<compile_context>
chip_gen: v7x
topology: tpu7x:2x2x1
jax: 0.10.0
libtpu: 0.0.40
codegen_flags: <defaults>
</compile_context>

<pallas_src>
import math

import jax
import jax.numpy as jnp
from jax.experimental import pallas as pl
from jax.experimental.pallas import tpu as pltpu


def _round_up(x, m):
    return ((x + m - 1) // m) * m


def _make_fused_kernel(num_layers, kernel_size, pad, tile, seq_len, c_ins,
                       im2col_first, compute_dtype, f32_highest):
    """Fused [Conv1d -> bias -> ReLU -> boundary-mask] x num_layers body."""
    K = kernel_size
    P = pad
    L = num_layers

    def kernel(*refs):
        x_ref = refs[0]            # (rows0, cols0) im2col  OR  (tile_in, C_in0)
        w_refs = refs[1:1 + L]     # each (K*C_in_l [padded], C_out), compute dt
        b_ref = refs[1 + L]        # (L, C_out) float32
        o_ref = refs[2 + L]        # (1, tile, C_out)
        slab_ref = refs[3 + L]     # (rows_max, slab_cols) compute dtype scratch

        t0 = pl.program_id(1) * tile     # global start position of this tile

        dot_kwargs = dict(preferred_element_type=jnp.float32)
        if f32_highest:
            dot_kwargs["precision"] = jax.lax.Precision.HIGHEST

        for l in range(L):
            r_out = tile + 2 * (L - 1 - l) * P
            c_in = c_ins[l]

            # ---- one long-contraction matmul per layer (no per-tap RMW) ----
            if l == 0:
                if im2col_first:
                    lhs = x_ref[...]                       # wrapper-built slab
                else:
                    for k in range(K):                     # in-kernel im2col
                        slab_ref[0:r_out, k * c_in:(k + 1) * c_in] = \
                            x_ref[k:k + r_out, :]
                    lhs = slab_ref[0:r_out, 0:K * c_in]
            else:
                lhs = slab_ref[0:r_out, 0:K * c_in]        # built by layer l-1

            y = jnp.dot(lhs, w_refs[l][...], **dot_kwargs)
            y = jnp.maximum(y + b_ref[l:l + 1, :], 0.0)    # bias + ReLU (f32)

            # ---- emulate PyTorch's per-layer zero padding of activations ----
            off = (L - 1 - l) * P
            if off > 0:
                pos = (t0 - off) + jax.lax.broadcasted_iota(
                    jnp.int32, (r_out, 1), 0)
                valid = (pos >= 0) & (pos < seq_len)
                y = jnp.where(valid, y, 0.0)

            if l == L - 1:
                o_ref[0] = y.astype(o_ref.dtype)
            else:
                # Write the NEXT layer's im2col slab directly (K shifted
                # copies); stays in VMEM, no extra h/acc scratch.
                r_next = tile + 2 * (L - 2 - l) * P
                c_next = c_ins[l + 1]
                yc = y.astype(compute_dtype)
                for k in range(K):
                    slab_ref[0:r_next, k * c_next:(k + 1) * c_next] = \
                        yc[k:k + r_next, :]

    return kernel


def encoder_prenet_forward(x, params, kernel_size, *, tile_t=512,
                           compute_dtype=jnp.bfloat16, out_dtype=None):
    """x: (B, T, input_dim) -> (B, T, conv_channels).

    Equivalent to PyTorch EncoderPrenet.forward (transpose -> [Conv1d(pad=K//2),
    ReLU]*L -> transpose back), computed in channels-last layout.  Matmul
    operands are `compute_dtype` (bf16 by default) with f32 accumulation.
    """
    assert kernel_size % 2 == 1, "only odd K matches PyTorch padding=K//2"
    B, T, c_in0 = x.shape
    L = len(params)
    K = kernel_size
    P = K // 2
    C = params[0][0].shape[2]
    out_dtype = x.dtype if out_dtype is None else out_dtype
    for l, (w, b) in enumerate(params):
        assert w.shape == (K, (c_in0 if l == 0 else C), C)
        assert b.shape == (C,)

    halo = L * P
    tile = max(8, min(_round_up(tile_t, 8), _round_up(T, 8)))
    nt = pl.cdiv(T, tile)
    t_round = nt * tile
    rows0 = tile + 2 * (L - 1) * P            # rows produced by layer 1
    itemsize_c = jnp.dtype(compute_dtype).itemsize
    sub = 16 if itemsize_c == 2 else 8        # bf16 packs 2 rows per sublane
    rows_max = _round_up(rows0, sub)
    im2col_first = (c_in0 < 128) and (K > 1)

    # ---- build zero-padded, halo'd input windows with ONE gather ----------
    starts = jnp.arange(nt, dtype=jnp.int32) * tile
    if im2col_first:
        idx_raw = (starts[:, None, None]
                   + jnp.arange(rows0, dtype=jnp.int32)[None, :, None]
                   + jnp.arange(K, dtype=jnp.int32)[None, None, :]
                   - halo)                                   # (NT, rows0, K)
        valid = (idx_raw >= 0) & (idx_raw < T)
        idx = jnp.clip(idx_raw, 0, T - 1)
        x_win = jnp.take(x, idx, axis=1)                     # (B,NT,rows0,K,Cin)
        x_win = jnp.where(valid[None, :, :, :, None], x_win, 0)
        x_win = x_win.reshape(B, nt, rows0, K * c_in0)
        cols0 = _round_up(K * c_in0, 128)                    # lane-dense LHS
        if cols0 != K * c_in0:
            x_win = jnp.pad(
                x_win, ((0, 0), (0, 0), (0, 0), (0, cols0 - K * c_in0)))
        x_win = x_win.astype(compute_dtype)
        x_rows, x_cols = rows0, cols0
    else:
        tile_in = tile + 2 * halo
        idx_raw = (starts[:, None]
                   + jnp.arange(tile_in, dtype=jnp.int32)[None, :] - halo)
        valid = (idx_raw >= 0) & (idx_raw < T)
        idx = jnp.clip(idx_raw, 0, T - 1)
        x_win = jnp.take(x, idx, axis=1)                     # (B,NT,tile_in,Cin)
        x_win = jnp.where(valid[None, :, :, None], x_win, 0)
        x_win = x_win.astype(compute_dtype)
        x_rows, x_cols = tile_in, c_in0

    c_ins = [w.shape[1] for (w, _) in params]
    w_flat = []
    for l, (w, _) in enumerate(params):                      # (K*C_in_l, C)
        wf = w.reshape(K * w.shape[1], C)
        if l == 0 and im2col_first and wf.shape[0] != x_cols:
            wf = jnp.pad(wf, ((0, x_cols - wf.shape[0]), (0, 0)))
        w_flat.append(wf.astype(compute_dtype))
    b_all = jnp.stack([b for (_, b) in params]).astype(jnp.float32)   # (L, C)

    slab_cols = K * max([C] + ([c_in0] if not im2col_first else []))

    kernel = _make_fused_kernel(
        L, K, P, tile, T, c_ins, im2col_first, compute_dtype,
        f32_highest=(jnp.dtype(compute_dtype) == jnp.float32))

    in_specs = [pl.BlockSpec((None, None, x_rows, x_cols),
                             lambda b, t: (b, t, 0, 0))]
    for wl in w_flat:
        in_specs.append(pl.BlockSpec(wl.shape, lambda b, t: (0, 0)))
    in_specs.append(pl.BlockSpec((L, C), lambda b, t: (0, 0)))
    out_specs = pl.BlockSpec((1, tile, C), lambda b, t: (b, t, 0))

    # ---- VMEM budget from the actual working set (+~30% headroom) ---------
    out_itemsize = jnp.dtype(out_dtype).itemsize
    ws = 2 * x_rows * x_cols * itemsize_c                        # input block
    ws += 2 * sum(int(wl.size) * itemsize_c for wl in w_flat)    # weights
    ws += 2 * L * C * 4                                          # bias
    ws += 2 * tile * C * out_itemsize                            # output block
    ws += rows_max * slab_cols * itemsize_c                      # slab scratch
    vmem_limit = min(max(int(ws * 1.3) + (2 << 20), 16 << 20), 96 << 20)

    flops = 2 * B * t_round * sum(K * ci * C for ci in c_ins)
    bytes_accessed = (int(x_win.size) * x_win.dtype.itemsize
                      + sum(int(wl.size) * wl.dtype.itemsize for wl in w_flat)
                      + int(b_all.size) * 4
                      + B * t_round * C * out_itemsize)

    out = pl.pallas_call(
        kernel,
        out_shape=jax.ShapeDtypeStruct((B, t_round, C), out_dtype),
        grid=(B, nt),
        in_specs=in_specs,
        out_specs=out_specs,
        scratch_shapes=[
            pltpu.VMEM((rows_max, slab_cols), compute_dtype),  # im2col slab
        ],
        compiler_params=pltpu.CompilerParams(
            dimension_semantics=("parallel", "parallel"),
            vmem_limit_bytes=vmem_limit),
        cost_estimate=pl.CostEstimate(flops=flops, transcendentals=0,
                                      bytes_accessed=bytes_accessed),
    )(x_win, *w_flat, b_all)

    if t_round != T:
        out = out[:, :T, :]
    return out


def init_encoder_prenet_params(key, input_dim, conv_channels, kernel_size,
                               num_layers=3):
    """Deterministic init matching nn.Conv1d shapes.

    PyTorch weight is (C_out, C_in, K); stored here tap-major as
    (K, C_in, C_out).  Weights: xavier_uniform_; biases: Conv1d default
    U(-1/sqrt(fan_in), 1/sqrt(fan_in)).
    """
    params = []
    c_in = input_dim
    for _ in range(num_layers):
        key, kw, kb = jax.random.split(key, 3)
        fan_in = c_in * kernel_size
        fan_out = conv_channels * kernel_size
        bound_w = math.sqrt(6.0 / (fan_in + fan_out))
        w = jax.random.uniform(
            kw, (kernel_size, c_in, conv_channels),
            minval=-bound_w, maxval=bound_w, dtype=jnp.float32)
        bound_b = 1.0 / math.sqrt(fan_in)
        b = jax.random.uniform(
            kb, (conv_channels,),
            minval=-bound_b, maxval=bound_b, dtype=jnp.float32)
        params.append((w, b))
        c_in = conv_channels
    return params


def encoder_prenet_reference(x, params, kernel_size):
    """Pure-JAX reference (same math as the PyTorch Conv1d+ReLU stack)."""
    P = kernel_size // 2
    y = x.astype(jnp.float32)
    for w, b in params:                      # w: (K, C_in, C_out)
        K = w.shape[0]
        T = y.shape[1]
        yp = jnp.pad(y, ((0, 0), (P, P), (0, 0)))
        acc = sum(jnp.einsum("btc,cd->btd", yp[:, k:k + T, :], w[k])
                  for k in range(K)) + b
        y = jnp.maximum(acc, 0.0)
    return y


if __name__ == "__main__":
    # ---- Config 1: skinny input (wrapper im2col first layer), multi-tile so
    # ---- both sequence boundaries + inter-tile halos are exercised. --------
    B, T = 2, 120
    input_dim, conv_channels, kernel_size, num_layers = 8, 128, 5, 3

    key = jax.random.PRNGKey(0)
    key, kx, kp, kx2, kp2 = jax.random.split(key, 5)
    x = jax.random.normal(kx, (B, T, input_dim), dtype=jnp.float32)
    params = init_encoder_prenet_params(
        kp, input_dim, conv_channels, kernel_size, num_layers)
    ref = encoder_prenet_reference(x, params, kernel_size)

    # Full-f32 compute path, small tile (2 time tiles -> boundary masking).
    out_f32 = encoder_prenet_forward(
        x, params, kernel_size, tile_t=64, compute_dtype=jnp.float32)
    out_f32 = jax.block_until_ready(out_f32)
    assert out_f32.shape == (B, T, conv_channels), out_f32.shape
    assert out_f32.dtype == x.dtype
    assert bool(jnp.allclose(out_f32, ref, atol=1e-2, rtol=1e-2))

    # Default path: bf16 matmul operands, f32 accumulation.
    out_bf = encoder_prenet_forward(x, params, kernel_size, tile_t=64)
    out_bf = jax.block_until_ready(out_bf)
    assert out_bf.shape == (B, T, conv_channels), out_bf.shape
    assert bool(jnp.all(jnp.isfinite(out_bf)))
    assert bool(jnp.all(out_bf >= 0.0))                 # ReLU output
    assert bool(jnp.allclose(out_bf, ref, atol=1e-1, rtol=1e-1))

    # Default (large) tile, f32: single tile covering the whole sequence.
    out_d = encoder_prenet_forward(
        x, params, kernel_size, compute_dtype=jnp.float32)
    out_d = jax.block_until_ready(out_d)
    assert bool(jnp.allclose(out_d, ref, atol=1e-2, rtol=1e-2))

    # ---- Config 2: wide first layer (in-kernel layer-0 im2col slab), odd T.
    B2, T2 = 1, 37
    in2, C2, K2, L2 = 128, 128, 3, 2
    x2 = jax.random.normal(kx2, (B2, T2, in2), dtype=jnp.float32)
    params2 = init_encoder_prenet_params(kp2, in2, C2, K2, L2)
    ref2 = encoder_prenet_reference(x2, params2, K2)
    out2 = encoder_prenet_forward(
        x2, params2, K2, tile_t=16, compute_dtype=jnp.float32)
    out2 = jax.block_until_ready(out2)
    assert out2.shape == (B2, T2, C2), out2.shape
    assert bool(jnp.allclose(out2, ref2, atol=1e-2, rtol=1e-2))

    print("KERNEL_OK")
</pallas_src>

<mosaic_0001>
module attributes {stable_mosaic.version = 11 : i64} {
  func.func @kernel(%arg0: i32, %arg1: i32, %arg2: memref<1x1x72x128xf32, #tpu.memory_space<vmem>>, %arg3: memref<128x128xf32, #tpu.memory_space<vmem>>, %arg4: memref<640x128xf32, #tpu.memory_space<vmem>>, %arg5: memref<640x128xf32, #tpu.memory_space<vmem>>, %arg6: memref<3x128xf32, #tpu.memory_space<vmem>>, %arg7: memref<1x64x128xf32, #tpu.memory_space<vmem>>, %arg8: memref<72x640xf32, #tpu.memory_space<vmem>>) attributes {dimension_semantics = [#tpu.dimension_semantics<parallel>, #tpu.dimension_semantics<parallel>], iteration_bounds = array<i64: 2, 2>, scalar_prefetch = 0 : i64, scratch_operands = 1 : i64, tpu.core_type = #tpu.core_type<tc>, window_params = [{transform_indices = @transform_0, window_bounds = array<i64: 1, 1, 72, 128>}, {pipeline_mode = #tpu.pipeline_mode<synchronous>, transform_indices = @transform_1, window_bounds = array<i64: 128, 128>}, {pipeline_mode = #tpu.pipeline_mode<synchronous>, transform_indices = @transform_2, window_bounds = array<i64: 640, 128>}, {pipeline_mode = #tpu.pipeline_mode<synchronous>, transform_indices = @transform_3, window_bounds = array<i64: 640, 128>}, {pipeline_mode = #tpu.pipeline_mode<synchronous>, transform_indices = @transform_4, window_bounds = array<i64: 3, 128>}, {transform_indices = @transform_5, window_bounds = array<i64: 1, 64, 128>}]} {
    %c64_i32 = arith.constant 64 : i32
    %0 = arith.muli %arg1, %c64_i32 : i32
    %c0 = arith.constant 0 : index
    %c0_0 = arith.constant 0 : index
    %c0_1 = arith.constant 0 : index
    %c0_2 = arith.constant 0 : index
    %1 = vector.load %arg2[%c0, %c0_0, %c0_1, %c0_2] : memref<1x1x72x128xf32, #tpu.memory_space<vmem>>, vector<1x1x72x128xf32>
    %2 = vector.shape_cast %1 : vector<1x1x72x128xf32> to vector<72x128xf32>
    %c0_3 = arith.constant 0 : index
    %c0_4 = arith.constant 0 : index
    %3 = vector.load %arg3[%c0_3, %c0_4] : memref<128x128xf32, #tpu.memory_space<vmem>>, vector<128x128xf32>
    %cst = arith.constant dense<0.000000e+00> : vector<72x128xf32>
    %4 = tpu.matmul %2, %3, %cst {dimension_numbers = #tpu.dot_dimension_numbers<[1], [0], [0], [1], [0, 0, 1, 1], [], []>, precision = #tpu.contract_precision<fp32>} : vector<72x128xf32>, vector<128x128xf32>, vector<72x128xf32> -> vector<72x128xf32>
    %c0_5 = arith.constant 0 : index
    %c0_6 = arith.constant 0 : index
    %5 = vector.load %arg6[%c0_5, %c0_6] : memref<3x128xf32, #tpu.memory_space<vmem>>, vector<1x128xf32>
    %6 = vector.broadcast %5 : vector<1x128xf32> to vector<72x128xf32>
    %7 = arith.addf %4, %6 : vector<72x128xf32>
    %cst_7 = arith.constant 0.000000e+00 : f32
    %8 = vector.broadcast %cst_7 : f32 to vector<72x128xf32>
    %9 = arith.maximumf %7, %8 : vector<72x128xf32>
    %c4_i32 = arith.constant 4 : i32
    %10 = arith.subi %0, %c4_i32 : i32
    %11 = tpu.iota {dimensions = array<i32: 0>} : vector<72x1xi32>
    %12 = vector.broadcast %10 : i32 to vector<72x1xi32>
    %13 = arith.addi %12, %11 : vector<72x1xi32>
    %c0_i32 = arith.constant 0 : i32
    %14 = vector.broadcast %c0_i32 : i32 to vector<72x1xi32>
    %15 = arith.cmpi sge, %13, %14 : vector<72x1xi32>
    %c120_i32 = arith.constant 120 : i32
    %16 = vector.broadcast %c120_i32 : i32 to vector<72x1xi32>
    %17 = arith.cmpi slt, %13, %16 : vector<72x1xi32>
    %18 = arith.andi %15, %17 : vector<72x1xi1>
    %cst_8 = arith.constant 0.000000e+00 : f32
    %19 = vector.shape_cast %18 : vector<72x1xi1> to vector<72x1xi1>
    %20 = vector.broadcast %19 : vector<72x1xi1> to vector<72x128xi1>
    %21 = vector.broadcast %cst_8 : f32 to vector<72x128xf32>
    %22 = arith.select %20, %9, %21 : vector<72x128xi1>, vector<72x128xf32>
    %23 = vector.extract_strided_slice %22 {offsets = [0, 0], sizes = [68, 128], strides = [1, 1]} : vector<72x128xf32> to vector<68x128xf32>
    %c0_9 = arith.constant 0 : index
    %c0_10 = arith.constant 0 : index
    %24 = vector.load %arg8[%c0_9, %c0_10] : memref<72x640xf32, #tpu.memory_space<vmem>>, vector<68x128xf32>
    tpu.vector_store %arg8[%c0_9, %c0_10], %23 {strides = array<i32>} : memref<72x640xf32, #tpu.memory_space<vmem>>, vector<68x128xf32>,
    %25 = vector.extract_strided_slice %22 {offsets = [1, 0], sizes = [68, 128], strides = [1, 1]} : vector<72x128xf32> to vector<68x128xf32>
    %c0_11 = arith.constant 0 : index
    %c128 = arith.constant 128 : index
    %26 = vector.load %arg8[%c0_11, %c128] : memref<72x640xf32, #tpu.memory_space<vmem>>, vector<68x128xf32>
    tpu.vector_store %arg8[%c0_11, %c128], %25 {strides = array<i32>} : memref<72x640xf32, #tpu.memory_space<vmem>>, vector<68x128xf32>,
    %27 = vector.extract_strided_slice %22 {offsets = [2, 0], sizes = [68, 128], strides = [1, 1]} : vector<72x128xf32> to vector<68x128xf32>
    %c0_12 = arith.constant 0 : index
    %c256 = arith.constant 256 : index
    %28 = vector.load %arg8[%c0_12, %c256] : memref<72x640xf32, #tpu.memory_space<vmem>>, vector<68x128xf32>
    tpu.vector_store %arg8[%c0_12, %c256], %27 {strides = array<i32>} : memref<72x640xf32, #tpu.memory_space<vmem>>, vector<68x128xf32>,
    %29 = vector.extract_strided_slice %22 {offsets = [3, 0], sizes = [68, 128], strides = [1, 1]} : vector<72x128xf32> to vector<68x128xf32>
    %c0_13 = arith.constant 0 : index
    %c384 = arith.constant 384 : index
    %30 = vector.load %arg8[%c0_13, %c384] : memref<72x640xf32, #tpu.memory_space<vmem>>, vector<68x128xf32>
    tpu.vector_store %arg8[%c0_13, %c384], %29 {strides = array<i32>} : memref<72x640xf32, #tpu.memory_space<vmem>>, vector<68x128xf32>,
    %31 = vector.extract_strided_slice %22 {offsets = [4, 0], sizes = [68, 128], strides = [1, 1]} : vector<72x128xf32> to vector<68x128xf32>
    %c0_14 = arith.constant 0 : index
    %c512 = arith.constant 512 : index
    %32 = vector.load %arg8[%c0_14, %c512] : memref<72x640xf32, #tpu.memory_space<vmem>>, vector<68x128xf32>
    tpu.vector_store %arg8[%c0_14, %c512], %31 {strides = array<i32>} : memref<72x640xf32, #tpu.memory_space<vmem>>, vector<68x128xf32>,
    %c0_15 = arith.constant 0 : index
    %c0_16 = arith.constant 0 : index
    %33 = vector.load %arg8[%c0_15, %c0_16] : memref<72x640xf32, #tpu.memory_space<vmem>>, vector<68x640xf32>
    %c0_17 = arith.constant 0 : index
    %c0_18 = arith.constant 0 : index
    %34 = vector.load %arg4[%c0_17, %c0_18] : memref<640x128xf32, #tpu.memory_space<vmem>>, vector<640x128xf32>
    %cst_19 = arith.constant dense<0.000000e+00> : vector<68x128xf32>
    %35 = tpu.matmul %33, %34, %cst_19 {dimension_numbers = #tpu.dot_dimension_numbers<[1], [0], [0], [1], [0, 0, 1, 1], [], []>, precision = #tpu.contract_precision<fp32>} : vector<68x640xf32>, vector<640x128xf32>, vector<68x128xf32> -> vector<68x128xf32>
    %c1 = arith.constant 1 : index
    %c0_20 = arith.constant 0 : index
    %36 = vector.load %arg6[%c1, %c0_20] : memref<3x128xf32, #tpu.memory_space<vmem>>, vector<1x128xf32>
    %37 = vector.broadcast %36 : vector<1x128xf32> to vector<68x128xf32>
    %38 = arith.addf %35, %37 : vector<68x128xf32>
    %cst_21 = arith.constant 0.000000e+00 : f32
    %39 = vector.broadcast %cst_21 : f32 to vector<68x128xf32>
    %40 = arith.maximumf %38, %39 : vector<68x128xf32>
    %c2_i32 = arith.constant 2 : i32
    %41 = arith.subi %0, %c2_i32 : i32
    %42 = tpu.iota {dimensions = array<i32: 0>} : vector<68x1xi32>
    %43 = vector.broadcast %41 : i32 to vector<68x1xi32>
    %44 = arith.addi %43, %42 : vector<68x1xi32>
    %c0_i32_22 = arith.constant 0 : i32
    %45 = vector.broadcast %c0_i32_22 : i32 to vector<68x1xi32>
    %46 = arith.cmpi sge, %44, %45 : vector<68x1xi32>
    %c120_i32_23 = arith.constant 120 : i32
    %47 = vector.broadcast %c120_i32_23 : i32 to vector<68x1xi32>
    %48 = arith.cmpi slt, %44, %47 : vector<68x1xi32>
    %49 = arith.andi %46, %48 : vector<68x1xi1>
    %cst_24 = arith.constant 0.000000e+00 : f32
    %50 = vector.shape_cast %49 : vector<68x1xi1> to vector<68x1xi1>
    %51 = vector.broadcast %50 : vector<68x1xi1> to vector<68x128xi1>
    %52 = vector.broadcast %cst_24 : f32 to vector<68x128xf32>
    %53 = arith.select %51, %40, %52 : vector<68x128xi1>, vector<68x128xf32>
    %54 = vector.extract_strided_slice %53 {offsets = [0, 0], sizes = [64, 128], strides = [1, 1]} : vector<68x128xf32> to vector<64x128xf32>
    %c0_25 = arith.constant 0 : index
    %c0_26 = arith.constant 0 : index
    %55 = vector.load %arg8[%c0_25, %c0_26] : memref<72x640xf32, #tpu.memory_space<vmem>>, vector<64x128xf32>
    tpu.vector_store %arg8[%c0_25, %c0_26], %54 {strides = array<i32>} : memref<72x640xf32, #tpu.memory_space<vmem>>, vector<64x128xf32>,
    %56 = vector.extract_strided_slice %53 {offsets = [1, 0], sizes = [64, 128], strides = [1, 1]} : vector<68x128xf32> to vector<64x128xf32>
    %c0_27 = arith.constant 0 : index
    %c128_28 = arith.constant 128 : index
    %57 = vector.load %arg8[%c0_27, %c128_28] : memref<72x640xf32, #tpu.memory_space<vmem>>, vector<64x128xf32>
    tpu.vector_store %arg8[%c0_27, %c128_28], %56 {strides = array<i32>} : memref<72x640xf32, #tpu.memory_space<vmem>>, vector<64x128xf32>,
    %58 = vector.extract_strided_slice %53 {offsets = [2, 0], sizes = [64, 128], strides = [1, 1]} : vector<68x128xf32> to vector<64x128xf32>
    %c0_29 = arith.constant 0 : index
    %c256_30 = arith.constant 256 : index
    %59 = vector.load %arg8[%c0_29, %c256_30] : memref<72x640xf32, #tpu.memory_space<vmem>>, vector<64x128xf32>
    tpu.vector_store %arg8[%c0_29, %c256_30], %58 {strides = array<i32>} : memref<72x640xf32, #tpu.memory_space<vmem>>, vector<64x128xf32>,
    %60 = vector.extract_strided_slice %53 {offsets = [3, 0], sizes = [64, 128], strides = [1, 1]} : vector<68x128xf32> to vector<64x128xf32>
    %c0_31 = arith.constant 0 : index
    %c384_32 = arith.constant 384 : index
    %61 = vector.load %arg8[%c0_31, %c384_32] : memref<72x640xf32, #tpu.memory_space<vmem>>, vector<64x128xf32>
    tpu.vector_store %arg8[%c0_31, %c384_32], %60 {strides = array<i32>} : memref<72x640xf32, #tpu.memory_space<vmem>>, vector<64x128xf32>,
    %62 = vector.extract_strided_slice %53 {offsets = [4, 0], sizes = [64, 128], strides = [1, 1]} : vector<68x128xf32> to vector<64x128xf32>
    %c0_33 = arith.constant 0 : index
    %c512_34 = arith.constant 512 : index
    %63 = vector.load %arg8[%c0_33, %c512_34] : memref<72x640xf32, #tpu.memory_space<vmem>>, vector<64x128xf32>
    tpu.vector_store %arg8[%c0_33, %c512_34], %62 {strides = array<i32>} : memref<72x640xf32, #tpu.memory_space<vmem>>, vector<64x128xf32>,
    %c0_35 = arith.constant 0 : index
    %c0_36 = arith.constant 0 : index
    %64 = vector.load %arg8[%c0_35, %c0_36] : memref<72x640xf32, #tpu.memory_space<vmem>>, vector<64x640xf32>
    %c0_37 = arith.constant 0 : index
    %c0_38 = arith.constant 0 : index
    %65 = vector.load %arg5[%c0_37, %c0_38] : memref<640x128xf32, #tpu.memory_space<vmem>>, vector<640x128xf32>
    %cst_39 = arith.constant dense<0.000000e+00> : vector<64x128xf32>
    %66 = tpu.matmul %64, %65, %cst_39 {dimension_numbers = #tpu.dot_dimension_numbers<[1], [0], [0], [1], [0, 0, 1, 1], [], []>, precision = #tpu.contract_precision<fp32>} : vector<64x640xf32>, vector<640x128xf32>, vector<64x128xf32> -> vector<64x128xf32>
    %c2 = arith.constant 2 : index
    %c0_40 = arith.constant 0 : index
    %67 = vector.load %arg6[%c2, %c0_40] : memref<3x128xf32, #tpu.memory_space<vmem>>, vector<1x128xf32>
    %68 = vector.broadcast %67 : vector<1x128xf32> to vector<64x128xf32>
    %69 = arith.addf %66, %68 : vector<64x128xf32>
    %cst_41 = arith.constant 0.000000e+00 : f32
    %70 = vector.broadcast %cst_41 : f32 to vector<64x128xf32>
    %71 = arith.maximumf %69, %70 : vector<64x128xf32>
    %c0_42 = arith.constant 0 : index
    %c0_43 = arith.constant 0 : index
    %c0_44 = arith.constant 0 : index
    %72 = vector.load %arg7[%c0_42, %c0_43, %c0_44] : memref<1x64x128xf32, #tpu.memory_space<vmem>>, vector<1x64x128xf32>
    %73 = vector.shape_cast %72 : vector<1x64x128xf32> to vector<64x128xf32>
    %74 = vector.shape_cast %71 : vector<64x128xf32> to vector<1x64x128xf32>
    tpu.vector_store %arg7[%c0_42, %c0_43, %c0_44], %74 {strides = array<i32>} : memref<1x64x128xf32, #tpu.memory_space<vmem>>, vector<1x64x128xf32>,
    return
  }
  func.func @transform_0(%arg0: i32, %arg1: i32) -> (i32, i32, i32, i32) {
    %c0_i32 = arith.constant 0 : i32
    %c0_i32_0 = arith.constant 0 : i32
    %c0_i32_1 = arith.constant 0 : i32
    return %arg0, %arg1, %c0_i32, %c0_i32_0 : i32, i32, i32, i32
  }
  func.func @transform_1(%arg0: i32, %arg1: i32) -> (i32, i32) {
    %c0_i32 = arith.constant 0 : i32
    %c0_i32_0 = arith.constant 0 : i32
    %c0_i32_1 = arith.constant 0 : i32
    return %c0_i32, %c0_i32_0 : i32, i32
  }
  func.func @transform_2(%arg0: i32, %arg1: i32) -> (i32, i32) {
    %c0_i32 = arith.constant 0 : i32
    %c0_i32_0 = arith.constant 0 : i32
    %c0_i32_1 = arith.constant 0 : i32
    return %c0_i32, %c0_i32_0 : i32, i32
  }
  func.func @transform_3(%arg0: i32, %arg1: i32) -> (i32, i32) {
    %c0_i32 = arith.constant 0 : i32
    %c0_i32_0 = arith.constant 0 : i32
    %c0_i32_1 = arith.constant 0 : i32
    return %c0_i32, %c0_i32_0 : i32, i32
  }
  func.func @transform_4(%arg0: i32, %arg1: i32) -> (i32, i32) {
    %c0_i32 = arith.constant 0 : i32
    %c0_i32_0 = arith.constant 0 : i32
    %c0_i32_1 = arith.constant 0 : i32
    return %c0_i32, %c0_i32_0 : i32, i32
  }
  func.func @transform_5(%arg0: i32, %arg1: i32) -> (i32, i32, i32) {
    %c0_i32 = arith.constant 0 : i32
    %c0_i32_0 = arith.constant 0 : i32
    return %arg0, %arg1, %c0_i32 : i32, i32, i32
  }
}

</mosaic_0001>

<bundles_post_ra>
// kernel: tpu_custom_call.1
= control target key start
LH: loop header
LB: loop body
LE: loop exit
PB: predicated region body
PF: predicated region fallthrough
CT: control target
= control target key end

     0   :  { %s20065_s0 = inlined_call_operand.hbm [shape: f32[2,2,72,128], index: 0, kind: input, shape index: {}]   ;;  %s20066_s1 = inlined_call_operand.hbm [shape: f32[128,128], index: 1, kind: input, shape index: {}]   ;;  %s20067_s2 = inlined_call_operand.hbm [shape: f32[640,128], index: 2, kind: input, shape index: {}]   ;;  %s20068_s3 = inlined_call_operand.hbm [shape: f32[640,128], index: 3, kind: input, shape index: {}]   ;;  %s20069_s4 = inlined_call_operand.vmem [shape: f32[3,128], index: 4, kind: input, shape index: {}]   ;;  %s20070_s5 = inlined_call_operand.hbm [shape: f32[2,128,128], index: 5, kind: output, shape index: {}]  }
   0x1   :  { %20853 = sst [smem:[#allocation166_spill]] %s20066_s1 }
   0x2   :  { %20854 = sst [smem:[#allocation167_spill]] %s20067_s2 }
   0x3   :  { %20855 = sst [smem:[#allocation168_spill]] %s20070_s5 }
   0x4   :  { %10 = vsyncpa [#allocation4], 0 }
   0x5   :  { %12 = vsyncpa [#allocation4 + $0x1], 0 }
   0x6   :  { %13 = vsyncpa [#allocation7], 0 }
   0x7   :  { %14 = vsyncpa [#allocation10], 0 }
   0x8   :  { %15 = vsyncpa [#allocation5], 0 }
   0x9   :  { %17 = vsyncpa [#allocation5 + $0x1], 0  ;;  %s13981_s18 = smov 0   ;;  %s13983_s19 = smov 0  }
   0xa   :  { %s13985_s20 = smov 0   ;;  %s13987_s21 = smov 0  }
   0xb   :  { %s13989_s22 = smov 0   ;;  %s13991_s23 = smov 0  }
   0xc   :  { %s13993_s24 = smov 0   ;;  %s13995_s25 = smov 0  }
   0xd LB: > { %20856 = sst [smem:[#allocation16_spill]] %s13909_s18  ;;  %s9252_s26 = sadd.s32 4294967295, %s13937_s25   ;;  %s13937_s25 = sphi %s13995_s25, %s23_s25   ;;  %s13933_s24 = sphi %s13993_s24, %s22209_s24   ;;  %s13929_s23 = sphi %s13991_s23, %s22208_s23   ;;  %s13925_s22 = sphi %s13989_s22, %s22207_s22   ;;  %s13921_s21 = sphi %s13987_s21, %s22206_s21   ;;  %s13917_s20 = sphi %s13985_s20, %s22205_s20   ;;  %s13913_s19 = sphi %s13983_s19, %s22204_s19   ;;  %s13909_s18 = sphi %s13981_s18, %s22203_s18  }
   0xe   : > { %20857 = sst [smem:[#allocation17_spill]] %s13925_s22  ;;  %s9253_s27 = sadd.s32 4294967294, %s13937_s25  }
   0xf   : > { %p57_p0 = scmp.ne.s32.totalorder %s13913_s19, %s13909_s18  ;;  %p14025_p1 = scmp.eq.s32.totalorder %s9252_s26, 0 }
  0x10   : > { %p14029_p2 = scmp.eq.s32.totalorder %s9252_s26, 3  ;;  %p173_p3 = scmp.eq.s32.totalorder %s9253_s27, 3 }
  0x11   : > { %s20858_s28 = scalar_select %p14025_p1, 1, 0 }
  0x12   : > { %s20859_s29 = scalar_select %p14029_p2, 1, 0 }
  0x13   : > { %p14035_p4 = por %p14025_p1, %p57_p0  ;;  %p9254_p5 = scmp.ge.s32.totalorder %s13937_s25, 1 }
  0x14   : > { %p14040_p6 = por %p173_p3, %p57_p0  ;;  %p180_p7 = scmp.lt.s32.totalorder %s13937_s25, 5 }
  0x15   : > { %s20860_s30 = scalar_select %p14035_p4, 1, 0 }
  0x16   : > { %s20861_s6 = scalar_select %p14040_p6, 1, 0 }
  0x17   : > { %p14045_p8 = pnand %p9254_p5, %p180_p7  ;;  %s13939_s8 = smov [#allocation6]  }
  0x18   : > { %20862 = sst [smem:[#allocation18_spill]] %s20861_s6  ;;  %s192_s9 = sshll.u32 %s13939_s8, 4  ;;  %s14049_s9 = int_to_ptr.vmem [resolvable:$true] %s192_s9 }
  0x19   : > { %s20863_s7 = scalar_select %p14045_p8, 1, 0 }
  0x1a   : > { %p13603_p9 = pneg %p14045_p8  ;;  %s13940_s11 = smov [#allocation8]  }
  0x1b   : > { %s205_s12 = sshll.u32 %s13940_s11, 4  ;;  %s13941_s13 = smov [#allocation9]   ;;  %s14059_s12 = int_to_ptr.vmem [resolvable:$true] %s205_s12 }
  0x1c   : > { %p14055_p10 = pnand %p13603_p9, %p14025_p1  ;;  %s14061_s14 = sshll.u32 %s13941_s13, 4  ;;  %s219_s14 = int_to_ptr.vmem [resolvable:$true] %s14061_s14 }
  0x1d   : > { %s20865_s1 = sld [smem:[#allocation166_spill]] }
  0x1e   : > { %p14071_p12 = pneg %p14055_p10 }
  0x23   : > { %s13717_s17 = scalar_lea.hbm %s20865_s1, 2048 }
  0x24   : > { %p13718_p11 = scmp.ne.s32.totalorder %s20865_s1, %s13717_s17  ;;  %p13724_p3 = scmp.lt.u32.totalorder %s13717_s17, %s20865_s1 }
  0x26   : > { %p13720_p13 = pnand %p14071_p12, %p13718_p11 }
  0x28   : > { %p13721_p0 = pneg %p13720_p13 }
  0x2a   : > { %p13726_p5 = pnand %p13724_p3, %p13721_p0 }
  0x2c   : > { %13729 = shalt.err (!%p13726_p5)
}
  0x2d   : > { %s13730_s15 = scalar_lea.vmem %s14049_s9, 2048  ;;  %p13738_p1 = scmp.lt.s32.totalorder %s14049_s9, %s14049_s9 }
  0x2e   : > { %p13731_p7 = scmp.ne.s32.totalorder %s14049_s9, %s13730_s15  ;;  %p13739_p4 = scmp.lt.s32.totalorder %s13730_s15, %s13730_s15 }
  0x30   : > { %p13733_p9 = pnand %p13731_p7, %p14071_p12  ;;  %p13740_p11 = por %p13739_p4, %p13738_p1 }
  0x32   : > { %p13734_p6 = pneg %p13733_p9 }
  0x34   : > { %p13741_p13 = pnand %p13740_p11, %p13734_p6 }
  0x36   : > { %13744 = shalt.err (!%p13741_p13)
}
  0x37   : > { %s20078_s16 = smov 128   ;;  %s20079_s17 = smov 8  }
  0x38   : > { %13606 = dma.hbm_to_vmem [thread:$0]  (!%p14055_p10), %s20865_s1, 2048, %s14049_s9, [#allocation7], %s20078_s16, %s20078_s16, %s20079_s17  }
  0x39   : > { %s20867_s2 = sld [smem:[#allocation167_spill]] }
  0x3f   : > { %s13745_s15 = scalar_lea.hbm %s20867_s2, 10240 }
  0x40   : > { %p13746_p1 = scmp.ne.s32.totalorder %s20867_s2, %s13745_s15  ;;  %p13752_p0 = scmp.lt.u32.totalorder %s13745_s15, %s20867_s2 }
  0x42   : > { %p13748_p4 = pnand %p13746_p1, %p14071_p12 }
  0x44   : > { %p13749_p6 = pneg %p13748_p4 }
  0x46   : > { %p13754_p3 = pnand %p13752_p0, %p13749_p6 }
  0x48   : > { %13757 = shalt.err (!%p13754_p3)
}
  0x49   : > { %s13758_s9 = scalar_lea.vmem %s14059_s12, 10240  ;;  %p13766_p11 = scmp.lt.s32.totalorder %s14059_s12, %s14059_s12 }
  0x4a   : > { %p13759_p5 = scmp.ne.s32.totalorder %s14059_s12, %s13758_s9  ;;  %p13767_p13 = scmp.lt.s32.totalorder %s13758_s9, %s13758_s9 }
  0x4c   : > { %p13761_p7 = pnand %p13759_p5, %p14071_p12  ;;  %p13768_p1 = por %p13767_p13, %p13766_p11 }
  0x4e   : > { %p13762_p9 = pneg %p13761_p7 }
  0x50   : > { %p13769_p4 = pnand %p13768_p1, %p13762_p9 }
  0x52   : > { %13772 = shalt.err (!%p13769_p4)
}
  0x53   : > { %13609 = dma.hbm_to_vmem [thread:$0]  (!%p14055_p10), %s20867_s2, 10240, %s14059_s12, [#allocation7], %s20078_s16, %s20078_s16, %s20079_s17  }
  0x54   : > { %s13773_s26 = scalar_lea.hbm %s20068_s3, 10240 }
  0x55   : > { %p13774_p6 = scmp.ne.s32.totalorder %s20068_s3, %s13773_s26  ;;  %p13780_p5 = scmp.lt.u32.totalorder %s13773_s26, %s20068_s3 }
  0x57   : > { %p13776_p0 = pnand %p13774_p6, %p14071_p12 }
  0x59   : > { %p13777_p3 = pneg %p13776_p0 }
  0x5b   : > { %p13782_p7 = pnand %p13780_p5, %p13777_p3 }
  0x5d   : > { %13785 = shalt.err (!%p13782_p7)
}
  0x5e   : > { %s13786_s9 = scalar_lea.vmem %s219_s14, 10240  ;;  %p13794_p1 = scmp.lt.s32.totalorder %s219_s14, %s219_s14 }
  0x5f   : > { %p13787_p9 = scmp.ne.s32.totalorder %s219_s14, %s13786_s9  ;;  %p13795_p4 = scmp.lt.s32.totalorder %s13786_s9, %s13786_s9 }
  0x61   : > { %p13789_p11 = pnand %p13787_p9, %p14071_p12  ;;  %p13796_p8 = por %p13795_p4, %p13794_p1 }
  0x63   : > { %p13790_p13 = pneg %p13789_p11 }
  0x65   : > { %p13797_p2 = pnand %p13796_p8, %p13790_p13 }
  0x67   : > { %13800 = shalt.err (!%p13797_p2)
}
  0x68   : > { %13612 = dma.hbm_to_vmem [thread:$0]  (!%p14055_p10), %s20068_s3, 10240, %s219_s14, [#allocation10], %s20078_s16, %s20078_s16, %s20079_s17  }
  0x69   : > { %s32_s10 = sadd.s32 1, %s13929_s23  ;;  %s35_s8 = sadd.s32 1, %s13933_s24 }
  0x6a   : > { %p33_p2 = scmp.ge.s32.totalorder %s32_s10, 2  ;;  %s44_s18 = sadd.s32 1, %s13917_s20 }
  0x6b   : > { %p51_p8 = scmp.ne.s32.totalorder %s13917_s20, %s13913_s19  ;;  %p52_p12 = scmp.eq.s32.totalorder %s13937_s25, 0 }
  0x6c   : > { %s22211_s10 = smov (%p33_p2, %s32_s10), 0  ;;  %s22213_s8 = smov (!%p33_p2, %s35_s8), %s13933_s24 }
  0x6d   : > { %s40_s22 = ssub.s32 %s13929_s23, %s22211_s10  ;;  %p37_p6 = scmp.ge.s32.totalorder %s22213_s8, 2 }
  0x6e   : > { %p20868_p0 = scmp.ne.s32.totalorder %s20859_s29, 0  ;;  %p53_p10 = por %p52_p12, %p51_p8 }
  0x6f   : > { %p13624_p5 = scmp.lt.s32.totalorder %s13937_s25, 4  ;;  %s22215_s8 = smov (%p37_p6, %s22213_s8), 0 }
  0x70   : > { %p14156_p3 = por %p20868_p0, %p51_p8  ;;  %s235_s14 = sand.u32 1, %s13917_s20  }
  0x71   : > { %s13584_s26 = smul.u32 9, %s13929_s23  ;;  %s39_s27 = ssub.s32 %s13933_s24, %s22215_s8 }
  0x72   : > { %s41_s11 = sor.u32 %s40_s22, %s39_s27  ;;  %s13583_s13 = smul.u32 72, %s235_s14 }
  0x73   : > { %p42_p7 = scmp.eq.s32.totalorder %s41_s11, 0  ;;  %s13585_s15 = smul.u32 18, %s13933_s24 }
  0x74   : > { %p14168_p9 = pnand %p13624_p5, %p53_p10  ;;  %s239_s5 = scalar_lea.vmem [#allocation3], %s13583_s13 }
  0x75   : > { %s14173_s29 = scalar_select %p42_p7, %s13917_s20, %s44_s18  }
  0x76   : > { %s245_s12 = sadd.s32 %s13585_s15, %s13584_s26  ;;  %s248_s16 = sshll.u32 %s239_s5, 4  ;;  %s14175_s16 = int_to_ptr.vmem [resolvable:$true] %s248_s16 }
  0x77   : > { %s9259_s17 = sshll.u32 %s245_s12, 7  ;;  %s14182_s27 = scalar_lea.sflag [#allocation4], %s235_s14 }
  0x78   : > { %s14180_s22 = scalar_lea.hbm %s20065_s0, %s9259_s17  ;;  %p13803_p13 = pneg %p14168_p9 }
  0x79   : > { %s13801_s11 = scalar_lea.hbm %s14180_s22, 1152  ;;  %s13806_s1 = scalar_lea.hbm %s20065_s0, 4608 }
  0x7a   : > { %p13802_p11 = scmp.ne.s32.totalorder %s14180_s22, %s13801_s11  ;;  %p13807_p2 = scmp.lt.u32.totalorder %s14180_s22, %s20065_s0 }
  0x7b   : > { %p13808_p8 = scmp.lt.u32.totalorder %s13806_s1, %s13801_s11  ;;  %p13810_p6 = scmp.lt.u32.totalorder %s13801_s11, %s14180_s22 }
  0x7c   : > { %p13804_p1 = pnand %p13803_p13, %p13802_p11 }
  0x7d   : > { %p13809_p12 = por %p13808_p8, %p13807_p2 }
  0x7e   : > { %p13805_p4 = pneg %p13804_p1 }
  0x7f   : > { %p13811_p0 = por %p13810_p6, %p13809_p12 }
  0x81   : > { %p13812_p10 = pnand %p13811_p0, %p13805_p4 }
  0x83   : > { %13815 = shalt.err (!%p13812_p10)
}
  0x84   : > { %s13816_s14 = scalar_lea.vmem %s14175_s16, 1152  ;;  %s13944_s13 = smov [#allocation3]  }
  0x85   : > { %p13817_p5 = scmp.ne.s32.totalorder %s14175_s16, %s13816_s14  ;;  %s13821_s15 = sshll.u32 %s13944_s13, 4  ;;  %s13822_s15 = int_to_ptr.vmem [resolvable:$false] %s13821_s15 }
  0x86   : > { %s13823_s12 = scalar_lea.vmem %s13822_s15, 2304  ;;  %p13824_p1 = scmp.lt.s32.totalorder %s14175_s16, %s13822_s15 }
  0x87   : > { %p13819_p7 = pnand %p13817_p5, %p13803_p13  ;;  %p13825_p2 = scmp.lt.s32.totalorder %s13823_s12, %s13816_s14 }
  0x89   : > { %p13820_p11 = pneg %p13819_p7  ;;  %p13826_p8 = por %p13825_p2, %p13824_p1 }
  0x8b   : > { %p13827_p12 = pnand %p13826_p8, %p13820_p11 }
  0x8d   : > { %13830 = shalt.err (!%p13827_p12)
}
  0x8e   : > { %s20871_s5 = smov 8   ;;  %s20872_s11 = smov 128  }
  0x8f   : > { %13616 = dma.hbm_to_vmem [thread:$0]  (!%p14168_p9), %s14180_s22, 1152, %s14175_s16, %s14182_s27, %s20872_s11, %s20872_s11, %s20871_s5  }
  0x90   : > { %p20873_p13 = scmp.ne.s32.totalorder %s20863_s7, 0 }
  0x92   : > { %260 = sbr.rel (%p20873_p13) target bundleno = 1943 (0x797), region = 40 }
  0x99   : > { %s14216_s18 = sand.u32 1, %s13913_s19   ;;  %p20874_p4 = scmp.ne.s32.totalorder %s20860_s30, 0 }
  0x9a   : > { %s13586_s26 = smul.u32 72, %s14216_s18  ;;  %s263_s1 = scalar_lea.sflag [#allocation4], %s14216_s18 }
  0x9c   : > { %s14220_s2 = scalar_lea.vmem [#allocation3], %s13586_s26 }
  0x9d   : > { %13892 = dma.done.wait (%p20874_p4), %s263_s1, 1152  }
  0x9e   : > { %13894 = vsyncadd (%p20874_p4), %s263_s1, 4294966144  ;;  %p20875_p9 = scmp.ne.s32.totalorder %s20858_s28, 0 }
  0xa0   : > { %13896 = dma.done.wait (%p20875_p9), [#allocation7], 12288  }
  0xa1   : > { %13898 = vsyncadd (%p20875_p9), [#allocation7], 4294955008 }
  0xa2   : > { %13900 = dma.done.wait (%p20875_p9), [#allocation10], 10240  }
  0xa3   : > { %13902 = vsyncadd (%p20875_p9), [#allocation10], 4294957056  ;;  %v20087_v0 = vmov 0.0|0.0   ;;  %vm13946_vm0 = vmmov 0   ;;  %v20089_v1 = vmov 0.0   ;;  %v316_v2 = vld [vmem:[#allocation6] sm:$0xff] }
  0xa4   : > { %12073 = vmatprep.subr.bf16.mxu0 %v20087_v0  ;;  %11133 = vmatprep.mubr.msk.f32.mxu0 %vm13946_vm0, %v20089_v1  ;;  %v317_v3 = vld [vmem:[#allocation6 + $0x8] sm:$0xff]  ;;  %v318_v4 = vld [vmem:[#allocation6 + $0x10] sm:$0xff]  ;;  %v338_v5 = vand.u32 4294901760, %v316_v2  ;;  %v319_v7 = vld [vmem:[#allocation6 + $0x18] sm:$0xff]  ;;  %s9265_s28 = sshll.u32 %s13921_s21, 6  ;;  %vm1424_vm5 = vcmask 1046528  }
  0xa5   : > { %v341_v6 = vand.u32 4294901760, %v317_v3  ;;  %v344_v8 = vand.u32 4294901760, %v318_v4  ;;  %v347_v9 = vand.u32 4294901760, %v319_v7  ;;  %v320_v10 = vld [vmem:[#allocation6 + $0x20] sm:$0xff]  ;;  %v321_v11 = vld [vmem:[#allocation6 + $0x28] sm:$0xff]  ;;  %v322_v16 = vld [vmem:[#allocation6 + $0x30] sm:$0xff] }
  0xa6   : > { %v350_v14 = vand.u32 4294901760, %v320_v10  ;;  %v353_v15 = vand.u32 4294901760, %v321_v11  ;;  %v14243_v17 = vld [vmem:[#allocation6 + $0x38] sm:$0xff]  ;;  %v356_v19 = vand.u32 4294901760, %v322_v16  ;;  %v14250_v21 = vld [vmem:[#allocation6 + $0x40] sm:$0xff]  ;;  %v14252_v22 = vld [vmem:[#allocation6 + $0x48] sm:$0xff]  ;;  %v14260_v27 = vsub.f32 %v316_v2, %v338_v5 }
  0xa7   : > { %v14237_v12 = vpack.c.bf16 %v341_v6, %v338_v5  ;;  %v14240_v13 = vpack.c.bf16 %v347_v9, %v344_v8  ;;  %v359_v20 = vand.u32 4294901760, %v14243_v17  ;;  %v362_v24 = vand.u32 4294901760, %v14250_v21  ;;  %v307_v26 = vld [vmem:[%s14220_s2] sm:$0xff]  ;;  %v308_v32 = vld [vmem:[%s14220_s2 + $0x8] sm:$0xff]  ;;  %v309_v36 = vld [vmem:[%s14220_s2 + $0x10] sm:$0xff]  ;;  %s9267_s30 = sadd.s32 4294967292, %s9265_s28 }
  0xa8   : > { %v14246_v18 = vpack.c.bf16 %v353_v15, %v350_v14  ;;  %v365_v25 = vand.u32 4294901760, %v14252_v22  ;;  %v14262_v28 = vsub.f32 %v317_v3, %v341_v6  ;;  %v326_v29 = vld [vmem:[#allocation6 + $0x50] sm:$0xff]  ;;  %v14265_v30 = vld [vmem:[#allocation6 + $0x58] sm:$0xff]  ;;  %v14267_v31 = vand.u32 4294901760, %v307_v26  ;;  %v14278_v37 = vld [vmem:[#allocation6 + $0x60] sm:$0xff]  ;;  %s9269_s27 = sadd.s32 4294967294, %s9265_s28 }
  0xa9   : > { %12075 = vmatpush3.bf16.msra.mxu0 %v14237_v12  ;;  %v14255_v23 = vpack.c.bf16 %v359_v20, %v356_v19  ;;  %v368_v34 = vand.u32 4294901760, %v326_v29  ;;  %v371_v35 = vand.u32 4294901760, %v14265_v30  ;;  %v14280_v38 = vld [vmem:[#allocation6 + $0x68] sm:$0xff]  ;;  %v511_v39 = vand.u32 4294901760, %v14260_v27  ;;  %v330_v51 = vld [vmem:[#allocation6 + $0x70] sm:$0xff]  ;;  %v331_v52 = vld [vmem:[#allocation6 + $0x78] sm:$0xff] }
  0xaa   : > { %12076 = vmatprep.subr.bf16.mxu0 %v20087_v0  ;;  %v14273_v33 = vpack.c.bf16 %v365_v25, %v362_v24  ;;  %v518_v40 = vand.u32 4294901760, %v14262_v28  ;;  %v14284_v41 = vsub.f32 %v318_v4, %v344_v8  ;;  %v14286_v42 = vsub.f32 %v319_v7, %v347_v9  ;;  %v310_v3 = vld [vmem:[%s14220_s2 + $0x18] sm:$0xff]  ;;  %v311_v7 = vld [vmem:[%s14220_s2 + $0x20] sm:$0xff]  ;;  %s9264_s13 = sshll.u32 %s14216_s18, 6  ;;  %s22196_s15 = sld [smem:[#allocation17_spill]] }
  0xab   : > { %v14288_v43 = vand.u32 4294901760, %v308_v32  ;;  %v14290_v44 = vsub.f32 %v320_v10, %v350_v14  ;;  %v14293_v45 = vsub.f32 %v307_v26, %v14267_v31  ;;  %v14295_v46 = vand.u32 4294901760, %v309_v36  ;;  %s19993_s12 = scalar_lea.vmem [#allocation11], %s9264_s13  ;;  %s9272_s5 = sshll.u32 %s13921_s21, 3 }
  0xac   : > { %v14297_v47 = vsub.f32 %v321_v11, %v353_v15  ;;  %v14302_v48 = vpack.c.bf16 %v371_v35, %v368_v34  ;;  %v374_v49 = vand.u32 4294901760, %v14278_v37  ;;  %v377_v50 = vand.u32 4294901760, %v14280_v38  ;;  %s9133_s1 = sshll.u32 %s19993_s12, 4  ;;  %s9118_s16 = scalar_lea.sflag [#allocation5], %s14216_s18  ;;  %s20003_s1 = int_to_ptr.vmem [resolvable:$true] %s9133_s1 }
  0xad   : > { %12078 = vmatpush3.bf16.msra.mxu0 %v14240_v13  ;;  %v512_v53 = vsub.f32 %v14260_v27, %v511_v39  ;;  %v519_v54 = vsub.f32 %v14262_v28, %v518_v40  ;;  %v14314_v55 = vsub.f32 %v308_v32, %v14288_v43  ;;  %v20086_v56 = vand.u32 4294901760, %v14284_v41  ;;  %s13831_s9 = scalar_lea.vmem %s20003_s1, 1024  ;;  %s13948_s22 = smov [#allocation11]  }
  0xae   : > { %12079 = vmatprep.subr.bf16.mxu0 %v20087_v0  ;;  %v20085_v57 = vand.u32 4294901760, %v14286_v42  ;;  %v20080_v58 = vand.u32 4294901760, %v14293_v45  ;;  %v14320_v59 = vsub.f32 %v309_v36, %v14295_v46  ;;  %v20082_v60 = vand.u32 4294901760, %v14290_v44  ;;  %p13832_p6 = scmp.ne.s32.totalorder %s20003_s1, %s13831_s9 }
  0xaf   : > { %v14324_v61 = vpack.c.bf16 %v377_v50, %v374_v49  ;;  %v380_v62 = vand.u32 4294901760, %v330_v51  ;;  %v383_v63 = vand.u32 4294901760, %v331_v52  ;;  %v20081_v2 = vand.u32 4294901760, %v14297_v47 }
  0xb0   : > { %v14328_v4 = vsub.f32 %v322_v16, %v356_v19  ;;  %v513_v5 = vand.u32 4294901760, %v512_v53  ;;  %v520_v6 = vand.u32 4294901760, %v519_v54  ;;  %v14333_v8 = vsub.f32 %v14243_v17, %v359_v20  ;;  %s9273_s11 = sshll.u32 %s22196_s15, 4  ;;  %p13833_p0 = pnand %p13832_p6, %p14156_p3 }
  0xb1   : > { %12081 = vmatpush3.bf16.msra.mxu0 %v14246_v18  ;;  %v20084_v9 = vand.u32 4294901760, %v14314_v55  ;;  %v526_v10 = vsub.f32 %v14284_v41, %v20086_v56  ;;  %v533_v11 = vsub.f32 %v14286_v42, %v20085_v57  ;;  %v421_v14 = vsub.f32 %v14293_v45, %v20080_v58  ;;  %v313_v56 = vld [vmem:[%s14220_s2 + $0x30] sm:$0xff]  ;;  %s9130_s26 = sadd.s32 %s9273_s11, %s9272_s5 }
  0xb2   : > { %12082 = vmatprep.subr.bf16.mxu0 %v20087_v0  ;;  %v20083_v15 = vand.u32 4294901760, %v14320_v59  ;;  %v540_v16 = vsub.f32 %v14290_v44, %v20082_v60  ;;  %v14349_v17 = vand.u32 4294901760, %v310_v3  ;;  %v14352_v19 = vsub.f32 %v14250_v21, %v362_v24  ;;  %s9274_s21 = sshll.u32 %s9130_s26, 7  ;;  %p13834_p10 = pneg %p13833_p0 }
  0xb3   : > { %v14355_v20 = vpack.c.bf16 %v383_v63, %v380_v62  ;;  %v547_v26 = vsub.f32 %v14297_v47, %v20081_v2  ;;  %v14360_v32 = vand.u32 4294901760, %v311_v7  ;;  %v14365_v36 = vsub.f32 %v14252_v22, %v365_v25 }
  0xb4   : > { %v14367_v53 = vsub.f32 %v326_v29, %v368_v34  ;;  %v12098_v21 = vpack.c.bf16 %v520_v6, %v513_v5  ;;  %v431_v24 = vsub.f32 %v14314_v55, %v20084_v9  ;;  %v527_v54 = vand.u32 4294901760, %v526_v10 }
  0xb5   : > { %12084 = vmatpush3.bf16.msra.mxu0 %v14255_v23  ;;  %v534_v58 = vand.u32 4294901760, %v533_v11  ;;  %v553_v2 = vand.u32 4294901760, %v14328_v4  ;;  %v422_v60 = vand.u32 4294901760, %v421_v14  ;;  %v441_v22 = vsub.f32 %v14320_v59, %v20083_v15  ;;  %v312_v11 = vld [vmem:[%s14220_s2 + $0x28] sm:$0xff] }
  0xb6   : > { %12085 = vmatprep.subr.bf16.mxu0 %v20087_v0  ;;  %v541_v25 = vand.u32 4294901760, %v540_v16  ;;  %v14378_v29 = vsub.f32 %v310_v3, %v14349_v17  ;;  %v548_v34 = vand.u32 4294901760, %v547_v26  ;;  %v560_v5 = vand.u32 4294901760, %v14333_v8 }
  0xb7   : > { %v14383_v6 = vsub.f32 %v311_v7, %v14360_v32  ;;  %v567_v10 = vand.u32 4294901760, %v14352_v19  ;;  %v14390_v14 = vsub.f32 %v14265_v30, %v371_v35  ;;  %v14393_v3 = vsub.f32 %v14278_v37, %v374_v49 }
  0xb8   : > { %v14396_v16 = vsub.f32 %v14280_v38, %v377_v50  ;;  %v14398_v26 = vsub.f32 %v330_v51, %v380_v62  ;;  %v14401_v7 = vsub.f32 %v331_v52, %v383_v63  ;;  %v432_v15 = vand.u32 4294901760, %v431_v24 }
  0xb9   : > { %12087 = vmatpush3.bf16.msra.mxu0 %v14273_v33  ;;  %v12101_v9 = vpack.c.bf16 %v534_v58, %v527_v54  ;;  %v554_v57 = vsub.f32 %v14328_v4, %v553_v2  ;;  %v442_v30 = vand.u32 4294901760, %v441_v22  ;;  %v20091_v35 = vand.u32 4294901760, %v14378_v29 }
  0xba   : > { %12088 = vmatprep.subr.bf16.mxu0 %v20087_v0  ;;  %v574_v37 = vand.u32 4294901760, %v14365_v36  ;;  %v14407_v49 = vand.u32 4294901760, %v312_v11  ;;  %v12104_v38 = vpack.c.bf16 %v548_v34, %v541_v25  ;;  %v561_v50 = vsub.f32 %v14333_v8, %v560_v5 }
  0xbb   : > { %v568_v52 = vsub.f32 %v14352_v19, %v567_v10  ;;  %v14415_v58 = vand.u32 4294901760, %v313_v56  ;;  %v588_v62 = vand.u32 4294901760, %v14390_v14  ;;  %v14423_v63 = vpack.c.bf16 %v518_v40, %v511_v39 }
  0xbc   : > { %v20878_v24 = vand.u32 4294901760, %v14286_v42  ;;  %v20880_v22 = vand.u32 4294901760, %v14290_v44  ;;  %v20881_v25 = vand.u32 4294901760, %v14297_v47  ;;  %v14437_v51 = vpack.c.bf16 %v560_v5, %v553_v2  ;;  %v314_v5 = vld [vmem:[%s14220_s2 + $0x38] sm:$0xff] }
  0xbd   : > { %12090 = vmatpush3.bf16.msra.mxu0 %v14302_v48  ;;  %20876 = vst [vmem:[#allocation19_spill] sm:$0xff] %v14423_v63  ;;  %v451_v39 = vsub.f32 %v14378_v29, %v20091_v35  ;;  %v555_v40 = vand.u32 4294901760, %v554_v57  ;;  %v575_v2 = vsub.f32 %v14365_v36, %v574_v37  ;;  %v569_v57 = vand.u32 4294901760, %v568_v52 }
  0xbe   : > { %12091 = vmatprep.subr.bf16.mxu0 %v20087_v0  ;;  %v14435_v34 = vpack.c.bf16 %v20881_v25, %v20880_v22  ;;  %20883 = vst [vmem:[#allocation22_spill] sm:$0xff] %v14437_v51  ;;  %v562_v22 = vand.u32 4294901760, %v561_v50  ;;  %v20887_v25 = vmov 0.0|0.0   ;;  %v589_v51 = vsub.f32 %v14390_v14, %v588_v62 }
  0xbf   : > { %vm1460_vm6 = vcmask 1045504   ;;  %vm1496_vm7 = vcmask 1044480   ;;  %vm1532_vm8 = vcmask 1043456  }
  0xc0   : > { %20882 = vst [vmem:[#allocation21_spill] sm:$0xff] %v14435_v34  ;;  %v14467_v34 = vand.u32 4294901760, %v314_v5  ;;  %v12107_v52 = vpack.c.bf16 %v562_v22, %v555_v40  ;;  %v590_v40 = vand.u32 4294901760, %v589_v51 }
  0xc1   : > { %12093 = vmatpush3.bf16.msra.mxu0 %v14324_v61 }
  0xc2   : > { %12094 = vmatprep.subr.bf16.mxu0 %v20087_v0  ;;  %v14482_v22 = vsub.f32 %v314_v5, %v14467_v34 }
  0xc5   : > { %12096 = vmatpush3.bf16.msra.mxu0 %v14355_v20 }
  0xc6   : > { %12097 = vmatprep.subr.bf16.mxu0 %v20087_v0 }
  0xc8   : > { %11134 = vmatmul.mubr.f32.vlgmr.msra.gmra.mrb[0].mxu0 %v422_v60  ;;  %v581_v60 = vand.u32 4294901760, %v14367_v53 }
  0xc9   : > { %12099 = vmatpush3.bf16.msra.mxu0 %v12098_v21  ;;  %11136 = vmatprep.mubr.msk.f32.mxu0 %vm13946_vm0, %v20089_v1  ;;  %v20877_v21 = vand.u32 4294901760, %v14284_v41  ;;  %v14445_v1 = vsub.f32 %v312_v11, %v14407_v49  ;;  %v20888_v11 = vand.u32 4294901760, %v14383_v6 }
  0xca   : > { %12100 = vmatprep.subr.bf16.mxu0 %v20087_v0  ;;  %v14439_v0 = vpack.c.bf16 %v574_v37, %v567_v10  ;;  %v602_v10 = vand.u32 4294901760, %v14396_v16  ;;  %v582_v50 = vsub.f32 %v14367_v53, %v581_v60  ;;  %v452_v37 = vand.u32 4294901760, %v451_v39 }
  0xcb   : > { %v14429_v54 = vpack.c.bf16 %v20878_v24, %v20877_v21  ;;  %v14447_v21 = vpack.c.bf16 %v588_v62, %v581_v60  ;;  %v20886_v24 = vmov 0.0   ;;  %v461_v35 = vsub.f32 %v14383_v6, %v20888_v11 }
  0xcc   : > { %20884 = vst [vmem:[#allocation23_spill] sm:$0xff] %v14439_v0  ;;  %11137 = vmatmul.mubr.f32.gmra.mrb[2].mxu0 %v432_v15  ;;  %v595_v15 = vand.u32 4294901760, %v14393_v3  ;;  %v576_v11 = vand.u32 4294901760, %v575_v2  ;;  %v616_v60 = vand.u32 4294901760, %v14401_v7  ;;  %v583_v0 = vand.u32 4294901760, %v582_v50 }
  0xcd   : > { %20879 = vst [vmem:[#allocation20_spill] sm:$0xff] %v14429_v54  ;;  %20885 = vst [vmem:[#allocation24_spill] sm:$0xff] %v14447_v21  ;;  %12102 = vmatpush3.bf16.msra.mxu0 %v12101_v9  ;;  %11139 = vmatprep.mubr.msk.f32.mxu0 %vm13946_vm0, %v20886_v24  ;;  %v14460_v9 = vsub.f32 %v313_v56, %v14415_v58  ;;  %v315_v56 = vld [vmem:[%s14220_s2 + $0x40] sm:$0xff]  ;;  %v609_v54 = vand.u32 4294901760, %v14398_v26  ;;  %v603_v39 = vsub.f32 %v14396_v16, %v602_v10 }
  0xce   : > { %12103 = vmatprep.subr.bf16.mxu0 %v20887_v25  ;;  %v14463_v21 = vpack.c.bf16 %v602_v10, %v595_v15  ;;  %v14484_v2 = vand.u32 4294901760, %v315_v56  ;;  %v596_v50 = vsub.f32 %v14393_v3, %v595_v15 }
  0xcf   : > { %v14476_v62 = vpack.c.bf16 %v616_v60, %v609_v54  ;;  %v604_v10 = vand.u32 4294901760, %v603_v39 }
  0xd0   : > { %20889 = vst [vmem:[#allocation25_spill] sm:$0xff] %v14463_v21  ;;  %11140 = vmatmul.mubr.f32.gmra.mrb[4].mxu0 %v442_v30  ;;  %v462_v30 = vand.u32 4294901760, %v461_v35  ;;  %v12110_v35 = vpack.c.bf16 %v576_v11, %v569_v57  ;;  %v14496_v63 = vsub.f32 %v315_v56, %v14484_v2  ;;  %v597_v15 = vand.u32 4294901760, %v596_v50 }
  0xd1   : > { %12105 = vmatpush3.bf16.msra.mxu0 %v12104_v38  ;;  %11142 = vmatprep.mubr.msk.f32.mxu0 %vm13946_vm0, %v20886_v24  ;;  %20890 = vst [vmem:[#allocation26_spill] sm:$0xff] %v14476_v62  ;;  %v20891_v38 = vand.u32 4294901760, %v14445_v1  ;;  %v490_v62 = vand.u32 4294901760, %v14482_v22  ;;  %v610_v57 = vsub.f32 %v14398_v26, %v609_v54  ;;  %v12122_v50 = vpack.c.bf16 %v14262_v28, %v14260_v27 }
  0xd2   : > { %12106 = vmatprep.subr.bf16.mxu0 %v20887_v25  ;;  %v500_v11 = vand.u32 4294901760, %v14496_v63  ;;  %v12116_v56 = vpack.c.bf16 %v604_v10, %v597_v15  ;;  %v12128_v27 = vpack.c.bf16 %v14297_v47, %v14290_v44  ;;  %v12131_v28 = vpack.c.bf16 %v14333_v8, %v14328_v4  ;;  %v1629_v4 = vld [vmem:[#allocation8 + $0x80] sm:$0xff]  ;;  %v1630_v8 = vld [vmem:[#allocation8 + $0x88] sm:$0xff]  ;;  %v14600_v15 = vld [vmem:[#allocation8 + $0x18] sm:$0xff] }
  0xd3   : > { %v471_v21 = vsub.f32 %v14445_v1, %v20891_v38  ;;  %v12113_v38 = vpack.c.bf16 %v590_v40, %v583_v0  ;;  %v491_v0 = vsub.f32 %v14482_v22, %v490_v62  ;;  %v12140_v44 = vpack.c.bf16 %v14396_v16, %v14393_v3  ;;  %v14591_v16 = vld [vmem:[#allocation8 + $0x90] sm:$0xff] }
  0xd4   : > { %11143 = vmatmul.mubr.f32.gmra.mrb[6].mxu0 %v452_v37  ;;  %v20892_v37 = vand.u32 4294901760, %v14460_v9  ;;  %v12143_v47 = vpack.c.bf16 %v14401_v7, %v14398_v26  ;;  %v14593_v26 = vld [vmem:[#allocation8 + $0x98] sm:$0xff] }
  0xd5   : > { %11145 = vmatprep.mubr.msk.f32.mxu0 %vm13946_vm0, %v20886_v24  ;;  %12108 = vmatpush3.bf16.msra.mxu0 %v12107_v52  ;;  %v472_v5 = vand.u32 4294901760, %v471_v21  ;;  %v617_v52 = vsub.f32 %v14401_v7, %v616_v60  ;;  %v492_v54 = vand.u32 4294901760, %v491_v0  ;;  %v501_v60 = vsub.f32 %v14496_v63, %v500_v11 }
  0xd6   : > { %12109 = vmatprep.subr.bf16.mxu0 %v20887_v25  ;;  %v481_v51 = vsub.f32 %v14460_v9, %v20892_v37  ;;  %v12125_v37 = vpack.c.bf16 %v14286_v42, %v14284_v41  ;;  %v12134_v41 = vpack.c.bf16 %v14365_v36, %v14352_v19  ;;  %v12137_v42 = vpack.c.bf16 %v14390_v14, %v14367_v53  ;;  %v1613_v19 = vld [vmem:[#allocation8] sm:$0xff]  ;;  %v1614_v14 = vld [vmem:[#allocation8 + $0x8] sm:$0xff] }
  0xd7   : > { %v618_v39 = vand.u32 4294901760, %v617_v52  ;;  %v1747_v36 = vand.u32 4294901760, %v1629_v4  ;;  %v1750_v53 = vand.u32 4294901760, %v1630_v8  ;;  %v1699_v3 = vand.u32 4294901760, %v1613_v19 }
  0xd8   : > { %11146 = vmatmul.mubr.f32.gmra.mrb[8].mxu0 %v462_v30  ;;  %v482_v21 = vand.u32 4294901760, %v481_v51  ;;  %v611_v30 = vand.u32 4294901760, %v610_v57  ;;  %v1702_v7 = vand.u32 4294901760, %v1614_v14  ;;  %v1753_v51 = vand.u32 4294901760, %v14591_v16 }
  0xd9   : > { %11148 = vmatprep.mubr.msk.f32.mxu0 %vm13946_vm0, %v20886_v24  ;;  %12111 = vmatpush3.bf16.msra.mxu0 %v12110_v35  ;;  %v502_v35 = vand.u32 4294901760, %v501_v60  ;;  %v14602_v10 = vsub.f32 %v1629_v4, %v1747_v36  ;;  %v14604_v57 = vsub.f32 %v1630_v8, %v1750_v53  ;;  %v14606_v52 = vsub.f32 %v1613_v19, %v1699_v3  ;;  %v20900_v4 = vld [vmem:[#allocation21_spill] sm:$0xff]  ;;  %v20902_v8 = vld [vmem:[#allocation22_spill] sm:$0xff]  ;;  %v20904_v19 = vld [vmem:[#allocation23_spill] sm:$0xff] }
  0xda   : > { %12112 = vmatprep.subr.bf16.mxu0 %v20887_v25  ;;  %v12119_v40 = vpack.c.bf16 %v618_v39, %v611_v30  ;;  %v14611_v0 = vsub.f32 %v1614_v14, %v1702_v7  ;;  %v14618_v30 = vsub.f32 %v14591_v16, %v1753_v51  ;;  %v1637_v16 = vld [vmem:[#allocation8 + $0xc0] sm:$0xff] }
  0xdc   : > { %11149 = vmatmul.mubr.f32.gmra.mrb[10].mxu0 %v472_v5  ;;  %v1756_v5 = vand.u32 4294901760, %v14593_v26 }
  0xdd   : > { %11151 = vmatprep.mubr.msk.f32.mxu0 %vm13946_vm0, %v20886_v24  ;;  %12114 = vmatpush3.bf16.msra.mxu0 %v12113_v38  ;;  %v14598_v38 = vld [vmem:[#allocation8 + $0x10] sm:$0xff] }
  0xde   : > { %12115 = vmatprep.subr.bf16.mxu0 %v20887_v25  ;;  %v14623_v39 = vsub.f32 %v14593_v26, %v1756_v5  ;;  %v1705_v60 = vand.u32 4294901760, %v14598_v38  ;;  %v14804_v14 = vpack.c.bf16 %v1756_v5, %v1753_v51  ;;  %v1638_v26 = vld [vmem:[#allocation8 + $0xc8] sm:$0xff]  ;;  %v1771_v5 = vand.u32 4294901760, %v1637_v16 }
  0xe0   : > { %11152 = vmatmul.mubr.f32.gmra.mrb[12].mxu0 %v482_v21  ;;  %v14608_v21 = vpack.c.bf16 %v1750_v53, %v1747_v36  ;;  %v20906_v36 = vld [vmem:[#allocation24_spill] sm:$0xff]  ;;  %v20908_v53 = vld [vmem:[#allocation25_spill] sm:$0xff] }
  0xe1   : > { %11154 = vmatprep.mubr.msk.f32.mxu0 %vm13946_vm0, %v20886_v24  ;;  %12117 = vmatpush3.bf16.msra.mxu0 %v12116_v56  ;;  %v14613_v56 = vpack.c.bf16 %v1702_v7, %v1699_v3 }
  0xe2   : > { %12118 = vmatprep.subr.bf16.mxu0 %v20887_v25  ;;  %20893 = vst [vmem:[#allocation27_spill] sm:$0xff] %v14608_v21 }
  0xe3   : > { %20894 = vst [vmem:[#allocation28_spill] sm:$0xff] %v14613_v56 }
  0xe4   : > { %11155 = vmatmul.mubr.f32.gmra.mrb[14].mxu0 %v492_v54  ;;  %v12281_v54 = vpack.c.bf16 %v14604_v57, %v14602_v10 }
  0xe5   : > { %11157 = vmatprep.mubr.msk.f32.mxu0 %vm13946_vm0, %v20886_v24  ;;  %12120 = vmatpush3.bf16.msra.mxu0 %v12119_v40  ;;  %v1708_v40 = vand.u32 4294901760, %v14600_v15 }
  0xe6   : > { %12121 = vmatprep.subr.bf16.mxu0 %v20887_v25  ;;  %12282 = vmatprep.subr.bf16.mxu1 %v12281_v54 }
  0xe7   : > { %v14814_v54 = vpack.c.bf16 %v1708_v40, %v1705_v60 }
  0xe8   : > { %11158 = vmatmul.mubr.f32.gmra.mrb[16].mxu0 %v502_v35  ;;  %v12283_v35 = vpack.c.bf16 %v14611_v0, %v14606_v52 }
  0xe9   : > { %11192 = vmatprep.mubr.msk.f32.mxu0 %vm13946_vm0, %v20886_v24 }
  0xea   : > { %12284 = vmatpush3.bf16.msra.mxu1 %v12283_v35 }
  0xec   : > { %11193 = vmatmul.mubr.f32.vlgmr.msra.gmra.mrb[0].mxu0 %v14267_v31 }
  0xed   : > { %12123 = vmatpush3.bf16.msra.mxu0 %v12122_v50  ;;  %11195 = vmatprep.mubr.msk.f32.mxu0 %vm13946_vm0, %v20886_v24  ;;  %v12285_v50 = vpack.c.bf16 %v14623_v39, %v14618_v30 }
  0xee   : > { %12124 = vmatprep.subr.bf16.mxu0 %v20887_v25 }
  0xef   : > { %12286 = vmatprep.subr.bf16.mxu1 %v12285_v50 }
  0xf0   : > { %11196 = vmatmul.mubr.f32.gmra.mrb[2].mxu0 %v14288_v43 }
  0xf1   : > { %12126 = vmatpush3.bf16.msra.mxu0 %v12125_v37  ;;  %11198 = vmatprep.mubr.msk.f32.mxu0 %vm13946_vm0, %v20886_v24  ;;  %v14640_v37 = vsub.f32 %v14598_v38, %v1705_v60  ;;  %v1622_v38 = vld [vmem:[#allocation8 + $0x48] sm:$0xff] }
  0xf2   : > { %12127 = vmatprep.subr.bf16.mxu0 %v20887_v25 }
  0xf4   : > { %11199 = vmatmul.mubr.f32.gmra.mrb[4].mxu0 %v14295_v46 }
  0xf5   : > { %12129 = vmatpush3.bf16.msra.mxu0 %v12128_v27  ;;  %11201 = vmatprep.mubr.msk.f32.mxu0 %vm13946_vm0, %v20886_v24  ;;  %v14645_v27 = vsub.f32 %v14600_v15, %v1708_v40  ;;  %v1726_v40 = vand.u32 4294901760, %v1622_v38 }
  0xf6   : > { %12130 = vmatprep.subr.bf16.mxu0 %v20887_v25 }
  0xf8   : > { %11202 = vmatmul.mubr.f32.gmra.mrb[6].mxu0 %v14349_v17 }
  0xf9   : > { %11204 = vmatprep.mubr.msk.f32.mxu0 %vm13946_vm0, %v20886_v24  ;;  %12132 = vmatpush3.bf16.msra.mxu0 %v12131_v28  ;;  %v12287_v28 = vpack.c.bf16 %v14645_v27, %v14640_v37 }
  0xfa   : > { %12133 = vmatprep.subr.bf16.mxu0 %v20887_v25 }
  0xfb   : > { %12288 = vmatpush3.bf16.msra.mxu1 %v12287_v28  ;;  %v1774_v28 = vand.u32 4294901760, %v1638_v26 }
  0xfc   : > { %11205 = vmatmul.mubr.f32.gmra.mrb[8].mxu0 %v14360_v32 }
  0xfd   : > { %11207 = vmatprep.mubr.msk.f32.mxu0 %vm13946_vm0, %v20886_v24  ;;  %12135 = vmatpush3.bf16.msra.mxu0 %v12134_v41  ;;  %v20895_v41 = vand.u32 4294901760, %v14293_v45 }
  0xfe   : > { %12136 = vmatprep.subr.bf16.mxu0 %v20887_v25 }
 0x100   : > { %11208 = vmatmul.mubr.f32.gmra.mrb[10].mxu0 %v14407_v49 }
 0x101   : > { %11210 = vmatprep.mubr.msk.f32.mxu0 %vm13946_vm0, %v20886_v24  ;;  %12138 = vmatpush3.bf16.msra.mxu0 %v12137_v42  ;;  %v20896_v42 = vld [vmem:[#allocation19_spill] sm:$0xff] }
 0x102   : > { %12139 = vmatprep.subr.bf16.mxu0 %v20887_v25  ;;  %20910 = vst [vmem:[#allocation19_spill] sm:$0xff] %v14804_v14 }
 0x104   : > { %11211 = vmatmul.mubr.f32.gmra.mrb[12].mxu0 %v14415_v58 }
 0x105   : > { %11213 = vmatprep.mubr.msk.f32.mxu0 %vm13946_vm0, %v20886_v24  ;;  %12141 = vmatpush3.bf16.msra.mxu0 %v12140_v44  ;;  %v20897_v44 = vand.u32 4294901760, %v14314_v55 }
 0x106   : > { %12142 = vmatprep.subr.bf16.mxu0 %v20887_v25 }
 0x108   : > { %11214 = vmatmul.mubr.f32.gmra.mrb[14].mxu0 %v14467_v34 }
 0x109   : > { %11216 = vmatprep.mubr.msk.f32.mxu0 %vm13946_vm0, %v20886_v24  ;;  %12144 = vmatpush3.bf16.msra.mxu0 %v12143_v47  ;;  %v20898_v47 = vld [vmem:[#allocation20_spill] sm:$0xff] }
 0x10a   : > { %12145 = vmatprep.subr.bf16.mxu0 %v20887_v25  ;;  %20911 = vst [vmem:[#allocation20_spill] sm:$0xff] %v14814_v54 }
 0x10c   : > { %11217 = vmatmul.mubr.f32.gmra.mrb[16].mxu0 %v14484_v2 }
 0x10d   : > { %11251 = vmatprep.mubr.msk.f32.mxu0 %vm13946_vm0, %v20886_v24 }
 0x110   : > { %11252 = vmatmul.mubr.f32.vlgmr.msra.gmra.mrb[0].mxu0 %v14293_v45  ;;  %v20899_v45 = vand.u32 4294901760, %v14320_v59 }
 0x111   : > { %12147 = vmatpush3.bf16.msra.mxu0 %v14237_v12  ;;  %11254 = vmatprep.mubr.msk.f32.mxu0 %vm13946_vm0, %v20886_v24 }
 0x112   : > { %12148 = vmatprep.subr.bf16.mxu0 %v20887_v25 }
 0x114   : > { %11255 = vmatmul.mubr.f32.gmra.mrb[2].mxu0 %v14314_v55  ;;  %v20901_v55 = vand.u32 4294901760, %v14378_v29 }
 0x115   : > { %12150 = vmatpush3.bf16.msra.mxu0 %v14240_v13  ;;  %11257 = vmatprep.mubr.msk.f32.mxu0 %vm13946_vm0, %v20886_v24 }
 0x116   : > { %12151 = vmatprep.subr.bf16.mxu0 %v20887_v25 }
 0x118   : > { %11258 = vmatmul.mubr.f32.gmra.mrb[4].mxu0 %v14320_v59  ;;  %v20903_v59 = vand.u32 4294901760, %v14383_v6 }
 0x119   : > { %12153 = vmatpush3.bf16.msra.mxu0 %v14246_v18  ;;  %11260 = vmatprep.mubr.msk.f32.mxu0 %vm13946_vm0, %v20886_v24 }
 0x11a   : > { %12154 = vmatprep.subr.bf16.mxu0 %v20887_v25 }
 0x11c   : > { %11261 = vmatmul.mubr.f32.gmra.mrb[6].mxu0 %v14378_v29  ;;  %v20905_v29 = vand.u32 4294901760, %v14445_v1 }
 0x11d   : > { %11263 = vmatprep.mubr.msk.f32.mxu0 %vm13946_vm0, %v20886_v24  ;;  %12156 = vmatpush3.bf16.msra.mxu0 %v14255_v23 }
 0x11e   : > { %12157 = vmatprep.subr.bf16.mxu0 %v20887_v25 }
 0x120   : > { %11264 = vmatmul.mubr.f32.gmra.mrb[8].mxu0 %v14383_v6  ;;  %v20907_v6 = vand.u32 4294901760, %v14460_v9 }
 0x121   : > { %11266 = vmatprep.mubr.msk.f32.mxu0 %vm13946_vm0, %v20886_v24  ;;  %12159 = vmatpush3.bf16.msra.mxu0 %v14273_v33 }
 0x122   : > { %12160 = vmatprep.subr.bf16.mxu0 %v20887_v25 }
 0x124   : > { %11267 = vmatmul.mubr.f32.gmra.mrb[10].mxu0 %v14445_v1  ;;  %v20909_v1 = vld [vmem:[#allocation26_spill] sm:$0xff] }
 0x125   : > { %11269 = vmatprep.mubr.msk.f32.mxu0 %vm13946_vm0, %v20886_v24  ;;  %12162 = vmatpush3.bf16.msra.mxu0 %v14302_v48 }
 0x126   : > { %12163 = vmatprep.subr.bf16.mxu0 %v20887_v25 }
 0x128   : > { %11270 = vmatmul.mubr.f32.gmra.mrb[12].mxu0 %v14460_v9  ;;  %v1619_v9 = vld [vmem:[#allocation8 + $0x30] sm:$0xff] }
 0x129   : > { %11272 = vmatprep.mubr.msk.f32.mxu0 %vm13946_vm0, %v20886_v24  ;;  %12165 = vmatpush3.bf16.msra.mxu0 %v14324_v61 }
 0x12a   : > { %12166 = vmatprep.subr.bf16.mxu0 %v20887_v25 }
 0x12c   : > { %11273 = vmatmul.mubr.f32.gmra.mrb[14].mxu0 %v14482_v22 }
 0x12d   : > { %11275 = vmatprep.mubr.msk.f32.mxu0 %vm13946_vm0, %v20886_v24  ;;  %12168 = vmatpush3.bf16.msra.mxu0 %v14355_v20 }
 0x12e   : > { %12169 = vmatprep.subr.bf16.mxu0 %v20887_v25 }
 0x130   : > { %11276 = vmatmul.mubr.f32.gmra.mrb[16].mxu0 %v14496_v63 }
 0x131   : > { %11310 = vmatprep.mubr.msk.f32.mxu0 %vm13946_vm0, %v20886_v24 }
 0x134   : > { %11311 = vmatmul.mubr.f32.vlgmr.msra.gmra.mrb[0].mxu0 %v20895_v41  ;;  %v1621_v41 = vld [vmem:[#allocation8 + $0x40] sm:$0xff] }
 0x135   : > { %12171 = vmatpush3.bf16.msra.mxu0 %v20896_v42  ;;  %11313 = vmatprep.mubr.msk.f32.mxu0 %vm13946_vm0, %v20886_v24  ;;  %v1723_v60 = vand.u32 4294901760, %v1621_v41 }
 0x136   : > { %12172 = vmatprep.subr.bf16.mxu0 %v20887_v25 }
 0x138   : > { %11314 = vmatmul.mubr.f32.gmra.mrb[2].mxu0 %v20897_v44  ;;  %v14828_v44 = vsub.f32 %v1637_v16, %v1771_v5 }
 0x139   : > { %12174 = vmatpush3.bf16.msra.mxu0 %v20898_v47  ;;  %11316 = vmatprep.mubr.msk.f32.mxu0 %vm13946_vm0, %v20886_v24  ;;  %v14830_v47 = vsub.f32 %v1638_v26, %v1774_v28 }
 0x13a   : > { %12175 = vmatprep.subr.bf16.mxu0 %v20887_v25 }
 0x13c   : > { %11317 = vmatmul.mubr.f32.gmra.mrb[4].mxu0 %v20899_v45 }
 0x13d   : > { %12177 = vmatpush3.bf16.msra.mxu0 %v20900_v4  ;;  %11319 = vmatprep.mubr.msk.f32.mxu0 %vm13946_vm0, %v20886_v24  ;;  %v14834_v4 = vsub.f32 %v1621_v41, %v1723_v60  ;;  %v1643_v41 = vld [vmem:[#allocation8 + $0xf0] sm:$0xff] }
 0x13e   : > { %12178 = vmatprep.subr.bf16.mxu0 %v20887_v25 }
 0x140   : > { %11320 = vmatmul.mubr.f32.gmra.mrb[6].mxu0 %v20901_v55  ;;  %v14836_v55 = vsub.f32 %v1622_v38, %v1726_v40  ;;  %v1644_v38 = vld [vmem:[#allocation8 + $0xf8] sm:$0xff] }
 0x141   : > { %11322 = vmatprep.mubr.msk.f32.mxu0 %vm13946_vm0, %v20886_v24  ;;  %12180 = vmatpush3.bf16.msra.mxu0 %v20902_v8  ;;  %v1639_v8 = vld [vmem:[#allocation8 + $0xd0] sm:$0xff] }
 0x142   : > { %12181 = vmatprep.subr.bf16.mxu0 %v20887_v25 }
 0x144   : > { %11323 = vmatmul.mubr.f32.gmra.mrb[8].mxu0 %v20903_v59  ;;  %v1640_v59 = vld [vmem:[#allocation8 + $0xd8] sm:$0xff] }
 0x145   : > { %11325 = vmatprep.mubr.msk.f32.mxu0 %vm13946_vm0, %v20886_v24  ;;  %12183 = vmatpush3.bf16.msra.mxu0 %v20904_v19  ;;  %v12297_v19 = vpack.c.bf16 %v14830_v47, %v14828_v44 }
 0x146   : > { %12184 = vmatprep.subr.bf16.mxu0 %v20887_v25 }
 0x148   : > { %11326 = vmatmul.mubr.f32.gmra.mrb[10].mxu0 %v20905_v29  ;;  %v1777_v29 = vand.u32 4294901760, %v1639_v8 }
 0x149   : > { %11328 = vmatprep.mubr.msk.f32.mxu0 %vm13946_vm0, %v20886_v24  ;;  %12186 = vmatpush3.bf16.msra.mxu0 %v20906_v36  ;;  %v1780_v36 = vand.u32 4294901760, %v1640_v59 }
 0x14a   : > { %12187 = vmatprep.subr.bf16.mxu0 %v20887_v25 }
 0x14c   : > { %11329 = vmatmul.mubr.f32.gmra.mrb[12].mxu0 %v20907_v6  ;;  %v1623_v6 = vld [vmem:[#allocation8 + $0x50] sm:$0xff] }
 0x14d   : > { %11331 = vmatprep.mubr.msk.f32.mxu0 %vm13946_vm0, %v20886_v24  ;;  %12189 = vmatpush3.bf16.msra.mxu0 %v20908_v53  ;;  %v1624_v53 = vld [vmem:[#allocation8 + $0x58] sm:$0xff] }
 0x14e   : > { %12190 = vmatprep.subr.bf16.mxu0 %v20887_v25 }
 0x150   : > { %11332 = vmatmul.mubr.f32.gmra.mrb[14].mxu0 %v490_v62  ;;  %v1620_v62 = vld [vmem:[#allocation8 + $0x38] sm:$0xff] }
 0x151   : > { %11334 = vmatprep.mubr.msk.f32.mxu0 %vm13946_vm0, %v20886_v24  ;;  %12192 = vmatpush3.bf16.msra.mxu0 %v20909_v1  ;;  %v12299_v1 = vpack.c.bf16 %v14836_v55, %v14834_v4 }
 0x152   : > { %12193 = vmatprep.subr.bf16.mxu0 %v20887_v25 }
 0x154   : > { %11335 = vmatmul.mubr.f32.gmra.mrb[16].mxu0 %v500_v11  ;;  %v1720_v11 = vand.u32 4294901760, %v1620_v62 }
 0x155   : > { %11369 = vmatprep.mubr.msk.f32.mxu0 %vm13946_vm0, %v20886_v24 }
 0x156   : > { %v14818_v50 = vsub.f32 %v1620_v62, %v1720_v11 }
 0x158   : > { %11370 = vmatmul.mubr.f32.vlgmr.msra.gmra.mrb[0].mxu0 %v14267_v31 }
 0x159   : > { %12195 = vmatpush3.bf16.msra.mxu0 %v14237_v12  ;;  %11372 = vmatprep.mubr.msk.f32.mxu0 %vm13946_vm0, %v20886_v24  ;;  %v1633_v12 = vld [vmem:[#allocation8 + $0xa0] sm:$0xff] }
 0x15a   : > { %12196 = vmatprep.subr.bf16.mxu0 %v20887_v25 }
 0x15c   : > { %11373 = vmatmul.mubr.f32.gmra.mrb[2].mxu0 %v14288_v43 }
 0x15d   : > { %12198 = vmatpush3.bf16.msra.mxu0 %v14240_v13  ;;  %11375 = vmatprep.mubr.msk.f32.mxu0 %vm13946_vm0, %v20886_v24  ;;  %v1634_v13 = vld [vmem:[#allocation8 + $0xa8] sm:$0xff] }
 0x15e   : > { %12199 = vmatprep.subr.bf16.mxu0 %v20887_v25 }
 0x160   : > { %11376 = vmatmul.mubr.f32.gmra.mrb[4].mxu0 %v14295_v46 }
 0x161   : > { %12201 = vmatpush3.bf16.msra.mxu0 %v14246_v18  ;;  %11378 = vmatprep.mubr.msk.f32.mxu0 %vm13946_vm0, %v20886_v24  ;;  %v1759_v18 = vand.u32 4294901760, %v1633_v12 }
 0x162   : > { %12202 = vmatprep.subr.bf16.mxu0 %v20887_v25 }
 0x164   : > { %11379 = vmatmul.mubr.f32.gmra.mrb[6].mxu0 %v14349_v17 }
 0x165   : > { %11381 = vmatprep.mubr.msk.f32.mxu0 %vm13946_vm0, %v20886_v24  ;;  %12204 = vmatpush3.bf16.msra.mxu0 %v14255_v23  ;;  %v1762_v23 = vand.u32 4294901760, %v1634_v13 }
 0x166   : > { %12205 = vmatprep.subr.bf16.mxu0 %v20887_v25 }
 0x167   : > { %v14826_v42 = vpack.c.bf16 %v1762_v23, %v1759_v18 }
 0x168   : > { %11382 = vmatmul.mubr.f32.gmra.mrb[8].mxu0 %v14360_v32 }
 0x169   : > { %11384 = vmatprep.mubr.msk.f32.mxu0 %vm13946_vm0, %v20886_v24  ;;  %12207 = vmatpush3.bf16.msra.mxu0 %v14273_v33  ;;  %v1618_v33 = vld [vmem:[#allocation8 + $0x28] sm:$0xff] }
 0x16a   : > { %12208 = vmatprep.subr.bf16.mxu0 %v20887_v25 }
 0x16c   : > { %11385 = vmatmul.mubr.f32.gmra.mrb[10].mxu0 %v14407_v49 }
 0x16d   : > { %11387 = vmatprep.mubr.msk.f32.mxu0 %vm13946_vm0, %v20886_v24  ;;  %12210 = vmatpush3.bf16.msra.mxu0 %v14302_v48  ;;  %v14788_v48 = vsub.f32 %v1633_v12, %v1759_v18  ;;  %v1729_v12 = vand.u32 4294901760, %v1623_v6 }
 0x16e   : > { %12211 = vmatprep.subr.bf16.mxu0 %v20887_v25 }
 0x170   : > { %11388 = vmatmul.mubr.f32.gmra.mrb[12].mxu0 %v14415_v58 }
 0x171   : > { %11390 = vmatprep.mubr.msk.f32.mxu0 %vm13946_vm0, %v20886_v24  ;;  %12213 = vmatpush3.bf16.msra.mxu0 %v14324_v61  ;;  %v14790_v61 = vsub.f32 %v1634_v13, %v1762_v23  ;;  %v1732_v13 = vand.u32 4294901760, %v1624_v53  ;;  %v14846_v23 = vsub.f32 %v1639_v8, %v1777_v29 }
 0x172   : > { %12214 = vmatprep.subr.bf16.mxu0 %v20887_v25 }
 0x174   : > { %11391 = vmatmul.mubr.f32.gmra.mrb[14].mxu0 %v14467_v34 }
 0x175   : > { %11393 = vmatprep.mubr.msk.f32.mxu0 %vm13946_vm0, %v20886_v24  ;;  %12216 = vmatpush3.bf16.msra.mxu0 %v14355_v20 }
 0x176   : > { %12218 = vmatprep.subr.bf16.mxu0 %v14608_v21 }
 0x178   : > { %11394 = vmatmul.mubr.f32.gmra.mrb[16].mxu0 %v14484_v2 }
 0x179   : > { %11428 = vmatprep.mubr.msk.f32.mxu0 %vm13946_vm0, %v20886_v24 }
 0x17c   : > { %11429 = vmatmul.mubr.f32.vlgmr.msra.gmra.mrb[0].mxu0 %v14267_v31  ;;  %v1617_v31 = vld [vmem:[#allocation8 + $0x20] sm:$0xff] }
 0x17d   : > { %11431 = vmatprep.mubr.msk.f32.mxu0 %vm13946_vm0, %v20886_v24  ;;  %12220 = vmatpush3.bf16.msra.mxu0 %v14613_v56 }
 0x17e   : > { %12222 = vmatprep.subr.bf16.mxu0 %v14804_v14 }
 0x180   : > { %11432 = vmatmul.mubr.f32.gmra.mrb[2].mxu0 %v14288_v43  ;;  %v1711_v43 = vand.u32 4294901760, %v1617_v31 }
 0x181   : > { %11434 = vmatprep.mubr.msk.f32.mxu0 %vm13946_vm0, %v20886_v24  ;;  %12224 = vmatpush3.bf16.msra.mxu0 %v14814_v54 }
 0x182   : > { %12226 = vmatprep.subr.bf16.mxu0 %v14826_v42 }
 0x184   : > { %11435 = vmatmul.mubr.f32.gmra.mrb[4].mxu0 %v14295_v46  ;;  %v1714_v46 = vand.u32 4294901760, %v1618_v33 }
 0x185   : > { %11437 = vmatprep.mubr.msk.f32.mxu0 %vm13946_vm0, %v20886_v24 }
 0x186   : > { %v14794_v20 = vsub.f32 %v1618_v33, %v1714_v46  ;;  %v14832_v45 = vpack.c.bf16 %v1714_v46, %v1711_v43  ;;  %v1642_v46 = vld [vmem:[#allocation8 + $0xe8] sm:$0xff] }
 0x187   : > { %v1786_v62 = vand.u32 4294901760, %v1642_v46 }
 0x188   : > { %11438 = vmatmul.mubr.f32.gmra.mrb[6].mxu0 %v14349_v17  ;;  %v14792_v17 = vsub.f32 %v1617_v31, %v1711_v43  ;;  %20912 = vst [vmem:[#allocation21_spill] sm:$0xff] %v14832_v45  ;;  %v14848_v31 = vsub.f32 %v1640_v59, %v1780_v36  ;;  %v1641_v43 = vld [vmem:[#allocation8 + $0xe0] sm:$0xff] }
 0x189   : > { %11440 = vmatprep.mubr.msk.f32.mxu0 %vm13946_vm0, %v20886_v24  ;;  %12228 = vmatpush3.bf16.msra.mxu0 %v14832_v45 }
 0x18a   : > { %v12291_v22 = vpack.c.bf16 %v14794_v20, %v14792_v17 }
 0x18c   : > { %11441 = vmatmul.mubr.f32.gmra.mrb[8].mxu0 %v14360_v32  ;;  %v1635_v32 = vld [vmem:[#allocation8 + $0xb0] sm:$0xff] }
 0x18d   : > { %11443 = vmatprep.mubr.msk.f32.mxu0 %vm13946_vm0, %v20886_v24  ;;  %v1765_v63 = vand.u32 4294901760, %v1635_v32 }
 0x18f   : > { %v14806_v3 = vsub.f32 %v1635_v32, %v1765_v63  ;;  %v12301_v32 = vpack.c.bf16 %v14848_v31, %v14846_v23 }
 0x190   : > { %11444 = vmatmul.mubr.f32.gmra.mrb[10].mxu0 %v14407_v49  ;;  %v1636_v49 = vld [vmem:[#allocation8 + $0xb8] sm:$0xff] }
 0x191   : > { %11446 = vmatprep.mubr.msk.f32.mxu0 %vm13946_vm0, %v20886_v24 }
 0x194   : > { %11447 = vmatmul.mubr.f32.gmra.mrb[12].mxu0 %v14415_v58  ;;  %v12289_v58 = vpack.c.bf16 %v14790_v61, %v14788_v48 }
 0x195   : > { %11449 = vmatprep.mubr.msk.f32.mxu0 %vm13946_vm0, %v20886_v24 }
 0x196   : > { %12290 = vmatprep.subr.bf16.mxu1 %v12289_v58  ;;  %v14857_v58 = vsub.f32 %v1624_v53, %v1732_v13 }
 0x197   : > { %12292 = vmatpush3.bf16.msra.mxu1 %v12291_v22 }
 0x198   : > { %11450 = vmatmul.mubr.f32.gmra.mrb[14].mxu0 %v14467_v34  ;;  %v1768_v34 = vand.u32 4294901760, %v1636_v49 }
 0x199   : > { %11452 = vmatprep.mubr.msk.f32.mxu0 %vm13946_vm0, %v20886_v24 }
 0x19a   : > { %v14808_v7 = vsub.f32 %v1636_v49, %v1768_v34  ;;  %v14844_v18 = vpack.c.bf16 %v1768_v34, %v1765_v63  ;;  %v14855_v49 = vsub.f32 %v1623_v6, %v1729_v12  ;;  %v1783_v63 = vand.u32 4294901760, %v1641_v43  ;;  %v1625_v34 = vld [vmem:[#allocation8 + $0x60] sm:$0xff] }
 0x19b   : > { %v1735_v22 = vand.u32 4294901760, %v1625_v34 }
 0x19c   : > { %11453 = vmatmul.mubr.f32.gmra.mrb[16].mxu0 %v14484_v2  ;;  %v1717_v2 = vand.u32 4294901760, %v1619_v9  ;;  %v12293_v51 = vpack.c.bf16 %v14808_v7, %v14806_v3  ;;  %20913 = vst [vmem:[#allocation22_spill] sm:$0xff] %v14844_v18  ;;  %12230 = vmatprep.subr.bf16.mxu0 %v14844_v18  ;;  %v12303_v16 = vpack.c.bf16 %v14857_v58, %v14855_v49 }
 0x19d   : > { %v14864_v26 = vsub.f32 %v1641_v43, %v1783_v63  ;;  %v14871_v8 = vsub.f32 %v1625_v34, %v1735_v22  ;;  %v1628_v43 = vld [vmem:[#allocation8 + $0x78] sm:$0xff] }
 0x19e   : > { %v14816_v35 = vsub.f32 %v1619_v9, %v1717_v2  ;;  %12294 = vmatprep.subr.bf16.mxu1 %v12293_v51  ;;  %v14850_v33 = vpack.c.bf16 %v1720_v11, %v1717_v2  ;;  %v1626_v9 = vld [vmem:[#allocation8 + $0x68] sm:$0xff]  ;;  %v14860_v11 = vpack.c.bf16 %v1774_v28, %v1771_v5  ;;  %v14866_v51 = vpack.c.bf16 %v1726_v40, %v1723_v60  ;;  %v1627_v28 = vld [vmem:[#allocation8 + $0x70] sm:$0xff] }
 0x19f   : > { %v1738_v2 = vand.u32 4294901760, %v1626_v9  ;;  %v1789_v5 = vand.u32 4294901760, %v1643_v41  ;;  %v1741_v6 = vand.u32 4294901760, %v1627_v28  ;;  %v14878_v40 = vpack.c.bf16 %v1780_v36, %v1777_v29 }
 0x1a0   : > { %v12295_v15 = vpack.c.bf16 %v14818_v50, %v14816_v35  ;;  %20914 = vst [vmem:[#allocation23_spill] sm:$0xff] %v14850_v33  ;;  %12232 = vmatpush3.bf16.msra.mxu0 %v14850_v33  ;;  %20915 = vst [vmem:[#allocation24_spill] sm:$0xff] %v14860_v11  ;;  %v1744_v34 = vand.u32 4294901760, %v1628_v43  ;;  %v14894_v36 = vpack.c.bf16 %v1786_v62, %v1783_v63  ;;  %v20094_v63 = vand.u32 4294901760, %v14602_v10 }
 0x1a1   : > { %20916 = vst [vmem:[#allocation25_spill] sm:$0xff] %v14866_v51  ;;  %12234 = vmatprep.subr.bf16.mxu0 %v14860_v11  ;;  %v14873_v59 = vsub.f32 %v1626_v9, %v1738_v2  ;;  %20917 = vst [vmem:[#allocation26_spill] sm:$0xff] %v14878_v40  ;;  %v14889_v9 = vsub.f32 %v1627_v28, %v1741_v6 }
 0x1a2   : > { %12296 = vmatpush3.bf16.msra.mxu1 %v12295_v15  ;;  %v14869_v15 = vsub.f32 %v1642_v46, %v1786_v62  ;;  %v14885_v46 = vpack.c.bf16 %v1732_v13, %v1729_v12  ;;  %20919 = vst [vmem:[#allocation30_spill] sm:$0xff] %v14894_v36  ;;  %v20092_v62 = vand.u32 4294901760, %v14604_v57 }
 0x1a3   : > { %12298 = vmatprep.subr.bf16.mxu1 %v12297_v19  ;;  %v1792_v19 = vand.u32 4294901760, %v1644_v38  ;;  %v12307_v53 = vpack.c.bf16 %v14873_v59, %v14871_v8 }
 0x1a4   : > { %12236 = vmatpush3.bf16.msra.mxu0 %v14866_v51  ;;  %v12305_v60 = vpack.c.bf16 %v14869_v15, %v14864_v26  ;;  %20918 = vst [vmem:[#allocation29_spill] sm:$0xff] %v14885_v46 }
 0x1a5   : > { %12238 = vmatprep.subr.bf16.mxu0 %v14878_v40  ;;  %v14904_v13 = vpack.c.bf16 %v1792_v19, %v1789_v5 }
 0x1a6   : > { %12300 = vmatpush3.bf16.msra.mxu1 %v12299_v1  ;;  %v14882_v1 = vsub.f32 %v1643_v41, %v1789_v5  ;;  %v14898_v41 = vpack.c.bf16 %v1738_v2, %v1735_v22  ;;  %v2046_v22 = vsub.f32 %v14602_v10, %v20094_v63  ;;  %v2053_v2 = vsub.f32 %v14604_v57, %v20092_v62 }
 0x1a7   : > { %12302 = vmatprep.subr.bf16.mxu1 %v12301_v32  ;;  %v14887_v32 = vsub.f32 %v1644_v38, %v1792_v19  ;;  %20921 = vst [vmem:[#allocation32_spill] sm:$0xff] %v14904_v13  ;;  %v14906_v38 = vpack.c.bf16 %v1744_v34, %v1741_v6  ;;  %v20093_v6 = vand.u32 4294901760, %v14788_v48  ;;  %v20099_v62 = vand.u32 4294901760, %v14806_v3 }
 0x1a8   : > { %12240 = vmatpush3.bf16.msra.mxu0 %v14885_v46  ;;  %20920 = vst [vmem:[#allocation31_spill] sm:$0xff] %v14898_v41  ;;  %v2047_v5 = vand.u32 4294901760, %v2046_v22  ;;  %v2054_v28 = vand.u32 4294901760, %v2053_v2 }
 0x1a9   : > { %v12309_v29 = vpack.c.bf16 %v14887_v32, %v14882_v1  ;;  %12242 = vmatprep.subr.bf16.mxu0 %v14894_v36  ;;  %20922 = vst [vmem:[#allocation33_spill] sm:$0xff] %v14906_v38 }
 0x1aa   : > { %12304 = vmatpush3.bf16.msra.mxu1 %v12303_v16  ;;  %v14896_v16 = vsub.f32 %v1628_v43, %v1744_v34  ;;  %v12249_v19 = vpack.c.bf16 %v2054_v28, %v2047_v5  ;;  %v20097_v43 = vand.u32 4294901760, %v14794_v20  ;;  %v2074_v34 = vsub.f32 %v14788_v48, %v20093_v6 }
 0x1ab   : > { %12306 = vmatprep.subr.bf16.mxu1 %v12305_v60  ;;  %v20100_v60 = vand.u32 4294901760, %v14790_v61  ;;  %v20098_v6 = vand.u32 4294901760, %v14808_v7 }
 0x1ac   : > { %v12311_v12 = vpack.c.bf16 %v14896_v16, %v14889_v9  ;;  %12244 = vmatpush3.bf16.msra.mxu0 %v14898_v41  ;;  %v1969_v22 = vsub.f32 %v14794_v20, %v20097_v43  ;;  %v2075_v2 = vand.u32 4294901760, %v2074_v34  ;;  %v20101_v34 = vand.u32 4294901760, %v14816_v35 }
 0x1ad   : > { %12246 = vmatprep.subr.bf16.mxu0 %v14904_v13  ;;  %v2095_v43 = vsub.f32 %v14808_v7, %v20098_v6  ;;  %v20113_v6 = vand.u32 4294901760, %v14834_v4 }
 0x1ae   : > { %12308 = vmatpush3.bf16.msra.mxu1 %v12307_v53  ;;  %v20096_v53 = vand.u32 4294901760, %v14792_v17 }
 0x1af   : > { %12310 = vmatprep.subr.bf16.mxu1 %v12309_v29  ;;  %v2081_v29 = vsub.f32 %v14790_v61, %v20100_v60 }
 0x1b0   : > { %12248 = vmatpush3.bf16.msra.mxu0 %v14906_v38 }
 0x1b1   : > { %12250 = vmatprep.subr.bf16.mxu0 %v12249_v19  ;;  %v2082_v5 = vand.u32 4294901760, %v2081_v29  ;;  %v1970_v19 = vand.u32 4294901760, %v1969_v22  ;;  %v20103_v29 = vand.u32 4294901760, %v14818_v50  ;;  %v2096_v22 = vand.u32 4294901760, %v2095_v43 }
 0x1b2   : > { %12312 = vmatpush3.bf16.msra.mxu1 %v12311_v12  ;;  %v1962_v12 = vsub.f32 %v14792_v17, %v20096_v53  ;;  %v2088_v53 = vsub.f32 %v14806_v3, %v20099_v62  ;;  %v20116_v62 = vand.u32 4294901760, %v14836_v55 }
 0x1b3   : > { %12314 = vmatprep.subr.bf16.mxu1 %v14608_v21  ;;  %v14937_v63 = vpack.c.bf16 %v2082_v5, %v2075_v2  ;;  %v1976_v2 = vsub.f32 %v14816_v35, %v20101_v34  ;;  %v20109_v5 = vand.u32 4294901760, %v14828_v44 }
 0x1b4   : > { %v1963_v28 = vand.u32 4294901760, %v1962_v12  ;;  %v2089_v12 = vand.u32 4294901760, %v2088_v53  ;;  %v1997_v21 = vsub.f32 %v14836_v55, %v20116_v62  ;;  %v2003_v62 = vand.u32 4294901760, %v14855_v49 }
 0x1b5   : > { %v1977_v53 = vand.u32 4294901760, %v1976_v2  ;;  %v2102_v43 = vsub.f32 %v14828_v44, %v20109_v5  ;;  %v2122_v5 = vand.u32 4294901760, %v14848_v31 }
 0x1b6   : > { %v14939_v24 = vpack.c.bf16 %v1970_v19, %v1963_v28  ;;  %v1983_v28 = vsub.f32 %v14818_v50, %v20103_v29  ;;  %v20112_v19 = vand.u32 4294901760, %v14830_v47  ;;  %v14959_v60 = vpack.c.bf16 %v2096_v22, %v2089_v12 }
 0x1b7   : > { %v1990_v29 = vsub.f32 %v14834_v4, %v20113_v6  ;;  %v2103_v12 = vand.u32 4294901760, %v2102_v43  ;;  %v1998_v13 = vand.u32 4294901760, %v1997_v21  ;;  %v2123_v36 = vsub.f32 %v14848_v31, %v2122_v5 }
 0x1b8   : > { %v1984_v34 = vand.u32 4294901760, %v1983_v28  ;;  %v2109_v25 = vsub.f32 %v14830_v47, %v20112_v19  ;;  %v2115_v28 = vand.u32 4294901760, %v14846_v23  ;;  %v2136_v21 = vand.u32 4294901760, %v14869_v15 }
 0x1b9   : > { %v1991_v38 = vand.u32 4294901760, %v1990_v29  ;;  %v2004_v43 = vsub.f32 %v14855_v49, %v2003_v62 }
 0x1ba   : > { %v14973_v22 = vpack.c.bf16 %v1984_v34, %v1977_v53  ;;  %v2110_v2 = vand.u32 4294901760, %v2109_v25  ;;  %v2116_v6 = vsub.f32 %v14846_v23, %v2115_v28  ;;  %v2010_v34 = vand.u32 4294901760, %v14857_v58 }
 0x1bb   : > { %v14979_v19 = vpack.c.bf16 %v1998_v13, %v1991_v38  ;;  %v2129_v25 = vand.u32 4294901760, %v14864_v26  ;;  %v2124_v53 = vand.u32 4294901760, %v2123_v36  ;;  %v2137_v23 = vsub.f32 %v14869_v15, %v2136_v21 }
 0x1bc   : > { %v14977_v41 = vpack.c.bf16 %v2110_v2, %v2103_v12  ;;  %v2117_v29 = vand.u32 4294901760, %v2116_v6  ;;  %v2011_v12 = vsub.f32 %v14857_v58, %v2010_v34  ;;  %v2005_v31 = vand.u32 4294901760, %v2004_v43 }
 0x1bd   : > { %20924 = vst [vmem:[#allocation35_spill] sm:$0xff] %v14979_v19  ;;  %v2130_v13 = vsub.f32 %v14864_v26, %v2129_v25  ;;  %v2017_v19 = vand.u32 4294901760, %v14871_v8  ;;  %v2138_v40 = vand.u32 4294901760, %v2137_v23  ;;  %v2143_v15 = vand.u32 4294901760, %v14882_v1 }
 0x1be   : > { %20923 = vst [vmem:[#allocation34_spill] sm:$0xff] %v14977_v41  ;;  %v14991_v38 = vpack.c.bf16 %v2124_v53, %v2117_v29  ;;  %v2012_v2 = vand.u32 4294901760, %v2011_v12  ;;  %v2024_v41 = vand.u32 4294901760, %v14873_v59  ;;  %v2150_v29 = vand.u32 4294901760, %v14887_v32 }
 0x1bf   : > { %v2131_v46 = vand.u32 4294901760, %v2130_v13  ;;  %v2018_v49 = vsub.f32 %v14871_v8, %v2017_v19  ;;  %v2031_v53 = vand.u32 4294901760, %v14889_v9  ;;  %v2038_v12 = vand.u32 4294901760, %v14896_v16 }
 0x1c0   : > { %v14995_v6 = vpack.c.bf16 %v2012_v2, %v2005_v31  ;;  %v2025_v58 = vsub.f32 %v14873_v59, %v2024_v41  ;;  %v20927_v13 = vand.u32 4294901760, %v14602_v10  ;;  %v20928_v23 = vand.u32 4294901760, %v14604_v57 }
 0x1c1   : > { %v14998_v36 = vpack.c.bf16 %v2138_v40, %v2131_v46  ;;  %v2019_v26 = vand.u32 4294901760, %v2018_v49  ;;  %v2144_v8 = vsub.f32 %v14882_v1, %v2143_v15  ;;  %v2151_v59 = vsub.f32 %v14887_v32, %v2150_v29 }
 0x1c2   : > { %20925 = vst [vmem:[#allocation36_spill] sm:$0xff] %v14995_v6  ;;  %v2026_v43 = vand.u32 4294901760, %v2025_v58  ;;  %v15009_v31 = vpack.c.bf16 %v20928_v23, %v20927_v13  ;;  %v2032_v40 = vsub.f32 %v14889_v9, %v2031_v53  ;;  %v2039_v2 = vsub.f32 %v14896_v16, %v2038_v12 }
 0x1c3   : > { %20926 = vst [vmem:[#allocation37_spill] sm:$0xff] %v14998_v36  ;;  %v2145_v49 = vand.u32 4294901760, %v2144_v8  ;;  %v2152_v58 = vand.u32 4294901760, %v2151_v59  ;;  %v20929_v1 = vand.u32 4294901760, %v14788_v48  ;;  %v20930_v32 = vand.u32 4294901760, %v14790_v61 }
 0x1c4   : > { %v15014_v46 = vpack.c.bf16 %v2026_v43, %v2019_v26  ;;  %v2033_v36 = vand.u32 4294901760, %v2032_v40  ;;  %v2040_v6 = vand.u32 4294901760, %v2039_v2  ;;  %v20931_v9 = vand.u32 4294901760, %v14792_v17 }
 0x1c5   : > { %v15017_v10 = vpack.c.bf16 %v2152_v58, %v2145_v49  ;;  %v15025_v13 = vpack.c.bf16 %v20930_v32, %v20929_v1  ;;  %v20932_v16 = vand.u32 4294901760, %v14794_v20  ;;  %v20933_v43 = vand.u32 4294901760, %v14806_v3 }
 0x1c6   : > { %v15019_v57 = vpack.c.bf16 %v2040_v6, %v2033_v36  ;;  %v20934_v23 = vand.u32 4294901760, %v14808_v7  ;;  %v20935_v6 = vand.u32 4294901760, %v14816_v35  ;;  %v20936_v48 = vand.u32 4294901760, %v14818_v50 }
 0x1c7   : > { %v15031_v26 = vpack.c.bf16 %v20932_v16, %v20931_v9  ;;  %v20938_v61 = vand.u32 4294901760, %v14828_v44  ;;  %v20939_v17 = vand.u32 4294901760, %v14830_v47  ;;  %v20941_v20 = vand.u32 4294901760, %v14834_v4 }
 0x1c8   : > { %v15037_v8 = vpack.c.bf16 %v20934_v23, %v20933_v43  ;;  %v15043_v36 = vpack.c.bf16 %v20936_v48, %v20935_v6  ;;  %v20942_v3 = vand.u32 4294901760, %v14836_v55  ;;  %v15057_v7 = vpack.c.bf16 %v2122_v5, %v2115_v28 }
 0x1c9   : > { %v15049_v59 = vpack.c.bf16 %v20939_v17, %v20938_v61  ;;  %v15059_v2 = vpack.c.bf16 %v2010_v34, %v2003_v62  ;;  %v15061_v35 = vpack.c.bf16 %v2136_v21, %v2129_v25  ;;  %v15063_v50 = vpack.c.bf16 %v2024_v41, %v2017_v19 }
 0x1ca   : > { %20937 = vst [vmem:[#allocation38_spill] sm:$0xff] %v15043_v36  ;;  %v15055_v40 = vpack.c.bf16 %v20942_v3, %v20941_v20  ;;  %20944 = vst [vmem:[#allocation41_spill] sm:$0xff] %v15057_v7  ;;  %v15065_v49 = vpack.c.bf16 %v2150_v29, %v2143_v15  ;;  %v15067_v44 = vpack.c.bf16 %v2038_v12, %v2031_v53  ;;  %v1332_v47 = vlaneseq  ;;  %v15095_v53 = vld [vmem:[%s20069_s4] ss:$0 sm:$0xff] }
 0x1cb   : > { %20940 = vst [vmem:[#allocation39_spill] sm:$0xff] %v15049_v59  ;;  %20945 = vst [vmem:[#allocation42_spill] sm:$0xff] %v15059_v2  ;;  %v1342_v55 = vstv %s9267_s30  ;;  %v20124_v41 = vand.u32 4294901760, %v14606_v52  ;;  %v20123_v19 = vand.u32 4294901760, %v14611_v0  ;;  %v20122_v21 = vand.u32 4294901760, %v14618_v30  ;;  %s22199_s30 = sld [smem:[#allocation168_spill]] }
 0x1cc   : > { %20943 = vst [vmem:[#allocation40_spill] sm:$0xff] %v15055_v40  ;;  %20946 = vst [vmem:[#allocation43_spill] sm:$0xff] %v15061_v35  ;;  %v15072_v4 = vshrl.u32 %v1332_v47, 7  ;;  %v20121_v15 = vand.u32 4294901760, %v14623_v39  ;;  %v20129_v32 = vand.u32 4294901760, %v14640_v37  ;;  %v20128_v9 = vand.u32 4294901760, %v14645_v27 }
 0x1cd   : > { %20947 = vst [vmem:[#allocation44_spill] sm:$0xff] %v15063_v50  ;;  %20948 = vst [vmem:[#allocation45_spill] sm:$0xff] %v15065_v49  ;;  %v1934_v12 = vsub.f32 %v14606_v52, %v20124_v41  ;;  %v1941_v58 = vsub.f32 %v14611_v0, %v20123_v19  ;;  %v2060_v23 = vsub.f32 %v14618_v30, %v20122_v21 }
 0x1ce   : > { %20949 = vst [vmem:[#allocation46_spill] sm:$0xff] %v15067_v44  ;;  %20950 = vst [vmem:[#allocation47_spill] sm:$0xff] %v15072_v4  ;;  %v15075_v5 = vadd.s32 8, %v15072_v4  ;;  %v15078_v62 = vadd.s32 16, %v15072_v4  ;;  %v1343_v28 = vadd.s32 %v1342_v55, %v15072_v4  ;;  %v15085_v25 = vadd.s32 24, %v15072_v4 }
 0x1cf   : > { %v15104_v1 = vadd.s32 32, %v15072_v4  ;;  %v2067_v6 = vsub.f32 %v14623_v39, %v20121_v15  ;;  %v15120_v17 = vadd.s32 40, %v15072_v4  ;;  %v15123_v20 = vadd.s32 48, %v15072_v4 }
 0x1d0   : > { %20951 = vst [vmem:[#allocation48_spill] sm:$0xff] %v15075_v5  ;;  %20952 = vst [vmem:[#allocation49_spill] sm:$0xff] %v15078_v62  ;;  %v1344_v34 = vadd.s32 %v1342_v55, %v15075_v5  ;;  %v15090_v29 = vadd.s32 %v1342_v55, %v15078_v62  ;;  %vm1352_vm1 = vcmp.ge.s32.totalorder %v1343_v28, 0  ;;  %vm1361_vm2 = vcmp.lt.s32.totalorder %v1343_v28, 120 }
 0x1d1   : > { %20953 = vst [vmem:[#allocation50_spill] sm:$0xff] %v15085_v25  ;;  %20954 = vst [vmem:[#allocation51_spill] sm:$0xff] %v15104_v1  ;;  %v15109_v43 = vadd.s32 %v1342_v55, %v15085_v25  ;;  %v15128_v3 = vadd.s32 56, %v15072_v4  ;;  %v15131_v47 = vadd.s32 64, %v15072_v4  ;;  %v15134_v21 = vadd.s32 %v1342_v55, %v15104_v1  ;;  %s20009_s7 = scalar_lea.hbm %s22199_s30, %s9274_s21 }
 0x1d2   : > { %vm1353_vm3 = vcmp.ge.s32.totalorder %v1344_v34, 0  ;;  %vm1362_vm4 = vcmp.lt.s32.totalorder %v1344_v34, 120  ;;  %vm1354_vm9 = vcmp.ge.s32.totalorder %v15090_v29, 0  ;;  %20955 = vst [vmem:[#allocation52_spill] sm:$0xff] %v15120_v17  ;;  %20956 = vst [vmem:[#allocation53_spill] sm:$0xff] %v15123_v20  ;;  %v1948_v19 = vsub.f32 %v14640_v37, %v20129_v32 }
 0x1d3   : > { %vm1370_vm10 = vmand %vm1352_vm1, %vm1361_vm2  ;;  %20957 = vst [vmem:[#allocation54_spill] sm:$0xff] %v15128_v3  ;;  %v1955_v28 = vsub.f32 %v14645_v27, %v20128_v9  ;;  %vm1363_vm11 = vcmp.lt.s32.totalorder %v15090_v29, 120  ;;  %vm1355_vm12 = vcmp.ge.s32.totalorder %v15109_v43, 0  ;;  %v2061_v25 = vand.u32 4294901760, %v2060_v23 }
 0x1d4   : > { %20958 = vst [vmem:[#allocation55_spill] sm:$0xff] %v15131_v47  ;;  %vm1364_vm13 = vcmp.lt.s32.totalorder %v15109_v43, 120  ;;  %v15147_v62 = vadd.s32 %v1342_v55, %v15120_v17  ;;  %vm15151_vm14 = vmand %vm1353_vm3, %vm1362_vm4  ;;  %v15156_v32 = vadd.s32 %v1342_v55, %v15123_v20  ;;  %v15159_v23 = vadd.s32 %v1342_v55, %v15128_v3 }
 0x1d5   : > { %vm1356_vm15 = vcmp.ge.s32.totalorder %v15134_v21, 0  ;;  %vm1365_vm1 = vcmp.lt.s32.totalorder %v15134_v21, 120  ;;  %v1956_v17 = vand.u32 4294901760, %v1955_v28  ;;  %vm1372_vm2 = vmand %vm1354_vm9, %vm1363_vm11 }
 0x1d6   : > { %vm1357_vm3 = vcmp.ge.s32.totalorder %v15147_v62, 0  ;;  %vm1366_vm4 = vcmp.lt.s32.totalorder %v15147_v62, 120  ;;  %vm1373_vm9 = vmand %vm1355_vm12, %vm1364_vm13  ;;  %vm1367_vm11 = vcmp.lt.s32.totalorder %v15156_v32, 120  ;;  %vm1359_vm13 = vcmp.ge.s32.totalorder %v15159_v23, 0 }
 0x1d7   : > { %vm15239_vm12 = vmand %vm1356_vm15, %vm1365_vm1 }
 0x1d8   : > { %vm15277_vm15 = vmand %vm1357_vm3, %vm1366_vm4 }
 0x24f   : > { %v1270_v16 = vpop.f32.mrb[0].mxu0 }
 0x250   : > { %v13337_v48 = vadd.f32 %v15095_v53, %v1270_v16  ;;  %v11430_v61 = vpop.f32.mrb[1].mxu0  ;;  %v1935_v16 = vand.u32 4294901760, %v1934_v12  ;;  %v2068_v12 = vand.u32 4294901760, %v2067_v6  ;;  %v1949_v6 = vand.u32 4294901760, %v1948_v19 }
 0x251   : > { %v1942_v61 = vand.u32 4294901760, %v1941_v58 }
 0x252   : > { %v1322_v15 = vmax.f32 %v13337_v48, 0.0  ;;  %v15170_v3 = vpack.c.bf16 %v2068_v12, %v2061_v25  ;;  %v15187_v12 = vpack.c.bf16 %v1956_v17, %v1949_v6 }
 0x253   : > { %v1276_v41 = vpop.f32.mrb[2].mxu0 }
 0x254   : > { %v1397_v58 = vsel %vm1370_vm10, %v1322_v15, 0.0  ;;  %v13338_v48 = vadd.f32 %v15095_v53, %v1276_v41  ;;  %v11433_v1 = vpop.f32.mrb[3].mxu0  ;;  %v15162_v41 = vadd.s32 %v1342_v55, %v15131_v47  ;;  %v15164_v15 = vpack.c.bf16 %v1942_v61, %v1935_v16 }
 0x255   : > { %v15168_v34 = vand.u32 4294901760, %v1397_v58  ;;  %v1425_v5 = vrot.slane %v1397_v58, 1  ;;  %v1461_v20 = vrot.slane %v1397_v58, 2  ;;  %v1497_v4 = vrot.slane %v1397_v58, 3 }
 0x256   : > { %v1323_v1 = vmax.f32 %v13338_v48, 0.0  ;;  %v1533_v49 = vrot.slane %v1397_v58, 4  ;;  %vm1358_vm10 = vcmp.ge.s32.totalorder %v15156_v32, 0  ;;  %vm1360_vm1 = vcmp.ge.s32.totalorder %v15162_v41, 0 }
 0x257   : > { %20961 = vst [vmem:[#allocation56_spill] sm:$0xff] %v15168_v34  ;;  %v1282_v44 = vpop.f32.mrb[4].mxu0  ;;  %v15176_v48 = vsub.f32 %v1397_v58, %v15168_v34  ;;  %vm15318_vm3 = vmand %vm1358_vm10, %vm1367_vm11 }
 0x258   : > { %v1398_v55 = vsel %vm15151_vm14, %v1323_v1, 0.0  ;;  %v13339_v16 = vadd.f32 %v15095_v53, %v1282_v44  ;;  %v11436_v61 = vpop.f32.mrb[5].mxu0  ;;  %vm1368_vm14 = vcmp.lt.s32.totalorder %v15159_v23, 120 }
 0x259   : > { %v1426_v47 = vrot.slane %v1398_v55, 1  ;;  %v1462_v50 = vrot.slane %v1398_v55, 2  ;;  %v1498_v19 = vrot.slane %v1398_v55, 3  ;;  %v1534_v28 = vrot.slane %v1398_v55, 4  ;;  %vm15354_vm4 = vmand %vm1359_vm13, %vm1368_vm14 }
 0x25a   : > { %v1324_v25 = vmax.f32 %v13339_v16, 0.0  ;;  %v15185_v9 = vand.u32 4294901760, %v1398_v55  ;;  %v20964_v17 = vand.u32 4294901760, %v15176_v48 }
 0x25b   : > { %v1427_v58 = vsel %vm1424_vm5, %v1425_v5, %v1426_v47  ;;  %v1463_v1 = vsel %vm1460_vm6, %v1461_v20, %v1462_v50  ;;  %v1499_v61 = vsel %vm1496_vm7, %v1497_v4, %v1498_v19  ;;  %v1535_v29 = vsel %vm1532_vm8, %v1533_v49, %v1534_v28  ;;  %v1288_v35 = vpop.f32.mrb[6].mxu0 }
 0x25c   : > { %20962 = vst [vmem:[#allocation57_spill] sm:$0xff] %v15185_v9  ;;  %1487 = vst [vmem:[#allocation2 + $0x10] sm:$0xff] %v1463_v1  ;;  %v15193_v16 = vsel %vm1372_vm2, %v1324_v25, 0.0  ;;  %v13340_v44 = vadd.f32 %v15095_v53, %v1288_v35  ;;  %v11439_v2 = vpop.f32.mrb[7].mxu0  ;;  %v15196_v7 = vand.u32 4294901760, %v1427_v58  ;;  %v15201_v5 = vsub.f32 %v15176_v48, %v20964_v17 }
 0x25d   : > { %1523 = vst [vmem:[#allocation2 + $0x18] sm:$0xff] %v1499_v61  ;;  %1559 = vst [vmem:[#allocation2 + $0x20] sm:$0xff] %v1535_v29  ;;  %v1428_v4 = vrot.slane %v15193_v16, 1  ;;  %v1464_v49 = vrot.slane %v15193_v16, 2  ;;  %v1500_v20 = vrot.slane %v15193_v16, 3  ;;  %v1536_v6 = vrot.slane %v15193_v16, 4 }
 0x25e   : > { %20963 = vst [vmem:[#allocation58_spill] sm:$0xff] %v15196_v7  ;;  %v1325_v2 = vmax.f32 %v13340_v44, 0.0  ;;  %v15214_v35 = vsub.f32 %v1427_v58, %v15196_v7  ;;  %v15218_v1 = vsub.f32 %v1398_v55, %v15185_v9  ;;  %v15254_v21 = vand.u32 4294901760, %v15193_v16 }
 0x25f   : > { %v1429_v61 = vsel %vm1424_vm5, %v1426_v47, %v1428_v4  ;;  %v1465_v29 = vsel %vm1460_vm6, %v1462_v50, %v1464_v49  ;;  %v1501_v43 = vsel %vm1496_vm7, %v1498_v19, %v1500_v20  ;;  %v1537_v44 = vsel %vm1532_vm8, %v1534_v28, %v1536_v6  ;;  %v1294_v17 = vpop.f32.mrb[8].mxu0 }
 0x260   : > { %1488 = vst [vmem:[#allocation2 + $0x38] sm:$0xff] %v1465_v29  ;;  %1524 = vst [vmem:[#allocation2 + $0x40] sm:$0xff] %v1501_v43  ;;  %v15224_v40 = vsel %vm1373_vm9, %v1325_v2, 0.0  ;;  %v13341_v58 = vadd.f32 %v15095_v53, %v1294_v17  ;;  %v11442_v25 = vpop.f32.mrb[9].mxu0  ;;  %2348 = vmatprep.mubr.f32.mxu1 %v15214_v35  ;;  %v15228_v55 = vand.u32 4294901760, %v1429_v61  ;;  %v20138_v47 = vand.u32 4294901760, %v15214_v35 }
 0x261   : > { %1560 = vst [vmem:[#allocation2 + $0x48] sm:$0xff] %v1537_v44  ;;  %v1430_v50 = vrot.slane %v15224_v40, 1  ;;  %v1466_v19 = vrot.slane %v15224_v40, 2  ;;  %v1502_v28 = vrot.slane %v15224_v40, 3  ;;  %v1538_v29 = vrot.slane %v15224_v40, 4  ;;  %2351 = vmatmul.mubr.f32.vlgmr.msra.gmra.mrb[0].mxu1 %v15176_v48  ;;  %20968 = vst [vmem:[#allocation60_spill] sm:$0xff] %v15254_v21 }
 0x262   : > { %20965 = vst [vmem:[#allocation59_spill] sm:$0xff] %v15228_v55  ;;  %v1326_v25 = vmax.f32 %v13341_v58, 0.0  ;;  %v15247_v43 = vsub.f32 %v1429_v61, %v15228_v55  ;;  %v1797_v44 = vsub.f32 %v15214_v35, %v20138_v47  ;;  %12316 = vmatpush3.bf16.msra.mxu1 %v14613_v56  ;;  %vm1369_vm2 = vcmp.lt.s32.totalorder %v15162_v41, 120 }
 0x263   : > { %v1431_v17 = vsel %vm1424_vm5, %v1428_v4, %v1430_v50  ;;  %v1467_v58 = vsel %vm1460_vm6, %v1464_v49, %v1466_v19  ;;  %v1503_v59 = vsel %vm1496_vm7, %v1500_v20, %v1502_v28  ;;  %v1539_v36 = vsel %vm1532_vm8, %v1536_v6, %v1538_v29  ;;  %v1300_v9 = vpop.f32.mrb[10].mxu0  ;;  %12318 = vmatprep.subr.bf16.mxu1 %v14804_v14  ;;  %vm1378_vm9 = vmand %vm1360_vm1, %vm1369_vm2 }
 0x264   : > { %1489 = vst [vmem:[#allocation2 + $0x60] sm:$0xff] %v1467_v58  ;;  %1525 = vst [vmem:[#allocation2 + $0x68] sm:$0xff] %v1503_v59  ;;  %v15263_v61 = vsel %vm15239_vm12, %v1326_v25, 0.0  ;;  %v13342_v47 = vadd.f32 %v15095_v53, %v1300_v9  ;;  %v11445_v56 = vpop.f32.mrb[11].mxu0  ;;  %2357 = vmatprep.mubr.f32.mxu1 %v15247_v43  ;;  %v1798_v4 = vand.u32 4294901760, %v1797_v44  ;;  %v15267_v49 = vand.u32 4294901760, %v1431_v17 }
 0x265   : > { %1561 = vst [vmem:[#allocation2 + $0x70] sm:$0xff] %v1539_v36  ;;  %v1432_v20 = vrot.slane %v15263_v61, 1  ;;  %v1468_v6 = vrot.slane %v15263_v61, 2  ;;  %v1504_v58 = vrot.slane %v15263_v61, 3  ;;  %v1540_v36 = vrot.slane %v15263_v61, 4  ;;  %2360 = vmatmul.mubr.f32.gmra.mrb[2].mxu1 %v15218_v1 }
 0x266   : > { %20969 = vst [vmem:[#allocation61_spill] sm:$0xff] %v15267_v49  ;;  %v1327_v56 = vmax.f32 %v13342_v47, 0.0  ;;  %1799 = vmatprep.mubr.f32.mxu0 %v1798_v4  ;;  %v15285_v9 = vsub.f32 %v1431_v17, %v15267_v49  ;;  %v15289_v2 = vsub.f32 %v15193_v16, %v15254_v21  ;;  %12320 = vmatpush3.bf16.msra.mxu1 %v14814_v54  ;;  %v20972_v17 = vand.u32 4294901760, %v15201_v5 }
 0x267   : > { %v1433_v25 = vsel %vm1424_vm5, %v1430_v50, %v1432_v20  ;;  %v1469_v47 = vsel %vm1460_vm6, %v1466_v19, %v1468_v6  ;;  %v1505_v44 = vsel %vm1496_vm7, %v1502_v28, %v1504_v58  ;;  %v1541_v4 = vsel %vm1532_vm8, %v1538_v29, %v1540_v36  ;;  %v1306_v14 = vpop.f32.mrb[12].mxu0  ;;  %12322 = vmatprep.subr.bf16.mxu1 %v14826_v42 }
 0x268   : > { %1805 = vmatmul.mubr.f32.vlgmr.msra.gmra.mrb[18].mxu0 %v20972_v17  ;;  %1490 = vst [vmem:[#allocation2 + $0x88] sm:$0xff] %v1469_v47  ;;  %1526 = vst [vmem:[#allocation2 + $0x90] sm:$0xff] %v1505_v44  ;;  %v15301_v16 = vsel %vm15277_vm15, %v1327_v56, 0.0  ;;  %v13343_v62 = vadd.f32 %v15095_v53, %v1306_v14  ;;  %v11448_v50 = vpop.f32.mrb[13].mxu0  ;;  %2366 = vmatprep.mubr.f32.mxu1 %v15285_v9  ;;  %v20973_v19 = vand.u32 4294901760, %v15247_v43  ;;  %v20142_v5 = vand.u32 4294901760, %v15218_v1 }
 0x269   : > { %1562 = vst [vmem:[#allocation2 + $0x98] sm:$0xff] %v1541_v4  ;;  %12252 = vmatpush3.bf16.msra.mxu0 %v15164_v15  ;;  %v1434_v29 = vrot.slane %v15301_v16, 1  ;;  %v1470_v47 = vrot.slane %v15301_v16, 2  ;;  %v1506_v59 = vrot.slane %v15301_v16, 3  ;;  %v1542_v56 = vrot.slane %v15301_v16, 4  ;;  %2369 = vmatmul.mubr.f32.gmra.mrb[4].mxu1 %v15289_v2 }
 0x26a   : > { %v1812_v28 = vsub.f32 %v15247_v43, %v20973_v19  ;;  %12254 = vmatprep.subr.bf16.mxu0 %v15170_v3  ;;  %v1328_v15 = vmax.f32 %v13343_v62, 0.0  ;;  %v1818_v4 = vsub.f32 %v15218_v1, %v20142_v5  ;;  %v15327_v17 = vand.u32 4294901760, %v1433_v25  ;;  %12324 = vmatpush3.bf16.msra.mxu1 %v14832_v45  ;;  %v20998_v45 = vld [vmem:[#allocation33_spill] sm:$0xff] }
 0x26b   : > { %v15331_v32 = vsel %vm1424_vm5, %v1432_v20, %v1434_v29  ;;  %v1471_v50 = vsel %vm1460_vm6, %v1468_v6, %v1470_v47  ;;  %v1507_v19 = vsel %vm1496_vm7, %v1504_v58, %v1506_v59  ;;  %v1543_v54 = vsel %vm1532_vm8, %v1540_v36, %v1542_v56  ;;  %v1312_v3 = vpop.f32.mrb[14].mxu0  ;;  %12326 = vmatprep.subr.bf16.mxu1 %v14844_v18 }
 0x26c   : > { %v1813_v44 = vand.u32 4294901760, %v1812_v28  ;;  %20976 = vst [vmem:[#allocation62_spill] sm:$0xff] %v15327_v17  ;;  %1491 = vst [vmem:[#allocation2 + $0xb0] sm:$0xff] %v1471_v50  ;;  %v15339_v62 = vsel %vm15318_vm3, %v1328_v15, 0.0  ;;  %v13344_v28 = vadd.f32 %v15095_v53, %v1312_v3  ;;  %v11451_v20 = vpop.f32.mrb[15].mxu0  ;;  %v1819_v5 = vand.u32 4294901760, %v1818_v4 }
 0x26d   : > { %1527 = vst [vmem:[#allocation2 + $0xb8] sm:$0xff] %v1507_v19  ;;  %1563 = vst [vmem:[#allocation2 + $0xc0] sm:$0xff] %v1543_v54  ;;  %v15343_v6 = vsub.f32 %v1433_v25, %v15327_v17  ;;  %12256 = vmatpush3.bf16.msra.mxu0 %v15187_v12  ;;  %v1436_v58 = vrot.slane %v15339_v62, 1  ;;  %v1472_v36 = vrot.slane %v15339_v62, 2  ;;  %v1508_v54 = vrot.slane %v15339_v62, 3 }
 0x26e   : > { %1814 = vmatprep.mubr.f32.mxu0 %v1813_v44  ;;  %v1544_v14 = vrot.slane %v15339_v62, 4  ;;  %12258 = vmatprep.subr.bf16.mxu0 %v14937_v63  ;;  %v1329_v12 = vmax.f32 %v13344_v28, 0.0  ;;  %v15362_v25 = vand.u32 4294901760, %v15224_v40  ;;  %v20148_v44 = vand.u32 4294901760, %v15285_v9 }
 0x26f   : > { %1820 = vmatmul.mubr.f32.gmra.mrb[20].mxu0 %v1819_v5  ;;  %2375 = vmatprep.mubr.f32.mxu1 %v15343_v6  ;;  %v20146_v4 = vand.u32 4294901760, %v15289_v2  ;;  %v15367_v23 = vsel %vm1424_vm5, %v1434_v29, %v1436_v58  ;;  %v1473_v50 = vsel %vm1460_vm6, %v1470_v47, %v1472_v36  ;;  %v1509_v63 = vsel %vm1496_vm7, %v1506_v59, %v1508_v54  ;;  %v1318_v3 = vpop.f32.mrb[16].mxu0 }
 0x270   : > { %20979 = vst [vmem:[#allocation63_spill] sm:$0xff] %v15362_v25  ;;  %v1545_v19 = vsel %vm1532_vm8, %v1542_v56, %v1544_v14  ;;  %12328 = vmatpush3.bf16.msra.mxu1 %v14850_v33  ;;  %1492 = vst [vmem:[#allocation2 + $0xd8] sm:$0xff] %v1473_v50  ;;  %v15375_v5 = vsel %vm15354_vm4, %v1329_v12, 0.0  ;;  %v13345_v28 = vadd.f32 %v15095_v53, %v1318_v3  ;;  %v11454_v29 = vpop.f32.mrb[17].mxu0  ;;  %v15401_v50 = vand.u32 4294901760, %v15331_v32  ;;  %v20996_v33 = vld [vmem:[#allocation37_spill] sm:$0xff] }
 0x271   : > { %1528 = vst [vmem:[#allocation2 + $0xe0] sm:$0xff] %v1509_v63  ;;  %1564 = vst [vmem:[#allocation2 + $0xe8] sm:$0xff] %v1545_v19  ;;  %v15380_v47 = vsub.f32 %v15224_v40, %v15362_v25  ;;  %v1827_v59 = vsub.f32 %v15285_v9, %v20148_v44  ;;  %12260 = vmatpush3.bf16.msra.mxu0 %v14939_v24  ;;  %12330 = vmatprep.subr.bf16.mxu1 %v14860_v11  ;;  %v1438_v56 = vrot.slane %v15375_v5, 1 }
 0x272   : > { %v1474_v20 = vrot.slane %v15375_v5, 2  ;;  %v1510_v15 = vrot.slane %v15375_v5, 3  ;;  %v1546_v53 = vrot.slane %v15375_v5, 4  ;;  %12262 = vmatprep.subr.bf16.mxu0 %v14959_v60  ;;  %v1330_v40 = vmax.f32 %v13345_v28, 0.0  ;;  %20980 = vst [vmem:[#allocation64_spill] sm:$0xff] %v15401_v50 }
 0x273   : > { %2378 = vmatmul.mubr.f32.gmra.mrb[6].mxu1 %v15380_v47  ;;  %v1828_v24 = vand.u32 4294901760, %v1827_v59  ;;  %v1833_v12 = vsub.f32 %v15289_v2, %v20146_v4  ;;  %v1439_v63 = vsel %vm1424_vm5, %v1436_v58, %v1438_v56  ;;  %v15410_v29 = vsub.f32 %v15331_v32, %v15401_v50 }
 0x274   : > { %v1475_v19 = vsel %vm1460_vm6, %v1472_v36, %v1474_v20  ;;  %v1511_v41 = vsel %vm1496_vm7, %v1508_v54, %v1510_v15  ;;  %v1547_v3 = vsel %vm1532_vm8, %v1544_v14, %v1546_v53  ;;  %12332 = vmatpush3.bf16.msra.mxu1 %v14866_v51  ;;  %v1405_v60 = vsel %vm1378_vm9, %v1330_v40, 0.0 }
 0x275   : > { %1493 = vst [vmem:[#allocation2 + $0x100] sm:$0xff] %v1475_v19  ;;  %1529 = vst [vmem:[#allocation2 + $0x108] sm:$0xff] %v1511_v41  ;;  %1829 = vmatprep.mubr.f32.mxu0 %v1828_v24  ;;  %v1834_v28 = vand.u32 4294901760, %v1833_v12  ;;  %v15413_v58 = vand.u32 4294901760, %v15263_v61  ;;  %12264 = vmatpush3.bf16.msra.mxu0 %v14973_v22  ;;  %v1440_v36 = vrot.slane %v1405_v60, 1  ;;  %v1476_v54 = vrot.slane %v1405_v60, 2 }
 0x276   : > { %1565 = vst [vmem:[#allocation2 + $0x110] sm:$0xff] %v1547_v3  ;;  %1414 = vst [vmem:[#allocation2 + $0x140] sm:$0xf] %v1405_v60  ;;  %v1512_v14 = vrot.slane %v1405_v60, 3  ;;  %v1548_v59 = vrot.slane %v1405_v60, 4  ;;  %v20982_v19 = vld [vmem:[#allocation34_spill] sm:$0xff]  ;;  %2384 = vmatprep.mubr.f32.mxu1 %v15410_v29 }
 0x277   : > { %20981 = vst [vmem:[#allocation65_spill] sm:$0xff] %v15413_v58  ;;  %12266 = vmatprep.subr.bf16.mxu0 %v20982_v19  ;;  %v20983_v41 = vld [vmem:[#allocation26_spill] sm:$0xff]  ;;  %1835 = vmatmul.mubr.f32.gmra.mrb[22].mxu0 %v1834_v28  ;;  %v15421_v32 = vsub.f32 %v15263_v61, %v15413_v58  ;;  %v20144_v40 = vand.u32 4294901760, %v15343_v6  ;;  %v20143_v22 = vand.u32 4294901760, %v15380_v47  ;;  %v15426_v24 = vand.u32 4294901760, %v15367_v23  ;;  %v20985_v61 = vld [vmem:[#allocation29_spill] sm:$0xff] }
 0x278   : > { %12334 = vmatprep.subr.bf16.mxu1 %v20983_v41  ;;  %v1441_v12 = vsel %vm1424_vm5, %v1438_v56, %v1440_v36  ;;  %1459 = vst [vmem:[#allocation2 + $0x148] sm:$0xf] %v1440_v36  ;;  %v1477_v3 = vsel %vm1460_vm6, %v1474_v20, %v1476_v54  ;;  %1495 = vst [vmem:[#allocation2 + $0x150] sm:$0xf] %v1476_v54  ;;  %v1513_v60 = vsel %vm1496_vm7, %v1510_v15, %v1512_v14  ;;  %v20987_v36 = vld [vmem:[#allocation35_spill] sm:$0xff] }
 0x279   : > { %20984 = vst [vmem:[#allocation34_spill] sm:$0xff] %v15426_v24  ;;  %1531 = vst [vmem:[#allocation2 + $0x158] sm:$0xf] %v1512_v14  ;;  %v1549_v28 = vsel %vm1532_vm8, %v1546_v53, %v1548_v59  ;;  %12336 = vmatpush3.bf16.msra.mxu1 %v20985_v61  ;;  %v1842_v56 = vsub.f32 %v15343_v6, %v20144_v40  ;;  %v1848_v20 = vsub.f32 %v15380_v47, %v20143_v22 }
 0x27a   : > { %1567 = vst [vmem:[#allocation2 + $0x160] sm:$0xf] %v1548_v59  ;;  %1494 = vst [vmem:[#allocation2 + $0x128] sm:$0xff] %v1477_v3  ;;  %2387 = vmatmul.mubr.f32.gmra.mrb[8].mxu1 %v15421_v32  ;;  %v15442_v15 = vsub.f32 %v15367_v23, %v15426_v24  ;;  %v15445_v53 = vand.u32 4294901760, %v15301_v16  ;;  %12268 = vmatpush3.bf16.msra.mxu0 %v20987_v36  ;;  %v20145_v54 = vand.u32 4294901760, %v15410_v29  ;;  %v20147_v14 = vand.u32 4294901760, %v15421_v32 }
 0x27b   : > { %1530 = vst [vmem:[#allocation2 + $0x130] sm:$0xff] %v1513_v60  ;;  %1566 = vst [vmem:[#allocation2 + $0x138] sm:$0xff] %v1549_v28  ;;  %v15450_v59 = vand.u32 4294901760, %v1439_v63  ;;  %v15453_v19 = vand.u32 4294901760, %v15339_v62  ;;  %v20989_v3 = vld [vmem:[#allocation30_spill] sm:$0xff]  ;;  %12270 = vmatprep.subr.bf16.mxu0 %v14991_v38  ;;  %v1843_v23 = vand.u32 4294901760, %v1842_v56 }
 0x27c   : > { %20986 = vst [vmem:[#allocation66_spill] sm:$0xff] %v15445_v53  ;;  %12338 = vmatprep.subr.bf16.mxu1 %v20989_v3  ;;  %v1849_v60 = vand.u32 4294901760, %v1848_v20  ;;  %2393 = vmatprep.mubr.f32.mxu1 %v15442_v15  ;;  %v15460_v28 = vsub.f32 %v15301_v16, %v15445_v53  ;;  %v20149_v36 = vand.u32 4294901760, %v15442_v15  ;;  %v1857_v22 = vsub.f32 %v15410_v29, %v20145_v54  ;;  %v20990_v20 = vld [vmem:[#allocation31_spill] sm:$0xff]  ;;  %v15491_v3 = vld [vmem:[#allocation8 + $0x188] sm:$0xff] }
 0x27d   : > { %20988 = vst [vmem:[#allocation35_spill] sm:$0xff] %v15450_v59  ;;  %v1863_v40 = vsub.f32 %v15421_v32, %v20147_v14  ;;  %v15470_v38 = vsub.f32 %v1439_v63, %v15450_v59  ;;  %v15474_v56 = vsub.f32 %v15339_v62, %v15453_v19  ;;  %12340 = vmatpush3.bf16.msra.mxu1 %v20990_v20  ;;  %v15482_v4 = vand.u32 4294901760, %v1441_v12  ;;  %v1608_v14 = vld [vmem:[#allocation2 + $0x140] sm:$0xf]  ;;  %v15489_v20 = vld [vmem:[#allocation8 + $0x180] sm:$0xff] }
 0x27e   : > { %1844 = vmatprep.mubr.f32.mxu0 %v1843_v23  ;;  %2396 = vmatmul.mubr.f32.gmra.mrb[10].mxu1 %v15460_v28  ;;  %v1872_v16 = vsub.f32 %v15442_v15, %v20149_v36  ;;  %v20152_v54 = vand.u32 4294901760, %v15460_v28  ;;  %v15485_v63 = vand.u32 4294901760, %v15375_v5  ;;  %v1858_v62 = vand.u32 4294901760, %v1857_v22 }
 0x27f   : > { %1850 = vmatmul.mubr.f32.gmra.mrb[24].mxu0 %v1849_v60  ;;  %v1864_v44 = vand.u32 4294901760, %v1863_v40  ;;  %2402 = vmatprep.mubr.f32.mxu1 %v15470_v38  ;;  %v15497_v41 = vsub.f32 %v1441_v12, %v15482_v4  ;;  %v1609_v51 = vld [vmem:[#allocation2 + $0x148] sm:$0xf]  ;;  %v20991_v40 = vld [vmem:[#allocation36_spill] sm:$0xff]  ;;  %v15511_v12 = vand.u32 4294901760, %v1608_v14 }
 0x280   : > { %v1873_v36 = vand.u32 4294901760, %v1872_v16  ;;  %v1878_v61 = vsub.f32 %v15460_v28, %v20152_v54  ;;  %12272 = vmatpush3.bf16.msra.mxu0 %v20991_v40  ;;  %v20992_v60 = vld [vmem:[#allocation32_spill] sm:$0xff]  ;;  %1859 = vmatprep.mubr.f32.mxu0 %v1858_v62  ;;  %v15504_v23 = vsub.f32 %v15375_v5, %v15485_v63  ;;  %v20993_v16 = vand.u32 4294901760, %v15470_v38 }
 0x281   : > { %12342 = vmatprep.subr.bf16.mxu1 %v20992_v60  ;;  %v15509_v54 = vand.u32 4294901760, %v1609_v51  ;;  %20995 = vst [vmem:[#allocation67_spill] sm:$0xff] %v15511_v12  ;;  %12274 = vmatprep.subr.bf16.mxu0 %v20996_v33  ;;  %v20159_v40 = vand.u32 4294901760, %v15497_v41  ;;  %v20997_v60 = vand.u32 4294901760, %v15474_v56 }
 0x282   : > { %v1887_v11 = vsub.f32 %v15470_v38, %v20993_v16  ;;  %2405 = vmatmul.mubr.f32.gmra.mrb[12].mxu1 %v15474_v56  ;;  %v1879_v62 = vand.u32 4294901760, %v1878_v61  ;;  %v20157_v22 = vand.u32 4294901760, %v15504_v23 }
 0x283   : > { %20994 = vst [vmem:[#allocation36_spill] sm:$0xff] %v15509_v54  ;;  %1865 = vmatmul.mubr.f32.gmra.mrb[26].mxu0 %v1864_v44  ;;  %2411 = vmatprep.mubr.f32.mxu1 %v15497_v41  ;;  %v15520_v5 = vsub.f32 %v1609_v51, %v15509_v54  ;;  %v1893_v33 = vsub.f32 %v15474_v56, %v20997_v60  ;;  %v20999_v51 = vand.u32 4294901760, %v15489_v20 }
 0x284   : > { %1874 = vmatprep.mubr.f32.mxu0 %v1873_v36  ;;  %v1888_v16 = vand.u32 4294901760, %v1887_v11  ;;  %v1902_v18 = vsub.f32 %v15497_v41, %v20159_v40  ;;  %12344 = vmatpush3.bf16.msra.mxu1 %v20998_v45  ;;  %v15530_v44 = vsub.f32 %v1608_v14, %v15511_v12  ;;  %v21000_v36 = vand.u32 4294901760, %v15491_v3  ;;  %v15651_v40 = vld [vmem:[#allocation8 + $0x130] sm:$0xff] }
 0x285   : > { %12276 = vmatpush3.bf16.msra.mxu0 %v15014_v46  ;;  %v20156_v11 = vand.u32 4294901760, %v15520_v5  ;;  %12346 = vmatprep.subr.bf16.mxu1 %v15009_v31  ;;  %v1894_v31 = vand.u32 4294901760, %v1893_v33  ;;  %v21004_v33 = vand.u32 4294901760, %v14611_v0  ;;  %v15576_v0 = vld [vmem:[#allocation8 + $0x198] sm:$0xff]  ;;  %v15805_v45 = vld [vmem:[#allocation8 + $0x1f0] sm:$0xff] }
 0x286   : > { %2414 = vmatmul.mubr.f32.gmra.mrb[14].mxu1 %v15504_v23  ;;  %12278 = vmatprep.subr.bf16.mxu0 %v15017_v10  ;;  %v15542_v61 = vpack.c.bf16 %v21000_v36, %v20999_v51  ;;  %v1903_v14 = vand.u32 4294901760, %v1902_v18  ;;  %v1908_v10 = vsub.f32 %v15504_v23, %v20157_v22  ;;  %v20158_v60 = vand.u32 4294901760, %v15530_v44  ;;  %v15566_v22 = vld [vmem:[#allocation8 + $0x108] sm:$0xff] }
 0x287   : > { %1880 = vmatmul.mubr.f32.gmra.mrb[28].mxu0 %v1879_v62  ;;  %2420 = vmatprep.mubr.f32.mxu1 %v15520_v5  ;;  %v1917_v46 = vsub.f32 %v15520_v5, %v20156_v11  ;;  %v21002_v18 = vand.u32 4294901760, %v15214_v35  ;;  %v15564_v11 = vld [vmem:[#allocation8 + $0x100] sm:$0xff]  ;;  %v21006_v35 = vand.u32 4294901760, %v14623_v39  ;;  %v21009_v39 = vand.u32 4294901760, %v14640_v37 }
 0x288   : > { %21001 = vst [vmem:[#allocation37_spill] sm:$0xff] %v15542_v61  ;;  %1889 = vmatprep.mubr.f32.mxu0 %v1888_v16  ;;  %v21003_v16 = vand.u32 4294901760, %v14606_v52  ;;  %v1909_v36 = vand.u32 4294901760, %v1908_v10  ;;  %v15574_v52 = vld [vmem:[#allocation8 + $0x190] sm:$0xff]  ;;  %v21008_v10 = vand.u32 4294901760, %v15247_v43  ;;  %v15590_v43 = vld [vmem:[#allocation8 + $0x118] sm:$0xff] }
 0x289   : > { %12280 = vmatpush3.bf16.msra.mxu0 %v15019_v57  ;;  %v1918_v62 = vand.u32 4294901760, %v1917_v46  ;;  %v1923_v57 = vsub.f32 %v15530_v44, %v20158_v60  ;;  %v21007_v46 = vand.u32 4294901760, %v15176_v48  ;;  %v21012_v37 = vand.u32 4294901760, %v15285_v9 }
 0x28a   : > { %2423 = vmatmul.mubr.f32.gmra.mrb[16].mxu1 %v15530_v44  ;;  %12410 = vmatprep.subr.bf16.mxu0 %v15542_v61  ;;  %v12347_v51 = vpack.c.bf16 %v21004_v33, %v21003_v16  ;;  %v21010_v16 = vand.u32 4294901760, %v14645_v27 }
 0x28b   : > { %1895 = vmatmul.mubr.f32.gmra.mrb[30].mxu0 %v1894_v31  ;;  %2527 = vmatprep.mubr.f32.mxu1 %v21002_v18  ;;  %v21005_v31 = vand.u32 4294901760, %v14618_v30  ;;  %v20169_v18 = vand.u32 4294901760, %v15564_v11  ;;  %v20166_v30 = vand.u32 4294901760, %v15566_v22  ;;  %v1924_v33 = vand.u32 4294901760, %v1923_v57 }
 0x28c   : > { %1904 = vmatprep.mubr.f32.mxu0 %v1903_v14  ;;  %v12351_v48 = vpack.c.bf16 %v21010_v16, %v21009_v39  ;;  %v20160_v57 = vand.u32 4294901760, %v15590_v43  ;;  %v15618_v39 = vld [vmem:[#allocation8 + $0x120] sm:$0xff]  ;;  %v15620_v16 = vld [vmem:[#allocation8 + $0x128] sm:$0xff] }
 0x28d   : > { %v12349_v14 = vpack.c.bf16 %v21006_v35, %v21005_v31  ;;  %v20163_v31 = vand.u32 4294901760, %v15574_v52  ;;  %v15588_v35 = vld [vmem:[#allocation8 + $0x110] sm:$0xff]  ;;  %v15605_v27 = vpack.c.bf16 %v20166_v30, %v20169_v18  ;;  %v21025_v18 = vand.u32 4294901760, %v15421_v32 }
 0x28e   : > { %2531 = vmatmul.mubr.f32.vlgmr.msra.gmra.mrb[18].mxu1 %v21007_v46  ;;  %v15596_v46 = vld [vmem:[#allocation8 + $0x1a8] sm:$0xff]  ;;  %v21035_v30 = vand.u32 4294901760, %v15489_v20 }
 0x28f   : > { %1910 = vmatmul.mubr.f32.gmra.mrb[32].mxu0 %v1909_v36  ;;  %2538 = vmatprep.mubr.f32.mxu1 %v21008_v10  ;;  %v20162_v36 = vand.u32 4294901760, %v15576_v0  ;;  %21013 = vst [vmem:[#allocation68_spill] sm:$0xff] %v15605_v27  ;;  %v20164_v10 = vand.u32 4294901760, %v15596_v46 }
 0x290   : > { %1919 = vmatprep.mubr.f32.mxu0 %v1918_v62  ;;  %12348 = vmatpush3.bf16.msra.mxu1 %v12347_v51  ;;  %v21011_v62 = vand.u32 4294901760, %v15218_v1  ;;  %v15594_v51 = vld [vmem:[#allocation8 + $0x1a0] sm:$0xff]  ;;  %v20161_v1 = vand.u32 4294901760, %v15588_v35 }
 0x291   : > { %12350 = vmatprep.subr.bf16.mxu1 %v12349_v14  ;;  %v15613_v14 = vpack.c.bf16 %v20162_v36, %v20163_v31  ;;  %v20165_v9 = vand.u32 4294901760, %v15594_v51  ;;  %v15660_v36 = vld [vmem:[#allocation8 + $0x1c8] sm:$0xff]  ;;  %v21020_v31 = vld [vmem:[#allocation57_spill] sm:$0xff] }
 0x292   : > { %2542 = vmatmul.mubr.f32.gmra.mrb[20].mxu1 %v21011_v62  ;;  %v15626_v62 = vld [vmem:[#allocation8 + $0x1b8] sm:$0xff] }
 0x293   : > { %1925 = vmatmul.mubr.f32.gmra.mrb[34].mxu0 %v1924_v33  ;;  %2549 = vmatprep.mubr.f32.mxu1 %v21012_v37  ;;  %21014 = vst [vmem:[#allocation69_spill] sm:$0xff] %v15613_v14  ;;  %v15624_v33 = vld [vmem:[#allocation8 + $0x1b0] sm:$0xff]  ;;  %v21016_v37 = vand.u32 4294901760, %v15343_v6  ;;  %v15647_v6 = vpack.c.bf16 %v20164_v10, %v20165_v9  ;;  %v20170_v60 = vand.u32 4294901760, %v15626_v62  ;;  %v21021_v10 = vand.u32 4294901760, %v15410_v29  ;;  %v21023_v9 = vld [vmem:[#allocation38_spill] sm:$0xff] }
 0x294   : > { %2155 = vmatprep.mubr.f32.mxu0 %v15196_v7  ;;  %12352 = vmatpush3.bf16.msra.mxu1 %v12351_v48  ;;  %v21015_v48 = vand.u32 4294901760, %v15289_v2  ;;  %v20168_v2 = vand.u32 4294901760, %v15618_v39 }
 0x295   : > { %12354 = vmatprep.subr.bf16.mxu1 %v15025_v13  ;;  %v15637_v13 = vpack.c.bf16 %v20160_v57, %v20161_v1  ;;  %21018 = vst [vmem:[#allocation71_spill] sm:$0xff] %v15647_v6  ;;  %v15653_v57 = vld [vmem:[#allocation8 + $0x138] sm:$0xff]  ;;  %v21019_v1 = vand.u32 4294901760, %v15380_v47 }
 0x296   : > { %2553 = vmatmul.mubr.f32.gmra.mrb[22].mxu1 %v21015_v48  ;;  %v20167_v48 = vand.u32 4294901760, %v15620_v16  ;;  %v21029_v32 = vand.u32 4294901760, %v15653_v57 }
 0x297   : > { %2157 = vmatmul.mubr.f32.vlgmr.msra.gmra.mrb[36].mxu0 %v15168_v34  ;;  %2560 = vmatprep.mubr.f32.mxu1 %v21016_v37  ;;  %21017 = vst [vmem:[#allocation70_spill] sm:$0xff] %v15637_v13  ;;  %v20171_v37 = vand.u32 4294901760, %v15624_v33 }
 0x298   : > { %2162 = vmatprep.mubr.f32.mxu0 %v15228_v55  ;;  %12412 = vmatpush3.bf16.msra.mxu0 %v15605_v27  ;;  %v15671_v47 = vpack.c.bf16 %v20167_v48, %v20168_v2  ;;  %v15685_v48 = vld [vmem:[#allocation8 + $0x140] sm:$0xff]  ;;  %v15687_v2 = vld [vmem:[#allocation8 + $0x148] sm:$0xff] }
 0x299   : > { %12414 = vmatprep.subr.bf16.mxu0 %v15613_v14  ;;  %12356 = vmatpush3.bf16.msra.mxu1 %v15031_v26  ;;  %v15658_v26 = vld [vmem:[#allocation8 + $0x1c0] sm:$0xff]  ;;  %v15681_v29 = vpack.c.bf16 %v20170_v60, %v20171_v37  ;;  %v21027_v60 = vand.u32 4294901760, %v15442_v15  ;;  %v21028_v37 = vand.u32 4294901760, %v15651_v40  ;;  %v21039_v14 = vand.u32 4294901760, %v15564_v11 }
 0x29a   : > { %2564 = vmatmul.mubr.f32.gmra.mrb[24].mxu1 %v21019_v1  ;;  %12358 = vmatprep.subr.bf16.mxu1 %v15037_v8  ;;  %21022 = vst [vmem:[#allocation72_spill] sm:$0xff] %v15671_v47  ;;  %v21026_v1 = vld [vmem:[#allocation39_spill] sm:$0xff]  ;;  %v15694_v8 = vld [vmem:[#allocation8 + $0x1d8] sm:$0xff]  ;;  %v21032_v15 = vand.u32 4294901760, %v15658_v26 }
 0x29b   : > { %2164 = vmatmul.mubr.f32.gmra.mrb[38].mxu0 %v21020_v31  ;;  %2571 = vmatprep.mubr.f32.mxu1 %v21021_v10  ;;  %21024 = vst [vmem:[#allocation38_spill] sm:$0xff] %v15681_v29  ;;  %v21031_v10 = vld [vmem:[#allocation40_spill] sm:$0xff]  ;;  %v15743_v27 = vsub.f32 %v15564_v11, %v21039_v14  ;;  %v21043_v11 = vand.u32 4294901760, %v15685_v48 }
 0x29c   : > { %2169 = vmatprep.mubr.f32.mxu0 %v15267_v49  ;;  %12416 = vmatpush3.bf16.msra.mxu0 %v15637_v13  ;;  %v21038_v13 = vand.u32 4294901760, %v15491_v3 }
 0x29d   : > { %12418 = vmatprep.subr.bf16.mxu0 %v15647_v6  ;;  %12360 = vmatpush3.bf16.msra.mxu1 %v21023_v9  ;;  %v15692_v9 = vld [vmem:[#allocation8 + $0x1d0] sm:$0xff] }
 0x29e   : > { %2575 = vmatmul.mubr.f32.gmra.mrb[26].mxu1 %v21025_v18  ;;  %12362 = vmatprep.subr.bf16.mxu1 %v21026_v1  ;;  %v15705_v18 = vpack.c.bf16 %v21029_v32, %v21028_v37  ;;  %v15719_v37 = vld [vmem:[#allocation8 + $0x150] sm:$0xff]  ;;  %v15721_v32 = vld [vmem:[#allocation8 + $0x158] sm:$0xff]  ;;  %v15726_v1 = vsub.f32 %v15489_v20, %v21035_v30  ;;  %v21040_v20 = vand.u32 4294901760, %v15566_v22  ;;  %v21041_v30 = vand.u32 4294901760, %v15470_v38  ;;  %v15783_v38 = vld [vmem:[#allocation8 + $0x160] sm:$0xff] }
 0x29f   : > { %2171 = vmatmul.mubr.f32.gmra.mrb[40].mxu0 %v15254_v21  ;;  %2582 = vmatprep.mubr.f32.mxu1 %v21027_v60  ;;  %v21033_v60 = vand.u32 4294901760, %v15660_v36 }
 0x2a0   : > { %2176 = vmatprep.mubr.f32.mxu0 %v15327_v17  ;;  %12420 = vmatpush3.bf16.msra.mxu0 %v15671_v47  ;;  %21030 = vst [vmem:[#allocation39_spill] sm:$0xff] %v15705_v18  ;;  %v15738_v47 = vsub.f32 %v15491_v3, %v21038_v13  ;;  %v15785_v13 = vld [vmem:[#allocation8 + $0x168] sm:$0xff]  ;;  %v21062_v17 = vand.u32 4294901760, %v15624_v33 }
 0x2a1   : > { %12422 = vmatprep.subr.bf16.mxu0 %v15681_v29  ;;  %12364 = vmatpush3.bf16.msra.mxu1 %v21031_v10  ;;  %v15715_v6 = vpack.c.bf16 %v21033_v60, %v21032_v15  ;;  %v21036_v10 = vand.u32 4294901760, %v15460_v28  ;;  %v21037_v29 = vld [vmem:[#allocation41_spill] sm:$0xff]  ;;  %v15731_v15 = vld [vmem:[#allocation8 + $0x1e0] sm:$0xff]  ;;  %v15733_v60 = vld [vmem:[#allocation8 + $0x1e8] sm:$0xff]  ;;  %v15748_v28 = vsub.f32 %v15566_v22, %v21040_v20  ;;  %v21044_v22 = vand.u32 4294901760, %v15687_v2 }
 0x2a2   : > { %12366 = vmatprep.subr.bf16.mxu1 %v21037_v29  ;;  %v1571_v29 = vld [vmem:[#allocation2 + $0x18] sm:$0xff]  ;;  %v21046_v20 = vand.u32 4294901760, %v15576_v0 }
 0x2a3   : > { %21034 = vst [vmem:[#allocation40_spill] sm:$0xff] %v15715_v6  ;;  %2586 = vmatmul.mubr.f32.gmra.mrb[28].mxu1 %v21036_v10  ;;  %2178 = vmatmul.mubr.f32.gmra.mrb[42].mxu0 %v15362_v25  ;;  %v21042_v10 = vand.u32 4294901760, %v15574_v52  ;;  %v15764_v14 = vpack.c.bf16 %v21044_v22, %v21043_v11  ;;  %v21054_v22 = vand.u32 4294901760, %v15474_v56  ;;  %v21055_v11 = vld [vmem:[#allocation43_spill] sm:$0xff]  ;;  %v21059_v56 = vand.u32 4294901760, %v15620_v16  ;;  %v1576_v25 = vld [vmem:[#allocation2 + $0x40] sm:$0xff] }
 0x2a4   : > { %2593 = vmatprep.mubr.f32.mxu1 %v21041_v30  ;;  %2183 = vmatprep.mubr.f32.mxu0 %v15401_v50  ;;  %v15771_v30 = vsub.f32 %v15576_v0, %v21046_v20  ;;  %v21051_v0 = vand.u32 4294901760, %v15588_v35  ;;  %v15807_v50 = vld [vmem:[#allocation8 + $0x1f8] sm:$0xff] }
 0x2a5   : > { %v15756_v3 = vsub.f32 %v15574_v52, %v21042_v10  ;;  %12424 = vmatpush3.bf16.msra.mxu0 %v15705_v18  ;;  %21045 = vst [vmem:[#allocation41_spill] sm:$0xff] %v15764_v14  ;;  %v21047_v52 = vld [vmem:[#allocation42_spill] sm:$0xff]  ;;  %v21048_v10 = vand.u32 4294901760, %v15692_v9  ;;  %v21049_v18 = vand.u32 4294901760, %v15694_v8 }
 0x2a6   : > { %12426 = vmatprep.subr.bf16.mxu0 %v15715_v6  ;;  %12368 = vmatpush3.bf16.msra.mxu1 %v21047_v52  ;;  %v15790_v20 = vsub.f32 %v15588_v35, %v21051_v0  ;;  %v21052_v52 = vand.u32 4294901760, %v15590_v43  ;;  %v15809_v35 = vand.u32 4294901760, %v1571_v29  ;;  %v1570_v0 = vld [vmem:[#allocation2 + $0x10] sm:$0xff] }
 0x2a7   : > { %v15779_v61 = vpack.c.bf16 %v21049_v18, %v21048_v10  ;;  %v21053_v18 = vand.u32 4294901760, %v15594_v51  ;;  %2597 = vmatmul.mubr.f32.gmra.mrb[30].mxu1 %v21054_v22  ;;  %12370 = vmatprep.subr.bf16.mxu1 %v21055_v11  ;;  %v15824_v11 = vsub.f32 %v15620_v16, %v21059_v56  ;;  %v21061_v22 = vand.u32 4294901760, %v15497_v41  ;;  %v21067_v56 = vld [vmem:[#allocation44_spill] sm:$0xff]  ;;  %v1575_v41 = vld [vmem:[#allocation2 + $0x38] sm:$0xff] }
 0x2a8   : > { %v15795_v6 = vsub.f32 %v15590_v43, %v21052_v52  ;;  %21056 = vst [vmem:[#allocation43_spill] sm:$0xff] %v15809_v35  ;;  %v21057_v43 = vand.u32 4294901760, %v15596_v46  ;;  %2185 = vmatmul.mubr.f32.gmra.mrb[44].mxu0 %v15413_v58  ;;  %v21065_v16 = vand.u32 4294901760, %v15721_v32  ;;  %v21074_v58 = vand.u32 4294901760, %v15651_v40 }
 0x2a9   : > { %21050 = vst [vmem:[#allocation42_spill] sm:$0xff] %v15779_v61  ;;  %v15800_v10 = vsub.f32 %v15594_v51, %v21053_v18  ;;  %v21058_v51 = vand.u32 4294901760, %v15618_v39  ;;  %21060 = vst [vmem:[#allocation73_spill] sm:$0xff] %v15824_v11  ;;  %2604 = vmatprep.mubr.f32.mxu1 %v21061_v22  ;;  %2190 = vmatprep.mubr.f32.mxu0 %v15426_v24  ;;  %v21076_v24 = vld [vmem:[#allocation45_spill] sm:$0xff]  ;;  %v21079_v11 = vand.u32 4294901760, %v15653_v57 }
 0x2aa   : > { %v15814_v52 = vsub.f32 %v15596_v46, %v21057_v43  ;;  %v15832_v46 = vsub.f32 %v15624_v33, %v21062_v17  ;;  %12428 = vmatpush3.bf16.msra.mxu0 %v15764_v14  ;;  %12372 = vmatpush3.bf16.msra.mxu1 %v21067_v56  ;;  %v21068_v17 = vand.u32 4294901760, %v15731_v15  ;;  %v21069_v33 = vand.u32 4294901760, %v15733_v60 }
 0x2ab   : > { %v15819_v18 = vsub.f32 %v15618_v39, %v21058_v51  ;;  %v21064_v39 = vand.u32 4294901760, %v15719_v37  ;;  %12430 = vmatprep.subr.bf16.mxu0 %v15779_v61  ;;  %v15858_v51 = vand.u32 4294901760, %v1570_v0  ;;  %v21072_v56 = vand.u32 4294901760, %v15626_v62  ;;  %12374 = vmatprep.subr.bf16.mxu1 %v21076_v24 }
 0x2ac   : > { %21063 = vst [vmem:[#allocation74_spill] sm:$0xff] %v15832_v46  ;;  %v15850_v22 = vpack.c.bf16 %v21069_v33, %v21068_v17  ;;  %v15868_v17 = vsub.f32 %v15651_v40, %v21074_v58  ;;  %v21075_v33 = vand.u32 4294901760, %v15504_v23  ;;  %v15874_v14 = vsub.f32 %v1571_v29, %v15809_v35  ;;  %2192 = vmatmul.mubr.f32.gmra.mrb[46].mxu0 %v15445_v53  ;;  %v1581_v29 = vld [vmem:[#allocation2 + $0x68] sm:$0xff] }
 0x2ad   : > { %v15840_v43 = vpack.c.bf16 %v21065_v16, %v21064_v39  ;;  %v15854_v39 = vld [vmem:[#allocation8 + $0x170] sm:$0xff]  ;;  %v15856_v16 = vld [vmem:[#allocation8 + $0x178] sm:$0xff]  ;;  %21071 = vst [vmem:[#allocation76_spill] sm:$0xff] %v15858_v51  ;;  %v15863_v61 = vsub.f32 %v15626_v62, %v21072_v56  ;;  %v15876_v46 = vand.u32 4294901760, %v1576_v25  ;;  %v15881_v62 = vsub.f32 %v15653_v57, %v21079_v11  ;;  %2197 = vmatprep.mubr.f32.mxu0 %v15450_v59  ;;  %v1580_v59 = vld [vmem:[#allocation2 + $0x60] sm:$0xff] }
 0x2ae   : > { %21070 = vst [vmem:[#allocation44_spill] sm:$0xff] %v15850_v22  ;;  %2608 = vmatmul.mubr.f32.gmra.mrb[32].mxu1 %v21075_v33  ;;  %21077 = vst [vmem:[#allocation45_spill] sm:$0xff] %v15874_v14  ;;  %v21080_v56 = vand.u32 4294901760, %v15658_v26  ;;  %v21081_v23 = vand.u32 4294901760, %v15660_v36  ;;  %v21083_v24 = vand.u32 4294901760, %v15520_v5  ;;  %v21084_v57 = vand.u32 4294901760, %v15783_v38 }
 0x2af   : > { %21066 = vst [vmem:[#allocation75_spill] sm:$0xff] %v15840_v43  ;;  %21073 = vst [vmem:[#allocation77_spill] sm:$0xff] %v15863_v61  ;;  %12432 = vmatpush3.bf16.msra.mxu0 %v15840_v43  ;;  %v3051_v33 = vand.u32 4294901760, %v15854_v39  ;;  %v21088_v5 = vand.u32 4294901760, %v15685_v48  ;;  %v21090_v43 = vand.u32 4294901760, %v15805_v45  ;;  %v15922_v35 = vsub.f32 %v1570_v0, %v15858_v51 }
 0x2b0   : > { %21078 = vst [vmem:[#allocation78_spill] sm:$0xff] %v15876_v46  ;;  %v15886_v58 = vsub.f32 %v15658_v26, %v21080_v56  ;;  %v15891_v40 = vsub.f32 %v15660_v36, %v21081_v23  ;;  %2615 = vmatprep.mubr.f32.mxu1 %v21083_v24  ;;  %v21085_v26 = vand.u32 4294901760, %v15785_v13  ;;  %v3054_v36 = vand.u32 4294901760, %v15856_v16  ;;  %v21089_v24 = vld [vmem:[#allocation46_spill] sm:$0xff]  ;;  %12434 = vmatprep.subr.bf16.mxu0 %v15850_v22 }
 0x2b1   : > { %v15906_v56 = vand.u32 4294901760, %v1575_v41  ;;  %v15911_v23 = vsub.f32 %v15685_v48, %v21088_v5  ;;  %12376 = vmatpush3.bf16.msra.mxu1 %v21089_v24  ;;  %21093 = vst [vmem:[#allocation82_spill] sm:$0xff] %v15922_v35  ;;  %v21094_v53 = vand.u32 4294901760, %v15687_v2  ;;  %v21095_v48 = vand.u32 4294901760, %v15530_v44  ;;  %v21096_v24 = vld [vmem:[#allocation27_spill] sm:$0xff]  ;;  %2199 = vmatmul.mubr.f32.gmra.mrb[48].mxu0 %v15453_v19 }
 0x2b2   : > { %21082 = vst [vmem:[#allocation79_spill] sm:$0xff] %v15891_v40  ;;  %v15902_v11 = vpack.c.bf16 %v21085_v26, %v21084_v57  ;;  %v21091_v57 = vand.u32 4294901760, %v15807_v50  ;;  %12378 = vmatprep.subr.bf16.mxu1 %v21096_v24  ;;  %v15934_v22 = vsub.f32 %v1576_v25, %v15876_v46  ;;  %v21099_v0 = vand.u32 4294901760, %v15692_v9  ;;  %v1586_v25 = vld [vmem:[#allocation2 + $0x90] sm:$0xff]  ;;  %2204 = vmatprep.mubr.f32.mxu0 %v15482_v4 }
 0x2b3   : > { %21087 = vst [vmem:[#allocation81_spill] sm:$0xff] %v15906_v56  ;;  %v15927_v40 = vsub.f32 %v15687_v2, %v21094_v53  ;;  %2619 = vmatmul.mubr.f32.gmra.mrb[34].mxu1 %v21095_v48  ;;  %v21100_v53 = vand.u32 4294901760, %v15694_v8  ;;  %v21101_v44 = vand.u32 4294901760, %v15719_v37  ;;  %v21102_v24 = vand.u32 4294901760, %v15721_v32 }
 0x2b4   : > { %21086 = vst [vmem:[#allocation80_spill] sm:$0xff] %v15902_v11  ;;  %v15919_v26 = vpack.c.bf16 %v21091_v57, %v21090_v43  ;;  %21097 = vst [vmem:[#allocation27_spill] sm:$0xff] %v15934_v22  ;;  %v15936_v43 = vand.u32 4294901760, %v1581_v29  ;;  %v15941_v57 = vsub.f32 %v15692_v9, %v21099_v0  ;;  %2785 = vmatprep.mubr.f32.mxu1 %v15196_v7  ;;  %12436 = vmatpush3.bf16.msra.mxu0 %v15902_v11 }
 0x2b5   : > { %v15946_v2 = vsub.f32 %v15694_v8, %v21100_v53  ;;  %v15952_v48 = vsub.f32 %v15719_v37, %v21101_v44  ;;  %v15958_v9 = vsub.f32 %v15721_v32, %v21102_v24  ;;  %v15962_v8 = vpack.c.bf16 %v3054_v36, %v3051_v33  ;;  %2206 = vmatmul.mubr.f32.gmra.mrb[50].mxu0 %v15485_v63 }
 0x2b6   : > { %21092 = vst [vmem:[#allocation46_spill] sm:$0xff] %v15919_v26  ;;  %21098 = vst [vmem:[#allocation83_spill] sm:$0xff] %v15936_v43  ;;  %v15965_v0 = vsub.f32 %v1575_v41, %v15906_v56  ;;  %v15967_v53 = vand.u32 4294901760, %v1580_v59  ;;  %v21106_v37 = vand.u32 4294901760, %v15731_v15  ;;  %v21107_v5 = vand.u32 4294901760, %v15733_v60  ;;  %12438 = vmatprep.subr.bf16.mxu0 %v15919_v26  ;;  %v1591_v26 = vld [vmem:[#allocation2 + $0xb8] sm:$0xff]  ;;  %2211 = vmatprep.mubr.f32.mxu0 %v15509_v54 }
 0x2b7   : > { %21103 = vst [vmem:[#allocation84_spill] sm:$0xff] %v15962_v8  ;;  %v12473_v41 = vpack.c.bf16 %v15738_v47, %v15726_v1  ;;  %2787 = vmatmul.mubr.f32.vlgmr.msra.gmra.mrb[36].mxu1 %v15168_v34  ;;  %v21108_v11 = vand.u32 4294901760, %v15874_v14  ;;  %v21111_v24 = vand.u32 4294901760, %v15783_v38  ;;  %v21112_v51 = vand.u32 4294901760, %v15785_v13 }
 0x2b8   : > { %21104 = vst [vmem:[#allocation85_spill] sm:$0xff] %v15965_v0  ;;  %21105 = vst [vmem:[#allocation86_spill] sm:$0xff] %v15967_v53  ;;  %v15972_v44 = vsub.f32 %v15731_v15, %v21106_v37  ;;  %v15977_v32 = vsub.f32 %v15733_v60, %v21107_v5  ;;  %v15989_v37 = vsub.f32 %v1581_v29, %v15936_v43  ;;  %v15991_v60 = vand.u32 4294901760, %v1586_v25  ;;  %v1585_v5 = vld [vmem:[#allocation2 + $0x88] sm:$0xff] }
 0x2b9   : > { %v3107_v56 = vsub.f32 %v15874_v14, %v21108_v11  ;;  %v15997_v46 = vsub.f32 %v15783_v38, %v21111_v24  ;;  %v16002_v11 = vsub.f32 %v15785_v13, %v21112_v51  ;;  %2792 = vmatprep.mubr.f32.mxu1 %v15228_v55  ;;  %v21113_v29 = vand.u32 4294901760, %v15805_v45  ;;  %12440 = vmatpush3.bf16.msra.mxu0 %v15962_v8  ;;  %v21116_v24 = vld [vmem:[#allocation28_spill] sm:$0xff] }
 0x2ba   : > { %21109 = vst [vmem:[#allocation87_spill] sm:$0xff] %v15989_v37  ;;  %21110 = vst [vmem:[#allocation88_spill] sm:$0xff] %v15991_v60  ;;  %v21114_v43 = vand.u32 4294901760, %v15807_v50  ;;  %v16018_v38 = vsub.f32 %v15854_v39, %v3051_v33  ;;  %v16022_v51 = vsub.f32 %v1580_v59, %v15967_v53  ;;  %12380 = vmatpush3.bf16.msra.mxu1 %v21116_v24  ;;  %12474 = vmatprep.subr.bf16.mxu0 %v12473_v41  ;;  %v1590_v39 = vld [vmem:[#allocation2 + $0xb0] sm:$0xff]  ;;  %v1596_v33 = vld [vmem:[#allocation2 + $0xe0] sm:$0xff] }
 0x2bb   : > { %v16008_v15 = vsub.f32 %v15805_v45, %v21113_v29  ;;  %v16025_v45 = vsub.f32 %v15856_v16, %v3054_v36  ;;  %v21117_v29 = vand.u32 4294901760, %v15922_v35  ;;  %v16033_v8 = vand.u32 4294901760, %v1591_v26  ;;  %2794 = vmatmul.mubr.f32.gmra.mrb[38].mxu1 %v21020_v31  ;;  %v21121_v36 = vld [vmem:[#allocation19_spill] sm:$0xff]  ;;  %2213 = vmatmul.mubr.f32.gmra.mrb[52].mxu0 %v15511_v12  ;;  %v21126_v31 = vld [vmem:[#allocation20_spill] sm:$0xff]  ;;  %v1606_v12 = vld [vmem:[#allocation2 + $0x130] sm:$0xff] }
 0x2bc   : > { %v16014_v14 = vsub.f32 %v15807_v50, %v21114_v43  ;;  %21115 = vst [vmem:[#allocation89_spill] sm:$0xff] %v16022_v51  ;;  %v16031_v43 = vand.u32 4294901760, %v1585_v5  ;;  %v3108_v13 = vand.u32 4294901760, %v3107_v56  ;;  %v21120_v59 = vand.u32 4294901760, %v15934_v22  ;;  %12382 = vmatprep.subr.bf16.mxu1 %v21121_v36  ;;  %v1595_v41 = vld [vmem:[#allocation2 + $0xd8] sm:$0xff]  ;;  %2799 = vmatprep.mubr.f32.mxu1 %v15267_v49 }
 0x2bd   : > { %v3113_v50 = vsub.f32 %v15922_v35, %v21117_v29  ;;  %21119 = vst [vmem:[#allocation90_spill] sm:$0xff] %v16033_v8  ;;  %v16042_v29 = vsub.f32 %v1586_v25, %v15991_v60  ;;  %v12475_v56 = vpack.c.bf16 %v15748_v28, %v15743_v27  ;;  %v12477_v53 = vpack.c.bf16 %v15771_v30, %v15756_v3  ;;  %v1601_v35 = vld [vmem:[#allocation2 + $0x108] sm:$0xff] }
 0x2be   : > { %21118 = vst [vmem:[#allocation28_spill] sm:$0xff] %v16031_v43  ;;  %v3122_v16 = vsub.f32 %v15934_v22, %v21120_v59  ;;  %v12479_v59 = vpack.c.bf16 %v15795_v6, %v15790_v20  ;;  %3109 = vmatprep.mubr.f32.mxu0 %v3108_v13  ;;  %v21123_v36 = vand.u32 4294901760, %v15965_v0  ;;  %v16056_v60 = vand.u32 4294901760, %v1590_v39  ;;  %12384 = vmatpush3.bf16.msra.mxu1 %v21126_v31 }
 0x2bf   : > { %21122 = vst [vmem:[#allocation19_spill] sm:$0xff] %v16042_v29  ;;  %v16058_v22 = vand.u32 4294901760, %v1596_v33  ;;  %v3114_v49 = vand.u32 4294901760, %v3113_v50  ;;  %v16062_v55 = vsub.f32 %v1585_v5, %v16031_v43  ;;  %v16065_v34 = vsub.f32 %v1591_v26, %v16033_v8  ;;  %2801 = vmatmul.mubr.f32.gmra.mrb[40].mxu1 %v15254_v21  ;;  %12386 = vmatprep.subr.bf16.mxu1 %v14826_v42  ;;  %v1600_v5 = vld [vmem:[#allocation2 + $0x100] sm:$0xff]  ;;  %v21130_v26 = vld [vmem:[#allocation62_spill] sm:$0xff]  ;;  %v21131_v8 = vld [vmem:[#allocation73_spill] sm:$0xff] }
 0x2c0   : > { %v3128_v25 = vsub.f32 %v15965_v0, %v21123_v36  ;;  %21124 = vst [vmem:[#allocation91_spill] sm:$0xff] %v16056_v60  ;;  %v16067_v13 = vand.u32 4294901760, %v1595_v41  ;;  %v3123_v7 = vand.u32 4294901760, %v3122_v16  ;;  %v21129_v36 = vand.u32 4294901760, %v15989_v37  ;;  %2806 = vmatprep.mubr.f32.mxu1 %v21130_v26  ;;  %v21132_v43 = vld [vmem:[#allocation74_spill] sm:$0xff] }
 0x2c1   : > { %21125 = vst [vmem:[#allocation92_spill] sm:$0xff] %v16058_v22  ;;  %21127 = vst [vmem:[#allocation20_spill] sm:$0xff] %v16062_v55  ;;  %v12481_v31 = vpack.c.bf16 %v15814_v52, %v15800_v10  ;;  %3115 = vmatmul.mubr.f32.vlgmr.msra.gmra.mrb[54].mxu0 %v3114_v49  ;;  %v12483_v16 = vpack.c.bf16 %v21131_v8, %v15819_v18  ;;  %v12485_v0 = vpack.c.bf16 %v15863_v61, %v21132_v43  ;;  %v1605_v61 = vld [vmem:[#allocation2 + $0x128] sm:$0xff] }
 0x2c2   : > { %21128 = vst [vmem:[#allocation93_spill] sm:$0xff] %v16067_v13  ;;  %v3137_v24 = vsub.f32 %v15989_v37, %v21129_v36  ;;  %v16084_v37 = vand.u32 4294901760, %v1601_v35  ;;  %3124 = vmatprep.mubr.f32.mxu0 %v3123_v7  ;;  %12476 = vmatpush3.bf16.msra.mxu0 %v12475_v56  ;;  %v3129_v42 = vand.u32 4294901760, %v3128_v25  ;;  %v21134_v50 = vand.u32 4294901760, %v16022_v51  ;;  %v21136_v43 = vld [vmem:[#allocation21_spill] sm:$0xff]  ;;  %v21152_v7 = vld [vmem:[#allocation24_spill] sm:$0xff] }
 0x2c3   : > { %v16090_v26 = vsub.f32 %v1590_v39, %v16056_v60  ;;  %v16093_v21 = vsub.f32 %v1596_v33, %v16058_v22  ;;  %12478 = vmatprep.subr.bf16.mxu0 %v12477_v53  ;;  %12388 = vmatpush3.bf16.msra.mxu1 %v21136_v43  ;;  %v16099_v56 = vsub.f32 %v1595_v41, %v16067_v13  ;;  %v16101_v25 = vand.u32 4294901760, %v1600_v5  ;;  %v21139_v39 = vld [vmem:[#allocation63_spill] sm:$0xff]  ;;  %v21141_v60 = vld [vmem:[#allocation22_spill] sm:$0xff]  ;;  %v21143_v41 = vld [vmem:[#allocation64_spill] sm:$0xff] }
 0x2c4   : > { %21133 = vst [vmem:[#allocation73_spill] sm:$0xff] %v16084_v37  ;;  %v3143_v49 = vsub.f32 %v16022_v51, %v21134_v50  ;;  %v3138_v50 = vand.u32 4294901760, %v3137_v24  ;;  %2808 = vmatmul.mubr.f32.gmra.mrb[42].mxu1 %v21139_v39  ;;  %v21140_v33 = vand.u32 4294901760, %v16042_v29  ;;  %12390 = vmatprep.subr.bf16.mxu1 %v21141_v60  ;;  %v21142_v53 = vld [vmem:[#allocation79_spill] sm:$0xff]  ;;  %v16114_v36 = vsub.f32 %v1601_v35, %v16084_v37  ;;  %v21151_v51 = vld [vmem:[#allocation65_spill] sm:$0xff] }
 0x2c5   : > { %21135 = vst [vmem:[#allocation94_spill] sm:$0xff] %v16093_v21  ;;  %21137 = vst [vmem:[#allocation21_spill] sm:$0xff] %v16099_v56  ;;  %v12489_v43 = vpack.c.bf16 %v21142_v53, %v15886_v58  ;;  %3130 = vmatmul.mubr.f32.gmra.mrb[56].mxu0 %v3129_v42  ;;  %2813 = vmatprep.mubr.f32.mxu1 %v21143_v41  ;;  %v16118_v13 = vand.u32 4294901760, %v1606_v12  ;;  %v1611_v60 = vld [vmem:[#allocation2 + $0x158] sm:$0xf]  ;;  %v21148_v24 = vand.u32 4294901760, %v16062_v55 }
 0x2c6   : > { %21138 = vst [vmem:[#allocation95_spill] sm:$0xff] %v16101_v25  ;;  %v3152_v22 = vsub.f32 %v16042_v29, %v21140_v33  ;;  %21144 = vst [vmem:[#allocation22_spill] sm:$0xff] %v16114_v36  ;;  %v16120_v33 = vand.u32 4294901760, %v1605_v61  ;;  %3139 = vmatprep.mubr.f32.mxu0 %v3138_v50  ;;  %12480 = vmatpush3.bf16.msra.mxu0 %v12479_v59  ;;  %v3144_v29 = vand.u32 4294901760, %v3143_v49  ;;  %v21147_v35 = vld [vmem:[#allocation23_spill] sm:$0xff]  ;;  %v21149_v41 = vand.u32 4294901760, %v16065_v34 }
 0x2c7   : > { %21145 = vst [vmem:[#allocation79_spill] sm:$0xff] %v16118_v13  ;;  %12482 = vmatprep.subr.bf16.mxu0 %v12481_v31  ;;  %12392 = vmatpush3.bf16.msra.mxu1 %v21147_v35  ;;  %v3158_v37 = vsub.f32 %v16062_v55, %v21148_v24  ;;  %v16135_v49 = vsub.f32 %v1600_v5, %v16101_v25  ;;  %v16139_v31 = vand.u32 4294901760, %v1611_v60  ;;  %v1610_v35 = vld [vmem:[#allocation2 + $0x150] sm:$0xf]  ;;  %v21157_v39 = vand.u32 4294901760, %v16090_v26 }
 0x2c8   : > { %21146 = vst [vmem:[#allocation96_spill] sm:$0xff] %v16120_v33  ;;  %v3167_v50 = vsub.f32 %v16065_v34, %v21149_v41  ;;  %v3153_v42 = vand.u32 4294901760, %v3152_v22  ;;  %2815 = vmatmul.mubr.f32.gmra.mrb[44].mxu1 %v21151_v51  ;;  %12394 = vmatprep.subr.bf16.mxu1 %v21152_v7  ;;  %v21154_v55 = vld [vmem:[#allocation34_spill] sm:$0xff]  ;;  %v16146_v5 = vsub.f32 %v1606_v12, %v16118_v13  ;;  %v21159_v13 = vld [vmem:[#allocation25_spill] sm:$0xff]  ;;  %v16166_v22 = vand.u32 4294901760, %v1610_v35  ;;  %v21167_v12 = vld [vmem:[#allocation35_spill] sm:$0xff] }
 0x2c9   : > { %21150 = vst [vmem:[#allocation23_spill] sm:$0xff] %v16135_v49  ;;  %21153 = vst [vmem:[#allocation65_spill] sm:$0xff] %v16139_v31  ;;  %3145 = vmatmul.mubr.f32.gmra.mrb[58].mxu0 %v3144_v29  ;;  %2820 = vmatprep.mubr.f32.mxu1 %v21154_v55  ;;  %v16151_v7 = vsub.f32 %v1605_v61, %v16120_v33  ;;  %v3173_v24 = vsub.f32 %v16090_v26, %v21157_v39  ;;  %v21158_v29 = vand.u32 4294901760, %v16093_v21  ;;  %v21162_v33 = vld [vmem:[#allocation66_spill] sm:$0xff] }
 0x2ca   : > { %21155 = vst [vmem:[#allocation24_spill] sm:$0xff] %v16146_v5  ;;  %3154 = vmatprep.mubr.f32.mxu0 %v3153_v42  ;;  %12484 = vmatpush3.bf16.msra.mxu0 %v12483_v16  ;;  %v3159_v41 = vand.u32 4294901760, %v3158_v37  ;;  %v21160_v61 = vand.u32 4294901760, %v16099_v56  ;;  %21161 = vst [vmem:[#allocation25_spill] sm:$0xff] %v16166_v22  ;;  %v3168_v39 = vand.u32 4294901760, %v3167_v50  ;;  %v21163_v25 = vld [vmem:[#allocation26_spill] sm:$0xff] }
 0x2cb   : > { %21156 = vst [vmem:[#allocation34_spill] sm:$0xff] %v16151_v7  ;;  %v3182_v59 = vsub.f32 %v16093_v21, %v21158_v29  ;;  %12486 = vmatprep.subr.bf16.mxu0 %v12485_v0  ;;  %12396 = vmatpush3.bf16.msra.mxu1 %v21159_v13  ;;  %v16171_v29 = vsub.f32 %v1611_v60, %v16139_v31  ;;  %v21165_v0 = vand.u32 4294901760, %v15726_v1  ;;  %v21166_v13 = vand.u32 4294901760, %v15738_v47 }
 0x2cc   : > { %v3188_v42 = vsub.f32 %v16099_v56, %v21160_v61  ;;  %2822 = vmatmul.mubr.f32.gmra.mrb[46].mxu1 %v21162_v33  ;;  %12398 = vmatprep.subr.bf16.mxu1 %v21163_v25  ;;  %v21168_v50 = vand.u32 4294901760, %v16114_v36  ;;  %v21171_v25 = vand.u32 4294901760, %v16135_v49  ;;  %v16197_v31 = vsub.f32 %v1610_v35, %v16166_v22 }
 0x2cd   : > { %21164 = vst [vmem:[#allocation66_spill] sm:$0xff] %v16171_v29  ;;  %v3356_v37 = vsub.f32 %v15726_v1, %v21165_v0  ;;  %v3363_v61 = vsub.f32 %v15738_v47, %v21166_v13  ;;  %3160 = vmatmul.mubr.f32.gmra.mrb[60].mxu0 %v3159_v41  ;;  %2827 = vmatprep.mubr.f32.mxu1 %v21167_v12  ;;  %v3174_v13 = vand.u32 4294901760, %v3173_v24  ;;  %v3183_v41 = vand.u32 4294901760, %v3182_v59  ;;  %v21173_v24 = vld [vmem:[#allocation30_spill] sm:$0xff] }
 0x2ce   : > { %v3197_v16 = vsub.f32 %v16114_v36, %v21168_v50  ;;  %3169 = vmatprep.mubr.f32.mxu0 %v3168_v39  ;;  %v21169_v0 = vpack.c.bf16 %v15881_v62, %v15868_v17  ;;  %v21170_v50 = vld [vmem:[#allocation29_spill] sm:$0xff]  ;;  %v3203_v60 = vsub.f32 %v16135_v49, %v21171_v25  ;;  %21172 = vst [vmem:[#allocation26_spill] sm:$0xff] %v16197_v31  ;;  %v3189_v59 = vand.u32 4294901760, %v3188_v42 }
 0x2cf   : > { %12400 = vmatpush3.bf16.msra.mxu1 %v21170_v50  ;;  %v3357_v21 = vand.u32 4294901760, %v3356_v37  ;;  %v3364_v50 = vand.u32 4294901760, %v3363_v61  ;;  %v21174_v35 = vand.u32 4294901760, %v16146_v5  ;;  %v21175_v39 = vand.u32 4294901760, %v16151_v7 }
 0x2d0   : > { %12488 = vmatpush3.bf16.msra.mxu0 %v21169_v0  ;;  %2829 = vmatmul.mubr.f32.gmra.mrb[48].mxu1 %v15453_v19  ;;  %v3198_v25 = vand.u32 4294901760, %v3197_v16  ;;  %v21176_v37 = vpack.c.bf16 %v15927_v40, %v15911_v23  ;;  %v21177_v61 = vand.u32 4294901760, %v15743_v27  ;;  %v3204_v42 = vand.u32 4294901760, %v3203_v60 }
 0x2d1   : > { %12490 = vmatprep.subr.bf16.mxu0 %v12489_v43  ;;  %12402 = vmatprep.subr.bf16.mxu1 %v21173_v24  ;;  %v3212_v56 = vsub.f32 %v16146_v5, %v21174_v35  ;;  %v16211_v0 = vsub.f32 %v16151_v7, %v21175_v39  ;;  %v21179_v43 = vld [vmem:[#allocation31_spill] sm:$0xff]  ;;  %v21181_v22 = vand.u32 4294901760, %v15756_v3  ;;  %v21182_v7 = vand.u32 4294901760, %v15771_v30  ;;  %v21183_v39 = vld [vmem:[#allocation32_spill] sm:$0xff] }
 0x2d2   : > { %3175 = vmatmul.mubr.f32.gmra.mrb[62].mxu0 %v3174_v13  ;;  %2834 = vmatprep.mubr.f32.mxu1 %v15482_v4  ;;  %v3244_v16 = vsub.f32 %v15743_v27, %v21177_v61  ;;  %v21178_v13 = vand.u32 4294901760, %v15748_v28  ;;  %v21189_v49 = vpack.c.bf16 %v15977_v32, %v15972_v44 }
 0x2d3   : > { %3184 = vmatprep.mubr.f32.mxu0 %v3183_v41  ;;  %12404 = vmatpush3.bf16.msra.mxu1 %v21179_v43  ;;  %v21180_v41 = vpack.c.bf16 %v15946_v2, %v15941_v57  ;;  %v3370_v61 = vsub.f32 %v15756_v3, %v21181_v22  ;;  %v21184_v43 = vand.u32 4294901760, %v16171_v29  ;;  %v3213_v22 = vand.u32 4294901760, %v3212_v56 }
 0x2d4   : > { %12492 = vmatpush3.bf16.msra.mxu0 %v21176_v37  ;;  %v3251_v24 = vsub.f32 %v15748_v28, %v21178_v13  ;;  %v3377_v13 = vsub.f32 %v15771_v30, %v21182_v7  ;;  %2836 = vmatmul.mubr.f32.gmra.mrb[50].mxu1 %v15485_v63  ;;  %v3219_v5 = vand.u32 4294901760, %v16211_v0  ;;  %v21187_v37 = vand.u32 4294901760, %v15795_v6  ;;  %v21188_v0 = vld [vmem:[#allocation33_spill] sm:$0xff] }
 0x2d5   : > { %12494 = vmatprep.subr.bf16.mxu0 %v21180_v41  ;;  %12406 = vmatprep.subr.bf16.mxu1 %v21183_v39  ;;  %v3227_v35 = vsub.f32 %v16171_v29, %v21184_v43  ;;  %v12441_v41 = vpack.c.bf16 %v3364_v50, %v3357_v21  ;;  %v21185_v39 = vpack.c.bf16 %v15958_v9, %v15952_v48  ;;  %v3245_v21 = vand.u32 4294901760, %v3244_v16  ;;  %v21193_v29 = vld [vmem:[#allocation67_spill] sm:$0xff] }
 0x2d6   : > { %3190 = vmatmul.mubr.f32.gmra.mrb[64].mxu0 %v3189_v59  ;;  %2841 = vmatprep.mubr.f32.mxu1 %v15509_v54  ;;  %v3252_v50 = vand.u32 4294901760, %v3251_v24  ;;  %v21186_v43 = vand.u32 4294901760, %v15790_v20  ;;  %v3265_v56 = vsub.f32 %v15795_v6, %v21187_v37  ;;  %v21191_v16 = vand.u32 4294901760, %v15726_v1  ;;  %v21196_v54 = vld [vmem:[#allocation74_spill] sm:$0xff] }
 0x2d7   : > { %3199 = vmatprep.mubr.f32.mxu0 %v3198_v25  ;;  %12408 = vmatpush3.bf16.msra.mxu1 %v21188_v0  ;;  %v21190_v25 = vand.u32 4294901760, %v16197_v31  ;;  %v21192_v24 = vand.u32 4294901760, %v15738_v47  ;;  %v3378_v60 = vand.u32 4294901760, %v3377_v13  ;;  %v21194_v37 = vand.u32 4294901760, %v15800_v10  ;;  %v21198_v47 = vld [vmem:[#allocation58_spill] sm:$0xff] }
 0x2d8   : > { %12496 = vmatpush3.bf16.msra.mxu0 %v21185_v39  ;;  %v3258_v59 = vsub.f32 %v15790_v20, %v21186_v43  ;;  %v3371_v43 = vand.u32 4294901760, %v3370_v61  ;;  %2843 = vmatmul.mubr.f32.gmra.mrb[52].mxu1 %v21193_v29  ;;  %v3228_v61 = vand.u32 4294901760, %v3227_v35  ;;  %v21199_v13 = vand.u32 4294901760, %v15743_v27 }
 0x2d9   : > { %12498 = vmatprep.subr.bf16.mxu0 %v21189_v49  ;;  %v3233_v39 = vsub.f32 %v16197_v31, %v21190_v25  ;;  %v12537_v7 = vpack.c.bf16 %v21192_v24, %v21191_v16  ;;  %12442 = vmatprep.subr.bf16.mxu1 %v12441_v41  ;;  %v3384_v0 = vsub.f32 %v15800_v10, %v21194_v37  ;;  %v21195_v49 = vand.u32 4294901760, %v15814_v52  ;;  %v21197_v31 = vld [vmem:[#allocation77_spill] sm:$0xff] }
 0x2da   : > { %3205 = vmatmul.mubr.f32.gmra.mrb[66].mxu0 %v3204_v42  ;;  %2945 = vmatprep.mubr.f32.mxu1 %v21198_v47  ;;  %v21200_v41 = vand.u32 4294901760, %v15748_v28  ;;  %v21201_v24 = vand.u32 4294901760, %v15819_v18  ;;  %v21203_v42 = vpack.c.bf16 %v16002_v11, %v15997_v46  ;;  %v12443_v35 = vpack.c.bf16 %v3252_v50, %v3245_v21 }
 0x2db   : > { %v3391_v36 = vsub.f32 %v15814_v52, %v21195_v49  ;;  %v21202_v49 = vand.u32 4294901760, %v21131_v8  ;;  %3214 = vmatprep.mubr.f32.mxu0 %v3213_v22  ;;  %v3259_v47 = vand.u32 4294901760, %v3258_v59  ;;  %v3266_v27 = vand.u32 4294901760, %v3265_v56 }
 0x2dc   : > { %v16282_v16 = vpack.c.bf16 %v21200_v41, %v21199_v13  ;;  %v3272_v37 = vsub.f32 %v15819_v18, %v21201_v24  ;;  %12500 = vmatpush3.bf16.msra.mxu0 %v21203_v42  ;;  %v20300_v28 = vand.u32 4294901760, %v15868_v17  ;;  %v21204_v13 = vpack.c.bf16 %v16014_v14, %v16008_v15 }
 0x2dd   : > { %v3279_v25 = vsub.f32 %v21131_v8, %v21202_v49  ;;  %v12445_v41 = vpack.c.bf16 %v3378_v60, %v3371_v43  ;;  %v20301_v24 = vand.u32 4294901760, %v15881_v62  ;;  %v21205_v49 = vld [vmem:[#allocation56_spill] sm:$0xff]  ;;  %v3385_v29 = vand.u32 4294901760, %v3384_v0  ;;  %v21208_v60 = vld [vmem:[#allocation59_spill] sm:$0xff] }
 0x2de   : > { %12502 = vmatprep.subr.bf16.mxu0 %v21204_v13  ;;  %2947 = vmatmul.mubr.f32.vlgmr.msra.gmra.mrb[54].mxu1 %v21205_v49  ;;  %v3392_v42 = vand.u32 4294901760, %v3391_v36  ;;  %v21206_v21 = vand.u32 4294901760, %v21196_v54  ;;  %v21207_v59 = vand.u32 4294901760, %v21197_v31  ;;  %v3273_v43 = vand.u32 4294901760, %v3272_v37 }
 0x2df   : > { %3220 = vmatmul.mubr.f32.gmra.mrb[68].mxu0 %v3219_v5  ;;  %2952 = vmatprep.mubr.f32.mxu1 %v21208_v60  ;;  %v3280_v13 = vand.u32 4294901760, %v3279_v25  ;;  %v20303_v1 = vand.u32 4294901760, %v15911_v23  ;;  %v20302_v22 = vand.u32 4294901760, %v15927_v40  ;;  %v21209_v36 = vpack.c.bf16 %v16025_v45, %v16018_v38  ;;  %v21212_v60 = vld [vmem:[#allocation57_spill] sm:$0xff] }
 0x2e0   : > { %v3398_v50 = vsub.f32 %v21196_v54, %v21206_v21  ;;  %v3405_v56 = vsub.f32 %v21197_v31, %v21207_v59  ;;  %3229 = vmatprep.mubr.f32.mxu0 %v3228_v61  ;;  %v12447_v0 = vpack.c.bf16 %v3266_v27, %v3259_v47  ;;  %v3286_v49 = vsub.f32 %v15868_v17, %v20300_v28 }
 0x2e1   : > { %12504 = vmatpush3.bf16.msra.mxu0 %v21209_v36  ;;  %v3234_v37 = vand.u32 4294901760, %v3233_v39  ;;  %12444 = vmatpush3.bf16.msra.mxu1 %v12443_v35  ;;  %v3293_v25 = vsub.f32 %v15881_v62, %v20301_v24  ;;  %v21210_v61 = vand.u32 4294901760, %v15886_v58  ;;  %v21211_v47 = vand.u32 4294901760, %v21142_v53  ;;  %v21215_v24 = vld [vmem:[#allocation61_spill] sm:$0xff] }
 0x2e2   : > { %12538 = vmatprep.subr.bf16.mxu0 %v12537_v7  ;;  %2954 = vmatmul.mubr.f32.gmra.mrb[56].mxu1 %v21212_v60  ;;  %v21213_v36 = vand.u32 4294901760, %v15756_v3  ;;  %v21214_v39 = vand.u32 4294901760, %v15771_v30  ;;  %v12449_v35 = vpack.c.bf16 %v3392_v42, %v3385_v29  ;;  %v3399_v28 = vand.u32 4294901760, %v3398_v50  ;;  %v21219_v60 = vld [vmem:[#allocation60_spill] sm:$0xff] }
 0x2e3   : > { %v3412_v59 = vsub.f32 %v15886_v58, %v21210_v61  ;;  %v3419_v27 = vsub.f32 %v21142_v53, %v21211_v47  ;;  %12446 = vmatprep.subr.bf16.mxu1 %v12445_v41  ;;  %v3406_v21 = vand.u32 4294901760, %v3405_v56  ;;  %3235 = vmatmul.mubr.f32.gmra.mrb[70].mxu0 %v3234_v37  ;;  %v12451_v5 = vpack.c.bf16 %v3280_v13, %v3273_v43  ;;  %v21216_v47 = vld [vmem:[#allocation45_spill] sm:$0xff] }
 0x2e4   : > { %v12541_v7 = vpack.c.bf16 %v21214_v39, %v21213_v36  ;;  %2959 = vmatprep.mubr.f32.mxu1 %v21215_v24  ;;  %v3300_v61 = vsub.f32 %v15911_v23, %v20303_v1  ;;  %v3307_v41 = vsub.f32 %v15927_v40, %v20302_v22  ;;  %3658 = vmatprep.mubr.f32.mxu0 %v21216_v47  ;;  %v21217_v3 = vand.u32 4294901760, %v15941_v57  ;;  %v21220_v22 = vld [vmem:[#allocation82_spill] sm:$0xff] }
 0x2e5   : > { %v21218_v29 = vand.u32 4294901760, %v15946_v2  ;;  %v3313_v24 = vand.u32 4294901760, %v15952_v48  ;;  %v20305_v50 = vand.u32 4294901760, %v15958_v9  ;;  %12448 = vmatpush3.bf16.msra.mxu1 %v12447_v0  ;;  %v3287_v56 = vand.u32 4294901760, %v3286_v49 }
 0x2e6   : > { %v3426_v30 = vsub.f32 %v15941_v57, %v21217_v3  ;;  %v3294_v43 = vand.u32 4294901760, %v3293_v25  ;;  %v3413_v13 = vand.u32 4294901760, %v3412_v59  ;;  %v3420_v37 = vand.u32 4294901760, %v3419_v27  ;;  %2961 = vmatmul.mubr.f32.gmra.mrb[58].mxu1 %v21219_v60  ;;  %12450 = vmatprep.subr.bf16.mxu1 %v12449_v35 }
 0x2e7   : > { %v3433_v42 = vsub.f32 %v15946_v2, %v21218_v29  ;;  %v12453_v36 = vpack.c.bf16 %v3406_v21, %v3399_v28  ;;  %v20304_v39 = vand.u32 4294901760, %v15972_v44  ;;  %3661 = vmatmul.mubr.f32.vlgmr.msra.gmra.mrb[72].mxu0 %v21220_v22  ;;  %v21221_v29 = vld [vmem:[#allocation62_spill] sm:$0xff]  ;;  %v21222_v1 = vand.u32 4294901760, %v15790_v20  ;;  %v21226_v21 = vld [vmem:[#allocation27_spill] sm:$0xff] }
 0x2e8   : > { %2966 = vmatprep.mubr.f32.mxu1 %v21221_v29  ;;  %v21223_v0 = vand.u32 4294901760, %v15795_v6  ;;  %v21224_v25 = vand.u32 4294901760, %v15800_v10  ;;  %v21225_v59 = vand.u32 4294901760, %v15814_v52  ;;  %v3301_v35 = vand.u32 4294901760, %v3300_v61  ;;  %3667 = vmatprep.mubr.f32.mxu0 %v21226_v21 }
 0x2e9   : > { %v3308_v28 = vand.u32 4294901760, %v3307_v41  ;;  %12540 = vmatpush3.bf16.msra.mxu0 %v16282_v16  ;;  %v3427_v60 = vand.u32 4294901760, %v3426_v30  ;;  %v3434_v3 = vand.u32 4294901760, %v3433_v42  ;;  %v3314_v20 = vsub.f32 %v15952_v48, %v3313_v24  ;;  %12452 = vmatpush3.bf16.msra.mxu1 %v12451_v5  ;;  %v21227_v41 = vld [vmem:[#allocation63_spill] sm:$0xff] }
 0x2ea   : > { %v12543_v49 = vpack.c.bf16 %v21223_v0, %v21222_v1  ;;  %v12545_v27 = vpack.c.bf16 %v21225_v59, %v21224_v25  ;;  %v3321_v6 = vsub.f32 %v15958_v9, %v20305_v50  ;;  %12542 = vmatprep.subr.bf16.mxu0 %v12541_v7  ;;  %v12455_v10 = vpack.c.bf16 %v3294_v43, %v3287_v56  ;;  %v21229_v56 = vld [vmem:[#allocation85_spill] sm:$0xff]  ;;  %v21230_v43 = vld [vmem:[#allocation64_spill] sm:$0xff]  ;;  %v21235_v59 = vld [vmem:[#allocation87_spill] sm:$0xff] }
 0x2eb   : > { %v12457_v52 = vpack.c.bf16 %v3420_v37, %v3413_v13  ;;  %v3327_v1 = vand.u32 4294901760, %v15997_v46  ;;  %v3334_v61 = vand.u32 4294901760, %v16002_v11  ;;  %2968 = vmatmul.mubr.f32.gmra.mrb[60].mxu1 %v21227_v41  ;;  %12454 = vmatprep.subr.bf16.mxu1 %v12453_v36  ;;  %v3440_v16 = vsub.f32 %v15972_v44, %v20304_v39 }
 0x2ec   : > { %v21228_v30 = vand.u32 4294901760, %v15977_v32  ;;  %v3453_v7 = vand.u32 4294901760, %v16008_v15  ;;  %v3460_v5 = vand.u32 4294901760, %v16014_v14  ;;  %3670 = vmatmul.mubr.f32.gmra.mrb[74].mxu0 %v21229_v56  ;;  %2973 = vmatprep.mubr.f32.mxu1 %v21230_v43  ;;  %v21231_v13 = vand.u32 4294901760, %v15819_v18 }
 0x2ed   : > { %v21232_v37 = vand.u32 4294901760, %v21131_v8  ;;  %v21233_v29 = vand.u32 4294901760, %v21196_v54  ;;  %v21234_v0 = vand.u32 4294901760, %v21197_v31  ;;  %3676 = vmatprep.mubr.f32.mxu0 %v21235_v59  ;;  %12544 = vmatpush3.bf16.msra.mxu0 %v12543_v49  ;;  %v12459_v41 = vpack.c.bf16 %v3308_v28, %v3301_v35  ;;  %v21236_v28 = vld [vmem:[#allocation89_spill] sm:$0xff] }
 0x2ee   : > { %v3447_v42 = vsub.f32 %v15977_v32, %v21228_v30  ;;  %v12461_v30 = vpack.c.bf16 %v3434_v3, %v3427_v60  ;;  %v3315_v39 = vand.u32 4294901760, %v3314_v20  ;;  %v3322_v50 = vand.u32 4294901760, %v3321_v6  ;;  %12546 = vmatprep.subr.bf16.mxu0 %v12545_v27  ;;  %12456 = vmatpush3.bf16.msra.mxu1 %v12455_v10  ;;  %v21237_v60 = vld [vmem:[#allocation19_spill] sm:$0xff] }
 0x2ef   : > { %v12547_v36 = vpack.c.bf16 %v21232_v37, %v21231_v13  ;;  %v12549_v25 = vpack.c.bf16 %v21234_v0, %v21233_v29  ;;  %v3328_v18 = vsub.f32 %v15997_v46, %v3327_v1  ;;  %v3335_v54 = vsub.f32 %v16002_v11, %v3334_v61  ;;  %2975 = vmatmul.mubr.f32.gmra.mrb[62].mxu1 %v21151_v51  ;;  %v21242_v37 = vld [vmem:[#allocation20_spill] sm:$0xff] }
 0x2f0   : > { %v3341_v8 = vand.u32 4294901760, %v16018_v38  ;;  %v3348_v31 = vand.u32 4294901760, %v16025_v45  ;;  %12458 = vmatprep.subr.bf16.mxu1 %v12457_v52  ;;  %v3441_v3 = vand.u32 4294901760, %v3440_v16  ;;  %v3448_v49 = vand.u32 4294901760, %v3447_v42  ;;  %3679 = vmatmul.mubr.f32.gmra.mrb[76].mxu0 %v21236_v28  ;;  %v21259_v11 = vld [vmem:[#allocation76_spill] sm:$0xff] }
 0x2f1   : > { %v3454_v27 = vsub.f32 %v16008_v15, %v3453_v7  ;;  %v3461_v35 = vsub.f32 %v16014_v14, %v3460_v5  ;;  %2980 = vmatprep.mubr.f32.mxu1 %v21154_v55  ;;  %3685 = vmatprep.mubr.f32.mxu0 %v21237_v60  ;;  %v21238_v51 = vand.u32 4294901760, %v15868_v17  ;;  %v21239_v20 = vand.u32 4294901760, %v15881_v62  ;;  %v16468_v15 = vld [vmem:[#allocation8 + $0x200] sm:$0xff]  ;;  %v16470_v14 = vld [vmem:[#allocation8 + $0x208] sm:$0xff] }
 0x2f2   : > { %12548 = vmatpush3.bf16.msra.mxu0 %v12547_v36  ;;  %v21240_v10 = vand.u32 4294901760, %v15886_v58  ;;  %v21241_v52 = vand.u32 4294901760, %v21142_v53  ;;  %v12463_v42 = vpack.c.bf16 %v3322_v50, %v3315_v39  ;;  %12460 = vmatpush3.bf16.msra.mxu1 %v12459_v41  ;;  %v3329_v43 = vand.u32 4294901760, %v3328_v18 }
 0x2f3   : > { %v12551_v6 = vpack.c.bf16 %v21239_v20, %v21238_v51  ;;  %12550 = vmatprep.subr.bf16.mxu0 %v12549_v25  ;;  %v3336_v13 = vand.u32 4294901760, %v3335_v54  ;;  %v3342_v55 = vsub.f32 %v16018_v38, %v3341_v8  ;;  %v3349_v17 = vsub.f32 %v16025_v45, %v3348_v31  ;;  %2982 = vmatmul.mubr.f32.gmra.mrb[64].mxu1 %v21162_v33  ;;  %v21263_v45 = vld [vmem:[#allocation68_spill] sm:$0xff]  ;;  %v21265_v51 = vld [vmem:[#allocation81_spill] sm:$0xff] }
 0x2f4   : > { %v12553_v16 = vpack.c.bf16 %v21241_v52, %v21240_v10  ;;  %12462 = vmatprep.subr.bf16.mxu1 %v12461_v30  ;;  %v12465_v62 = vpack.c.bf16 %v3448_v49, %v3441_v3  ;;  %v3455_v58 = vand.u32 4294901760, %v3454_v27  ;;  %v3462_v53 = vand.u32 4294901760, %v3461_v35  ;;  %3688 = vmatmul.mubr.f32.gmra.mrb[78].mxu0 %v21242_v37  ;;  %v21252_v3 = vld [vmem:[#allocation36_spill] sm:$0xff]  ;;  %v21253_v49 = vld [vmem:[#allocation22_spill] sm:$0xff]  ;;  %v21266_v20 = vld [vmem:[#allocation69_spill] sm:$0xff] }
 0x2f5   : > { %2987 = vmatprep.mubr.f32.mxu1 %v21167_v12  ;;  %3694 = vmatprep.mubr.f32.mxu0 %v16065_v34  ;;  %v21243_v50 = vand.u32 4294901760, %v15911_v23  ;;  %v21244_v39 = vand.u32 4294901760, %v15927_v40  ;;  %v12467_v29 = vpack.c.bf16 %v3336_v13, %v3329_v43  ;;  %v21245_v33 = vand.u32 4294901760, %v15941_v57  ;;  %v21247_v40 = vld [vmem:[#allocation94_spill] sm:$0xff]  ;;  %v21258_v27 = vld [vmem:[#allocation24_spill] sm:$0xff]  ;;  %v21268_v10 = vld [vmem:[#allocation83_spill] sm:$0xff] }
 0x2f6   : > { %12552 = vmatpush3.bf16.msra.mxu0 %v12551_v6  ;;  %12464 = vmatpush3.bf16.msra.mxu1 %v12463_v42  ;;  %v21246_v0 = vand.u32 4294901760, %v15946_v2  ;;  %v3343_v41 = vand.u32 4294901760, %v3342_v55  ;;  %v3350_v30 = vand.u32 4294901760, %v3349_v17  ;;  %v12469_v12 = vpack.c.bf16 %v3462_v53, %v3455_v58  ;;  %v16482_v35 = vld [vmem:[#allocation8 + $0x218] sm:$0xff]  ;;  %v16498_v13 = vld [vmem:[#allocation8 + $0x220] sm:$0xff]  ;;  %v16500_v55 = vld [vmem:[#allocation8 + $0x228] sm:$0xff] }
 0x2f7   : > { %v12555_v36 = vpack.c.bf16 %v21244_v39, %v21243_v50  ;;  %12554 = vmatprep.subr.bf16.mxu0 %v12553_v16  ;;  %2989 = vmatmul.mubr.f32.gmra.mrb[66].mxu1 %v15453_v19  ;;  %v21248_v23 = vand.u32 4294901760, %v15958_v9  ;;  %v21249_v18 = vand.u32 4294901760, %v15972_v44  ;;  %v21250_v19 = vand.u32 4294901760, %v15977_v32  ;;  %v21254_v9 = vld [vmem:[#allocation67_spill] sm:$0xff]  ;;  %v21255_v44 = vld [vmem:[#allocation37_spill] sm:$0xff]  ;;  %v21267_v6 = vld [vmem:[#allocation26_spill] sm:$0xff] }
 0x2f8   : > { %v12557_v25 = vpack.c.bf16 %v21246_v0, %v21245_v33  ;;  %12466 = vmatprep.subr.bf16.mxu1 %v12465_v62  ;;  %3697 = vmatmul.mubr.f32.gmra.mrb[80].mxu0 %v16090_v26  ;;  %v12471_v2 = vpack.c.bf16 %v3350_v30, %v3343_v41  ;;  %v12563_v48 = vpack.c.bf16 %v3334_v61, %v3327_v1  ;;  %v21256_v32 = vld [vmem:[#allocation23_spill] sm:$0xff]  ;;  %v21260_v1 = vld [vmem:[#allocation34_spill] sm:$0xff]  ;;  %v20312_v38 = vand.u32 4294901760, %v16470_v14  ;;  %v21273_v58 = vld [vmem:[#allocation88_spill] sm:$0xff] }
 0x2f9   : > { %2994 = vmatprep.mubr.f32.mxu1 %v15482_v4  ;;  %3703 = vmatprep.mubr.f32.mxu0 %v21247_v40  ;;  %v12559_v57 = vpack.c.bf16 %v21248_v23, %v3313_v24  ;;  %v12561_v54 = vpack.c.bf16 %v21250_v19, %v21249_v18  ;;  %v21251_v4 = vld [vmem:[#allocation21_spill] sm:$0xff]  ;;  %v21257_v24 = vld [vmem:[#allocation43_spill] sm:$0xff]  ;;  %v12567_v46 = vpack.c.bf16 %v3348_v31, %v3341_v8  ;;  %v21261_v61 = vld [vmem:[#allocation78_spill] sm:$0xff]  ;;  %v21264_v8 = vmov 0.0|0.0  }
 0x2fa   : > { %12556 = vmatpush3.bf16.msra.mxu0 %v12555_v36  ;;  %12468 = vmatpush3.bf16.msra.mxu1 %v12467_v29  ;;  %v16480_v31 = vld [vmem:[#allocation8 + $0x210] sm:$0xff]  ;;  %v20308_v42 = vand.u32 4294901760, %v16482_v35  ;;  %v21270_v43 = vld [vmem:[#allocation70_spill] sm:$0xff]  ;;  %v21272_v62 = vld [vmem:[#allocation71_spill] sm:$0xff]  ;;  %v20307_v50 = vand.u32 4294901760, %v16498_v13  ;;  %v20306_v39 = vand.u32 4294901760, %v16500_v55 }
 0x2fb   : > { %12558 = vmatprep.subr.bf16.mxu0 %v12557_v25  ;;  %2996 = vmatmul.mubr.f32.gmra.mrb[68].mxu1 %v15485_v63  ;;  %v12565_v63 = vpack.c.bf16 %v3460_v5, %v3453_v7  ;;  %v21262_v7 = vld [vmem:[#allocation66_spill] sm:$0xff]  ;;  %v20313_v5 = vand.u32 4294901760, %v16468_v15  ;;  %v20309_v16 = vand.u32 4294901760, %v16480_v31  ;;  %v21275_v36 = vld [vmem:[#allocation72_spill] sm:$0xff]  ;;  %v16518_v29 = vld [vmem:[#allocation8 + $0x230] sm:$0xff] }
 0x2fc   : > { %12470 = vmatprep.subr.bf16.mxu1 %v12469_v12  ;;  %3706 = vmatmul.mubr.f32.gmra.mrb[82].mxu0 %v21251_v4  ;;  %v21271_v17 = vld [vmem:[#allocation86_spill] sm:$0xff]  ;;  %v21276_v0 = vld [vmem:[#allocation28_spill] sm:$0xff]  ;;  %v16532_v30 = vpack.c.bf16 %v20306_v39, %v20307_v50  ;;  %v20311_v12 = vand.u32 4294901760, %v16518_v29  ;;  %v21281_v19 = vld [vmem:[#allocation91_spill] sm:$0xff] }
 0x2fd   : > { %3001 = vmatprep.mubr.f32.mxu1 %v21252_v3  ;;  %3712 = vmatprep.mubr.f32.mxu0 %v21253_v49  ;;  %v16493_v52 = vpack.c.bf16 %v20312_v38, %v20313_v5  ;;  %v16512_v53 = vpack.c.bf16 %v20308_v42, %v20309_v16  ;;  %v16520_v33 = vld [vmem:[#allocation8 + $0x238] sm:$0xff]  ;;  %v16540_v18 = vld [vmem:[#allocation8 + $0x248] sm:$0xff]  ;;  %v16558_v39 = vld [vmem:[#allocation8 + $0x250] sm:$0xff]  ;;  %v21294_v5 = vand.u32 4294901760, %v16470_v14 }
 0x2fe   : > { %12560 = vmatpush3.bf16.msra.mxu0 %v12559_v57  ;;  %12472 = vmatpush3.bf16.msra.mxu1 %v12471_v2  ;;  %v21277_v25 = vld [vmem:[#allocation38_spill] sm:$0xff]  ;;  %21279 = vst [vmem:[#allocation30_spill] sm:$0xff] %v16532_v30  ;;  %v20310_v23 = vand.u32 4294901760, %v16520_v33  ;;  %v21280_v57 = vld [vmem:[#allocation39_spill] sm:$0xff]  ;;  %v21283_v3 = vld [vmem:[#allocation92_spill] sm:$0xff] }
 0x2ff   : > { %12562 = vmatprep.subr.bf16.mxu0 %v12561_v54  ;;  %3003 = vmatmul.mubr.f32.gmra.mrb[70].mxu1 %v21254_v9  ;;  %21269 = vst [vmem:[#allocation35_spill] sm:$0xff] %v16493_v52  ;;  %21274 = vst [vmem:[#allocation29_spill] sm:$0xff] %v16512_v53  ;;  %v21278_v41 = vld [vmem:[#allocation90_spill] sm:$0xff]  ;;  %v16538_v2 = vld [vmem:[#allocation8 + $0x240] sm:$0xff]  ;;  %v20324_v9 = vand.u32 4294901760, %v16540_v18  ;;  %v16592_v38 = vsub.f32 %v16470_v14, %v21294_v5 }
 0x300   : > { %12506 = vmatprep.subr.bf16.mxu1 %v21255_v44  ;;  %3715 = vmatmul.mubr.f32.gmra.mrb[84].mxu0 %v21256_v32  ;;  %v21282_v54 = vld [vmem:[#allocation40_spill] sm:$0xff]  ;;  %v16560_v50 = vld [vmem:[#allocation8 + $0x258] sm:$0xff]  ;;  %v21286_v42 = vld [vmem:[#allocation93_spill] sm:$0xff] }
 0x301   : > { %3465 = vmatprep.mubr.f32.mxu1 %v21257_v24  ;;  %3721 = vmatprep.mubr.f32.mxu0 %v21258_v27  ;;  %v21287_v16 = vld [vmem:[#allocation42_spill] sm:$0xff]  ;;  %v21299_v14 = vld [vmem:[#allocation80_spill] sm:$0xff]  ;;  %v16608_v5 = vld [vmem:[#allocation8 + $0x270] sm:$0xff] }
 0x302   : > { %12564 = vmatpush3.bf16.msra.mxu0 %v12563_v48  ;;  %v16552_v48 = vpack.c.bf16 %v20310_v23, %v20311_v12  ;;  %v21288_v23 = vld [vmem:[#allocation73_spill] sm:$0xff] }
 0x303   : > { %12566 = vmatprep.subr.bf16.mxu0 %v12565_v63  ;;  %3467 = vmatmul.mubr.f32.vlgmr.msra.gmra.mrb[72].mxu1 %v21259_v11  ;;  %v20325_v63 = vand.u32 4294901760, %v16538_v2 }
 0x304   : > { %3724 = vmatmul.mubr.f32.gmra.mrb[86].mxu0 %v21260_v1  ;;  %3472 = vmatprep.mubr.f32.mxu1 %v21261_v61  ;;  %21284 = vst [vmem:[#allocation31_spill] sm:$0xff] %v16552_v48 }
 0x305   : > { %3730 = vmatprep.mubr.f32.mxu0 %v21262_v7  ;;  %12508 = vmatpush3.bf16.msra.mxu1 %v21263_v45  ;;  %v16572_v12 = vpack.c.bf16 %v20324_v9, %v20325_v63  ;;  %v21293_v9 = vand.u32 4294901760, %v16468_v15 }
 0x306   : > { %12568 = vmatpush3.bf16.msra.mxu0 %v12567_v46  ;;  %12510 = vmatprep.subr.bf16.mxu1 %v21266_v20  ;;  %v21285_v46 = vld [vmem:[#allocation41_spill] sm:$0xff] }
 0x307   : > { %12601 = vmatprep.subr.bf16.mxu0 %v21264_v8  ;;  %3474 = vmatmul.mubr.f32.gmra.mrb[74].mxu1 %v21265_v51  ;;  %21289 = vst [vmem:[#allocation32_spill] sm:$0xff] %v16572_v12  ;;  %v16587_v63 = vsub.f32 %v16468_v15, %v21293_v9  ;;  %v21304_v9 = vld [vmem:[#allocation65_spill] sm:$0xff] }
 0x308   : > { %3733 = vmatmul.mubr.f32.gmra.mrb[88].mxu0 %v21267_v6  ;;  %3479 = vmatprep.mubr.f32.mxu1 %v21268_v10  ;;  %v21305_v6 = vand.u32 4294901760, %v16482_v35 }
 0x309   : > { %4095 = vmatprep.mubr.f32.mxu0 %v21257_v24  ;;  %12512 = vmatpush3.bf16.msra.mxu1 %v21270_v43  ;;  %v21309_v24 = vld [vmem:[#allocation84_spill] sm:$0xff] }
 0x30a   : > { %12514 = vmatprep.subr.bf16.mxu1 %v21272_v62  ;;  %v16628_v7 = vsub.f32 %v16482_v35, %v21305_v6 }
 0x30b   : > { %3481 = vmatmul.mubr.f32.gmra.mrb[76].mxu1 %v21271_v17 }
 0x30c   : > { %4097 = vmatmul.mubr.f32.vlgmr.msra.gmra.mrb[90].mxu0 %v21259_v11  ;;  %3486 = vmatprep.mubr.f32.mxu1 %v21273_v58  ;;  %v21314_v11 = vand.u32 4294901760, %v16500_v55 }
 0x30d   : > { %4102 = vmatprep.mubr.f32.mxu0 %v21261_v61  ;;  %12603 = vmatpush3.bf16.msra.mxu0 %v16493_v52  ;;  %v16580_v52 = vld [vmem:[#allocation8 + $0x268] sm:$0xff]  ;;  %v21302_v61 = vld [vmem:[#allocation46_spill] sm:$0xff] }
 0x30e   : > { %12604 = vmatprep.subr.bf16.mxu0 %v21264_v8  ;;  %12516 = vmatpush3.bf16.msra.mxu1 %v21275_v36 }
 0x30f   : > { %3488 = vmatmul.mubr.f32.gmra.mrb[78].mxu1 %v21276_v0  ;;  %12518 = vmatprep.subr.bf16.mxu1 %v21277_v25 }
 0x310   : > { %4104 = vmatmul.mubr.f32.gmra.mrb[92].mxu0 %v21265_v51  ;;  %3493 = vmatprep.mubr.f32.mxu1 %v21278_v41 }
 0x311   : > { %4109 = vmatprep.mubr.f32.mxu0 %v21268_v10  ;;  %12606 = vmatpush3.bf16.msra.mxu0 %v16512_v53  ;;  %v16578_v53 = vld [vmem:[#allocation8 + $0x260] sm:$0xff]  ;;  %v21297_v10 = vand.u32 4294901760, %v16560_v50 }
 0x312   : > { %12607 = vmatprep.subr.bf16.mxu0 %v21264_v8  ;;  %12520 = vmatpush3.bf16.msra.mxu1 %v21280_v57 }
 0x313   : > { %3495 = vmatmul.mubr.f32.gmra.mrb[80].mxu1 %v21281_v19  ;;  %12522 = vmatprep.subr.bf16.mxu1 %v21282_v54 }
 0x314   : > { %4111 = vmatmul.mubr.f32.gmra.mrb[94].mxu0 %v21271_v17  ;;  %3500 = vmatprep.mubr.f32.mxu1 %v21283_v3  ;;  %v21296_v17 = vand.u32 4294901760, %v16558_v39 }
 0x315   : > { %4116 = vmatprep.mubr.f32.mxu0 %v21273_v58  ;;  %12609 = vmatpush3.bf16.msra.mxu0 %v16532_v30  ;;  %v21290_v30 = vld [vmem:[#allocation75_spill] sm:$0xff] }
 0x316   : > { %12610 = vmatprep.subr.bf16.mxu0 %v21264_v8  ;;  %12524 = vmatpush3.bf16.msra.mxu1 %v21285_v46  ;;  %v21295_v58 = vld [vmem:[#allocation79_spill] sm:$0xff]  ;;  %v16602_v51 = vpack.c.bf16 %v21297_v10, %v21296_v17  ;;  %v1577_v10 = vld [vmem:[#allocation2 + $0x48] sm:$0xff]  ;;  %v21303_v17 = vand.u32 4294901760, %v16480_v31 }
 0x317   : > { %3502 = vmatmul.mubr.f32.gmra.mrb[82].mxu1 %v21286_v42  ;;  %12526 = vmatprep.subr.bf16.mxu1 %v21287_v16  ;;  %v16645_v6 = vand.u32 4294901760, %v1577_v10 }
 0x318   : > { %4118 = vmatmul.mubr.f32.gmra.mrb[96].mxu0 %v21276_v0  ;;  %3507 = vmatprep.mubr.f32.mxu1 %v21288_v23  ;;  %v1572_v0 = vld [vmem:[#allocation2 + $0x20] sm:$0xff]  ;;  %21298 = vst [vmem:[#allocation33_spill] sm:$0xff] %v16602_v51  ;;  %v16619_v15 = vsub.f32 %v16480_v31, %v21303_v17  ;;  %v21306_v31 = vand.u32 4294901760, %v16578_v53  ;;  %v21307_v17 = vand.u32 4294901760, %v16580_v52 }
 0x319   : > { %4123 = vmatprep.mubr.f32.mxu0 %v21278_v41  ;;  %12612 = vmatpush3.bf16.msra.mxu0 %v16552_v48  ;;  %v21291_v41 = vld [vmem:[#allocation95_spill] sm:$0xff]  ;;  %v21292_v48 = vld [vmem:[#allocation44_spill] sm:$0xff]  ;;  %21311 = vst [vmem:[#allocation56_spill] sm:$0xff] %v16645_v6 }
 0x31a   : > { %12613 = vmatprep.subr.bf16.mxu0 %v21264_v8  ;;  %12528 = vmatpush3.bf16.msra.mxu1 %v21290_v30 }
 0x31b   : > { %3509 = vmatmul.mubr.f32.gmra.mrb[84].mxu1 %v21291_v41  ;;  %12530 = vmatprep.subr.bf16.mxu1 %v21292_v48 }
 0x31c   : > { %4125 = vmatmul.mubr.f32.gmra.mrb[98].mxu0 %v21281_v19  ;;  %3514 = vmatprep.mubr.f32.mxu1 %v21295_v58  ;;  %v16610_v19 = vld [vmem:[#allocation8 + $0x278] sm:$0xff] }
 0x31d   : > { %4130 = vmatprep.mubr.f32.mxu0 %v21283_v3  ;;  %12615 = vmatpush3.bf16.msra.mxu0 %v16572_v12  ;;  %v16612_v3 = vand.u32 4294901760, %v1572_v0  ;;  %v21301_v12 = vld [vmem:[#allocation96_spill] sm:$0xff] }
 0x31e   : > { %12532 = vmatpush3.bf16.msra.mxu1 %v21299_v14  ;;  %12616 = vmatprep.subr.bf16.mxu0 %v21264_v8 }
 0x31f   : > { %21300 = vst [vmem:[#allocation74_spill] sm:$0xff] %v16612_v3  ;;  %3516 = vmatmul.mubr.f32.gmra.mrb[86].mxu1 %v21301_v12  ;;  %12534 = vmatprep.subr.bf16.mxu1 %v21302_v61  ;;  %v16643_v35 = vsub.f32 %v1572_v0, %v16612_v3  ;;  %v16657_v61 = vsub.f32 %v16500_v55, %v21314_v11  ;;  %v21315_v0 = vand.u32 4294901760, %v21216_v47  ;;  %v21316_v3 = vand.u32 4294901760, %v16587_v63 }
 0x320   : > { %4132 = vmatmul.mubr.f32.gmra.mrb[100].mxu0 %v21286_v42  ;;  %3521 = vmatprep.mubr.f32.mxu1 %v21304_v9  ;;  %v16636_v42 = vpack.c.bf16 %v21307_v17, %v21306_v31  ;;  %v21313_v31 = vld [vmem:[#allocation25_spill] sm:$0xff]  ;;  %v1582_v17 = vld [vmem:[#allocation2 + $0x70] sm:$0xff]  ;;  %v21319_v11 = vand.u32 4294901760, %v16610_v19 }
 0x321   : > { %4137 = vmatprep.mubr.f32.mxu0 %v21288_v23  ;;  %12618 = vmatpush3.bf16.msra.mxu0 %v16602_v51  ;;  %21310 = vst [vmem:[#allocation58_spill] sm:$0xff] %v16643_v35  ;;  %v21312_v51 = vand.u32 4294901760, %v16498_v13 }
 0x322   : > { %21308 = vst [vmem:[#allocation77_spill] sm:$0xff] %v16636_v42  ;;  %12536 = vmatpush3.bf16.msra.mxu1 %v21309_v24  ;;  %12619 = vmatprep.subr.bf16.mxu0 %v21264_v8 }
 0x323   : > { %v16650_v23 = vsub.f32 %v16498_v13, %v21312_v51  ;;  %3523 = vmatmul.mubr.f32.gmra.mrb[88].mxu1 %v21313_v31  ;;  %12570 = vmatprep.subr.bf16.mxu1 %v21255_v44  ;;  %v4493_v51 = vsub.f32 %v16587_v63, %v21316_v3  ;;  %v21317_v13 = vand.u32 4294901760, %v16592_v38  ;;  %v21318_v44 = vand.u32 4294901760, %v16608_v5 }
 0x324   : > { %4139 = vmatmul.mubr.f32.gmra.mrb[102].mxu0 %v21291_v41  ;;  %3837 = vmatprep.mubr.f32.mxu1 %v21315_v0  ;;  %v21324_v3 = vand.u32 4294901760, %v21226_v21  ;;  %v21327_v21 = vand.u32 4294901760, %v16628_v7 }
 0x325   : > { %v4500_v24 = vsub.f32 %v16592_v38, %v21317_v13  ;;  %4144 = vmatprep.mubr.f32.mxu0 %v21295_v58  ;;  %12621 = vmatpush3.bf16.msra.mxu0 %v16636_v42  ;;  %v16674_v55 = vpack.c.bf16 %v21319_v11, %v21318_v44  ;;  %v16681_v13 = vsub.f32 %v1577_v10, %v16645_v6  ;;  %v16683_v58 = vand.u32 4294901760, %v1582_v17  ;;  %v1587_v44 = vld [vmem:[#allocation2 + $0x98] sm:$0xff] }
 0x326   : > { %12622 = vmatprep.subr.bf16.mxu0 %v21264_v8  ;;  %v21322_v42 = vand.u32 4294901760, %v21220_v22  ;;  %v21323_v11 = vand.u32 4294901760, %v16518_v29  ;;  %v4494_v10 = vand.u32 4294901760, %v4493_v51  ;;  %v21325_v22 = vand.u32 4294901760, %v16520_v33 }
 0x327   : > { %21320 = vst [vmem:[#allocation59_spill] sm:$0xff] %v16674_v55  ;;  %21321 = vst [vmem:[#allocation57_spill] sm:$0xff] %v16683_v58  ;;  %v4501_v0 = vand.u32 4294901760, %v4500_v24  ;;  %v4514_v51 = vsub.f32 %v16628_v7, %v21327_v21  ;;  %v1592_v24 = vld [vmem:[#allocation2 + $0xc0] sm:$0xff]  ;;  %v16717_v6 = vsub.f32 %v1582_v17, %v16683_v58  ;;  %v16719_v41 = vand.u32 4294901760, %v1587_v44 }
 0x328   : > { %3841 = vmatmul.mubr.f32.vlgmr.msra.gmra.mrb[90].mxu1 %v21322_v42  ;;  %v16691_v47 = vsub.f32 %v16518_v29, %v21323_v11  ;;  %4146 = vmatmul.mubr.f32.gmra.mrb[104].mxu0 %v21301_v12  ;;  %v16700_v42 = vsub.f32 %v16520_v33, %v21325_v22  ;;  %v21326_v29 = vand.u32 4294901760, %v16619_v15  ;;  %v21333_v22 = vand.u32 4294901760, %v16540_v18 }
 0x329   : > { %3848 = vmatprep.mubr.f32.mxu1 %v21324_v3  ;;  %4151 = vmatprep.mubr.f32.mxu0 %v21304_v9  ;;  %v21328_v3 = vand.u32 4294901760, %v16643_v35  ;;  %21329 = vst [vmem:[#allocation61_spill] sm:$0xff] %v16719_v41  ;;  %v4515_v9 = vand.u32 4294901760, %v4514_v51  ;;  %v21340_v51 = vand.u32 4294901760, %v16560_v50 }
 0x32a   : > { %12624 = vmatpush3.bf16.msra.mxu0 %v16674_v55  ;;  %v4507_v11 = vsub.f32 %v16619_v15, %v21326_v29  ;;  %12572 = vmatpush3.bf16.msra.mxu1 %v21263_v45  ;;  %v21330_v29 = vand.u32 4294901760, %v16538_v2  ;;  %v21331_v45 = vand.u32 4294901760, %v21229_v56  ;;  %v16735_v17 = vsub.f32 %v16540_v18, %v21333_v22 }
 0x32b   : > { %v4402_v33 = vsub.f32 %v16643_v35, %v21328_v3  ;;  %12625 = vmatprep.subr.bf16.mxu0 %v21264_v8  ;;  %12574 = vmatprep.subr.bf16.mxu1 %v21266_v20  ;;  %v21332_v3 = vand.u32 4294901760, %v16650_v23  ;;  %v21334_v35 = vand.u32 4294901760, %v21235_v59  ;;  %v21335_v56 = vand.u32 4294901760, %v16657_v61 }
 0x32c   : > { %v16724_v21 = vsub.f32 %v16538_v2, %v21330_v29  ;;  %3852 = vmatmul.mubr.f32.gmra.mrb[92].mxu1 %v21331_v45  ;;  %4153 = vmatmul.mubr.f32.gmra.mrb[106].mxu0 %v21313_v31  ;;  %v12626_v2 = vpack.c.bf16 %v4501_v0, %v4494_v10  ;;  %v16743_v20 = vand.u32 4294901760, %v1592_v24  ;;  %v21337_v45 = vmov 0.0   ;;  %v1597_v0 = vld [vmem:[#allocation2 + $0xe8] sm:$0xff] }
 0x32d   : > { %v4521_v55 = vsub.f32 %v16650_v23, %v21332_v3  ;;  %3859 = vmatprep.mubr.f32.mxu1 %v21334_v35  ;;  %v4528_v29 = vsub.f32 %v16657_v61, %v21335_v56  ;;  %11487 = vmatprep.mubr.msk.f32.mxu0 %vm13946_vm0, %v21337_v45  ;;  %v4508_v3 = vand.u32 4294901760, %v4507_v11  ;;  %v20355_v18 = vand.u32 4294901760, %v16691_v47 }
 0x32e   : > { %21336 = vst [vmem:[#allocation45_spill] sm:$0xff] %v16743_v20  ;;  %v4403_v31 = vand.u32 4294901760, %v4402_v33  ;;  %12576 = vmatpush3.bf16.msra.mxu1 %v21270_v43  ;;  %v21338_v59 = vand.u32 4294901760, %v16681_v13  ;;  %v16755_v10 = vsub.f32 %v1587_v44, %v16719_v41  ;;  %v21339_v56 = vand.u32 4294901760, %v16558_v39 }
 0x32f   : > { %v16765_v33 = vsub.f32 %v16560_v50, %v21340_v51  ;;  %v21341_v43 = vand.u32 4294901760, %v21236_v28  ;;  %12578 = vmatprep.subr.bf16.mxu1 %v21272_v62  ;;  %v21342_v44 = vand.u32 4294901760, %v21237_v60  ;;  %v4529_v22 = vand.u32 4294901760, %v4528_v29 }
 0x330   : > { %v4412_v35 = vsub.f32 %v16681_v13, %v21338_v59  ;;  %v16760_v11 = vsub.f32 %v16558_v39, %v21339_v56  ;;  %v4522_v59 = vand.u32 4294901760, %v4521_v55  ;;  %11488 = vmatmul.mubr.f32.vlgmr.msra.gmra.mrb[108].mxu0 %v4403_v31  ;;  %v16773_v39 = vsub.f32 %v1592_v24, %v16743_v20 }
 0x331   : > { %3863 = vmatmul.mubr.f32.gmra.mrb[94].mxu1 %v21341_v43  ;;  %v20368_v56 = vand.u32 4294901760, %v16724_v21  ;;  %v20356_v50 = vand.u32 4294901760, %v16735_v17  ;;  %12627 = vmatpush3.bf16.msra.mxu0 %v12626_v2  ;;  %v12629_v28 = vpack.c.bf16 %v4515_v9, %v4508_v3  ;;  %v4535_v62 = vsub.f32 %v16691_v47, %v20355_v18 }
 0x332   : > { %3870 = vmatprep.mubr.f32.mxu1 %v21342_v44  ;;  %11490 = vmatprep.mubr.msk.f32.mxu0 %vm13946_vm0, %v21337_v45  ;;  %v21343_v60 = vand.u32 4294901760, %v16700_v42  ;;  %v4413_v55 = vand.u32 4294901760, %v4412_v35  ;;  %v21344_v24 = vand.u32 4294901760, %v16717_v6  ;;  %v20369_v29 = vand.u32 4294901760, %v16755_v10  ;;  %v1602_v44 = vld [vmem:[#allocation2 + $0x110] sm:$0xff] }
 0x333   : > { %12628 = vmatprep.subr.bf16.mxu0 %v21264_v8  ;;  %12580 = vmatpush3.bf16.msra.mxu1 %v21275_v36  ;;  %v16791_v9 = vand.u32 4294901760, %v1597_v0  ;;  %v21346_v3 = vand.u32 4294901760, %v16578_v53  ;;  %v21347_v43 = vand.u32 4294901760, %v16580_v52  ;;  %v21348_v36 = vand.u32 4294901760, %v21242_v37 }
 0x334   : > { %v4542_v31 = vsub.f32 %v16700_v42, %v21343_v60  ;;  %v4422_v2 = vsub.f32 %v16717_v6, %v21344_v24  ;;  %12582 = vmatprep.subr.bf16.mxu1 %v21277_v25  ;;  %11491 = vmatmul.mubr.f32.gmra.mrb[110].mxu0 %v4413_v55  ;;  %v21349_v60 = vand.u32 4294901760, %v16065_v34  ;;  %v12632_v24 = vpack.c.bf16 %v4529_v22, %v4522_v59 }
 0x335   : > { %21345 = vst [vmem:[#allocation60_spill] sm:$0xff] %v16791_v9  ;;  %v16796_v51 = vsub.f32 %v16578_v53, %v21346_v3  ;;  %v16801_v35 = vsub.f32 %v16580_v52, %v21347_v43  ;;  %3874 = vmatmul.mubr.f32.gmra.mrb[96].mxu1 %v21348_v36  ;;  %v20367_v18 = vand.u32 4294901760, %v16773_v39  ;;  %v4549_v53 = vsub.f32 %v16724_v21, %v20368_v56  ;;  %v1607_v36 = vld [vmem:[#allocation2 + $0x138] sm:$0xff] }
 0x336   : > { %3881 = vmatprep.mubr.f32.mxu1 %v21349_v60  ;;  %v4556_v52 = vsub.f32 %v16735_v17, %v20356_v50  ;;  %12630 = vmatpush3.bf16.msra.mxu0 %v12629_v28  ;;  %v4536_v37 = vand.u32 4294901760, %v4535_v62  ;;  %v4543_v25 = vand.u32 4294901760, %v4542_v31  ;;  %v20366_v34 = vand.u32 4294901760, %v16760_v11 }
 0x337   : > { %11493 = vmatprep.mubr.msk.f32.mxu0 %vm13946_vm0, %v21337_v45  ;;  %v20365_v22 = vand.u32 4294901760, %v16765_v33  ;;  %v4423_v59 = vand.u32 4294901760, %v4422_v2  ;;  %12631 = vmatprep.subr.bf16.mxu0 %v21264_v8  ;;  %v4432_v55 = vsub.f32 %v16755_v10, %v20369_v29  ;;  %v16825_v28 = vsub.f32 %v1597_v0, %v16791_v9 }
 0x338   : > { %12584 = vmatpush3.bf16.msra.mxu1 %v21280_v57  ;;  %v16827_v3 = vand.u32 4294901760, %v1602_v44  ;;  %v21351_v62 = vand.u32 4294901760, %v16608_v5  ;;  %v21352_v2 = vand.u32 4294901760, %v16610_v19  ;;  %v21353_v57 = vand.u32 4294901760, %v16090_v26 }
 0x339   : > { %12586 = vmatprep.subr.bf16.mxu1 %v21282_v54  ;;  %11494 = vmatmul.mubr.f32.gmra.mrb[112].mxu0 %v4423_v59  ;;  %v21354_v0 = vand.u32 4294901760, %v21247_v40  ;;  %v4550_v60 = vand.u32 4294901760, %v4549_v53  ;;  %v20363_v50 = vand.u32 4294901760, %v16796_v51  ;;  %v12635_v26 = vpack.c.bf16 %v4543_v25, %v4536_v37  ;;  %v1612_v25 = vld [vmem:[#allocation2 + $0x160] sm:$0xf] }
 0x33a   : > { %21350 = vst [vmem:[#allocation82_spill] sm:$0xff] %v16827_v3  ;;  %v16832_v31 = vsub.f32 %v16608_v5, %v21351_v62  ;;  %v16837_v43 = vsub.f32 %v16610_v19, %v21352_v2  ;;  %3885 = vmatmul.mubr.f32.gmra.mrb[98].mxu1 %v21353_v57  ;;  %v4442_v5 = vsub.f32 %v16773_v39, %v20367_v18  ;;  %v4557_v62 = vand.u32 4294901760, %v4556_v52  ;;  %v21386_v18 = vld [vmem:[#allocation25_spill] sm:$0xff] }
 0x33b   : > { %3892 = vmatprep.mubr.f32.mxu1 %v21354_v0  ;;  %12633 = vmatpush3.bf16.msra.mxu0 %v12632_v24  ;;  %v4563_v19 = vsub.f32 %v16760_v11, %v20366_v34  ;;  %v4570_v40 = vsub.f32 %v16765_v33, %v20365_v22  ;;  %v20362_v54 = vand.u32 4294901760, %v16801_v35  ;;  %v4433_v59 = vand.u32 4294901760, %v4432_v55 }
 0x33c   : > { %11496 = vmatprep.mubr.msk.f32.mxu0 %vm13946_vm0, %v21337_v45  ;;  %12634 = vmatprep.subr.bf16.mxu0 %v21264_v8  ;;  %v20364_v24 = vand.u32 4294901760, %v16825_v28  ;;  %v16861_v53 = vsub.f32 %v1602_v44, %v16827_v3  ;;  %v16863_v52 = vand.u32 4294901760, %v1607_v36  ;;  %v21356_v37 = vand.u32 4294901760, %v21251_v4 }
 0x33d   : > { %12588 = vmatpush3.bf16.msra.mxu1 %v21285_v46  ;;  %11497 = vmatmul.mubr.f32.gmra.mrb[114].mxu0 %v4433_v59  ;;  %v21357_v55 = vand.u32 4294901760, %v21253_v49  ;;  %v4443_v2 = vand.u32 4294901760, %v4442_v5  ;;  %v12638_v57 = vpack.c.bf16 %v4557_v62, %v4550_v60  ;;  %v4577_v46 = vsub.f32 %v16796_v51, %v20363_v50 }
 0x33e   : > { %21355 = vst [vmem:[#allocation62_spill] sm:$0xff] %v16863_v52  ;;  %3896 = vmatmul.mubr.f32.gmra.mrb[100].mxu1 %v21356_v37  ;;  %12590 = vmatprep.subr.bf16.mxu1 %v21287_v16  ;;  %v20358_v44 = vand.u32 4294901760, %v16832_v31  ;;  %v4564_v4 = vand.u32 4294901760, %v4563_v19  ;;  %v4571_v0 = vand.u32 4294901760, %v4570_v40  ;;  %v4584_v16 = vsub.f32 %v16801_v35, %v20362_v54  ;;  %v9577_v40 = vpop.f32.mrb[0].mxu1  ;;  %v21381_v54 = vld [vmem:[#allocation93_spill] sm:$0xff] }
 0x33f   : > { %3903 = vmatprep.mubr.f32.mxu1 %v21357_v55  ;;  %11499 = vmatprep.mubr.msk.f32.mxu0 %vm13946_vm0, %v21337_v45  ;;  %v20357_v49 = vand.u32 4294901760, %v16837_v43  ;;  %v4452_v5 = vsub.f32 %v16825_v28, %v20364_v24  ;;  %v20361_v60 = vand.u32 4294901760, %v16861_v53  ;;  %v16887_v62 = vsub.f32 %v1607_v36, %v16863_v52  ;;  %v9578_v59 = vpop.f32.mrb[1].mxu1  ;;  %v21383_v24 = vld [vmem:[#allocation95_spill] sm:$0xff] }
 0x340   : > { %12636 = vmatpush3.bf16.msra.mxu0 %v12635_v26  ;;  %v16889_v26 = vand.u32 4294901760, %v1612_v25  ;;  %v21359_v19 = vand.u32 4294901760, %v21256_v32  ;;  %v4578_v37 = vand.u32 4294901760, %v4577_v46  ;;  %v4591_v55 = vsub.f32 %v16832_v31, %v20358_v44 }
 0x341   : > { %12637 = vmatprep.subr.bf16.mxu0 %v21264_v8  ;;  %12592 = vmatpush3.bf16.msra.mxu1 %v21290_v30  ;;  %v21360_v30 = vand.u32 4294901760, %v21258_v27  ;;  %v12641_v36 = vpack.c.bf16 %v4571_v0, %v4564_v4  ;;  %v16901_v32 = vadd.f32 %v9578_v59, %v9577_v40  ;;  %v4453_v27 = vand.u32 4294901760, %v4452_v5  ;;  %v21362_v0 = vld [vmem:[#allocation46_spill] sm:$0xff] }
 0x342   : > { %21358 = vst [vmem:[#allocation27_spill] sm:$0xff] %v16889_v26  ;;  %3907 = vmatmul.mubr.f32.gmra.mrb[102].mxu1 %v21359_v19  ;;  %12594 = vmatprep.subr.bf16.mxu1 %v21292_v48  ;;  %v4585_v19 = vand.u32 4294901760, %v4584_v16  ;;  %v4598_v48 = vsub.f32 %v16837_v43, %v20357_v49  ;;  %v20360_v46 = vand.u32 4294901760, %v16887_v62  ;;  %v21361_v4 = vand.u32 4294901760, %v21260_v1  ;;  %v9580_v16 = vpop.f32.mrb[2].mxu1  ;;  %v21363_v5 = vld [vmem:[#allocation66_spill] sm:$0xff] }
 0x343   : > { %11500 = vmatmul.mubr.f32.gmra.mrb[116].mxu0 %v4443_v2  ;;  %3914 = vmatprep.mubr.f32.mxu1 %v21360_v30  ;;  %v4462_v2 = vsub.f32 %v16861_v53, %v20361_v60  ;;  %v9581_v40 = vpop.f32.mrb[3].mxu1  ;;  %v4592_v49 = vand.u32 4294901760, %v4591_v55  ;;  %v21368_v55 = vld [vmem:[#allocation43_spill] sm:$0xff] }
 0x344   : > { %11502 = vmatprep.mubr.msk.f32.mxu0 %vm13946_vm0, %v21337_v45  ;;  %12639 = vmatpush3.bf16.msra.mxu0 %v12638_v57  ;;  %v16913_v57 = vsub.f32 %v1612_v25, %v16889_v26  ;;  %v12644_v30 = vpack.c.bf16 %v4585_v19, %v4578_v37  ;;  %v16922_v59 = vadd.f32 %v9581_v40, %v9580_v16  ;;  %v9459_v25 = vpop.f32.mrb[18].mxu0  ;;  %v4599_v44 = vand.u32 4294901760, %v4598_v48  ;;  %v9583_v19 = vpop.f32.mrb[4].mxu1 }
 0x345   : > { %12596 = vmatpush3.bf16.msra.mxu1 %v21299_v14  ;;  %12640 = vmatprep.subr.bf16.mxu0 %v21264_v8  ;;  %v21364_v14 = vand.u32 4294901760, %v21363_v5  ;;  %v4463_v1 = vand.u32 4294901760, %v4462_v2  ;;  %v9584_v48 = vpop.f32.mrb[5].mxu1 }
 0x346   : > { %3918 = vmatmul.mubr.f32.gmra.mrb[104].mxu1 %v21361_v4  ;;  %12598 = vmatprep.subr.bf16.mxu1 %v21362_v0  ;;  %v21365_v4 = vld [vmem:[#allocation84_spill] sm:$0xff]  ;;  %v9460_v0 = vpop.f32.mrb[19].mxu0  ;;  %v20359_v5 = vand.u32 4294901760, %v16913_v57  ;;  %v12647_v2 = vpack.c.bf16 %v4599_v44, %v4592_v49  ;;  %v16937_v16 = vadd.f32 %v9584_v48, %v9583_v19  ;;  %v12650_v19 = vpack.c.bf16 %v16592_v38, %v16587_v63 }
 0x347   : > { %11503 = vmatmul.mubr.f32.gmra.mrb[118].mxu0 %v4453_v27  ;;  %3925 = vmatprep.mubr.f32.mxu1 %v21364_v14  ;;  %v4472_v27 = vsub.f32 %v16887_v62, %v20360_v46  ;;  %v21366_v14 = vld [vmem:[#allocation26_spill] sm:$0xff]  ;;  %v16932_v37 = vadd.f32 %v9460_v0, %v9459_v25  ;;  %v21369_v25 = vld [vmem:[#allocation76_spill] sm:$0xff]  ;;  %v9462_v0 = vpop.f32.mrb[20].mxu0 }
 0x348   : > { %11505 = vmatprep.mubr.msk.f32.mxu0 %vm13946_vm0, %v21337_v45  ;;  %12642 = vmatpush3.bf16.msra.mxu0 %v12641_v36  ;;  %v21367_v36 = vand.u32 4294901760, %v21366_v14  ;;  %v9463_v44 = vpop.f32.mrb[21].mxu0  ;;  %v21372_v14 = vld [vmem:[#allocation83_spill] sm:$0xff] }
 0x349   : > { %12600 = vmatpush3.bf16.msra.mxu1 %v21365_v4  ;;  %12643 = vmatprep.subr.bf16.mxu0 %v21264_v8  ;;  %v4473_v40 = vand.u32 4294901760, %v4472_v27  ;;  %v4482_v4 = vsub.f32 %v16913_v57, %v20359_v5  ;;  %v21371_v27 = vld [vmem:[#allocation81_spill] sm:$0xff]  ;;  %v21379_v5 = vld [vmem:[#allocation91_spill] sm:$0xff] }
 0x34a   : > { %3929 = vmatmul.mubr.f32.gmra.mrb[106].mxu1 %v21367_v36  ;;  %v9586_v36 = vpop.f32.mrb[6].mxu1 }
 0x34b   : > { %11506 = vmatmul.mubr.f32.gmra.mrb[120].mxu0 %v4463_v1  ;;  %4255 = vmatprep.mubr.f32.mxu1 %v21368_v55  ;;  %v21370_v1 = vld [vmem:[#allocation78_spill] sm:$0xff]  ;;  %v4483_v49 = vand.u32 4294901760, %v4482_v4  ;;  %v9587_v55 = vpop.f32.mrb[7].mxu1  ;;  %v9465_v4 = vpop.f32.mrb[22].mxu0 }
 0x34c   : > { %11508 = vmatprep.mubr.msk.f32.mxu0 %vm13946_vm0, %v21337_v45  ;;  %12645 = vmatpush3.bf16.msra.mxu0 %v12644_v30  ;;  %v16947_v30 = vadd.f32 %v9463_v44, %v9462_v0  ;;  %v16956_v48 = vadd.f32 %v9587_v55, %v9586_v36  ;;  %v12653_v0 = vpack.c.bf16 %v16628_v7, %v16619_v15  ;;  %v21377_v36 = vld [vmem:[#allocation56_spill] sm:$0xff] }
 0x34d   : > { %12646 = vmatprep.subr.bf16.mxu0 %v21264_v8 }
 0x34e   : > { %4257 = vmatmul.mubr.f32.vlgmr.msra.gmra.mrb[108].mxu1 %v21369_v25  ;;  %v21375_v25 = vld [vmem:[#allocation88_spill] sm:$0xff] }
 0x34f   : > { %11509 = vmatmul.mubr.f32.gmra.mrb[122].mxu0 %v4473_v40  ;;  %4262 = vmatprep.mubr.f32.mxu1 %v21370_v1  ;;  %v21374_v40 = vld [vmem:[#allocation74_spill] sm:$0xff]  ;;  %v9466_v1 = vpop.f32.mrb[23].mxu0 }
 0x350   : > { %11511 = vmatprep.mubr.msk.f32.mxu0 %vm13946_vm0, %v21337_v45  ;;  %12648 = vmatpush3.bf16.msra.mxu0 %v12647_v2  ;;  %v21373_v2 = vld [vmem:[#allocation86_spill] sm:$0xff]  ;;  %v16965_v44 = vadd.f32 %v9466_v1, %v9465_v4 }
 0x351   : > { %12649 = vmatprep.subr.bf16.mxu0 %v21264_v8 }
 0x352   : > { %4264 = vmatmul.mubr.f32.gmra.mrb[110].mxu1 %v21371_v27 }
 0x353   : > { %11512 = vmatmul.mubr.f32.gmra.mrb[124].mxu0 %v4483_v49  ;;  %4269 = vmatprep.mubr.f32.mxu1 %v21372_v14  ;;  %v9589_v49 = vpop.f32.mrb[8].mxu1  ;;  %v21376_v14 = vld [vmem:[#allocation28_spill] sm:$0xff] }
 0x354   : > { %11546 = vmatprep.mubr.msk.f32.mxu0 %vm13946_vm0, %v21337_v45  ;;  %v9590_v27 = vpop.f32.mrb[9].mxu1 }
 0x355   : > { %v16970_v55 = vadd.f32 %v9590_v27, %v9589_v49  ;;  %v9592_v4 = vpop.f32.mrb[10].mxu1  ;;  %v21380_v27 = vld [vmem:[#allocation92_spill] sm:$0xff] }
 0x356   : > { %4271 = vmatmul.mubr.f32.gmra.mrb[112].mxu1 %v21373_v2  ;;  %v12656_v2 = vpack.c.bf16 %v16657_v61, %v16650_v23  ;;  %v9593_v1 = vpop.f32.mrb[11].mxu1 }
 0x357   : > { %11547 = vmatmul.mubr.f32.vlgmr.msra.gmra.mrb[108].mxu0 %v21374_v40  ;;  %4276 = vmatprep.mubr.f32.mxu1 %v21375_v25  ;;  %v9468_v25 = vpop.f32.mrb[24].mxu0  ;;  %v16980_v49 = vadd.f32 %v9593_v1, %v9592_v4  ;;  %v9595_v46 = vpop.f32.mrb[12].mxu1 }
 0x358   : > { %12651 = vmatpush3.bf16.msra.mxu0 %v12650_v19  ;;  %11549 = vmatprep.mubr.msk.f32.mxu0 %vm13946_vm0, %v21337_v45  ;;  %v21378_v19 = vld [vmem:[#allocation90_spill] sm:$0xff]  ;;  %v9596_v60 = vpop.f32.mrb[13].mxu1 }
 0x359   : > { %12652 = vmatprep.subr.bf16.mxu0 %v21264_v8  ;;  %v16992_v1 = vadd.f32 %v9596_v60, %v9595_v46  ;;  %v21384_v46 = vld [vmem:[#allocation79_spill] sm:$0xff] }
 0x35a   : > { %4278 = vmatmul.mubr.f32.gmra.mrb[114].mxu1 %v21376_v14  ;;  %v9469_v14 = vpop.f32.mrb[25].mxu0 }
 0x35b   : > { %11550 = vmatmul.mubr.f32.gmra.mrb[110].mxu0 %v21377_v36  ;;  %4283 = vmatprep.mubr.f32.mxu1 %v21378_v19  ;;  %v12659_v19 = vpack.c.bf16 %v16700_v42, %v16691_v47 }
 0x35c   : > { %12654 = vmatpush3.bf16.msra.mxu0 %v12653_v0  ;;  %11552 = vmatprep.mubr.msk.f32.mxu0 %vm13946_vm0, %v21337_v45  ;;  %v16983_v0 = vadd.f32 %v9469_v14, %v9468_v25  ;;  %v21382_v25 = vld [vmem:[#allocation73_spill] sm:$0xff]  ;;  %v12662_v14 = vpack.c.bf16 %v16735_v17, %v16724_v21 }
 0x35d   : > { %12655 = vmatprep.subr.bf16.mxu0 %v21264_v8 }
 0x35e   : > { %4285 = vmatmul.mubr.f32.gmra.mrb[116].mxu1 %v21379_v5  ;;  %v9471_v5 = vpop.f32.mrb[26].mxu0 }
 0x35f   : > { %11553 = vmatmul.mubr.f32.gmra.mrb[112].mxu0 %v16683_v58  ;;  %4290 = vmatprep.mubr.f32.mxu1 %v21380_v27  ;;  %v9472_v4 = vpop.f32.mrb[27].mxu0  ;;  %v9598_v27 = vpop.f32.mrb[14].mxu1 }
 0x360   : > { %12657 = vmatpush3.bf16.msra.mxu0 %v12656_v2  ;;  %11555 = vmatprep.mubr.msk.f32.mxu0 %vm13946_vm0, %v21337_v45  ;;  %v16995_v2 = vadd.f32 %v9472_v4, %v9471_v5  ;;  %v9599_v50 = vpop.f32.mrb[15].mxu1 }
 0x361   : > { %12658 = vmatprep.subr.bf16.mxu0 %v21264_v8  ;;  %v17005_v5 = vadd.f32 %v9599_v50, %v9598_v27  ;;  %v21385_v50 = vld [vmem:[#allocation65_spill] sm:$0xff] }
 0x362   : > { %4292 = vmatmul.mubr.f32.gmra.mrb[118].mxu1 %v21381_v54  ;;  %v9474_v54 = vpop.f32.mrb[28].mxu0 }
 0x363   : > { %11556 = vmatmul.mubr.f32.gmra.mrb[114].mxu0 %v16719_v41  ;;  %4297 = vmatprep.mubr.f32.mxu1 %v21382_v25  ;;  %v9475_v60 = vpop.f32.mrb[29].mxu0  ;;  %v9601_v25 = vpop.f32.mrb[16].mxu1  ;;  %v21387_v41 = vld [vmem:[#allocation58_spill] sm:$0xff] }
 0x364   : > { %11558 = vmatprep.mubr.msk.f32.mxu0 %vm13946_vm0, %v21337_v45  ;;  %12660 = vmatpush3.bf16.msra.mxu0 %v12659_v19  ;;  %v17007_v4 = vadd.f32 %v9475_v60, %v9474_v54  ;;  %v12665_v19 = vpack.c.bf16 %v16765_v33, %v16760_v11  ;;  %v9602_v22 = vpop.f32.mrb[17].mxu1 }
 0x365   : > { %12661 = vmatprep.subr.bf16.mxu0 %v21264_v8  ;;  %v17017_v27 = vadd.f32 %v9602_v22, %v9601_v25  ;;  %v9636_v60 = vpop.f32.mrb[18].mxu1 }
 0x366   : > { %4299 = vmatmul.mubr.f32.gmra.mrb[120].mxu1 %v21383_v24  ;;  %v9477_v24 = vpop.f32.mrb[30].mxu0 }
 0x367   : > { %11559 = vmatmul.mubr.f32.gmra.mrb[116].mxu0 %v16743_v20  ;;  %4304 = vmatprep.mubr.f32.mxu1 %v21384_v46  ;;  %v9478_v34 = vpop.f32.mrb[31].mxu0  ;;  %v9637_v46 = vpop.f32.mrb[19].mxu1 }
 0x368   : > { %11561 = vmatprep.mubr.msk.f32.mxu0 %vm13946_vm0, %v21337_v45  ;;  %12663 = vmatpush3.bf16.msra.mxu0 %v12662_v14  ;;  %v17019_v54 = vadd.f32 %v9478_v34, %v9477_v24  ;;  %v12668_v14 = vpack.c.bf16 %v16801_v35, %v16796_v51  ;;  %v9638_v22 = vadd.f32 %v9637_v46, %v9636_v60  ;;  %v9639_v25 = vpop.f32.mrb[20].mxu1 }
 0x369   : > { %12664 = vmatprep.subr.bf16.mxu0 %v21264_v8 }
 0x36a   : > { %4306 = vmatmul.mubr.f32.gmra.mrb[122].mxu1 %v21301_v12  ;;  %v9480_v12 = vpop.f32.mrb[32].mxu0 }
 0x36b   : > { %11562 = vmatmul.mubr.f32.gmra.mrb[118].mxu0 %v16791_v9  ;;  %4311 = vmatprep.mubr.f32.mxu1 %v21385_v50  ;;  %v9481_v56 = vpop.f32.mrb[33].mxu0  ;;  %v9640_v50 = vpop.f32.mrb[21].mxu1 }
 0x36c   : > { %11564 = vmatprep.mubr.msk.f32.mxu0 %vm13946_vm0, %v21337_v45  ;;  %12666 = vmatpush3.bf16.msra.mxu0 %v12665_v19  ;;  %v17028_v34 = vadd.f32 %v9481_v56, %v9480_v12  ;;  %v12671_v19 = vpack.c.bf16 %v16837_v43, %v16832_v31  ;;  %v9483_v24 = vpop.f32.mrb[34].mxu0  ;;  %v17043_v56 = vld [vmem:[%s20069_s4 + $0x1] ss:$0 sm:$0xff] }
 0x36d   : > { %12667 = vmatprep.subr.bf16.mxu0 %v21264_v8  ;;  %v9484_v29 = vpop.f32.mrb[35].mxu0  ;;  %v1822_v36 = vadd.f32 %v16947_v30, %v17043_v56 }
 0x36e   : > { %4313 = vmatmul.mubr.f32.gmra.mrb[124].mxu1 %v21386_v18  ;;  %v9641_v18 = vadd.f32 %v9640_v50, %v9639_v25  ;;  %v9518_v60 = vpop.f32.mrb[36].mxu0 }
 0x36f   : > { %11565 = vmatmul.mubr.f32.gmra.mrb[120].mxu0 %v16827_v3  ;;  %v17036_v3 = vadd.f32 %v9484_v29, %v9483_v24  ;;  %v9519_v46 = vpop.f32.mrb[37].mxu0  ;;  %v1807_v29 = vadd.f32 %v16932_v37, %v17043_v56 }
 0x370   : > { %11567 = vmatprep.mubr.msk.f32.mxu0 %vm13946_vm0, %v21337_v45  ;;  %12669 = vmatpush3.bf16.msra.mxu0 %v12668_v14  ;;  %v9642_v14 = vpop.f32.mrb[22].mxu1  ;;  %v9520_v24 = vadd.f32 %v9519_v46, %v9518_v60 }
 0x371   : > { %12670 = vmatprep.subr.bf16.mxu0 %v21264_v8  ;;  %v9643_v12 = vpop.f32.mrb[23].mxu1 }
 0x372   : > { %v9644_v25 = vadd.f32 %v9643_v12, %v9642_v14  ;;  %v2159_v50 = vadd.f32 %v9520_v24, %v1807_v29 }
 0x373   : > { %11568 = vmatmul.mubr.f32.gmra.mrb[122].mxu0 %v16863_v52  ;;  %v9521_v52 = vpop.f32.mrb[38].mxu0 }
 0x374   : > { %11570 = vmatprep.mubr.msk.f32.mxu0 %vm13946_vm0, %v21337_v45  ;;  %12672 = vmatpush3.bf16.msra.mxu0 %v12671_v19  ;;  %v9645_v19 = vpop.f32.mrb[24].mxu1  ;;  %v9522_v20 = vpop.f32.mrb[39].mxu0  ;;  %v2353_v14 = vadd.f32 %v16901_v32, %v2159_v50 }
 0x375   : > { %12673 = vmatprep.subr.bf16.mxu0 %v21264_v8  ;;  %v9646_v9 = vpop.f32.mrb[25].mxu1  ;;  %v9523_v12 = vadd.f32 %v9522_v20, %v9521_v52  ;;  %v9524_v46 = vpop.f32.mrb[40].mxu0  ;;  %v1837_v20 = vadd.f32 %v16965_v44, %v17043_v56 }
 0x376   : > { %v9647_v58 = vadd.f32 %v9646_v9, %v9645_v19  ;;  %v9648_v37 = vpop.f32.mrb[26].mxu1  ;;  %v17059_v24 = vadd.f32 %v9638_v22, %v2353_v14  ;;  %v9525_v9 = vpop.f32.mrb[41].mxu0  ;;  %v21389_v19 = vld [vmem:[#allocation29_spill] sm:$0xff] }
 0x377   : > { %11571 = vmatmul.mubr.f32.gmra.mrb[124].mxu0 %v16889_v26  ;;  %v21388_v26 = vld [vmem:[#allocation35_spill] sm:$0xff]  ;;  %v2166_v60 = vadd.f32 %v9523_v12, %v1822_v36  ;;  %v9649_v29 = vpop.f32.mrb[27].mxu1  ;;  %v9526_v32 = vadd.f32 %v9525_v9, %v9524_v46  ;;  %v9527_v50 = vpop.f32.mrb[42].mxu0 }
 0x378   : > { %11605 = vmatprep.mubr.msk.f32.mxu0 %vm13946_vm0, %v21337_v45  ;;  %v9650_v30 = vadd.f32 %v9649_v29, %v9648_v37  ;;  %v9651_v36 = vpop.f32.mrb[28].mxu1  ;;  %v9528_v37 = vpop.f32.mrb[43].mxu0  ;;  %v21390_v29 = vld [vmem:[#allocation30_spill] sm:$0xff] }
 0x379   : > { %v2362_v52 = vadd.f32 %v16922_v59, %v2166_v60  ;;  %v2173_v22 = vadd.f32 %v9526_v32, %v1837_v20  ;;  %v9652_v14 = vpop.f32.mrb[29].mxu1  ;;  %v1852_v59 = vadd.f32 %v16983_v0, %v17043_v56  ;;  %v9529_v46 = vadd.f32 %v9528_v37, %v9527_v50 }
 0x37a   : > { %v9653_v44 = vadd.f32 %v9652_v14, %v9651_v36  ;;  %v9654_v9 = vpop.f32.mrb[30].mxu1  ;;  %v21391_v14 = vld [vmem:[#allocation31_spill] sm:$0xff] }
 0x37b   : > { %11606 = vmatmul.mubr.f32.vlgmr.msra.gmra.mrb[108].mxu0 %v21387_v41  ;;  %v17069_v12 = vadd.f32 %v9641_v18, %v2362_v52  ;;  %v2371_v60 = vadd.f32 %v16937_v16, %v2173_v22  ;;  %v2180_v18 = vadd.f32 %v9529_v46, %v1852_v59  ;;  %v9530_v20 = vpop.f32.mrb[44].mxu0  ;;  %v9655_v52 = vpop.f32.mrb[31].mxu1  ;;  %v1867_v16 = vadd.f32 %v16995_v2, %v17043_v56 }
 0x37c   : > { %12675 = vmatpush3.bf16.msra.mxu0 %v21388_v26  ;;  %11608 = vmatprep.mubr.msk.f32.mxu0 %vm13946_vm0, %v21337_v45  ;;  %v9531_v36 = vpop.f32.mrb[45].mxu0  ;;  %v9656_v0 = vadd.f32 %v9655_v52, %v9654_v9  ;;  %v21392_v52 = vld [vmem:[#allocation32_spill] sm:$0xff] }
 0x37d   : > { %12676 = vmatprep.subr.bf16.mxu0 %v21264_v8  ;;  %v17079_v32 = vadd.f32 %v9644_v25, %v2371_v60  ;;  %v2380_v22 = vadd.f32 %v16956_v48, %v2180_v18  ;;  %v9532_v50 = vadd.f32 %v9531_v36, %v9530_v20  ;;  %v1882_v48 = vadd.f32 %v17007_v4, %v17043_v56 }
 0x37f   : > { %11609 = vmatmul.mubr.f32.gmra.mrb[110].mxu0 %v16681_v13  ;;  %v2187_v25 = vadd.f32 %v9532_v50, %v1867_v16  ;;  %v9533_v59 = vpop.f32.mrb[46].mxu0  ;;  %v17089_v46 = vadd.f32 %v9647_v58, %v2380_v22 }
 0x380   : > { %12678 = vmatpush3.bf16.msra.mxu0 %v21389_v19  ;;  %11611 = vmatprep.mubr.msk.f32.mxu0 %vm13946_vm0, %v21337_v45  ;;  %v9534_v9 = vpop.f32.mrb[47].mxu0 }
 0x381   : > { %12679 = vmatprep.subr.bf16.mxu0 %v21264_v8  ;;  %v9657_v37 = vpop.f32.mrb[32].mxu1  ;;  %v2389_v18 = vadd.f32 %v16970_v55, %v2187_v25  ;;  %v9535_v20 = vadd.f32 %v9534_v9, %v9533_v59  ;;  %v1897_v55 = vadd.f32 %v17019_v54, %v17043_v56 }
 0x382   : > { %v9658_v60 = vpop.f32.mrb[33].mxu1 }
 0x383   : > { %11612 = vmatmul.mubr.f32.gmra.mrb[112].mxu0 %v16717_v6  ;;  %v9659_v2 = vadd.f32 %v9658_v60, %v9657_v37  ;;  %v2194_v58 = vadd.f32 %v9535_v20, %v1882_v48  ;;  %v17099_v50 = vadd.f32 %v9650_v30, %v2389_v18  ;;  %v21393_v60 = vld [vmem:[#allocation33_spill] sm:$0xff] }
 0x384   : > { %12681 = vmatpush3.bf16.msra.mxu0 %v21390_v29  ;;  %11614 = vmatprep.mubr.msk.f32.mxu0 %vm13946_vm0, %v21337_v45  ;;  %v9536_v16 = vpop.f32.mrb[48].mxu0 }
 0x385   : > { %12682 = vmatprep.subr.bf16.mxu0 %v21264_v8  ;;  %v9537_v37 = vpop.f32.mrb[49].mxu0  ;;  %v2398_v25 = vadd.f32 %v16980_v49, %v2194_v58  ;;  %v1912_v49 = vadd.f32 %v17028_v34, %v17043_v56 }
 0x386   : > { %v9660_v36 = vpop.f32.mrb[34].mxu1  ;;  %v9538_v59 = vadd.f32 %v9537_v37, %v9536_v16 }
 0x387   : > { %11615 = vmatmul.mubr.f32.gmra.mrb[114].mxu0 %v16755_v10  ;;  %v9661_v22 = vpop.f32.mrb[35].mxu1  ;;  %v17109_v20 = vadd.f32 %v9653_v44, %v2398_v25 }
 0x388   : > { %11617 = vmatprep.mubr.msk.f32.mxu0 %vm13946_vm0, %v21337_v45  ;;  %12684 = vmatpush3.bf16.msra.mxu0 %v21391_v14  ;;  %v9662_v4 = vadd.f32 %v9661_v22, %v9660_v36  ;;  %v2201_v30 = vadd.f32 %v9538_v59, %v1897_v55  ;;  %v9539_v48 = vpop.f32.mrb[50].mxu0  ;;  %v21394_v22 = vld [vmem:[#allocation77_spill] sm:$0xff] }
 0x389   : > { %12685 = vmatprep.subr.bf16.mxu0 %v21264_v8  ;;  %v9540_v36 = vpop.f32.mrb[51].mxu0 }
 0x38a   : > { %v9695_v9 = vpop.f32.mrb[36].mxu1  ;;  %v2407_v58 = vadd.f32 %v16992_v1, %v2201_v30  ;;  %v9541_v16 = vadd.f32 %v9540_v36, %v9539_v48  ;;  %v1927_v30 = vadd.f32 %v17036_v3, %v17043_v56 }
 0x38b   : > { %11618 = vmatmul.mubr.f32.gmra.mrb[116].mxu0 %v16773_v39  ;;  %v9696_v18 = vpop.f32.mrb[37].mxu1 }
 0x38c   : > { %11620 = vmatprep.mubr.msk.f32.mxu0 %vm13946_vm0, %v21337_v45  ;;  %12687 = vmatpush3.bf16.msra.mxu0 %v21392_v52  ;;  %v9697_v54 = vadd.f32 %v9696_v18, %v9695_v9  ;;  %v2208_v55 = vadd.f32 %v9541_v16, %v1912_v49  ;;  %v17122_v9 = vadd.f32 %v9656_v0, %v2407_v58 }
 0x38d   : > { %12688 = vmatprep.subr.bf16.mxu0 %v21264_v8 }
 0x38e   : > { %v17119_v37 = vadd.f32 %v9697_v54, %v17059_v24  ;;  %v9698_v44 = vpop.f32.mrb[38].mxu1  ;;  %v9542_v25 = vpop.f32.mrb[52].mxu0  ;;  %v2416_v48 = vadd.f32 %v17005_v5, %v2208_v55  ;;  %v21395_v24 = vld [vmem:[#allocation59_spill] sm:$0xff]  ;;  %v21397_v55 = vand.u32 4294901760, %v16592_v38  ;;  %v21399_v38 = vand.u32 4294901760, %v16619_v15 }
 0x38f   : > { %11621 = vmatmul.mubr.f32.gmra.mrb[118].mxu0 %v16825_v28  ;;  %v9699_v59 = vpop.f32.mrb[39].mxu1  ;;  %v9543_v34 = vpop.f32.mrb[53].mxu0  ;;  %v21403_v15 = vand.u32 4294901760, %v16657_v61  ;;  %v21405_v61 = vand.u32 4294901760, %v16691_v47  ;;  %v21408_v47 = vand.u32 4294901760, %v16724_v21  ;;  %v21411_v21 = vand.u32 4294901760, %v16760_v11 }
 0x390   : > { %11623 = vmatprep.mubr.msk.f32.mxu0 %vm13946_vm0, %v21337_v45  ;;  %12690 = vmatpush3.bf16.msra.mxu0 %v21393_v60  ;;  %v9700_v1 = vadd.f32 %v9699_v59, %v9698_v44  ;;  %v9544_v18 = vadd.f32 %v9543_v34, %v9542_v25  ;;  %v17135_v16 = vadd.f32 %v9659_v2, %v2416_v48  ;;  %v21414_v11 = vand.u32 4294901760, %v16796_v51 }
 0x391   : > { %12691 = vmatprep.subr.bf16.mxu0 %v21264_v8  ;;  %v21417_v51 = vand.u32 4294901760, %v16832_v31 }
 0x392   : > { %v17132_v36 = vadd.f32 %v9700_v1, %v17069_v12  ;;  %v9701_v0 = vpop.f32.mrb[40].mxu1  ;;  %v2215_v54 = vadd.f32 %v9544_v18, %v1927_v30  ;;  %v21396_v12 = vand.u32 4294901760, %v16587_v63  ;;  %v21400_v63 = vand.u32 4294901760, %v16628_v7 }
 0x393   : > { %11624 = vmatmul.mubr.f32.gmra.mrb[120].mxu0 %v16861_v53  ;;  %v9702_v58 = vpop.f32.mrb[41].mxu1  ;;  %v21402_v7 = vand.u32 4294901760, %v16650_v23  ;;  %v21406_v23 = vand.u32 4294901760, %v16700_v42  ;;  %v21409_v42 = vand.u32 4294901760, %v16735_v17  ;;  %v21412_v17 = vand.u32 4294901760, %v16765_v33 }
 0x394   : > { %11626 = vmatprep.mubr.msk.f32.mxu0 %vm13946_vm0, %v21337_v45  ;;  %12693 = vmatpush3.bf16.msra.mxu0 %v21394_v22  ;;  %v9813_v49 = vpop.f32.mrb[54].mxu0  ;;  %v9703_v5 = vadd.f32 %v9702_v58, %v9701_v0  ;;  %v2425_v56 = vadd.f32 %v17017_v27, %v2215_v54  ;;  %v12698_v25 = vpack.c.bf16 %v21397_v55, %v21396_v12  ;;  %v21398_v27 = vand.u32 4294901760, %v21387_v41 }
 0x395   : > { %12694 = vmatprep.subr.bf16.mxu0 %v21264_v8  ;;  %v9814_v3 = vpop.f32.mrb[55].mxu0  ;;  %v21415_v33 = vand.u32 4294901760, %v16801_v35  ;;  %v21418_v35 = vand.u32 4294901760, %v16837_v43 }
 0x396   : > { %v17139_v44 = vadd.f32 %v9814_v3, %v9813_v49  ;;  %v17148_v59 = vadd.f32 %v9703_v5, %v17079_v32  ;;  %v17150_v30 = vadd.f32 %v9662_v4, %v2425_v56  ;;  %v12701_v32 = vpack.c.bf16 %v21400_v63, %v21399_v38 }
 0x397   : > { %11627 = vmatmul.mubr.f32.gmra.mrb[122].mxu0 %v16887_v62  ;;  %v9704_v2 = vpop.f32.mrb[42].mxu1  ;;  %v21401_v3 = vand.u32 4294901760, %v16681_v13 }
 0x398   : > { %11629 = vmatprep.mubr.msk.f32.mxu0 %vm13946_vm0, %v21337_v45  ;;  %12696 = vmatpush3.bf16.msra.mxu0 %v21395_v24  ;;  %v9816_v34 = vpop.f32.mrb[56].mxu0  ;;  %v9705_v1 = vpop.f32.mrb[43].mxu1 }
 0x399   : > { %12697 = vmatprep.subr.bf16.mxu0 %v21264_v8  ;;  %v9817_v48 = vpop.f32.mrb[57].mxu0  ;;  %v9706_v18 = vadd.f32 %v9705_v1, %v9704_v2 }
 0x39a   : > { %v17154_v0 = vadd.f32 %v9817_v48, %v9816_v34  ;;  %v21404_v34 = vand.u32 4294901760, %v16717_v6 }
 0x39b   : > { %11630 = vmatmul.mubr.f32.gmra.mrb[124].mxu0 %v16913_v57  ;;  %v17163_v54 = vadd.f32 %v9706_v18, %v17089_v46  ;;  %v9707_v4 = vpop.f32.mrb[44].mxu1  ;;  %v12704_v46 = vpack.c.bf16 %v21403_v15, %v21402_v7  ;;  %v21410_v7 = vand.u32 4294901760, %v16773_v39 }
 0x39c   : > { %11664 = vmatprep.mubr.msk.f32.mxu0 %vm13946_vm0, %v21337_v45  ;;  %v9819_v41 = vpop.f32.mrb[58].mxu0  ;;  %v9708_v49 = vpop.f32.mrb[45].mxu1 }
 0x39d   : > { %v9820_v58 = vpop.f32.mrb[59].mxu0  ;;  %v9709_v5 = vadd.f32 %v9708_v49, %v9707_v4 }
 0x39e   : > { %v17168_v56 = vadd.f32 %v9820_v58, %v9819_v41 }
 0x39f   : > { %11665 = vmatmul.mubr.f32.vlgmr.msra.gmra.mrb[108].mxu0 %v21398_v27  ;;  %v17177_v12 = vadd.f32 %v9709_v5, %v17099_v50  ;;  %v9710_v55 = vpop.f32.mrb[46].mxu1  ;;  %v12707_v50 = vpack.c.bf16 %v21406_v23, %v21405_v61 }
 0x3a0   : > { %12699 = vmatpush3.bf16.msra.mxu0 %v12698_v25  ;;  %11667 = vmatprep.mubr.msk.f32.mxu0 %vm13946_vm0, %v21337_v45  ;;  %v9822_v13 = vpop.f32.mrb[60].mxu0  ;;  %v9711_v25 = vpop.f32.mrb[47].mxu1 }
 0x3a1   : > { %12700 = vmatprep.subr.bf16.mxu0 %v21264_v8  ;;  %v9823_v2 = vpop.f32.mrb[61].mxu0  ;;  %v9712_v1 = vadd.f32 %v9711_v25, %v9710_v55 }
 0x3a2   : > { %v17182_v48 = vadd.f32 %v9823_v2, %v9822_v13 }
 0x3a3   : > { %11668 = vmatmul.mubr.f32.gmra.mrb[110].mxu0 %v21401_v3  ;;  %v17191_v27 = vadd.f32 %v9712_v1, %v17109_v20  ;;  %v9713_v18 = vpop.f32.mrb[48].mxu1  ;;  %v12710_v20 = vpack.c.bf16 %v21409_v42, %v21408_v47 }
 0x3a4   : > { %12702 = vmatpush3.bf16.msra.mxu0 %v12701_v32  ;;  %11670 = vmatprep.mubr.msk.f32.mxu0 %vm13946_vm0, %v21337_v45  ;;  %v9714_v38 = vpop.f32.mrb[49].mxu1  ;;  %v21407_v32 = vand.u32 4294901760, %v16755_v10 }
 0x3a5   : > { %12703 = vmatprep.subr.bf16.mxu0 %v21264_v8  ;;  %v9825_v6 = vpop.f32.mrb[62].mxu0  ;;  %v9715_v4 = vadd.f32 %v9714_v38, %v9713_v18  ;;  %v21416_v38 = vand.u32 4294901760, %v16861_v53 }
 0x3a6   : > { %v9826_v63 = vpop.f32.mrb[63].mxu0 }
 0x3a7   : > { %11671 = vmatmul.mubr.f32.gmra.mrb[112].mxu0 %v21404_v34  ;;  %v17196_v41 = vadd.f32 %v9826_v63, %v9825_v6  ;;  %v17205_v49 = vadd.f32 %v9715_v4, %v17122_v9  ;;  %v9716_v58 = vpop.f32.mrb[50].mxu1  ;;  %v12713_v9 = vpack.c.bf16 %v21412_v17, %v21411_v21  ;;  %v21413_v34 = vand.u32 4294901760, %v16825_v28 }
 0x3a8   : > { %12705 = vmatpush3.bf16.msra.mxu0 %v12704_v46  ;;  %11673 = vmatprep.mubr.msk.f32.mxu0 %vm13946_vm0, %v21337_v45  ;;  %v9717_v3 = vpop.f32.mrb[51].mxu1 }
 0x3a9   : > { %12706 = vmatprep.subr.bf16.mxu0 %v21264_v8  ;;  %v9828_v10 = vpop.f32.mrb[64].mxu0  ;;  %v9718_v15 = vadd.f32 %v9717_v3, %v9716_v58  ;;  %v21419_v58 = vand.u32 4294901760, %v16887_v62  ;;  %v21420_v62 = vand.u32 4294901760, %v16913_v57 }
 0x3aa   : > { %v9829_v5 = vpop.f32.mrb[65].mxu0 }
 0x3ab   : > { %11674 = vmatmul.mubr.f32.gmra.mrb[114].mxu0 %v21407_v32  ;;  %v17210_v46 = vadd.f32 %v9829_v5, %v9828_v10  ;;  %v17219_v55 = vadd.f32 %v9718_v15, %v17135_v16  ;;  %v9719_v13 = vpop.f32.mrb[52].mxu1  ;;  %v12716_v16 = vpack.c.bf16 %v21415_v33, %v21414_v11  ;;  %v17280_v33 = vld [vmem:[#allocation9 + $0x180] sm:$0xff] }
 0x3ac   : > { %11676 = vmatprep.mubr.msk.f32.mxu0 %vm13946_vm0, %v21337_v45  ;;  %12708 = vmatpush3.bf16.msra.mxu0 %v12707_v50  ;;  %v9720_v25 = vpop.f32.mrb[53].mxu1 }
 0x3ad   : > { %12709 = vmatprep.subr.bf16.mxu0 %v21264_v8  ;;  %v9831_v39 = vpop.f32.mrb[66].mxu0  ;;  %v9721_v1 = vadd.f32 %v9720_v25, %v9719_v13 }
 0x3ae   : > { %v9832_v2 = vpop.f32.mrb[67].mxu0 }
 0x3af   : > { %11677 = vmatmul.mubr.f32.gmra.mrb[116].mxu0 %v21410_v7  ;;  %v17224_v61 = vadd.f32 %v9832_v2, %v9831_v39  ;;  %v17233_v23 = vadd.f32 %v9721_v1, %v17150_v30  ;;  %v12719_v30 = vpack.c.bf16 %v21418_v35, %v21417_v51  ;;  %v5583_v1 = vld [vmem:[#allocation9 + $0x88] sm:$0xff]  ;;  %v20391_v35 = vand.u32 4294901760, %v17280_v33 }
 0x3b0   : > { %11679 = vmatprep.mubr.msk.f32.mxu0 %vm13946_vm0, %v21337_v45  ;;  %12711 = vmatpush3.bf16.msra.mxu0 %v12710_v20 }
 0x3b1   : > { %12712 = vmatprep.subr.bf16.mxu0 %v21264_v8  ;;  %v9754_v50 = vpop.f32.mrb[54].mxu1 }
 0x3b2   : > { %v9834_v28 = vpop.f32.mrb[68].mxu0  ;;  %v9755_v18 = vpop.f32.mrb[55].mxu1 }
 0x3b3   : > { %11680 = vmatmul.mubr.f32.gmra.mrb[118].mxu0 %v21413_v34  ;;  %v9835_v6 = vpop.f32.mrb[69].mxu0  ;;  %v9756_v63 = vadd.f32 %v9755_v18, %v9754_v50  ;;  %v5703_v50 = vand.u32 4294901760, %v5583_v1  ;;  %v17282_v18 = vld [vmem:[#allocation9 + $0x188] sm:$0xff] }
 0x3b4   : > { %11682 = vmatprep.mubr.msk.f32.mxu0 %vm13946_vm0, %v21337_v45  ;;  %12714 = vmatpush3.bf16.msra.mxu0 %v12713_v9  ;;  %v17238_v32 = vadd.f32 %v9835_v6, %v9834_v28 }
 0x3b5   : > { %12715 = vmatprep.subr.bf16.mxu0 %v21264_v8  ;;  %v2949_v4 = vadd.f32 %v9756_v63, %v17119_v37  ;;  %v9757_v47 = vpop.f32.mrb[56].mxu1 }
 0x3b6   : > { %v9837_v42 = vpop.f32.mrb[70].mxu0  ;;  %v9758_v53 = vpop.f32.mrb[57].mxu1 }
 0x3b7   : > { %11683 = vmatmul.mubr.f32.gmra.mrb[120].mxu0 %v21416_v38  ;;  %v9838_v20 = vpop.f32.mrb[71].mxu0  ;;  %v9759_v10 = vadd.f32 %v9758_v53, %v9757_v47  ;;  %v17251_v3 = vadd.f32 %v17139_v44, %v2949_v4  ;;  %v20390_v47 = vand.u32 4294901760, %v17282_v18 }
 0x3b8   : > { %11685 = vmatprep.mubr.msk.f32.mxu0 %vm13946_vm0, %v21337_v45  ;;  %12717 = vmatpush3.bf16.msra.mxu0 %v12716_v16  ;;  %v17253_v5 = vadd.f32 %v9838_v20, %v9837_v42  ;;  %v17302_v42 = vsub.f32 %v5583_v1, %v5703_v50 }
 0x3b9   : > { %12718 = vmatprep.subr.bf16.mxu0 %v21264_v8  ;;  %v2956_v31 = vadd.f32 %v9759_v10, %v17132_v36  ;;  %v9760_v43 = vpop.f32.mrb[58].mxu1 }
 0x3ba   : > { %v9931_v37 = vpop.f32.mrb[72].mxu0  ;;  %v9761_v7 = vpop.f32.mrb[59].mxu1  ;;  %21424 = vst [vmem:[#allocation64_spill] sm:$0xff] %v17302_v42 }
 0x3bb   : > { %11686 = vmatmul.mubr.f32.gmra.mrb[122].mxu0 %v21419_v58  ;;  %v9932_v15 = vpop.f32.mrb[73].mxu0  ;;  %v9762_v21 = vadd.f32 %v9761_v7, %v9760_v43  ;;  %v17262_v44 = vadd.f32 %v17154_v0, %v2956_v31  ;;  %v5582_v0 = vld [vmem:[#allocation9 + $0x80] sm:$0xff]  ;;  %v21425_v58 = vld [vmem:[#allocation57_spill] sm:$0xff] }
 0x3bc   : > { %11688 = vmatprep.mubr.msk.f32.mxu0 %vm13946_vm0, %v21337_v45  ;;  %12720 = vmatpush3.bf16.msra.mxu0 %v12719_v30  ;;  %v17264_v17 = vadd.f32 %v9932_v15, %v9931_v37  ;;  %v5700_v16 = vand.u32 4294901760, %v5582_v0  ;;  %v5566_v43 = vld [vmem:[#allocation9] sm:$0xff]  ;;  %v5567_v37 = vld [vmem:[#allocation9 + $0x8] sm:$0xff]  ;;  %v17318_v15 = vsub.f32 %v17280_v33, %v20391_v35 }
 0x3bd   : > { %12721 = vmatprep.subr.bf16.mxu0 %v21264_v8  ;;  %v2963_v36 = vadd.f32 %v9762_v21, %v17148_v59 }
 0x3be   : > { %v9763_v9 = vpop.f32.mrb[60].mxu1  ;;  %v17288_v51 = vpack.c.bf16 %v5703_v50, %v5700_v16  ;;  %21427 = vst [vmem:[#allocation89_spill] sm:$0xff] %v17318_v15 }
 0x3bf   : > { %11689 = vmatmul.mubr.f32.gmra.mrb[124].mxu0 %v21420_v62  ;;  %v9934_v13 = vpop.f32.mrb[74].mxu0  ;;  %v9764_v39 = vpop.f32.mrb[61].mxu1  ;;  %v17271_v57 = vadd.f32 %v17168_v56, %v2963_v36  ;;  %v17320_v62 = vld [vmem:[#allocation9 + $0x108] sm:$0xff] }
 0x3c0   : > { %11723 = vmatprep.mubr.msk.f32.mxu0 %vm13946_vm0, %v21337_v45  ;;  %v9935_v25 = vpop.f32.mrb[75].mxu0  ;;  %v9765_v2 = vadd.f32 %v9764_v39, %v9763_v9  ;;  %21422 = vst [vmem:[#allocation63_spill] sm:$0xff] %v17288_v51  ;;  %12746 = vmatprep.subr.bf16.mxu1 %v17288_v51  ;;  %21428 = vst [vmem:[#allocation19_spill] sm:$0xff] %v17320_v62 }
 0x3c1   : > { %v17273_v34 = vadd.f32 %v9935_v25, %v9934_v13  ;;  %v17332_v25 = vld [vmem:[#allocation9 + $0x198] sm:$0xff] }
 0x3c2   : > { %v2970_v59 = vadd.f32 %v9765_v2, %v17163_v54  ;;  %v9766_v11 = vpop.f32.mrb[62].mxu1  ;;  %21431 = vst [vmem:[#allocation21_spill] sm:$0xff] %v17332_v25  ;;  %v5652_v2 = vand.u32 4294901760, %v5566_v43 }
 0x3c3   : > { %11724 = vmatmul.mubr.f32.vlgmr.msra.gmra.mrb[108].mxu0 %v21374_v40  ;;  %v9937_v56 = vpop.f32.mrb[76].mxu0  ;;  %v9767_v28 = vpop.f32.mrb[63].mxu1 }
 0x3c4   : > { %12723 = vmatpush3.bf16.msra.mxu0 %v21388_v26  ;;  %11726 = vmatprep.mubr.msk.f32.mxu0 %vm13946_vm0, %v21337_v45  ;;  %v9938_v6 = vpop.f32.mrb[77].mxu0  ;;  %v21421_v26 = vld [vmem:[#allocation56_spill] sm:$0xff]  ;;  %v9768_v38 = vadd.f32 %v9767_v28, %v9766_v11  ;;  %v17286_v63 = vadd.f32 %v17182_v48, %v2970_v59  ;;  %v17300_v48 = vsub.f32 %v5582_v0, %v5700_v16  ;;  %v5655_v0 = vand.u32 4294901760, %v5567_v37  ;;  %v21432_v59 = vld [vmem:[#allocation61_spill] sm:$0xff] }
 0x3c5   : > { %12724 = vmatprep.subr.bf16.mxu0 %v21264_v8  ;;  %v17290_v54 = vadd.f32 %v9938_v6, %v9937_v56  ;;  %v20385_v16 = vand.u32 4294901760, %v17320_v62  ;;  %v20384_v28 = vand.u32 4294901760, %v17318_v15 }
 0x3c6   : > { %v2977_v30 = vadd.f32 %v9768_v38, %v17177_v12  ;;  %v9769_v4 = vpop.f32.mrb[64].mxu1  ;;  %21423 = vst [vmem:[#allocation85_spill] sm:$0xff] %v17300_v48  ;;  %v17308_v12 = vld [vmem:[#allocation9 + $0x100] sm:$0xff]  ;;  %v17346_v6 = vpack.c.bf16 %v5655_v0, %v5652_v2  ;;  %v17348_v38 = vsub.f32 %v5566_v43, %v5652_v2 }
 0x3c7   : > { %11727 = vmatmul.mubr.f32.gmra.mrb[110].mxu0 %v21421_v26  ;;  %v9940_v53 = vpop.f32.mrb[78].mxu0  ;;  %21426 = vst [vmem:[#allocation87_spill] sm:$0xff] %v17308_v12  ;;  %v20387_v39 = vand.u32 4294901760, %v17308_v12 }
 0x3c8   : > { %12726 = vmatpush3.bf16.msra.mxu0 %v21389_v19  ;;  %11729 = vmatprep.mubr.msk.f32.mxu0 %vm13946_vm0, %v21337_v45  ;;  %v9770_v19 = vpop.f32.mrb[65].mxu1  ;;  %v9941_v20 = vpop.f32.mrb[79].mxu0  ;;  %v17306_v31 = vadd.f32 %v17196_v41, %v2977_v30  ;;  %v17322_v41 = vld [vmem:[#allocation9 + $0x190] sm:$0xff]  ;;  %21433 = vst [vmem:[#allocation36_spill] sm:$0xff] %v17346_v6  ;;  %21434 = vst [vmem:[#allocation22_spill] sm:$0xff] %v17348_v38 }
 0x3c9   : > { %12727 = vmatprep.subr.bf16.mxu0 %v21264_v8  ;;  %v9771_v10 = vadd.f32 %v9770_v19, %v9769_v4  ;;  %v17310_v7 = vadd.f32 %v9941_v20, %v9940_v53  ;;  %21429 = vst [vmem:[#allocation20_spill] sm:$0xff] %v17322_v41  ;;  %v20388_v50 = vand.u32 4294901760, %v17322_v41  ;;  %v20389_v53 = vand.u32 4294901760, %v17332_v25  ;;  %v17356_v20 = vld [vmem:[#allocation9 + $0x110] sm:$0xff]  ;;  %12748 = vmatpush3.bf16.msra.mxu1 %v17346_v6 }
 0x3ca   : > { %v9772_v36 = vpop.f32.mrb[66].mxu1  ;;  %v17354_v19 = vsub.f32 %v5567_v37, %v5655_v0  ;;  %21436 = vst [vmem:[#allocation37_spill] sm:$0xff] %v17356_v20  ;;  %v17368_v37 = vsub.f32 %v17308_v12, %v20387_v39  ;;  %v20392_v0 = vand.u32 4294901760, %v17356_v20 }
 0x3cb   : > { %11730 = vmatmul.mubr.f32.gmra.mrb[112].mxu0 %v21425_v58  ;;  %v2984_v21 = vadd.f32 %v9771_v10, %v17191_v27  ;;  %v9943_v9 = vpop.f32.mrb[80].mxu0  ;;  %v9773_v13 = vpop.f32.mrb[67].mxu1 }
 0x3cc   : > { %12729 = vmatpush3.bf16.msra.mxu0 %v21390_v29  ;;  %11732 = vmatprep.mubr.msk.f32.mxu0 %vm13946_vm0, %v21337_v45  ;;  %v17329_v29 = vsub.f32 %v17282_v18, %v20390_v47  ;;  %v9944_v1 = vpop.f32.mrb[81].mxu0  ;;  %v9774_v27 = vadd.f32 %v9773_v13, %v9772_v36  ;;  %21435 = vst [vmem:[#allocation67_spill] sm:$0xff] %v17354_v19  ;;  %v21438_v36 = vld [vmem:[#allocation45_spill] sm:$0xff]  ;;  %21439 = vst [vmem:[#allocation24_spill] sm:$0xff] %v17368_v37 }
 0x3cd   : > { %12730 = vmatprep.subr.bf16.mxu0 %v21264_v8  ;;  %v17336_v11 = vadd.f32 %v17210_v46, %v2984_v21  ;;  %v17340_v56 = vadd.f32 %v9944_v1, %v9943_v9  ;;  %v17373_v13 = vsub.f32 %v17320_v62, %v20385_v16  ;;  %v17414_v47 = vsub.f32 %v17356_v20, %v20392_v0  ;;  %v21446_v0 = vld [vmem:[#allocation82_spill] sm:$0xff] }
 0x3ce   : > { %21430 = vst [vmem:[#allocation94_spill] sm:$0xff] %v17329_v29  ;;  %v2991_v46 = vadd.f32 %v9774_v27, %v17205_v49  ;;  %v9775_v30 = vpop.f32.mrb[68].mxu1  ;;  %v20386_v4 = vand.u32 4294901760, %v17329_v29 }
 0x3cf   : > { %11733 = vmatmul.mubr.f32.gmra.mrb[114].mxu0 %v21432_v59  ;;  %v9946_v10 = vpop.f32.mrb[82].mxu0  ;;  %v9776_v21 = vpop.f32.mrb[69].mxu1  ;;  %21440 = vst [vmem:[#allocation34_spill] sm:$0xff] %v17373_v13  ;;  %21444 = vst [vmem:[#allocation70_spill] sm:$0xff] %v17414_v47 }
 0x3d0   : > { %11735 = vmatprep.mubr.msk.f32.mxu0 %vm13946_vm0, %v21337_v45  ;;  %12732 = vmatpush3.bf16.msra.mxu0 %v21391_v14  ;;  %v17358_v14 = vld [vmem:[#allocation9 + $0x118] sm:$0xff]  ;;  %v9947_v43 = vpop.f32.mrb[83].mxu0  ;;  %v9777_v49 = vadd.f32 %v9776_v21, %v9775_v30  ;;  %v17363_v9 = vadd.f32 %v17224_v61, %v2991_v46  ;;  %v7238_v61 = vsub.f32 %v17318_v15, %v20384_v28 }
 0x3d1   : > { %12733 = vmatprep.subr.bf16.mxu0 %v21264_v8  ;;  %21437 = vst [vmem:[#allocation23_spill] sm:$0xff] %v17358_v14  ;;  %v17375_v2 = vadd.f32 %v9947_v43, %v9946_v10  ;;  %v20393_v1 = vand.u32 4294901760, %v17358_v14  ;;  %v7245_v30 = vsub.f32 %v17329_v29, %v20386_v4  ;;  %v17398_v10 = vsub.f32 %v17332_v25, %v20389_v53  ;;  %v17804_v25 = vld [vmem:[#allocation9 + $0x160] sm:$0xff] }
 0x3d2   : > { %v2998_v27 = vadd.f32 %v9777_v49, %v17219_v55  ;;  %v9778_v46 = vpop.f32.mrb[70].mxu1  ;;  %v21443_v49 = vld [vmem:[#allocation60_spill] sm:$0xff]  ;;  %v7239_v53 = vand.u32 4294901760, %v7238_v61  ;;  %21506 = vst [vmem:[#allocation97_spill] sm:$0xff] %v17804_v25  ;;  %v20498_v12 = vand.u32 4294901760, %v17804_v25 }
 0x3d3   : > { %11736 = vmatmul.mubr.f32.gmra.mrb[116].mxu0 %v21438_v36  ;;  %21442 = vst [vmem:[#allocation69_spill] sm:$0xff] %v17398_v10  ;;  %v9949_v21 = vpop.f32.mrb[84].mxu0  ;;  %v9779_v43 = vpop.f32.mrb[71].mxu1 }
 0x3d4   : > { %11738 = vmatprep.mubr.msk.f32.mxu0 %vm13946_vm0, %v21337_v45  ;;  %12735 = vmatpush3.bf16.msra.mxu0 %v21392_v52  ;;  %v17393_v52 = vsub.f32 %v17322_v41, %v20388_v50  ;;  %v9950_v55 = vpop.f32.mrb[85].mxu0  ;;  %v9780_v28 = vadd.f32 %v9779_v43, %v9778_v46  ;;  %v17402_v16 = vadd.f32 %v17238_v32, %v2998_v27  ;;  %v17793_v41 = vld [vmem:[#allocation9 + $0x1e8] sm:$0xff] }
 0x3d5   : > { %12736 = vmatprep.subr.bf16.mxu0 %v21264_v8  ;;  %v17406_v50 = vadd.f32 %v9950_v55, %v9949_v21  ;;  %v17419_v32 = vsub.f32 %v17358_v14, %v20393_v1  ;;  %v7246_v21 = vand.u32 4294901760, %v7245_v30  ;;  %v21447_v1 = vand.u32 4294901760, %v17368_v37 }
 0x3d6   : > { %21441 = vst [vmem:[#allocation68_spill] sm:$0xff] %v17393_v52  ;;  %v3005_v27 = vadd.f32 %v9780_v28, %v17233_v23  ;;  %v9872_v46 = vpop.f32.mrb[72].mxu1  ;;  %v20398_v43 = vand.u32 4294901760, %v17393_v52  ;;  %v21448_v30 = vand.u32 4294901760, %v17373_v13 }
 0x3d7   : > { %11739 = vmatmul.mubr.f32.gmra.mrb[118].mxu0 %v21443_v49  ;;  %21445 = vst [vmem:[#allocation71_spill] sm:$0xff] %v17419_v32  ;;  %v9952_v61 = vpop.f32.mrb[86].mxu0  ;;  %v9873_v55 = vpop.f32.mrb[73].mxu1  ;;  %v7126_v23 = vsub.f32 %v17368_v37, %v21447_v1 }
 0x3d8   : > { %11741 = vmatprep.mubr.msk.f32.mxu0 %vm13946_vm0, %v21337_v45  ;;  %12738 = vmatpush3.bf16.msra.mxu0 %v21393_v60  ;;  %v9953_v35 = vpop.f32.mrb[87].mxu0  ;;  %v9874_v39 = vadd.f32 %v9873_v55, %v9872_v46  ;;  %v17427_v4 = vadd.f32 %v17253_v5, %v3005_v27  ;;  %v7133_v60 = vsub.f32 %v17373_v13, %v21448_v30  ;;  %v21450_v46 = vld [vmem:[#allocation62_spill] sm:$0xff] }
 0x3d9   : > { %12739 = vmatprep.subr.bf16.mxu0 %v21264_v8  ;;  %v17432_v28 = vadd.f32 %v9953_v35, %v9952_v61  ;;  %v12969_v35 = vpack.c.bf16 %v7246_v21, %v7239_v53  ;;  %v7252_v1 = vsub.f32 %v17393_v52, %v20398_v43  ;;  %v21451_v21 = vand.u32 4294901760, %v17414_v47  ;;  %v21453_v52 = vld [vmem:[#allocation27_spill] sm:$0xff]  ;;  %21504 = vst [vmem:[#allocation62_spill] sm:$0xff] %v17793_v41 }
 0x3da   : > { %v3469_v27 = vadd.f32 %v9874_v39, %v17251_v3  ;;  %v9875_v55 = vpop.f32.mrb[74].mxu1  ;;  %v7127_v39 = vand.u32 4294901760, %v7126_v23  ;;  %v7134_v53 = vand.u32 4294901760, %v7133_v60  ;;  %v21452_v43 = vand.u32 4294901760, %v17419_v32 }
 0x3db   : > { %11742 = vmatmul.mubr.f32.gmra.mrb[120].mxu0 %v21446_v0  ;;  %v9955_v37 = vpop.f32.mrb[88].mxu0  ;;  %v9876_v30 = vpop.f32.mrb[75].mxu1 }
 0x3dc   : > { %11744 = vmatprep.mubr.msk.f32.mxu0 %vm13946_vm0, %v21337_v45  ;;  %12741 = vmatpush3.bf16.msra.mxu0 %v21394_v22  ;;  %v21449_v22 = vand.u32 4294901760, %v17398_v10  ;;  %v9956_v13 = vpop.f32.mrb[89].mxu0  ;;  %v9877_v5 = vadd.f32 %v9876_v30, %v9875_v55  ;;  %v17452_v3 = vadd.f32 %v17264_v17, %v3469_v27  ;;  %v7147_v55 = vsub.f32 %v17419_v32, %v21452_v43 }
 0x3dd   : > { %12742 = vmatprep.subr.bf16.mxu0 %v21264_v8  ;;  %v17454_v8 = vadd.f32 %v9956_v13, %v9955_v37  ;;  %v7253_v37 = vand.u32 4294901760, %v7252_v1  ;;  %v12971_v43 = vpack.c.bf16 %v7134_v53, %v7127_v39 }
 0x3de   : > { %v7259_v61 = vsub.f32 %v17398_v10, %v21449_v22  ;;  %v7140_v22 = vsub.f32 %v17414_v47, %v21451_v21  ;;  %v3476_v17 = vadd.f32 %v9877_v5, %v17262_v44  ;;  %v9878_v27 = vpop.f32.mrb[76].mxu1  ;;  %v7148_v5 = vand.u32 4294901760, %v7147_v55 }
 0x3df   : > { %11745 = vmatmul.mubr.f32.gmra.mrb[122].mxu0 %v21450_v46  ;;  %v10049_v23 = vpop.f32.mrb[90].mxu0  ;;  %v9879_v30 = vpop.f32.mrb[77].mxu1 }
 0x3e0   : > { %11747 = vmatprep.mubr.msk.f32.mxu0 %vm13946_vm0, %v21337_v45  ;;  %12744 = vmatpush3.bf16.msra.mxu0 %v21395_v24  ;;  %v7260_v13 = vand.u32 4294901760, %v7259_v61  ;;  %v10050_v10 = vpop.f32.mrb[91].mxu0  ;;  %v9880_v24 = vadd.f32 %v9879_v30, %v9878_v27  ;;  %v17468_v60 = vadd.f32 %v17273_v34, %v3476_v17  ;;  %v7141_v44 = vand.u32 4294901760, %v7140_v22 }
 0x3e1   : > { %12970 = vmatprep.subr.bf16.mxu0 %v12969_v35  ;;  %v17470_v21 = vadd.f32 %v10050_v10, %v10049_v23 }
 0x3e2   : > { %v3483_v35 = vadd.f32 %v9880_v24, %v17271_v57  ;;  %v9881_v1 = vpop.f32.mrb[78].mxu1  ;;  %v12973_v61 = vpack.c.bf16 %v7260_v13, %v7253_v37  ;;  %v12975_v39 = vpack.c.bf16 %v7148_v5, %v7141_v44 }
 0x3e3   : > { %11748 = vmatmul.mubr.f32.gmra.mrb[124].mxu0 %v21453_v52  ;;  %v10052_v32 = vpop.f32.mrb[92].mxu0  ;;  %v9882_v47 = vpop.f32.mrb[79].mxu1 }
 0x3e4   : > { %11782 = vmatprep.mubr.msk.f32.mxu0 %vm13946_vm0, %v21337_v45  ;;  %v10053_v29 = vpop.f32.mrb[93].mxu0  ;;  %v9883_v27 = vadd.f32 %v9882_v47, %v9881_v1  ;;  %v17477_v34 = vadd.f32 %v17290_v54, %v3483_v35 }
 0x3e5   : > { %v17479_v10 = vadd.f32 %v10053_v29, %v10052_v32 }
 0x3e6   : > { %v3490_v57 = vadd.f32 %v9883_v27, %v17286_v63  ;;  %v9884_v53 = vpop.f32.mrb[80].mxu1 }
 0x3e7   : > { %11783 = vmatmul.mubr.f32.vlgmr.msra.gmra.mrb[108].mxu0 %v21374_v40  ;;  %v10055_v22 = vpop.f32.mrb[94].mxu0  ;;  %v9885_v55 = vpop.f32.mrb[81].mxu1 }
 0x3e8   : > { %11785 = vmatprep.mubr.msk.f32.mxu0 %vm13946_vm0, %v21337_v45  ;;  %12972 = vmatpush3.bf16.msra.mxu0 %v12971_v43  ;;  %v10056_v17 = vpop.f32.mrb[95].mxu0  ;;  %v9886_v40 = vadd.f32 %v9885_v55, %v9884_v53  ;;  %v17486_v54 = vadd.f32 %v17310_v7, %v3490_v57 }
 0x3e9   : > { %12974 = vmatprep.subr.bf16.mxu0 %v12973_v61  ;;  %v17488_v47 = vadd.f32 %v10056_v17, %v10055_v22 }
 0x3ea   : > { %v3497_v29 = vadd.f32 %v9886_v40, %v17306_v31  ;;  %v9887_v63 = vpop.f32.mrb[82].mxu1 }
 0x3eb   : > { %11786 = vmatmul.mubr.f32.gmra.mrb[110].mxu0 %v21421_v26  ;;  %v10058_v32 = vpop.f32.mrb[96].mxu0  ;;  %v9888_v37 = vpop.f32.mrb[83].mxu1 }
 0x3ec   : > { %11788 = vmatprep.mubr.msk.f32.mxu0 %vm13946_vm0, %v21337_v45  ;;  %12976 = vmatpush3.bf16.msra.mxu0 %v12975_v39  ;;  %v10059_v13 = vpop.f32.mrb[97].mxu0  ;;  %v9889_v23 = vadd.f32 %v9888_v37, %v9887_v63  ;;  %v17495_v26 = vadd.f32 %v17340_v56, %v3497_v29 }
 0x3ed   : > { %v17497_v7 = vadd.f32 %v10059_v13, %v10058_v32 }
 0x3ee   : > { %v3504_v30 = vadd.f32 %v9889_v23, %v17336_v11  ;;  %v9890_v24 = vpop.f32.mrb[84].mxu1 }
 0x3ef   : > { %11789 = vmatmul.mubr.f32.gmra.mrb[112].mxu0 %v21425_v58  ;;  %v10061_v43 = vpop.f32.mrb[98].mxu0  ;;  %v9891_v31 = vpop.f32.mrb[85].mxu1 }
 0x3f0   : > { %11791 = vmatprep.mubr.msk.f32.mxu0 %vm13946_vm0, %v21337_v45  ;;  %v10062_v44 = vpop.f32.mrb[99].mxu0  ;;  %v9892_v5 = vadd.f32 %v9891_v31, %v9890_v24  ;;  %v17504_v58 = vadd.f32 %v17375_v2, %v3504_v30 }
 0x3f1   : > { %v10063_v35 = vadd.f32 %v10062_v44, %v10061_v43 }
 0x3f2   : > { %v3511_v56 = vadd.f32 %v9892_v5, %v17363_v9  ;;  %v9893_v1 = vpop.f32.mrb[86].mxu1 }
 0x3f3   : > { %11792 = vmatmul.mubr.f32.gmra.mrb[114].mxu0 %v21432_v59  ;;  %v10064_v61 = vpop.f32.mrb[100].mxu0  ;;  %v9894_v27 = vpop.f32.mrb[87].mxu1 }
 0x3f4   : > { %11794 = vmatprep.mubr.msk.f32.mxu0 %vm13946_vm0, %v21337_v45  ;;  %v10065_v11 = vpop.f32.mrb[101].mxu0  ;;  %v9895_v39 = vadd.f32 %v9894_v27, %v9893_v1  ;;  %v3717_v57 = vadd.f32 %v17406_v50, %v3511_v56 }
 0x3f5   : > { %v10066_v59 = vadd.f32 %v10065_v11, %v10064_v61 }
 0x3f6   : > { %v3518_v2 = vadd.f32 %v9895_v39, %v17402_v16  ;;  %v9896_v53 = vpop.f32.mrb[88].mxu1 }
 0x3f7   : > { %11795 = vmatmul.mubr.f32.gmra.mrb[116].mxu0 %v21438_v36  ;;  %v10067_v22 = vpop.f32.mrb[102].mxu0  ;;  %v9897_v55 = vpop.f32.mrb[89].mxu1 }
 0x3f8   : > { %11797 = vmatprep.mubr.msk.f32.mxu0 %vm13946_vm0, %v21337_v45  ;;  %v10068_v17 = vpop.f32.mrb[103].mxu0  ;;  %v9898_v9 = vadd.f32 %v9897_v55, %v9896_v53  ;;  %v3726_v40 = vadd.f32 %v17432_v28, %v3518_v2 }
 0x3f9   : > { %v10069_v29 = vadd.f32 %v10068_v17, %v10067_v22 }
 0x3fa   : > { %v3525_v50 = vadd.f32 %v9898_v9, %v17427_v4 }
 0x3fb   : > { %11798 = vmatmul.mubr.f32.gmra.mrb[118].mxu0 %v21443_v49  ;;  %v9990_v36 = vpop.f32.mrb[90].mxu1  ;;  %v10070_v63 = vpop.f32.mrb[104].mxu0 }
 0x3fc   : > { %11800 = vmatprep.mubr.msk.f32.mxu0 %vm13946_vm0, %v21337_v45  ;;  %v9991_v32 = vpop.f32.mrb[91].mxu1  ;;  %v10071_v37 = vpop.f32.mrb[105].mxu0  ;;  %v3735_v13 = vadd.f32 %v17454_v8, %v3525_v50 }
 0x3fd   : > { %v9992_v16 = vadd.f32 %v9991_v32, %v9990_v36  ;;  %v10072_v23 = vadd.f32 %v10071_v37, %v10070_v63 }
 0x3ff   : > { %11801 = vmatmul.mubr.f32.gmra.mrb[120].mxu0 %v21446_v0  ;;  %v3843_v49 = vadd.f32 %v9992_v16, %v17452_v3  ;;  %v9993_v28 = vpop.f32.mrb[92].mxu1  ;;  %v10073_v30 = vpop.f32.mrb[106].mxu0 }
 0x400   : > { %11803 = vmatprep.mubr.msk.f32.mxu0 %vm13946_vm0, %v21337_v45  ;;  %v9994_v24 = vpop.f32.mrb[93].mxu1  ;;  %v10074_v43 = vpop.f32.mrb[107].mxu0 }
 0x401   : > { %v9995_v4 = vadd.f32 %v9994_v24, %v9993_v28  ;;  %v4099_v31 = vadd.f32 %v17470_v21, %v3843_v49  ;;  %v10075_v44 = vadd.f32 %v10074_v43, %v10073_v30 }
 0x403   : > { %11804 = vmatmul.mubr.f32.gmra.mrb[122].mxu0 %v21450_v46  ;;  %v3854_v0 = vadd.f32 %v9995_v4, %v17468_v60 }
 0x404   : > { %11806 = vmatprep.mubr.msk.f32.mxu0 %vm13946_vm0, %v21337_v45  ;;  %v9996_v8 = vpop.f32.mrb[94].mxu1 }
 0x405   : > { %v9997_v5 = vpop.f32.mrb[95].mxu1  ;;  %v4106_v56 = vadd.f32 %v17479_v10, %v3854_v0 }
 0x406   : > { %v9998_v3 = vadd.f32 %v9997_v5, %v9996_v8 }
 0x407   : > { %11807 = vmatmul.mubr.f32.gmra.mrb[124].mxu0 %v21453_v52 }
 0x408   : > { %v3865_v1 = vadd.f32 %v9998_v3, %v17477_v34  ;;  %v9999_v61 = vpop.f32.mrb[96].mxu1 }
 0x409   : > { %v10000_v46 = vpop.f32.mrb[97].mxu1 }
 0x40a   : > { %v10001_v27 = vadd.f32 %v10000_v46, %v9999_v61  ;;  %v4113_v21 = vadd.f32 %v17488_v47, %v3865_v1 }
 0x40c   : > { %v3876_v11 = vadd.f32 %v10001_v27, %v17486_v54 }
 0x40d   : > { %v10002_v39 = vpop.f32.mrb[98].mxu1 }
 0x40e   : > { %v10003_v45 = vpop.f32.mrb[99].mxu1  ;;  %v4120_v60 = vadd.f32 %v17497_v7, %v3876_v11 }
 0x40f   : > { %v10004_v2 = vadd.f32 %v10003_v45, %v10002_v39 }
 0x411   : > { %v3887_v53 = vadd.f32 %v10004_v2, %v17495_v26  ;;  %v10005_v52 = vpop.f32.mrb[100].mxu1 }
 0x412   : > { %v10006_v22 = vpop.f32.mrb[101].mxu1 }
 0x413   : > { %v10007_v55 = vadd.f32 %v10006_v22, %v10005_v52  ;;  %v4127_v10 = vadd.f32 %v10063_v35, %v3887_v53 }
 0x415   : > { %v3898_v34 = vadd.f32 %v10007_v55, %v17504_v58  ;;  %v10008_v17 = vpop.f32.mrb[102].mxu1 }
 0x416   : > { %v10009_v9 = vpop.f32.mrb[103].mxu1 }
 0x417   : > { %v10010_v50 = vadd.f32 %v10009_v9, %v10008_v17  ;;  %v4134_v36 = vadd.f32 %v10066_v59, %v3898_v34  ;;  %v17553_v17 = vld [vmem:[#allocation9 + $0x1a0] sm:$0xff]  ;;  %v5584_v9 = vld [vmem:[#allocation9 + $0x90] sm:$0xff] }
 0x419   : > { %v3909_v47 = vadd.f32 %v10010_v50, %v3717_v57  ;;  %v10011_v63 = vpop.f32.mrb[104].mxu1 }
 0x41a   : > { %v10012_v54 = vpop.f32.mrb[105].mxu1 }
 0x41b   : > { %v10013_v32 = vadd.f32 %v10012_v54, %v10011_v63  ;;  %v4141_v37 = vadd.f32 %v10069_v29, %v3909_v47  ;;  %v5585_v63 = vld [vmem:[#allocation9 + $0x98] sm:$0xff]  ;;  %v5706_v54 = vand.u32 4294901760, %v5584_v9 }
 0x41d   : > { %v3920_v16 = vadd.f32 %v10013_v32, %v3726_v40  ;;  %v10014_v49 = vpop.f32.mrb[106].mxu1  ;;  %v5709_v32 = vand.u32 4294901760, %v5585_v63 }
 0x41e   : > { %v10015_v7 = vpop.f32.mrb[107].mxu1 }
 0x41f   : > { %v10016_v28 = vadd.f32 %v10015_v7, %v10014_v49  ;;  %v4148_v26 = vadd.f32 %v10072_v23, %v3920_v16  ;;  %v17559_v16 = vld [vmem:[#allocation9 + $0x120] sm:$0xff] }
 0x421   : > { %v3931_v30 = vadd.f32 %v10016_v28, %v3735_v13  ;;  %v10108_v24 = vpop.f32.mrb[108].mxu1 }
 0x422   : > { %v10109_v43 = vpop.f32.mrb[109].mxu1 }
 0x423   : > { %v10110_v35 = vadd.f32 %v10109_v43, %v10108_v24  ;;  %v17537_v4 = vadd.f32 %v10075_v44, %v3931_v30  ;;  %v20414_v24 = vand.u32 4294901760, %v17559_v16  ;;  %v5568_v43 = vld [vmem:[#allocation9 + $0x10] sm:$0xff] }
 0x425   : > { %v10111_v58 = vpop.f32.mrb[110].mxu1  ;;  %v17539_v0 = vadd.f32 %v10110_v35, %v4099_v31  ;;  %v5569_v35 = vld [vmem:[#allocation9 + $0x18] sm:$0xff] }
 0x426   : > { %v10112_v59 = vpop.f32.mrb[111].mxu1 }
 0x427   : > { %21454 = vst [vmem:[#allocation72_spill] sm:$0xff] %v17539_v0  ;;  %v10113_v57 = vadd.f32 %v10112_v59, %v10111_v58  ;;  %v17578_v58 = vpack.c.bf16 %v5709_v32, %v5706_v54  ;;  %v17582_v59 = vsub.f32 %v5585_v63, %v5709_v32 }
 0x429   : > { %v10114_v8 = vpop.f32.mrb[112].mxu1  ;;  %v17541_v5 = vadd.f32 %v10113_v57, %v4106_v56  ;;  %21464 = vst [vmem:[#allocation46_spill] sm:$0xff] %v17578_v58  ;;  %21466 = vst [vmem:[#allocation84_spill] sm:$0xff] %v17582_v59  ;;  %12750 = vmatprep.subr.bf16.mxu1 %v17578_v58 }
 0x42a   : > { %v10115_v29 = vpop.f32.mrb[113].mxu1 }
 0x42b   : > { %21455 = vst [vmem:[#allocation38_spill] sm:$0xff] %v17541_v5  ;;  %v10116_v40 = vadd.f32 %v10115_v29, %v10114_v8 }
 0x42d   : > { %v10117_v3 = vpop.f32.mrb[114].mxu1  ;;  %v17543_v1 = vadd.f32 %v10116_v40, %v4113_v21  ;;  %v17590_v40 = vsub.f32 %v17559_v16, %v20414_v24 }
 0x42e   : > { %v10118_v23 = vpop.f32.mrb[115].mxu1 }
 0x42f   : > { %21456 = vst [vmem:[#allocation39_spill] sm:$0xff] %v17543_v1  ;;  %v10119_v13 = vadd.f32 %v10118_v23, %v10117_v3  ;;  %21467 = vst [vmem:[#allocation26_spill] sm:$0xff] %v17590_v40  ;;  %v5658_v3 = vand.u32 4294901760, %v5568_v43  ;;  %v5593_v1 = vld [vmem:[#allocation9 + $0xd8] sm:$0xff] }
 0x431   : > { %v10120_v61 = vpop.f32.mrb[116].mxu1  ;;  %v17545_v46 = vadd.f32 %v10119_v13, %v4120_v60  ;;  %v17555_v60 = vld [vmem:[#allocation9 + $0x1a8] sm:$0xff]  ;;  %v5661_v13 = vand.u32 4294901760, %v5569_v35 }
 0x432   : > { %v10121_v44 = vpop.f32.mrb[117].mxu1  ;;  %v20416_v47 = vand.u32 4294901760, %v17555_v60 }
 0x433   : > { %21457 = vst [vmem:[#allocation40_spill] sm:$0xff] %v17545_v46  ;;  %v10122_v27 = vadd.f32 %v10121_v44, %v10120_v61 }
 0x434   : > { %v17575_v30 = vsub.f32 %v17555_v60, %v20416_v47 }
 0x435   : > { %v10123_v11 = vpop.f32.mrb[118].mxu1  ;;  %v17547_v31 = vadd.f32 %v10122_v27, %v4127_v10  ;;  %v20418_v10 = vand.u32 4294901760, %v17553_v17  ;;  %v20409_v27 = vand.u32 4294901760, %v17590_v40 }
 0x436   : > { %v10124_v39 = vpop.f32.mrb[119].mxu1  ;;  %21463 = vst [vmem:[#allocation96_spill] sm:$0xff] %v17575_v30  ;;  %v20411_v29 = vand.u32 4294901760, %v17575_v30 }
 0x437   : > { %21458 = vst [vmem:[#allocation41_spill] sm:$0xff] %v17547_v31  ;;  %v10125_v45 = vadd.f32 %v10124_v39, %v10123_v11  ;;  %v17570_v28 = vsub.f32 %v17553_v17, %v20418_v10  ;;  %v17605_v11 = vsub.f32 %v5568_v43, %v5658_v3  ;;  %v17607_v39 = vld [vmem:[#allocation9 + $0x1b0] sm:$0xff] }
 0x438   : > { %v7273_v44 = vsub.f32 %v17575_v30, %v20411_v29  ;;  %v5570_v29 = vld [vmem:[#allocation9 + $0x20] sm:$0xff] }
 0x439   : > { %v10126_v2 = vpop.f32.mrb[120].mxu1  ;;  %v17549_v56 = vadd.f32 %v10125_v45, %v4134_v36  ;;  %21462 = vst [vmem:[#allocation80_spill] sm:$0xff] %v17570_v28  ;;  %v20412_v8 = vand.u32 4294901760, %v17570_v28  ;;  %21469 = vst [vmem:[#allocation76_spill] sm:$0xff] %v17605_v11  ;;  %v17609_v45 = vld [vmem:[#allocation9 + $0x1b8] sm:$0xff] }
 0x43a   : > { %v10127_v53 = vpop.f32.mrb[121].mxu1  ;;  %v7274_v63 = vand.u32 4294901760, %v7273_v44 }
 0x43b   : > { %21459 = vst [vmem:[#allocation42_spill] sm:$0xff] %v17549_v56  ;;  %v10128_v52 = vadd.f32 %v10127_v53, %v10126_v2  ;;  %v7266_v61 = vsub.f32 %v17570_v28, %v20412_v8  ;;  %v17612_v53 = vpack.c.bf16 %v5661_v13, %v5658_v3  ;;  %v5571_v8 = vld [vmem:[#allocation9 + $0x28] sm:$0xff]  ;;  %v5588_v28 = vld [vmem:[#allocation9 + $0xb0] sm:$0xff] }
 0x43d   : > { %v10129_v22 = vpop.f32.mrb[122].mxu1  ;;  %v17551_v21 = vadd.f32 %v10128_v52, %v4141_v37  ;;  %v17561_v37 = vld [vmem:[#allocation9 + $0x128] sm:$0xff]  ;;  %21470 = vst [vmem:[#allocation78_spill] sm:$0xff] %v17612_v53  ;;  %v17614_v52 = vsub.f32 %v5569_v35, %v5661_v13  ;;  %12752 = vmatpush3.bf16.msra.mxu1 %v17612_v53  ;;  %v17632_v13 = vld [vmem:[#allocation9 + $0x138] sm:$0xff] }
 0x43e   : > { %v10130_v55 = vpop.f32.mrb[123].mxu1  ;;  %v20413_v57 = vand.u32 4294901760, %v17561_v37 }
 0x43f   : > { %21460 = vst [vmem:[#allocation75_spill] sm:$0xff] %v17551_v21  ;;  %v10131_v34 = vadd.f32 %v10130_v55, %v10129_v22  ;;  %21471 = vst [vmem:[#allocation81_spill] sm:$0xff] %v17614_v52  ;;  %v20415_v22 = vand.u32 4294901760, %v17607_v39  ;;  %v5586_v55 = vld [vmem:[#allocation9 + $0xa0] sm:$0xff] }
 0x440   : > { %v17596_v23 = vsub.f32 %v17561_v37, %v20413_v57  ;;  %v5712_v35 = vand.u32 4294901760, %v5586_v55 }
 0x441   : > { %v10132_v50 = vpop.f32.mrb[124].mxu1  ;;  %v17563_v49 = vadd.f32 %v10131_v34, %v4148_v26  ;;  %v17580_v26 = vsub.f32 %v5584_v9, %v5706_v54  ;;  %v5587_v34 = vld [vmem:[#allocation9 + $0xa8] sm:$0xff]  ;;  %v17617_v9 = vld [vmem:[#allocation9 + $0x130] sm:$0xff]  ;;  %v20417_v54 = vand.u32 4294901760, %v17609_v45  ;;  %v17630_v43 = vsub.f32 %v17607_v39, %v20415_v22 }
 0x442   : > { %v10133_v36 = vpop.f32.mrb[125].mxu1  ;;  %21468 = vst [vmem:[#allocation43_spill] sm:$0xff] %v17596_v23  ;;  %v20410_v2 = vand.u32 4294901760, %v17596_v23  ;;  %v5715_v3 = vand.u32 4294901760, %v5587_v34  ;;  %v17643_v47 = vsub.f32 %v5586_v55, %v5712_v35  ;;  %v5664_v55 = vand.u32 4294901760, %v5570_v29 }
 0x443   : > { %21461 = vst [vmem:[#allocation44_spill] sm:$0xff] %v17563_v49  ;;  %v17565_v7 = vadd.f32 %v10133_v36, %v10132_v50  ;;  %21465 = vst [vmem:[#allocation66_spill] sm:$0xff] %v17580_v26  ;;  %v7267_v50 = vand.u32 4294901760, %v7266_v61  ;;  %v7154_v36 = vsub.f32 %v17590_v40, %v20409_v27  ;;  %v17637_v27 = vsub.f32 %v17609_v45, %v20417_v54 }
 0x444   : > { %v7161_v32 = vsub.f32 %v17596_v23, %v20410_v2  ;;  %21472 = vst [vmem:[#allocation83_spill] sm:$0xff] %v17630_v43  ;;  %v20420_v2 = vand.u32 4294901760, %v17617_v9  ;;  %v20419_v24 = vand.u32 4294901760, %v17630_v43  ;;  %v17641_v22 = vpack.c.bf16 %v5715_v3, %v5712_v35  ;;  %21475 = vst [vmem:[#allocation88_spill] sm:$0xff] %v17643_v47 }
 0x445   : > { %v12977_v61 = vpack.c.bf16 %v7274_v63, %v7267_v50  ;;  %v7155_v44 = vand.u32 4294901760, %v7154_v36  ;;  %21473 = vst [vmem:[#allocation86_spill] sm:$0xff] %v17637_v27  ;;  %v20425_v50 = vand.u32 4294901760, %v17637_v27  ;;  %v17646_v63 = vsub.f32 %v5587_v34, %v5715_v3  ;;  %v17679_v3 = vld [vmem:[#allocation9 + $0x148] sm:$0xff] }
 0x446   : > { %v7162_v57 = vand.u32 4294901760, %v7161_v32  ;;  %21474 = vst [vmem:[#allocation74_spill] sm:$0xff] %v17641_v22  ;;  %v20428_v36 = vand.u32 4294901760, %v17632_v13  ;;  %v17652_v54 = vsub.f32 %v17617_v9, %v20420_v2  ;;  %v7280_v32 = vsub.f32 %v17630_v43, %v20419_v24  ;;  %12754 = vmatprep.subr.bf16.mxu1 %v17641_v22  ;;  %v17671_v24 = vld [vmem:[#allocation9 + $0x140] sm:$0xff] }
 0x447   : > { %12978 = vmatprep.subr.bf16.mxu0 %v12977_v61  ;;  %21476 = vst [vmem:[#allocation28_spill] sm:$0xff] %v17646_v63  ;;  %v5667_v35 = vand.u32 4294901760, %v5571_v8  ;;  %v7287_v34 = vsub.f32 %v17637_v27, %v20425_v50  ;;  %v17675_v23 = vsub.f32 %v5570_v29, %v5664_v55  ;;  %v20454_v29 = vand.u32 4294901760, %v17671_v24 }
 0x448   : > { %21477 = vst [vmem:[#allocation90_spill] sm:$0xff] %v17652_v54  ;;  %v12979_v10 = vpack.c.bf16 %v7162_v57, %v7155_v44  ;;  %v17665_v61 = vsub.f32 %v17632_v13, %v20428_v36  ;;  %v17667_v57 = vld [vmem:[#allocation9 + $0x1c0] sm:$0xff]  ;;  %v17669_v44 = vld [vmem:[#allocation9 + $0x1c8] sm:$0xff]  ;;  %v7281_v2 = vand.u32 4294901760, %v7280_v32  ;;  %v21482_v36 = vand.u32 4294901760, %v17652_v54 }
 0x449   : > { %v17673_v43 = vpack.c.bf16 %v5667_v35, %v5664_v55  ;;  %21480 = vst [vmem:[#allocation93_spill] sm:$0xff] %v17675_v23  ;;  %v17677_v50 = vsub.f32 %v5571_v8, %v5667_v35  ;;  %v7288_v27 = vand.u32 4294901760, %v7287_v34  ;;  %v20449_v32 = vand.u32 4294901760, %v17669_v44  ;;  %v5589_v8 = vld [vmem:[#allocation9 + $0xb8] sm:$0xff]  ;;  %v5572_v55 = vld [vmem:[#allocation9 + $0x30] sm:$0xff] }
 0x44a   : > { %21478 = vst [vmem:[#allocation91_spill] sm:$0xff] %v17665_v61  ;;  %12980 = vmatpush3.bf16.msra.mxu0 %v12979_v10  ;;  %v7168_v40 = vsub.f32 %v17652_v54, %v21482_v36  ;;  %v20441_v30 = vand.u32 4294901760, %v17665_v61  ;;  %v20442_v10 = vand.u32 4294901760, %v17667_v57  ;;  %v20457_v36 = vand.u32 4294901760, %v17679_v3 }
 0x44b   : > { %21479 = vst [vmem:[#allocation92_spill] sm:$0xff] %v17673_v43  ;;  %21481 = vst [vmem:[#allocation73_spill] sm:$0xff] %v17677_v50  ;;  %12756 = vmatpush3.bf16.msra.mxu1 %v17673_v43  ;;  %v12981_v35 = vpack.c.bf16 %v7288_v27, %v7281_v2  ;;  %v17701_v43 = vsub.f32 %v17669_v44, %v20449_v32  ;;  %v5718_v27 = vand.u32 4294901760, %v5588_v28  ;;  %v5670_v22 = vand.u32 4294901760, %v5572_v55 }
 0x44c   : > { %v7169_v15 = vand.u32 4294901760, %v7168_v40  ;;  %v7175_v34 = vsub.f32 %v17665_v61, %v20441_v30  ;;  %v17696_v54 = vsub.f32 %v17667_v57, %v20442_v10  ;;  %v17706_v40 = vsub.f32 %v17671_v24, %v20454_v29  ;;  %v5573_v61 = vld [vmem:[#allocation9 + $0x38] sm:$0xff]  ;;  %v17718_v29 = vld [vmem:[#allocation9 + $0x1d0] sm:$0xff] }
 0x44d   : > { %21484 = vst [vmem:[#allocation79_spill] sm:$0xff] %v17701_v43  ;;  %12982 = vmatprep.subr.bf16.mxu0 %v12981_v35  ;;  %v17711_v30 = vsub.f32 %v17679_v3, %v20457_v36  ;;  %v5721_v10 = vand.u32 4294901760, %v5589_v8  ;;  %v20458_v32 = vand.u32 4294901760, %v17701_v43  ;;  %v17716_v6 = vsub.f32 %v5588_v28, %v5718_v27 }
 0x44e   : > { %21483 = vst [vmem:[#allocation95_spill] sm:$0xff] %v17696_v54  ;;  %21485 = vst [vmem:[#allocation65_spill] sm:$0xff] %v17706_v40  ;;  %v7176_v2 = vand.u32 4294901760, %v7175_v34  ;;  %v20459_v53 = vand.u32 4294901760, %v17696_v54  ;;  %v20462_v58 = vand.u32 4294901760, %v17706_v40  ;;  %v5673_v56 = vand.u32 4294901760, %v5573_v61 }
 0x44f   : > { %21486 = vst [vmem:[#allocation25_spill] sm:$0xff] %v17711_v30  ;;  %21487 = vst [vmem:[#allocation58_spill] sm:$0xff] %v17716_v6  ;;  %v20467_v34 = vand.u32 4294901760, %v17711_v30  ;;  %v17721_v51 = vpack.c.bf16 %v5721_v10, %v5718_v27  ;;  %v17723_v36 = vsub.f32 %v5589_v8, %v5721_v10  ;;  %v7301_v21 = vsub.f32 %v17701_v43, %v20458_v32  ;;  %v17740_v8 = vld [vmem:[#allocation9 + $0x1d8] sm:$0xff] }
 0x450   : > { %v12983_v35 = vpack.c.bf16 %v7176_v2, %v7169_v15  ;;  %v7294_v49 = vsub.f32 %v17696_v54, %v20459_v53  ;;  %v7182_v28 = vsub.f32 %v17706_v40, %v20462_v58  ;;  %v17738_v10 = vsub.f32 %v5572_v55, %v5670_v22  ;;  %v17743_v2 = vld [vmem:[#allocation9 + $0x150] sm:$0xff]  ;;  %v5590_v40 = vld [vmem:[#allocation9 + $0xc0] sm:$0xff]  ;;  %v5591_v54 = vld [vmem:[#allocation9 + $0xc8] sm:$0xff] }
 0x451   : > { %21488 = vst [vmem:[#allocation35_spill] sm:$0xff] %v17721_v51  ;;  %21489 = vst [vmem:[#allocation29_spill] sm:$0xff] %v17723_v36  ;;  %v7189_v15 = vsub.f32 %v17711_v30, %v20467_v34  ;;  %12758 = vmatprep.subr.bf16.mxu1 %v17721_v51  ;;  %v7302_v53 = vand.u32 4294901760, %v7301_v21  ;;  %v17745_v58 = vpack.c.bf16 %v5673_v56, %v5670_v22  ;;  %v5574_v55 = vld [vmem:[#allocation9 + $0x40] sm:$0xff]  ;;  %v20472_v27 = vand.u32 4294901760, %v17740_v8 }
 0x452   : > { %12984 = vmatpush3.bf16.msra.mxu0 %v12983_v35  ;;  %21490 = vst [vmem:[#allocation30_spill] sm:$0xff] %v17738_v10  ;;  %v7295_v32 = vand.u32 4294901760, %v7294_v49  ;;  %v7183_v43 = vand.u32 4294901760, %v7182_v28  ;;  %v17747_v35 = vld [vmem:[#allocation9 + $0x158] sm:$0xff]  ;;  %v17749_v30 = vsub.f32 %v5573_v61, %v5673_v56  ;;  %v21493_v31 = vand.u32 4294901760, %v17718_v29  ;;  %v5575_v56 = vld [vmem:[#allocation9 + $0x48] sm:$0xff] }
 0x453   : > { %21491 = vst [vmem:[#allocation31_spill] sm:$0xff] %v17745_v58  ;;  %v7190_v34 = vand.u32 4294901760, %v7189_v15  ;;  %12760 = vmatpush3.bf16.msra.mxu1 %v17745_v58  ;;  %v20475_v49 = vand.u32 4294901760, %v17743_v2  ;;  %v20479_v28 = vand.u32 4294901760, %v17747_v35  ;;  %v5724_v46 = vand.u32 4294901760, %v5590_v40 }
 0x454   : > { %21492 = vst [vmem:[#allocation32_spill] sm:$0xff] %v17749_v30  ;;  %v12985_v51 = vpack.c.bf16 %v7302_v53, %v7295_v32  ;;  %v17756_v21 = vsub.f32 %v17718_v29, %v21493_v31  ;;  %v5727_v15 = vand.u32 4294901760, %v5591_v54  ;;  %v17764_v61 = vsub.f32 %v17740_v8, %v20472_v27 }
 0x455   : > { %v12987_v22 = vpack.c.bf16 %v7190_v34, %v7183_v43  ;;  %v17769_v31 = vsub.f32 %v17743_v2, %v20475_v49  ;;  %v5676_v32 = vand.u32 4294901760, %v5574_v55  ;;  %v17771_v43 = vld [vmem:[#allocation9 + $0x1e0] sm:$0xff]  ;;  %v17780_v53 = vsub.f32 %v5590_v40, %v5724_v46 }
 0x456   : > { %21494 = vst [vmem:[#allocation33_spill] sm:$0xff] %v17756_v21  ;;  %12986 = vmatprep.subr.bf16.mxu0 %v12985_v51  ;;  %21495 = vst [vmem:[#allocation77_spill] sm:$0xff] %v17764_v61  ;;  %v17776_v51 = vsub.f32 %v17747_v35, %v20479_v28  ;;  %v17778_v34 = vpack.c.bf16 %v5727_v15, %v5724_v46  ;;  %v17782_v27 = vsub.f32 %v5591_v54, %v5727_v15 }
 0x457   : > { %21496 = vst [vmem:[#allocation59_spill] sm:$0xff] %v17769_v31  ;;  %21497 = vst [vmem:[#allocation56_spill] sm:$0xff] %v17771_v43  ;;  %12988 = vmatpush3.bf16.msra.mxu0 %v12987_v22  ;;  %v21502_v58 = vand.u32 4294901760, %v17756_v21  ;;  %v20486_v14 = vand.u32 4294901760, %v17764_v61  ;;  %v20487_v20 = vand.u32 4294901760, %v17769_v31  ;;  %v5679_v22 = vand.u32 4294901760, %v5575_v56 }
 0x458   : > { %21498 = vst [vmem:[#allocation57_spill] sm:$0xff] %v17776_v51  ;;  %21499 = vst [vmem:[#allocation61_spill] sm:$0xff] %v17778_v34  ;;  %12762 = vmatprep.subr.bf16.mxu1 %v17778_v34  ;;  %v17791_v28 = vsub.f32 %v5574_v55, %v5676_v32  ;;  %v5592_v55 = vld [vmem:[#allocation9 + $0xd0] sm:$0xff]  ;;  %v21508_v34 = vand.u32 4294901760, %v17776_v51 }
 0x459   : > { %21500 = vst [vmem:[#allocation45_spill] sm:$0xff] %v17780_v53  ;;  %21501 = vst [vmem:[#allocation60_spill] sm:$0xff] %v17782_v27  ;;  %v7308_v49 = vsub.f32 %v17756_v21, %v21502_v58  ;;  %v7315_v58 = vsub.f32 %v17764_v61, %v20486_v14  ;;  %v7196_v40 = vsub.f32 %v17769_v31, %v20487_v20  ;;  %v17806_v21 = vld [vmem:[#allocation9 + $0x168] sm:$0xff]  ;;  %v20497_v20 = vand.u32 4294901760, %v17793_v41 }
 0x45a   : > { %21503 = vst [vmem:[#allocation82_spill] sm:$0xff] %v17791_v28  ;;  %v17802_v15 = vpack.c.bf16 %v5679_v22, %v5676_v32  ;;  %21507 = vst [vmem:[#allocation98_spill] sm:$0xff] %v17806_v21  ;;  %v7203_v46 = vsub.f32 %v17776_v51, %v21508_v34  ;;  %v21510_v32 = vand.u32 4294901760, %v17771_v43  ;;  %v20499_v5 = vand.u32 4294901760, %v17806_v21  ;;  %v5576_v51 = vld [vmem:[#allocation9 + $0x50] sm:$0xff] }
 0x45b   : > { %v7309_v54 = vand.u32 4294901760, %v7308_v49  ;;  %v17811_v49 = vsub.f32 %v5575_v56, %v5679_v22  ;;  %v7316_v62 = vand.u32 4294901760, %v7315_v58  ;;  %v7197_v14 = vand.u32 4294901760, %v7196_v40  ;;  %v17840_v22 = vld [vmem:[#allocation9 + $0x1f0] sm:$0xff] }
 0x45c   : > { %21505 = vst [vmem:[#allocation27_spill] sm:$0xff] %v17802_v15  ;;  %12764 = vmatpush3.bf16.msra.mxu1 %v17802_v15  ;;  %v17818_v31 = vsub.f32 %v17771_v43, %v21510_v32  ;;  %v7204_v61 = vand.u32 4294901760, %v7203_v46  ;;  %v5730_v34 = vand.u32 4294901760, %v5592_v55  ;;  %v17826_v58 = vsub.f32 %v17793_v41, %v20497_v20  ;;  %21516 = vst [vmem:[#allocation105_spill] sm:$0xff] %v17840_v22 }
 0x45d   : > { %21509 = vst [vmem:[#allocation99_spill] sm:$0xff] %v17811_v49  ;;  %v12989_v56 = vpack.c.bf16 %v7316_v62, %v7309_v54  ;;  %v5733_v40 = vand.u32 4294901760, %v5593_v1  ;;  %v17831_v46 = vsub.f32 %v17804_v25, %v20498_v12  ;;  %v17836_v32 = vsub.f32 %v17806_v21, %v20499_v5  ;;  %v5577_v54 = vld [vmem:[#allocation9 + $0x58] sm:$0xff] }
 0x45e   : > { %21511 = vst [vmem:[#allocation100_spill] sm:$0xff] %v17818_v31  ;;  %21512 = vst [vmem:[#allocation101_spill] sm:$0xff] %v17826_v58  ;;  %v12991_v15 = vpack.c.bf16 %v7204_v61, %v7197_v14  ;;  %v17838_v62 = vsub.f32 %v5592_v55, %v5730_v34  ;;  %v21517_v20 = vand.u32 4294901760, %v17818_v31  ;;  %v20504_v61 = vand.u32 4294901760, %v17826_v58 }
 0x45f   : > { %21513 = vst [vmem:[#allocation102_spill] sm:$0xff] %v17831_v46  ;;  %21514 = vst [vmem:[#allocation103_spill] sm:$0xff] %v17836_v32  ;;  %12990 = vmatprep.subr.bf16.mxu0 %v12989_v56  ;;  %v17846_v0 = vpack.c.bf16 %v5733_v40, %v5730_v34  ;;  %v17848_v12 = vsub.f32 %v5593_v1, %v5733_v40  ;;  %v20513_v5 = vand.u32 4294901760, %v17831_v46  ;;  %v20516_v55 = vand.u32 4294901760, %v17836_v32  ;;  %v17865_v40 = vld [vmem:[#allocation9 + $0x170] sm:$0xff]  ;;  %v5595_v34 = vld [vmem:[#allocation9 + $0xe8] sm:$0xff] }
 0x460   : > { %21515 = vst [vmem:[#allocation104_spill] sm:$0xff] %v17838_v62  ;;  %v7322_v14 = vsub.f32 %v17818_v31, %v21517_v20  ;;  %12992 = vmatpush3.bf16.msra.mxu0 %v12991_v15  ;;  %v5682_v62 = vand.u32 4294901760, %v5576_v51  ;;  %v7329_v56 = vsub.f32 %v17826_v58, %v20504_v61  ;;  %v5685_v20 = vand.u32 4294901760, %v5577_v54  ;;  %v17856_v31 = vld [vmem:[#allocation9 + $0x1f8] sm:$0xff]  ;;  %21521 = vst [vmem:[#allocation109_spill] sm:$0xff] %v17865_v40  ;;  %v5594_v61 = vld [vmem:[#allocation9 + $0xe0] sm:$0xff] }
 0x461   : > { %21518 = vst [vmem:[#allocation106_spill] sm:$0xff] %v17846_v0  ;;  %21519 = vst [vmem:[#allocation107_spill] sm:$0xff] %v17848_v12  ;;  %12766 = vmatprep.subr.bf16.mxu1 %v17846_v0  ;;  %v7210_v1 = vsub.f32 %v17831_v46, %v20513_v5  ;;  %v7217_v15 = vsub.f32 %v17836_v32, %v20516_v55  ;;  %v20519_v5 = vand.u32 4294901760, %v17856_v31  ;;  %v21526_v46 = vand.u32 4294901760, %v17840_v22 }
 0x462   : > { %v7323_v21 = vand.u32 4294901760, %v7322_v14  ;;  %21520 = vst [vmem:[#allocation108_spill] sm:$0xff] %v17856_v31  ;;  %v17867_v14 = vld [vmem:[#allocation9 + $0x178] sm:$0xff]  ;;  %v7330_v58 = vand.u32 4294901760, %v7329_v56  ;;  %v17869_v0 = vpack.c.bf16 %v5685_v20, %v5682_v62  ;;  %v17871_v12 = vsub.f32 %v5576_v51, %v5682_v62 }
 0x463   : > { %21522 = vst [vmem:[#allocation110_spill] sm:$0xff] %v17867_v14  ;;  %v17873_v25 = vsub.f32 %v5577_v54, %v5685_v20  ;;  %v7211_v41 = vand.u32 4294901760, %v7210_v1  ;;  %v7218_v43 = vand.u32 4294901760, %v7217_v15  ;;  %v17879_v55 = vsub.f32 %v17840_v22, %v21526_v46  ;;  %v5579_v46 = vld [vmem:[#allocation9 + $0x68] sm:$0xff] }
 0x464   : > { %21523 = vst [vmem:[#allocation111_spill] sm:$0xff] %v17869_v0  ;;  %21524 = vst [vmem:[#allocation112_spill] sm:$0xff] %v17871_v12  ;;  %v12993_v32 = vpack.c.bf16 %v7330_v58, %v7323_v21  ;;  %12768 = vmatpush3.bf16.msra.mxu1 %v17869_v0  ;;  %v20522_v56 = vand.u32 4294901760, %v17865_v40  ;;  %v20524_v51 = vand.u32 4294901760, %v17867_v14  ;;  %v5736_v62 = vand.u32 4294901760, %v5594_v61 }
 0x465   : > { %21525 = vst [vmem:[#allocation113_spill] sm:$0xff] %v17873_v25  ;;  %21527 = vst [vmem:[#allocation114_spill] sm:$0xff] %v17879_v55  ;;  %v12995_v54 = vpack.c.bf16 %v7218_v43, %v7211_v41  ;;  %v20527_v20 = vand.u32 4294901760, %v17879_v55  ;;  %v17888_v1 = vsub.f32 %v17856_v31, %v20519_v5  ;;  %v5739_v15 = vand.u32 4294901760, %v5595_v34  ;;  %v5578_v43 = vld [vmem:[#allocation9 + $0x60] sm:$0xff] }
 0x466   : > { %12994 = vmatprep.subr.bf16.mxu0 %v12993_v32  ;;  %v17893_v21 = vsub.f32 %v17865_v40, %v20522_v56  ;;  %v17898_v58 = vsub.f32 %v17867_v14, %v20524_v51  ;;  %v17900_v41 = vsub.f32 %v5594_v61, %v5736_v62 }
 0x467   : > { %21528 = vst [vmem:[#allocation115_spill] sm:$0xff] %v17888_v1  ;;  %12996 = vmatpush3.bf16.msra.mxu0 %v12995_v54  ;;  %v7336_v5 = vsub.f32 %v17879_v55, %v20527_v20  ;;  %v20532_v32 = vand.u32 4294901760, %v17888_v1  ;;  %v17906_v0 = vpack.c.bf16 %v5739_v15, %v5736_v62  ;;  %v17908_v56 = vsub.f32 %v5595_v34, %v5739_v15  ;;  %v5596_v20 = vld [vmem:[#allocation9 + $0xf0] sm:$0xff]  ;;  %v5597_v55 = vld [vmem:[#allocation9 + $0xf8] sm:$0xff] }
 0x468   : > { %21529 = vst [vmem:[#allocation116_spill] sm:$0xff] %v17893_v21  ;;  %21530 = vst [vmem:[#allocation117_spill] sm:$0xff] %v17898_v58  ;;  %v20541_v40 = vand.u32 4294901760, %v17893_v21  ;;  %v20542_v51 = vand.u32 4294901760, %v17898_v58  ;;  %v5688_v54 = vand.u32 4294901760, %v5578_v43  ;;  %v5580_v15 = vld [vmem:[#allocation9 + $0x70] sm:$0xff] }
 0x469   : > { %21531 = vst [vmem:[#allocation118_spill] sm:$0xff] %v17900_v41  ;;  %21532 = vst [vmem:[#allocation119_spill] sm:$0xff] %v17906_v0  ;;  %v7337_v14 = vand.u32 4294901760, %v7336_v5  ;;  %v7343_v61 = vsub.f32 %v17888_v1, %v20532_v32  ;;  %12770 = vmatprep.subr.bf16.mxu1 %v17906_v0  ;;  %v5691_v41 = vand.u32 4294901760, %v5579_v46  ;;  %v5581_v5 = vld [vmem:[#allocation9 + $0x78] sm:$0xff]  ;;  %v5742_v25 = vand.u32 4294901760, %v5596_v20 }
 0x46a   : > { %21533 = vst [vmem:[#allocation120_spill] sm:$0xff] %v17908_v56  ;;  %v7224_v34 = vsub.f32 %v17893_v21, %v20541_v40  ;;  %v7231_v62 = vsub.f32 %v17898_v58, %v20542_v51  ;;  %v17924_v32 = vsub.f32 %v5578_v43, %v5688_v54  ;;  %v5745_v12 = vand.u32 4294901760, %v5597_v55 }
 0x46b   : > { %v7344_v56 = vand.u32 4294901760, %v7343_v61  ;;  %v17922_v31 = vpack.c.bf16 %v5691_v41, %v5688_v54  ;;  %v17926_v1 = vsub.f32 %v5579_v46, %v5691_v41  ;;  %v21537_v40 = vand.u32 4294901760, %v17280_v33 }
 0x46c   : > { %21535 = vst [vmem:[#allocation122_spill] sm:$0xff] %v17924_v32  ;;  %v7225_v0 = vand.u32 4294901760, %v7224_v34  ;;  %v7232_v22 = vand.u32 4294901760, %v7231_v62  ;;  %v21538_v51 = vand.u32 4294901760, %v17282_v18  ;;  %v5694_v61 = vand.u32 4294901760, %v5580_v15 }
 0x46d   : > { %21534 = vst [vmem:[#allocation121_spill] sm:$0xff] %v17922_v31  ;;  %21536 = vst [vmem:[#allocation123_spill] sm:$0xff] %v17926_v1  ;;  %v12997_v49 = vpack.c.bf16 %v7344_v56, %v7337_v14  ;;  %12772 = vmatpush3.bf16.msra.mxu1 %v17922_v31  ;;  %v5697_v21 = vand.u32 4294901760, %v5581_v5  ;;  %v17935_v43 = vpack.c.bf16 %v5745_v12, %v5742_v25  ;;  %v20564_v18 = vand.u32 4294901760, %v17300_v48 }
 0x46e   : > { %v17933_v58 = vpack.c.bf16 %v21538_v51, %v21537_v40  ;;  %v12999_v28 = vpack.c.bf16 %v7232_v22, %v7225_v0  ;;  %v17937_v41 = vsub.f32 %v5596_v20, %v5742_v25  ;;  %v17939_v46 = vsub.f32 %v5597_v55, %v5745_v12 }
 0x46f   : > { %21540 = vst [vmem:[#allocation125_spill] sm:$0xff] %v17935_v43  ;;  %12998 = vmatprep.subr.bf16.mxu0 %v12997_v49  ;;  %v17941_v54 = vpack.c.bf16 %v5697_v21, %v5694_v61  ;;  %v17943_v14 = vsub.f32 %v5580_v15, %v5694_v61  ;;  %12774 = vmatprep.subr.bf16.mxu1 %v17935_v43  ;;  %v20563_v25 = vand.u32 4294901760, %v17302_v42  ;;  %v20560_v0 = vand.u32 4294901760, %v17348_v38  ;;  %v21587_v43 = vld [vmem:[#allocation112_spill] sm:$0xff] }
 0x470   : > { %21539 = vst [vmem:[#allocation124_spill] sm:$0xff] %v17933_v58  ;;  %21541 = vst [vmem:[#allocation126_spill] sm:$0xff] %v17937_v41  ;;  %13000 = vmatpush3.bf16.msra.mxu0 %v12999_v28  ;;  %v17946_v33 = vsub.f32 %v5581_v5, %v5697_v21  ;;  %v17954_v12 = vadd.f32 %v17565_v7, %v17537_v4  ;;  %v5984_v28 = vsub.f32 %v17300_v48, %v20564_v18 }
 0x471   : > { %21542 = vst [vmem:[#allocation127_spill] sm:$0xff] %v17939_v46  ;;  %21543 = vst [vmem:[#allocation128_spill] sm:$0xff] %v17941_v54  ;;  %13034 = vmatprep.subr.bf16.mxu0 %v17933_v58  ;;  %12776 = vmatpush3.bf16.msra.mxu1 %v17941_v54  ;;  %v20551_v49 = vand.u32 4294901760, %v17354_v19  ;;  %v21546_v22 = vand.u32 4294901760, %v17553_v17  ;;  %v21547_v55 = vand.u32 4294901760, %v17555_v60  ;;  %v21549_v56 = vand.u32 4294901760, %v17559_v16 }
 0x472   : > { %21544 = vst [vmem:[#allocation129_spill] sm:$0xff] %v17943_v14  ;;  %21545 = vst [vmem:[#allocation130_spill] sm:$0xff] %v17946_v33  ;;  %v21550_v51 = vand.u32 4294901760, %v17561_v37  ;;  %v5991_v7 = vsub.f32 %v17302_v42, %v20563_v25  ;;  %v5872_v20 = vsub.f32 %v17348_v38, %v20560_v0  ;;  %v5985_v21 = vand.u32 4294901760, %v5984_v28 }
 0x473   : > { %v17965_v40 = vpack.c.bf16 %v21547_v55, %v21546_v22  ;;  %v5879_v17 = vsub.f32 %v17354_v19, %v20551_v49  ;;  %v20548_v60 = vand.u32 4294901760, %v17580_v26  ;;  %v20549_v16 = vand.u32 4294901760, %v17582_v59 }
 0x474   : > { %v17971_v4 = vpack.c.bf16 %v21550_v51, %v21549_v56  ;;  %v5992_v37 = vand.u32 4294901760, %v5991_v7  ;;  %v5873_v34 = vand.u32 4294901760, %v5872_v20  ;;  %v20550_v62 = vand.u32 4294901760, %v17605_v11 }
 0x475   : > { %21548 = vst [vmem:[#allocation131_spill] sm:$0xff] %v17965_v40  ;;  %v20552_v15 = vand.u32 4294901760, %v17614_v52  ;;  %v5880_v5 = vand.u32 4294901760, %v5879_v17  ;;  %v5998_v61 = vsub.f32 %v17580_v26, %v20548_v60  ;;  %v6005_v28 = vsub.f32 %v17582_v59, %v20549_v16 }
 0x476   : > { %21551 = vst [vmem:[#allocation132_spill] sm:$0xff] %v17971_v4  ;;  %v21552_v22 = vand.u32 4294901760, %v17607_v39  ;;  %v21553_v55 = vand.u32 4294901760, %v17609_v45  ;;  %v12777_v51 = vpack.c.bf16 %v5992_v37, %v5985_v21  ;;  %v5886_v7 = vsub.f32 %v17605_v11, %v20550_v62 }
 0x477   : > { %v5893_v20 = vsub.f32 %v17614_v52, %v20552_v15  ;;  %v21555_v17 = vand.u32 4294901760, %v17617_v9  ;;  %v21556_v60 = vand.u32 4294901760, %v17632_v13  ;;  %v18010_v39 = vpack.c.bf16 %v5880_v5, %v5873_v34 }
 0x478   : > { %v17996_v56 = vpack.c.bf16 %v21553_v55, %v21552_v22  ;;  %v5999_v45 = vand.u32 4294901760, %v5998_v61  ;;  %v6006_v22 = vand.u32 4294901760, %v6005_v28  ;;  %v20559_v21 = vand.u32 4294901760, %v17643_v47  ;;  %12778 = vmatprep.subr.bf16.mxu1 %v12777_v51 }
 0x479   : > { %v18008_v16 = vpack.c.bf16 %v21556_v60, %v21555_v17  ;;  %v5887_v37 = vand.u32 4294901760, %v5886_v7  ;;  %v5894_v55 = vand.u32 4294901760, %v5893_v20  ;;  %v20558_v62 = vand.u32 4294901760, %v17646_v63 }
 0x47a   : > { %21554 = vst [vmem:[#allocation133_spill] sm:$0xff] %v17996_v56  ;;  %v20556_v49 = vand.u32 4294901760, %v17675_v23  ;;  %v18015_v15 = vpack.c.bf16 %v6006_v22, %v5999_v45  ;;  %v6012_v9 = vsub.f32 %v17643_v47, %v20559_v21  ;;  %v20553_v13 = vand.u32 4294901760, %v17677_v50 }
 0x47b   : > { %21557 = vst [vmem:[#allocation134_spill] sm:$0xff] %v18008_v16  ;;  %v21558_v60 = vand.u32 4294901760, %v17667_v57  ;;  %v21559_v34 = vand.u32 4294901760, %v17669_v44  ;;  %v18027_v61 = vpack.c.bf16 %v5894_v55, %v5887_v37  ;;  %v6019_v28 = vsub.f32 %v17646_v63, %v20558_v62  ;;  %v21571_v62 = vld [vmem:[#allocation82_spill] sm:$0xff] }
 0x47c   : > { %v5900_v51 = vsub.f32 %v17675_v23, %v20556_v49  ;;  %v21561_v7 = vand.u32 4294901760, %v17671_v24  ;;  %v21562_v20 = vand.u32 4294901760, %v17679_v3  ;;  %v6013_v57 = vand.u32 4294901760, %v6012_v9 }
 0x47d   : > { %v18025_v5 = vpack.c.bf16 %v21559_v34, %v21558_v60  ;;  %v5907_v44 = vsub.f32 %v17677_v50, %v20553_v13  ;;  %v20554_v45 = vand.u32 4294901760, %v17716_v6  ;;  %v20555_v22 = vand.u32 4294901760, %v17723_v36  ;;  %v21639_v50 = vld [vmem:[#allocation41_spill] sm:$0xff] }
 0x47e   : > { %v18039_v17 = vpack.c.bf16 %v21562_v20, %v21561_v7  ;;  %v6020_v37 = vand.u32 4294901760, %v6019_v28  ;;  %v5901_v55 = vand.u32 4294901760, %v5900_v51  ;;  %v20557_v60 = vand.u32 4294901760, %v17738_v10 }
 0x47f   : > { %21560 = vst [vmem:[#allocation135_spill] sm:$0xff] %v18025_v5  ;;  %v20562_v34 = vand.u32 4294901760, %v17749_v30  ;;  %v5908_v24 = vand.u32 4294901760, %v5907_v44  ;;  %v6026_v3 = vsub.f32 %v17716_v6, %v20554_v45  ;;  %v6033_v9 = vsub.f32 %v17723_v36, %v20555_v22 }
 0x480   : > { %21563 = vst [vmem:[#allocation136_spill] sm:$0xff] %v18039_v17  ;;  %v21564_v7 = vand.u32 4294901760, %v17718_v29  ;;  %v21565_v20 = vand.u32 4294901760, %v17740_v8  ;;  %v18060_v28 = vpack.c.bf16 %v6020_v37, %v6013_v57  ;;  %v5914_v51 = vsub.f32 %v17738_v10, %v20557_v60  ;;  %v21630_v10 = vld [vmem:[#allocation55_spill] sm:$0xff] }
 0x481   : > { %v5921_v44 = vsub.f32 %v17749_v30, %v20562_v34  ;;  %v21567_v45 = vand.u32 4294901760, %v17743_v2  ;;  %v21568_v22 = vand.u32 4294901760, %v17747_v35  ;;  %v18074_v29 = vpack.c.bf16 %v5908_v24, %v5901_v55  ;;  %v21573_v35 = vld [vmem:[#allocation99_spill] sm:$0xff]  ;;  %v21576_v24 = vld [vmem:[#allocation62_spill] sm:$0xff] }
 0x482   : > { %v18058_v13 = vpack.c.bf16 %v21565_v20, %v21564_v7  ;;  %v6027_v8 = vand.u32 4294901760, %v6026_v3  ;;  %v6034_v7 = vand.u32 4294901760, %v6033_v9  ;;  %v20561_v57 = vand.u32 4294901760, %v17780_v53  ;;  %v21582_v34 = vld [vmem:[#allocation98_spill] sm:$0xff] }
 0x483   : > { %v18072_v49 = vpack.c.bf16 %v21568_v22, %v21567_v45  ;;  %21570 = vst [vmem:[#allocation139_spill] sm:$0xff] %v18074_v29  ;;  %v5915_v37 = vand.u32 4294901760, %v5914_v51  ;;  %v5922_v20 = vand.u32 4294901760, %v5921_v44  ;;  %v20565_v60 = vand.u32 4294901760, %v17782_v27  ;;  %v21574_v22 = vld [vmem:[#allocation56_spill] sm:$0xff] }
 0x484   : > { %21566 = vst [vmem:[#allocation137_spill] sm:$0xff] %v18058_v13  ;;  %v20572_v21 = vand.u32 4294901760, %v21571_v62  ;;  %v18079_v0 = vpack.c.bf16 %v6034_v7, %v6027_v8  ;;  %v6040_v2 = vsub.f32 %v17780_v53, %v20561_v57  ;;  %v20575_v45 = vand.u32 4294901760, %v21573_v35  ;;  %v21580_v7 = vld [vmem:[#allocation97_spill] sm:$0xff] }
 0x485   : > { %21569 = vst [vmem:[#allocation138_spill] sm:$0xff] %v18072_v49  ;;  %v21575_v55 = vand.u32 4294901760, %v21574_v22  ;;  %v21577_v3 = vand.u32 4294901760, %v21576_v24  ;;  %v18091_v51 = vpack.c.bf16 %v5922_v20, %v5915_v37  ;;  %v6047_v44 = vsub.f32 %v17782_v27, %v20565_v60  ;;  %v21585_v20 = vld [vmem:[#allocation104_spill] sm:$0xff]  ;;  %v21586_v24 = vld [vmem:[#allocation107_spill] sm:$0xff] }
 0x486   : > { %21572 = vst [vmem:[#allocation140_spill] sm:$0xff] %v18079_v0  ;;  %v5928_v8 = vsub.f32 %v21571_v62, %v20572_v21  ;;  %v21581_v57 = vand.u32 4294901760, %v21580_v7  ;;  %v21583_v25 = vand.u32 4294901760, %v21582_v34  ;;  %v6041_v22 = vand.u32 4294901760, %v6040_v2  ;;  %v21588_v21 = vld [vmem:[#allocation113_spill] sm:$0xff]  ;;  %v21597_v0 = vld [vmem:[#allocation110_spill] sm:$0xff] }
 0x487   : > { %v18089_v9 = vpack.c.bf16 %v21577_v3, %v21575_v55  ;;  %21579 = vst [vmem:[#allocation62_spill] sm:$0xff] %v18091_v51  ;;  %v5935_v37 = vsub.f32 %v21573_v35, %v20575_v45  ;;  %v20577_v55 = vand.u32 4294901760, %v21585_v20  ;;  %v20579_v3 = vand.u32 4294901760, %v21586_v24  ;;  %v21591_v45 = vld [vmem:[#allocation108_spill] sm:$0xff]  ;;  %v21627_v35 = vld [vmem:[#allocation23_spill] sm:$0xff] }
 0x488   : > { %v18103_v18 = vpack.c.bf16 %v21583_v25, %v21581_v57  ;;  %v6048_v60 = vand.u32 4294901760, %v6047_v44  ;;  %v5929_v54 = vand.u32 4294901760, %v5928_v8  ;;  %v20582_v31 = vand.u32 4294901760, %v21587_v43  ;;  %v21589_v57 = vld [vmem:[#allocation105_spill] sm:$0xff] }
 0x489   : > { %21578 = vst [vmem:[#allocation56_spill] sm:$0xff] %v18089_v9  ;;  %v20589_v58 = vand.u32 4294901760, %v21588_v21  ;;  %v5936_v7 = vand.u32 4294901760, %v5935_v37  ;;  %v6054_v25 = vsub.f32 %v21585_v20, %v20577_v55  ;;  %v6061_v34 = vsub.f32 %v21586_v24, %v20579_v3  ;;  %v21595_v55 = vld [vmem:[#allocation109_spill] sm:$0xff] }
 0x48a   : > { %21584 = vst [vmem:[#allocation97_spill] sm:$0xff] %v18103_v18  ;;  %v21590_v2 = vand.u32 4294901760, %v21589_v57  ;;  %v21592_v18 = vand.u32 4294901760, %v21591_v45  ;;  %v18124_v44 = vpack.c.bf16 %v6048_v60, %v6041_v22  ;;  %v5942_v8 = vsub.f32 %v21587_v43, %v20582_v31  ;;  %v21600_v60 = vld [vmem:[#allocation118_spill] sm:$0xff] }
 0x48b   : > { %v5949_v37 = vsub.f32 %v21588_v21, %v20589_v58  ;;  %v21596_v9 = vand.u32 4294901760, %v21595_v55  ;;  %v21598_v3 = vand.u32 4294901760, %v21597_v0  ;;  %v18138_v57 = vpack.c.bf16 %v5936_v7, %v5929_v54 }
 0x48c   : > { %v18122_v51 = vpack.c.bf16 %v21592_v18, %v21590_v2  ;;  %21594 = vst [vmem:[#allocation105_spill] sm:$0xff] %v18124_v44  ;;  %v6055_v18 = vand.u32 4294901760, %v6054_v25  ;;  %v6062_v45 = vand.u32 4294901760, %v6061_v34  ;;  %v20587_v22 = vand.u32 4294901760, %v21600_v60  ;;  %v21601_v44 = vld [vmem:[#allocation120_spill] sm:$0xff] }
 0x48d   : > { %v18136_v49 = vpack.c.bf16 %v21598_v3, %v21596_v9  ;;  %v5943_v2 = vand.u32 4294901760, %v5942_v8  ;;  %v20585_v31 = vand.u32 4294901760, %v21601_v44  ;;  %v20584_v29 = vand.u32 4294901760, %v17924_v32 }
 0x48e   : > { %21593 = vst [vmem:[#allocation98_spill] sm:$0xff] %v18122_v51  ;;  %v5950_v51 = vand.u32 4294901760, %v5949_v37  ;;  %v18143_v13 = vpack.c.bf16 %v6062_v45, %v6055_v18  ;;  %v6068_v0 = vsub.f32 %v21600_v60, %v20587_v22  ;;  %v20586_v9 = vand.u32 4294901760, %v17926_v1 }
 0x48f   : > { %21599 = vst [vmem:[#allocation108_spill] sm:$0xff] %v18136_v49  ;;  %v20588_v54 = vand.u32 4294901760, %v17937_v41  ;;  %v6075_v3 = vsub.f32 %v21601_v44, %v20585_v31  ;;  %v5956_v7 = vsub.f32 %v17924_v32, %v20584_v29  ;;  %v20590_v25 = vand.u32 4294901760, %v17939_v46 }
 0x490   : > { %v18150_v55 = vpack.c.bf16 %v5950_v51, %v5943_v2  ;;  %v6069_v34 = vand.u32 4294901760, %v6068_v0  ;;  %v5963_v8 = vsub.f32 %v17926_v1, %v20586_v9  ;;  %v20591_v37 = vand.u32 4294901760, %v17943_v14 }
 0x491   : > { %v6082_v51 = vsub.f32 %v17937_v41, %v20588_v54  ;;  %v6076_v18 = vand.u32 4294901760, %v6075_v3  ;;  %v5957_v45 = vand.u32 4294901760, %v5956_v7  ;;  %v6089_v2 = vsub.f32 %v17939_v46, %v20590_v25 }
 0x492   : > { %v20592_v29 = vand.u32 4294901760, %v17946_v33  ;;  %v5964_v31 = vand.u32 4294901760, %v5963_v8  ;;  %v5970_v9 = vsub.f32 %v17943_v14, %v20591_v37  ;;  %v21628_v53 = vand.u32 4294901760, %v21627_v35 }
 0x493   : > { %v6083_v0 = vand.u32 4294901760, %v6082_v51  ;;  %v18175_v54 = vpack.c.bf16 %v6076_v18, %v6069_v34  ;;  %v6090_v58 = vand.u32 4294901760, %v6089_v2 }
 0x494   : > { %v5977_v3 = vsub.f32 %v17946_v33, %v20592_v29  ;;  %v18182_v25 = vpack.c.bf16 %v5964_v31, %v5957_v45  ;;  %v5971_v8 = vand.u32 4294901760, %v5970_v9  ;;  %v21603_v29 = vld [vmem:[#allocation48_spill] sm:$0xff]  ;;  %v21605_v9 = vld [vmem:[#allocation49_spill] sm:$0xff]  ;;  %v21606_v45 = vld [vmem:[#allocation50_spill] sm:$0xff] }
 0x495   : > { %v18188_v34 = vpack.c.bf16 %v6090_v58, %v6083_v0  ;;  %v21604_v31 = vld [vmem:[#allocation72_spill] sm:$0xff]  ;;  %v21607_v58 = vld [vmem:[#allocation51_spill] sm:$0xff] }
 0x496   : > { %v5978_v18 = vand.u32 4294901760, %v5977_v3 }
 0x498   : > { %v18202_v0 = vpack.c.bf16 %v5978_v18, %v5971_v8  ;;  %v5313_v8 = vstv %s9269_s27  ;;  %v21602_v18 = vld [vmem:[#allocation47_spill] sm:$0xff]  ;;  %s13835_s27 = sshll.u32 %s13948_s22, 4  ;;  %s13836_s27 = int_to_ptr.vmem [resolvable:$false] %s13835_s27 }
 0x499   : > { %v5314_v3 = vadd.s32 %v5313_v8, %v21602_v18  ;;  %v5315_v2 = vadd.s32 %v5313_v8, %v21603_v29  ;;  %v5316_v22 = vadd.s32 %v5313_v8, %v21605_v9  ;;  %v5317_v41 = vadd.s32 %v5313_v8, %v21606_v45  ;;  %s13837_s17 = scalar_lea.vmem %s13836_s27, 2048  ;;  %p13838_p5 = scmp.lt.s32.totalorder %s20003_s1, %s13836_s27 }
 0x49a   : > { %v18224_v14 = vadd.s32 %v5313_v8, %v21607_v58  ;;  %p13839_p7 = scmp.lt.s32.totalorder %s13837_s17, %s13831_s9 }
 0x49b   : > { %vm5323_vm0 = vcmp.ge.s32.totalorder %v5314_v3, 0  ;;  %vm5332_vm10 = vcmp.lt.s32.totalorder %v5314_v3, 120  ;;  %vm5324_vm12 = vcmp.ge.s32.totalorder %v5315_v2, 0  ;;  %vm5333_vm13 = vcmp.lt.s32.totalorder %v5315_v2, 120  ;;  %v21608_v3 = vld [vmem:[#allocation38_spill] sm:$0xff] }
 0x49c   : > { %vm5341_vm11 = vmand %vm5323_vm0, %vm5332_vm10  ;;  %vm5325_vm15 = vcmp.ge.s32.totalorder %v5316_v22, 0  ;;  %vm5334_vm1 = vcmp.lt.s32.totalorder %v5316_v22, 120  ;;  %vm5326_vm2 = vcmp.ge.s32.totalorder %v5317_v41, 0  ;;  %vm5335_vm3 = vcmp.lt.s32.totalorder %v5317_v41, 120  ;;  %p13840_p11 = por %p13839_p7, %p13838_p5 }
 0x49d   : > { %vm18227_vm14 = vmand %vm5324_vm12, %vm5333_vm13  ;;  %vm5327_vm4 = vcmp.ge.s32.totalorder %v18224_v14, 0  ;;  %vm5336_vm9 = vcmp.lt.s32.totalorder %v18224_v14, 120  ;;  %v18274_v22 = vadd.s32 %v5313_v8, %v21630_v10  ;;  %v21631_v10 = vld [vmem:[#allocation40_spill] sm:$0xff] }
 0x49e   : > { %vm5343_vm0 = vmand %vm5325_vm15, %vm5334_vm1  ;;  %p13841_p1 = pnand %p13840_p11, %p13834_p10 }
 0x49f   : > { %vm18301_vm12 = vmand %vm5326_vm2, %vm5335_vm3 }
 0x4a0   : > { %vm18348_vm15 = vmand %vm5327_vm4, %vm5336_vm9  ;;  %vm5331_vm4 = vcmp.ge.s32.totalorder %v18274_v22, 0  ;;  %vm5340_vm9 = vcmp.lt.s32.totalorder %v18274_v22, 120 }
 0x4ba   : > { %v5251_v37 = vpop.f32.mrb[108].mxu0 }
 0x4bb   : > { %v13346_v51 = vadd.f32 %v5251_v37, %v21604_v31  ;;  %v11784_v7 = vpop.f32.mrb[109].mxu0 }
 0x4bd   : > { %v5303_v46 = vmax.f32 %v13346_v51, 0.0  ;;  %v21611_v51 = vld [vmem:[#allocation52_spill] sm:$0xff] }
 0x4be   : > { %v5257_v18 = vpop.f32.mrb[110].mxu0  ;;  %v18234_v2 = vadd.s32 %v5313_v8, %v21611_v51 }
 0x4bf   : > { %v5368_v33 = vsel %vm5341_vm11, %v5303_v46, 0.0  ;;  %v13347_v32 = vadd.f32 %v5257_v18, %v21608_v3  ;;  %v11787_v29 = vpop.f32.mrb[111].mxu0  ;;  %v21612_v46 = vld [vmem:[#allocation53_spill] sm:$0xff]  ;;  %v21613_v18 = vld [vmem:[#allocation87_spill] sm:$0xff] }
 0x4c0   : > { %5377 = vst [vmem:[#allocation2] sm:$0xff] %v5368_v33  ;;  %v18237_v31 = vadd.s32 %v5313_v8, %v21612_v46  ;;  %v5394_v9 = vrot.slane %v5368_v33, 1  ;;  %v5427_v45 = vrot.slane %v5368_v33, 2  ;;  %v21614_v3 = vand.u32 4294901760, %v21613_v18  ;;  %v21615_v29 = vld [vmem:[#allocation19_spill] sm:$0xff] }
 0x4c1   : > { %v5304_v7 = vmax.f32 %v13347_v32, 0.0  ;;  %v21616_v1 = vand.u32 4294901760, %v21615_v29  ;;  %v21618_v32 = vld [vmem:[#allocation54_spill] sm:$0xff]  ;;  %v5460_v43 = vrot.slane %v5368_v33, 3  ;;  %v5493_v21 = vrot.slane %v5368_v33, 4  ;;  %v21619_v46 = vld [vmem:[#allocation39_spill] sm:$0xff] }
 0x4c2   : > { %v5263_v58 = vpop.f32.mrb[112].mxu0  ;;  %v18246_v44 = vadd.s32 %v5313_v8, %v21618_v32  ;;  %vm5328_vm10 = vcmp.ge.s32.totalorder %v18234_v2, 0  ;;  %vm5337_vm11 = vcmp.lt.s32.totalorder %v18234_v2, 120  ;;  %v21620_v33 = vld [vmem:[#allocation20_spill] sm:$0xff]  ;;  %v21625_v32 = vld [vmem:[#allocation37_spill] sm:$0xff]  ;;  %vm5329_vm13 = vcmp.ge.s32.totalorder %v18237_v31, 0 }
 0x4c3   : > { %v18243_v60 = vpack.c.bf16 %v21616_v1, %v21614_v3  ;;  %v18250_v51 = vsel %vm18227_vm14, %v5304_v7, 0.0  ;;  %v13348_v20 = vadd.f32 %v5263_v58, %v21619_v46  ;;  %v11790_v24 = vpop.f32.mrb[113].mxu0  ;;  %v21621_v37 = vand.u32 4294901760, %v21620_v33  ;;  %v21622_v7 = vld [vmem:[#allocation21_spill] sm:$0xff]  ;;  %vm18396_vm3 = vmand %vm5328_vm10, %vm5337_vm11 }
 0x4c4   : > { %v5395_v62 = vrot.slane %v18250_v51, 1  ;;  %v5428_v18 = vrot.slane %v18250_v51, 2  ;;  %v5461_v29 = vrot.slane %v18250_v51, 3  ;;  %v5494_v1 = vrot.slane %v18250_v51, 4  ;;  %vm18528_vm11 = vmand %vm5331_vm4, %vm5340_vm9 }
 0x4c5   : > { %21617 = vst [vmem:[#allocation109_spill] sm:$0xff] %v18243_v60  ;;  %v5305_v3 = vmax.f32 %v13348_v20, 0.0  ;;  %v21623_v24 = vand.u32 4294901760, %v21622_v7  ;;  %v21626_v46 = vand.u32 4294901760, %v21625_v32  ;;  %vm5338_vm14 = vcmp.lt.s32.totalorder %v18237_v31, 120 }
 0x4c6   : > { %v5396_v20 = vsel %vm1424_vm5, %v5394_v9, %v5395_v62  ;;  %v18278_v30 = vsel %vm1460_vm6, %v5427_v45, %v5428_v18  ;;  %v18281_v33 = vsel %vm1496_vm7, %v5460_v43, %v5461_v29  ;;  %v5269_v7 = vpop.f32.mrb[114].mxu0  ;;  %vm5330_vm1 = vcmp.ge.s32.totalorder %v18246_v44, 0 }
 0x4c7   : > { %v18265_v58 = vpack.c.bf16 %v21623_v24, %v21621_v37  ;;  %v18271_v27 = vpack.c.bf16 %v21628_v53, %v21626_v46  ;;  %v5495_v37 = vsel %vm1532_vm8, %v5493_v21, %v5494_v1  ;;  %5452 = vst [vmem:[#allocation2 + $0x10] sm:$0xff] %v18278_v30  ;;  %5485 = vst [vmem:[#allocation2 + $0x18] sm:$0xff] %v18281_v33  ;;  %v18286_v53 = vsel %vm5343_vm0, %v5305_v3, 0.0  ;;  %v11793_v8 = vpop.f32.mrb[115].mxu0  ;;  %v5526_v43 = vld [vmem:[#allocation2] sm:$0xff] }
 0x4c8   : > { %5518 = vst [vmem:[#allocation2 + $0x20] sm:$0xff] %v5495_v37  ;;  %v13349_v35 = vadd.f32 %v5269_v7, %v21631_v10  ;;  %v18290_v9 = vand.u32 4294901760, %v18281_v33  ;;  %v18293_v45 = vand.u32 4294901760, %v18278_v30  ;;  %v5397_v21 = vrot.slane %v18286_v53, 1  ;;  %vm18440_vm0 = vmand %vm5329_vm13, %vm5338_vm14 }
 0x4c9   : > { %21624 = vst [vmem:[#allocation110_spill] sm:$0xff] %v18265_v58  ;;  %21629 = vst [vmem:[#allocation47_spill] sm:$0xff] %v18271_v27  ;;  %v5430_v24 = vrot.slane %v18286_v53, 2  ;;  %v5463_v32 = vrot.slane %v18286_v53, 3  ;;  %v5496_v46 = vrot.slane %v18286_v53, 4  ;;  %v18308_v7 = vand.u32 4294901760, %v5396_v20 }
 0x4ca   : > { %21632 = vst [vmem:[#allocation48_spill] sm:$0xff] %v18290_v9  ;;  %21633 = vst [vmem:[#allocation72_spill] sm:$0xff] %v18293_v45  ;;  %v5306_v37 = vmax.f32 %v13349_v35, 0.0  ;;  %7347 = vmatprep.mubr.f32.mxu0 %v18290_v9  ;;  %v18310_v10 = vand.u32 4294901760, %v5526_v43  ;;  %v18313_v8 = vand.u32 4294901760, %v18250_v51  ;;  %v18316_v41 = vsel %vm1424_vm5, %v5395_v62, %v5397_v21  ;;  %v5275_v23 = vpop.f32.mrb[116].mxu0 }
 0x4cb   : > { %21636 = vst [vmem:[#allocation49_spill] sm:$0xff] %v18308_v7  ;;  %v18319_v6 = vsel %vm1460_vm6, %v5428_v18, %v5430_v24  ;;  %v18322_v35 = vsel %vm1496_vm7, %v5461_v29, %v5463_v32  ;;  %v5497_v36 = vsel %vm1532_vm8, %v5494_v1, %v5496_v46  ;;  %7349 = vmatmul.mubr.f32.vlgmr.msra.gmra.mrb[126].mxu0 %v18293_v45  ;;  %v11796_v47 = vpop.f32.mrb[117].mxu0  ;;  %vm5339_vm2 = vcmp.lt.s32.totalorder %v18246_v44, 120 }
 0x4cc   : > { %21637 = vst [vmem:[#allocation50_spill] sm:$0xff] %v18310_v10  ;;  %21638 = vst [vmem:[#allocation51_spill] sm:$0xff] %v18313_v8  ;;  %v18330_v62 = vsel %vm18301_vm12, %v5306_v37, 0.0  ;;  %v13350_v18 = vadd.f32 %v5275_v23, %v21639_v50  ;;  %13036 = vmatpush3.bf16.msra.mxu0 %v18243_v60  ;;  %v18335_v29 = vand.u32 4294901760, %v18322_v35  ;;  %v18338_v1 = vand.u32 4294901760, %v18319_v6 }
 0x4cd   : > { %5453 = vst [vmem:[#allocation2 + $0x38] sm:$0xff] %v18319_v6  ;;  %5486 = vst [vmem:[#allocation2 + $0x40] sm:$0xff] %v18322_v35  ;;  %v5399_v63 = vrot.slane %v18330_v62, 1  ;;  %v5432_v11 = vrot.slane %v18330_v62, 2  ;;  %v5498_v3 = vrot.slane %v18330_v62, 4  ;;  %13038 = vmatprep.subr.bf16.mxu0 %v18265_v58  ;;  %v18357_v50 = vsub.f32 %v5396_v20, %v18308_v7 }
 0x4ce   : > { %5519 = vst [vmem:[#allocation2 + $0x48] sm:$0xff] %v5497_v36  ;;  %21640 = vst [vmem:[#allocation38_spill] sm:$0xff] %v18335_v29  ;;  %v5465_v36 = vrot.slane %v18330_v62, 3  ;;  %v5307_v23 = vmax.f32 %v13350_v18, 0.0  ;;  %7354 = vmatprep.mubr.f32.mxu0 %v18335_v29  ;;  %v18360_v37 = vsub.f32 %v5526_v43, %v18310_v10  ;;  %v18363_v14 = vand.u32 4294901760, %v18316_v41  ;;  %v5281_v38 = vpop.f32.mrb[118].mxu0 }
 0x4cf   : > { %21641 = vst [vmem:[#allocation52_spill] sm:$0xff] %v18338_v1  ;;  %21644 = vst [vmem:[#allocation53_spill] sm:$0xff] %v18357_v50  ;;  %v18366_v52 = vsel %vm1424_vm5, %v5397_v21, %v5399_v63  ;;  %v18369_v18 = vsel %vm1460_vm6, %v5430_v24, %v5432_v11  ;;  %v5499_v59 = vsel %vm1532_vm8, %v5496_v46, %v5498_v3  ;;  %7356 = vmatmul.mubr.f32.gmra.mrb[128].mxu0 %v18338_v1  ;;  %v21648_v43 = vld [vmem:[#allocation42_spill] sm:$0xff]  ;;  %v11799_v24 = vpop.f32.mrb[119].mxu0 }
 0x4d0   : > { %21645 = vst [vmem:[#allocation87_spill] sm:$0xff] %v18360_v37  ;;  %21646 = vst [vmem:[#allocation19_spill] sm:$0xff] %v18363_v14  ;;  %v18372_v26 = vsel %vm1496_vm7, %v5463_v32, %v5465_v36  ;;  %v18380_v20 = vsel %vm18348_vm15, %v5307_v23, 0.0  ;;  %v13351_v21 = vadd.f32 %v5281_v38, %v21648_v43  ;;  %13040 = vmatpush3.bf16.msra.mxu0 %v18271_v27  ;;  %v20651_v32 = vand.u32 4294901760, %v18357_v50 }
 0x4d1   : > { %21647 = vst [vmem:[#allocation54_spill] sm:$0xff] %v18369_v18  ;;  %5454 = vst [vmem:[#allocation2 + $0x60] sm:$0xff] %v18369_v18  ;;  %v18386_v46 = vand.u32 4294901760, %v18372_v26  ;;  %v5401_v19 = vrot.slane %v18380_v20, 1  ;;  %v5434_v10 = vrot.slane %v18380_v20, 2  ;;  %v5500_v47 = vrot.slane %v18380_v20, 4  ;;  %13042 = vmatprep.subr.bf16.mxu0 %v17965_v40 }
 0x4d2   : > { %5487 = vst [vmem:[#allocation2 + $0x68] sm:$0xff] %v18372_v26  ;;  %5520 = vst [vmem:[#allocation2 + $0x70] sm:$0xff] %v5499_v59  ;;  %v5467_v59 = vrot.slane %v18380_v20, 3  ;;  %v5308_v23 = vmax.f32 %v13351_v21, 0.0  ;;  %v5750_v43 = vsub.f32 %v18357_v50, %v20651_v32  ;;  %v18409_v2 = vand.u32 4294901760, %v18369_v18  ;;  %v5287_v50 = vpop.f32.mrb[120].mxu0 }
 0x4d3   : > { %21649 = vst [vmem:[#allocation39_spill] sm:$0xff] %v18386_v46  ;;  %7361 = vmatprep.mubr.f32.mxu0 %v18386_v46  ;;  %v18412_v7 = vsel %vm1424_vm5, %v5399_v63, %v5401_v19  ;;  %v18415_v21 = vsel %vm1460_vm6, %v5432_v11, %v5434_v10  ;;  %v5501_v32 = vsel %vm1532_vm8, %v5498_v3, %v5500_v47  ;;  %v21653_v63 = vld [vmem:[#allocation75_spill] sm:$0xff]  ;;  %v11802_v48 = vpop.f32.mrb[121].mxu0  ;;  %v21654_v42 = vand.u32 4294901760, %v18360_v37  ;;  %vm18484_vm10 = vmand %vm5330_vm1, %vm5339_vm2 }
 0x4d4   : > { %21652 = vst [vmem:[#allocation20_spill] sm:$0xff] %v18409_v2  ;;  %v18418_v40 = vsel %vm1496_vm7, %v5465_v36, %v5467_v59  ;;  %5455 = vst [vmem:[#allocation2 + $0x88] sm:$0xff] %v18415_v21  ;;  %v18425_v24 = vsel %vm18396_vm3, %v5308_v23, 0.0  ;;  %v13352_v27 = vadd.f32 %v5287_v50, %v21653_v63  ;;  %v5751_v11 = vand.u32 4294901760, %v5750_v43  ;;  %7363 = vmatmul.mubr.f32.gmra.mrb[130].mxu0 %v18409_v2 }
 0x4d5   : > { %5488 = vst [vmem:[#allocation2 + $0x90] sm:$0xff] %v18418_v40  ;;  %5521 = vst [vmem:[#allocation2 + $0x98] sm:$0xff] %v5501_v32  ;;  %v5756_v36 = vsub.f32 %v18360_v37, %v21654_v42  ;;  %v5403_v3 = vrot.slane %v18425_v24, 1  ;;  %v5436_v18 = vrot.slane %v18425_v24, 2  ;;  %v5469_v32 = vrot.slane %v18425_v24, 3  ;;  %13044 = vmatpush3.bf16.msra.mxu0 %v17971_v4 }
 0x4d6   : > { %v5502_v38 = vrot.slane %v18425_v24, 4  ;;  %v5309_v42 = vmax.f32 %v13352_v27, 0.0  ;;  %5752 = vmatprep.mubr.f32.mxu1 %v5751_v11  ;;  %v18447_v23 = vsub.f32 %v18316_v41, %v18363_v14  ;;  %v18450_v43 = vand.u32 4294901760, %v18418_v40  ;;  %13046 = vmatprep.subr.bf16.mxu0 %v17996_v56  ;;  %v5293_v11 = vpop.f32.mrb[122].mxu0 }
 0x4d7   : > { %v5757_v50 = vand.u32 4294901760, %v5756_v36  ;;  %v18454_v31 = vsel %vm1424_vm5, %v5401_v19, %v5403_v3  ;;  %v18457_v63 = vsel %vm1460_vm6, %v5434_v10, %v5436_v18  ;;  %v18460_v37 = vsel %vm1496_vm7, %v5467_v59, %v5469_v32  ;;  %v21659_v19 = vld [vmem:[#allocation44_spill] sm:$0xff]  ;;  %v11805_v14 = vpop.f32.mrb[123].mxu0 }
 0x4d8   : > { %21657 = vst [vmem:[#allocation21_spill] sm:$0xff] %v18447_v23  ;;  %21658 = vst [vmem:[#allocation37_spill] sm:$0xff] %v18450_v43  ;;  %v5503_v27 = vsel %vm1532_vm8, %v5500_v47, %v5502_v38  ;;  %v18467_v41 = vsel %vm18440_vm0, %v5309_v42, 0.0  ;;  %v13353_v36 = vadd.f32 %v5293_v11, %v21659_v19  ;;  %v20665_v10 = vand.u32 4294901760, %v18447_v23  ;;  %7368 = vmatprep.mubr.f32.mxu0 %v18450_v43 }
 0x4d9   : > { %5456 = vst [vmem:[#allocation2 + $0xb0] sm:$0xff] %v18457_v63  ;;  %5489 = vst [vmem:[#allocation2 + $0xb8] sm:$0xff] %v18460_v37  ;;  %5758 = vmatmul.mubr.f32.vlgmr.msra.gmra.mrb[126].mxu1 %v5757_v50  ;;  %v18474_v59 = vsub.f32 %v18250_v51, %v18313_v8  ;;  %v5405_v47 = vrot.slane %v18467_v41, 1  ;;  %v5471_v48 = vrot.slane %v18467_v41, 3  ;;  %v5504_v42 = vrot.slane %v18467_v41, 4  ;;  %13048 = vmatpush3.bf16.msra.mxu0 %v18008_v16 }
 0x4da   : > { %5522 = vst [vmem:[#allocation2 + $0xc0] sm:$0xff] %v5503_v27  ;;  %v5438_v27 = vrot.slane %v18467_v41, 2  ;;  %12780 = vmatpush3.bf16.msra.mxu1 %v18010_v39  ;;  %v5310_v51 = vmax.f32 %v13353_v36, 0.0  ;;  %v5765_v50 = vsub.f32 %v18447_v23, %v20665_v10  ;;  %v18496_v19 = vand.u32 4294901760, %v18415_v21  ;;  %13050 = vmatprep.subr.bf16.mxu0 %v18025_v5  ;;  %v5299_v23 = vpop.f32.mrb[124].mxu0 }
 0x4db   : > { %21660 = vst [vmem:[#allocation23_spill] sm:$0xff] %v18474_v59  ;;  %12782 = vmatprep.subr.bf16.mxu1 %v18015_v15  ;;  %v18500_v44 = vsel %vm1424_vm5, %v5403_v3, %v5405_v47  ;;  %v18506_v36 = vsel %vm1496_vm7, %v5469_v32, %v5471_v48  ;;  %v5505_v10 = vsel %vm1532_vm8, %v5502_v38, %v5504_v42  ;;  %v11808_v11 = vpop.f32.mrb[125].mxu0  ;;  %v21664_v8 = vand.u32 4294901760, %v18474_v59 }
 0x4dc   : > { %21663 = vst [vmem:[#allocation55_spill] sm:$0xff] %v18496_v19  ;;  %v18503_v39 = vsel %vm1460_vm6, %v5436_v18, %v5438_v27  ;;  %5490 = vst [vmem:[#allocation2 + $0xe0] sm:$0xff] %v18506_v36  ;;  %v18513_v15 = vsel %vm18484_vm10, %v5310_v51, 0.0  ;;  %v13354_v3 = vadd.f32 %v5299_v23, %v17954_v12  ;;  %v5766_v18 = vand.u32 4294901760, %v5765_v50  ;;  %7370 = vmatmul.mubr.f32.gmra.mrb[132].mxu0 %v18496_v19  ;;  %v21674_v12 = vld [vmem:[#allocation138_spill] sm:$0xff] }
 0x4dd   : > { %5457 = vst [vmem:[#allocation2 + $0xd8] sm:$0xff] %v18503_v39  ;;  %5523 = vst [vmem:[#allocation2 + $0xe8] sm:$0xff] %v5505_v10  ;;  %v5771_v32 = vsub.f32 %v18474_v59, %v21664_v8  ;;  %v5407_v38 = vrot.slane %v18513_v15, 1  ;;  %v5440_v5 = vrot.slane %v18513_v15, 2  ;;  %v5473_v10 = vrot.slane %v18513_v15, 3  ;;  %13052 = vmatpush3.bf16.msra.mxu0 %v18039_v17 }
 0x4de   : > { %v5506_v14 = vrot.slane %v18513_v15, 4  ;;  %12784 = vmatpush3.bf16.msra.mxu1 %v18027_v61  ;;  %v5311_v8 = vmax.f32 %v13354_v3, 0.0  ;;  %5767 = vmatprep.mubr.f32.mxu1 %v5766_v18  ;;  %v18535_v51 = vand.u32 4294901760, %v18366_v52  ;;  %v18539_v50 = vand.u32 4294901760, %v18460_v37  ;;  %v21669_v18 = vld [vmem:[#allocation137_spill] sm:$0xff] }
 0x4df   : > { %v5772_v23 = vand.u32 4294901760, %v5771_v32  ;;  %12786 = vmatprep.subr.bf16.mxu1 %v18060_v28  ;;  %v18542_v22 = vsel %vm1424_vm5, %v5405_v47, %v5407_v38  ;;  %v18545_v11 = vsel %vm1460_vm6, %v5438_v27, %v5440_v5  ;;  %v18548_v61 = vsel %vm1496_vm7, %v5471_v48, %v5473_v10  ;;  %13054 = vmatprep.subr.bf16.mxu0 %v21669_v18  ;;  %v21673_v18 = vld [vmem:[#allocation139_spill] sm:$0xff] }
 0x4e0   : > { %21667 = vst [vmem:[#allocation40_spill] sm:$0xff] %v18535_v51  ;;  %21668 = vst [vmem:[#allocation41_spill] sm:$0xff] %v18539_v50  ;;  %v5507_v3 = vsel %vm1532_vm8, %v5504_v42, %v5506_v14  ;;  %v5376_v28 = vsel %vm18528_vm11, %v5311_v8, 0.0  ;;  %v18558_v47 = vsub.f32 %v18366_v52, %v18535_v51  ;;  %7375 = vmatprep.mubr.f32.mxu0 %v18539_v50  ;;  %v18562_v27 = vand.u32 4294901760, %v18286_v53  ;;  %v21677_v51 = vld [vmem:[#allocation140_spill] sm:$0xff] }
 0x4e1   : > { %5458 = vst [vmem:[#allocation2 + $0x100] sm:$0xff] %v18545_v11  ;;  %5491 = vst [vmem:[#allocation2 + $0x108] sm:$0xff] %v18548_v61  ;;  %5773 = vmatmul.mubr.f32.gmra.mrb[128].mxu1 %v5772_v23  ;;  %v18565_v48 = vand.u32 4294901760, %v18457_v63  ;;  %v5409_v42 = vrot.slane %v5376_v28, 1  ;;  %v5442_v32 = vrot.slane %v5376_v28, 2  ;;  %v5475_v59 = vrot.slane %v5376_v28, 3  ;;  %13056 = vmatpush3.bf16.msra.mxu0 %v21674_v12 }
 0x4e2   : > { %5524 = vst [vmem:[#allocation2 + $0x110] sm:$0xff] %v5507_v3  ;;  %21670 = vst [vmem:[#allocation42_spill] sm:$0xff] %v18558_v47  ;;  %v5508_v3 = vrot.slane %v5376_v28, 4  ;;  %12788 = vmatpush3.bf16.msra.mxu1 %v21673_v18  ;;  %v18572_v52 = vsub.f32 %v18286_v53, %v18562_v27  ;;  %v18576_v23 = vand.u32 4294901760, %v18412_v7  ;;  %v18580_v17 = vand.u32 4294901760, %v18506_v36  ;;  %v21691_v12 = vld [vmem:[#allocation98_spill] sm:$0xff] }
 0x4e3   : > { %21671 = vst [vmem:[#allocation75_spill] sm:$0xff] %v18562_v27  ;;  %21672 = vst [vmem:[#allocation44_spill] sm:$0xff] %v18565_v48  ;;  %7377 = vmatmul.mubr.f32.gmra.mrb[134].mxu0 %v18565_v48  ;;  %12790 = vmatprep.subr.bf16.mxu1 %v21677_v51  ;;  %v18583_v18 = vsel %vm1424_vm5, %v5407_v38, %v5409_v42  ;;  %v18586_v28 = vsel %vm1460_vm6, %v5440_v5, %v5442_v32  ;;  %v21679_v27 = vld [vmem:[#allocation56_spill] sm:$0xff]  ;;  %v21680_v51 = vand.u32 4294901760, %v18558_v47 }
 0x4e4   : > { %21675 = vst [vmem:[#allocation139_spill] sm:$0xff] %v18572_v52  ;;  %21676 = vst [vmem:[#allocation141_spill] sm:$0xff] %v18576_v23  ;;  %v18589_v8 = vsel %vm1496_vm7, %v5473_v10, %v5475_v59  ;;  %v5509_v53 = vsel %vm1532_vm8, %v5506_v14, %v5508_v3  ;;  %13058 = vmatprep.subr.bf16.mxu0 %v21679_v27  ;;  %v20684_v42 = vand.u32 4294901760, %v18572_v52  ;;  %7382 = vmatprep.mubr.f32.mxu0 %v18580_v17  ;;  %v21683_v10 = vld [vmem:[#allocation62_spill] sm:$0xff]  ;;  %v21690_v27 = vld [vmem:[#allocation105_spill] sm:$0xff] }
 0x4e5   : > { %21678 = vst [vmem:[#allocation140_spill] sm:$0xff] %v18580_v17  ;;  %5459 = vst [vmem:[#allocation2 + $0x128] sm:$0xff] %v18586_v28  ;;  %v5780_v38 = vsub.f32 %v18558_v47, %v21680_v51  ;;  %v18601_v5 = vsub.f32 %v18412_v7, %v18576_v23  ;;  %v18605_v59 = vand.u32 4294901760, %v18330_v62  ;;  %v18609_v14 = vand.u32 4294901760, %v18503_v39  ;;  %v21688_v7 = vld [vmem:[#allocation97_spill] sm:$0xff] }
 0x4e6   : > { %5492 = vst [vmem:[#allocation2 + $0x130] sm:$0xff] %v18589_v8  ;;  %5525 = vst [vmem:[#allocation2 + $0x138] sm:$0xff] %v5509_v53  ;;  %12792 = vmatpush3.bf16.msra.mxu1 %v21683_v10  ;;  %v18612_v32 = vand.u32 4294901760, %v18454_v31  ;;  %v18615_v3 = vand.u32 4294901760, %v18548_v61  ;;  %v18618_v53 = vand.u32 4294901760, %v18380_v20  ;;  %13060 = vmatpush3.bf16.msra.mxu0 %v21688_v7  ;;  %v5786_v47 = vsub.f32 %v18572_v52, %v20684_v42 }
 0x4e7   : > { %21681 = vst [vmem:[#allocation142_spill] sm:$0xff] %v18601_v5  ;;  %21682 = vst [vmem:[#allocation143_spill] sm:$0xff] %v18605_v59  ;;  %v5781_v51 = vand.u32 4294901760, %v5780_v38  ;;  %v20689_v10 = vand.u32 4294901760, %v18601_v5  ;;  %v18627_v23 = vsub.f32 %v18330_v62, %v18605_v59  ;;  %12794 = vmatprep.subr.bf16.mxu1 %v21690_v27  ;;  %13062 = vmatprep.subr.bf16.mxu0 %v21691_v12  ;;  %v18641_v42 = vand.u32 4294901760, %v18545_v11 }
 0x4e8   : > { %21684 = vst [vmem:[#allocation62_spill] sm:$0xff] %v18609_v14  ;;  %21685 = vst [vmem:[#allocation144_spill] sm:$0xff] %v18612_v32  ;;  %7384 = vmatmul.mubr.f32.gmra.mrb[136].mxu0 %v18609_v14  ;;  %v18634_v7 = vsub.f32 %v18454_v31, %v18612_v32  ;;  %v18638_v38 = vsub.f32 %v18380_v20, %v18618_v53  ;;  %v18644_v62 = vand.u32 4294901760, %v18500_v44  ;;  %v5787_v27 = vand.u32 4294901760, %v5786_v47 }
 0x4e9   : > { %21686 = vst [vmem:[#allocation145_spill] sm:$0xff] %v18615_v3  ;;  %21687 = vst [vmem:[#allocation146_spill] sm:$0xff] %v18618_v53  ;;  %5782 = vmatprep.mubr.f32.mxu1 %v5781_v51  ;;  %v5795_v52 = vsub.f32 %v18601_v5, %v20689_v10  ;;  %v20692_v12 = vand.u32 4294901760, %v18627_v23  ;;  %7389 = vmatprep.mubr.f32.mxu0 %v18615_v3  ;;  %v18652_v31 = vand.u32 4294901760, %v18589_v8  ;;  %v18662_v51 = vand.u32 4294901760, %v18425_v24 }
 0x4ea   : > { %21689 = vst [vmem:[#allocation147_spill] sm:$0xff] %v18627_v23  ;;  %21692 = vst [vmem:[#allocation105_spill] sm:$0xff] %v18634_v7  ;;  %v20695_v20 = vand.u32 4294901760, %v18634_v7  ;;  %12796 = vmatpush3.bf16.msra.mxu1 %v18138_v57  ;;  %v18659_v47 = vsub.f32 %v18500_v44, %v18644_v62  ;;  %13064 = vmatpush3.bf16.msra.mxu0 %v18136_v49  ;;  %v18671_v57 = vsub.f32 %v18281_v33, %v18290_v9 }
 0x4eb   : > { %21693 = vst [vmem:[#allocation148_spill] sm:$0xff] %v18638_v38  ;;  %21694 = vst [vmem:[#allocation149_spill] sm:$0xff] %v18641_v42  ;;  %5788 = vmatmul.mubr.f32.gmra.mrb[130].mxu1 %v5787_v27  ;;  %v5796_v10 = vand.u32 4294901760, %v5795_v52  ;;  %v5801_v5 = vsub.f32 %v18627_v23, %v20692_v12  ;;  %12798 = vmatprep.subr.bf16.mxu1 %v18143_v13  ;;  %v18680_v52 = vsub.f32 %v18425_v24, %v18662_v51  ;;  %v21700_v13 = vld [vmem:[#allocation124_spill] sm:$0xff] }
 0x4ec   : > { %21695 = vst [vmem:[#allocation150_spill] sm:$0xff] %v18644_v62  ;;  %21696 = vst [vmem:[#allocation151_spill] sm:$0xff] %v18652_v31  ;;  %v5810_v44 = vsub.f32 %v18634_v7, %v20695_v20  ;;  %7391 = vmatmul.mubr.f32.gmra.mrb[138].mxu0 %v18641_v42  ;;  %v18683_v27 = vand.u32 4294901760, %v18586_v28  ;;  %13098 = vmatprep.subr.bf16.mxu0 %v21700_v13  ;;  %v21701_v12 = vand.u32 4294901760, %v18638_v38  ;;  %v18691_v20 = vand.u32 4294901760, %v18542_v22 }
 0x4ed   : > { %21697 = vst [vmem:[#allocation152_spill] sm:$0xff] %v18662_v51  ;;  %21698 = vst [vmem:[#allocation153_spill] sm:$0xff] %v18671_v57  ;;  %5797 = vmatprep.mubr.f32.mxu1 %v5796_v10  ;;  %v5802_v33 = vand.u32 4294901760, %v5801_v5  ;;  %7396 = vmatprep.mubr.f32.mxu0 %v18652_v31  ;;  %v18694_v53 = vand.u32 4294901760, %v18467_v41  ;;  %v18698_v24 = vsub.f32 %v18278_v30, %v18293_v45  ;;  %v21705_v10 = vand.u32 4294901760, %v18659_v47 }
 0x4ee   : > { %21699 = vst [vmem:[#allocation154_spill] sm:$0xff] %v18683_v27  ;;  %v5816_v23 = vsub.f32 %v18638_v38, %v21701_v12  ;;  %21702 = vst [vmem:[#allocation155_spill] sm:$0xff] %v18691_v20  ;;  %v5811_v7 = vand.u32 4294901760, %v5810_v44  ;;  %v20700_v13 = vand.u32 4294901760, %v18680_v52  ;;  %12800 = vmatpush3.bf16.msra.mxu1 %v18150_v55  ;;  %v20701_v12 = vand.u32 4294901760, %v18671_v57  ;;  %v21719_v57 = vld [vmem:[#allocation131_spill] sm:$0xff] }
 0x4ef   : > { %21703 = vst [vmem:[#allocation156_spill] sm:$0xff] %v18694_v53  ;;  %21704 = vst [vmem:[#allocation157_spill] sm:$0xff] %v18698_v24  ;;  %v5825_v5 = vsub.f32 %v18659_v47, %v21705_v10  ;;  %5803 = vmatmul.mubr.f32.gmra.mrb[132].mxu1 %v5802_v33  ;;  %v18708_v38 = vsub.f32 %v18542_v22, %v18691_v20  ;;  %12802 = vmatprep.subr.bf16.mxu1 %v18175_v54  ;;  %v18721_v55 = vand.u32 4294901760, %v18583_v18 }
 0x4f0   : > { %v18713_v30 = vsub.f32 %v18467_v41, %v18694_v53  ;;  %v18717_v44 = vsub.f32 %v18322_v35, %v18335_v29  ;;  %5812 = vmatprep.mubr.f32.mxu1 %v5811_v7  ;;  %7398 = vmatmul.mubr.f32.gmra.mrb[140].mxu0 %v18683_v27  ;;  %v18724_v22 = vand.u32 4294901760, %v18513_v15  ;;  %v5817_v33 = vand.u32 4294901760, %v5816_v23 }
 0x4f1   : > { %v5826_v10 = vand.u32 4294901760, %v5825_v5  ;;  %21707 = vst [vmem:[#allocation159_spill] sm:$0xff] %v18721_v55  ;;  %v5831_v54 = vsub.f32 %v18680_v52, %v20700_v13  ;;  %7703 = vmatprep.mubr.f32.mxu0 %v20701_v12  ;;  %v20702_v35 = vand.u32 4294901760, %v18708_v38  ;;  %v20704_v7 = vand.u32 4294901760, %v18698_v24  ;;  %v21718_v24 = vld [vmem:[#allocation47_spill] sm:$0xff] }
 0x4f2   : > { %21706 = vst [vmem:[#allocation158_spill] sm:$0xff] %v18717_v44  ;;  %21708 = vst [vmem:[#allocation160_spill] sm:$0xff] %v18724_v22  ;;  %v20705_v41 = vand.u32 4294901760, %v18713_v30  ;;  %12804 = vmatpush3.bf16.msra.mxu1 %v18182_v25  ;;  %v18737_v5 = vsub.f32 %v18583_v18, %v18721_v55  ;;  %v18741_v23 = vsub.f32 %v18513_v15, %v18724_v22  ;;  %v20703_v25 = vand.u32 4294901760, %v18717_v44 }
 0x4f3   : > { %v18745_v13 = vsub.f32 %v18319_v6, %v18338_v1  ;;  %5818 = vmatmul.mubr.f32.gmra.mrb[134].mxu1 %v5817_v33  ;;  %v5840_v12 = vsub.f32 %v18708_v38, %v20702_v35  ;;  %12806 = vmatprep.subr.bf16.mxu1 %v18188_v34  ;;  %v18754_v18 = vsub.f32 %v18372_v26, %v18386_v46  ;;  %v5832_v15 = vand.u32 4294901760, %v5831_v54 }
 0x4f4   : > { %5827 = vmatprep.mubr.f32.mxu1 %v5826_v10  ;;  %7707 = vmatmul.mubr.f32.vlgmr.msra.gmra.mrb[142].mxu0 %v20704_v7  ;;  %v20706_v6 = vand.u32 4294901760, %v18737_v5  ;;  %v5846_v35 = vsub.f32 %v18713_v30, %v20705_v41  ;;  %v21713_v7 = vld [vmem:[#allocation64_spill] sm:$0xff]  ;;  %v21714_v41 = vld [vmem:[#allocation85_spill] sm:$0xff] }
 0x4f5   : > { %21709 = vst [vmem:[#allocation161_spill] sm:$0xff] %v18745_v13  ;;  %21710 = vst [vmem:[#allocation162_spill] sm:$0xff] %v18754_v18  ;;  %v5841_v33 = vand.u32 4294901760, %v5840_v12  ;;  %7714 = vmatprep.mubr.f32.mxu0 %v20703_v25  ;;  %13100 = vmatpush3.bf16.msra.mxu0 %v18243_v60  ;;  %v20718_v10 = vand.u32 4294901760, %v18745_v13  ;;  %v21711_v12 = vld [vmem:[#allocation54_spill] sm:$0xff]  ;;  %v20716_v25 = vand.u32 4294901760, %v18754_v18  ;;  %v21715_v26 = vpack.c.bf16 %v21713_v7, %v21714_v41 }
 0x4f6   : > { %v5855_v34 = vsub.f32 %v18737_v5, %v20706_v6  ;;  %12808 = vmatpush3.bf16.msra.mxu1 %v18202_v0  ;;  %13102 = vmatprep.subr.bf16.mxu0 %v18265_v58  ;;  %v18774_v54 = vsub.f32 %v21711_v12, %v18409_v2  ;;  %v18782_v6 = vsub.f32 %v18418_v40, %v18450_v43  ;;  %v5847_v44 = vand.u32 4294901760, %v5846_v35  ;;  %v21738_v18 = vld [vmem:[#allocation137_spill] sm:$0xff]  ;;  %v21762_v60 = vld [vmem:[#allocation58_spill] sm:$0xff] }
 0x4f7   : > { %5833 = vmatmul.mubr.f32.gmra.mrb[136].mxu1 %v5832_v15  ;;  %12810 = vmatprep.subr.bf16.mxu1 %v21715_v26  ;;  %v21717_v12 = vand.u32 4294901760, %v18741_v23  ;;  %v18796_v40 = vsub.f32 %v18415_v21, %v18496_v19  ;;  %v21740_v13 = vld [vmem:[#allocation81_spill] sm:$0xff] }
 0x4f8   : > { %21712 = vst [vmem:[#allocation54_spill] sm:$0xff] %v18774_v54  ;;  %21716 = vst [vmem:[#allocation64_spill] sm:$0xff] %v18782_v6  ;;  %5842 = vmatprep.mubr.f32.mxu1 %v5841_v33  ;;  %v5856_v0 = vand.u32 4294901760, %v5855_v34  ;;  %7718 = vmatmul.mubr.f32.gmra.mrb[144].mxu0 %v20718_v10  ;;  %v20715_v26 = vand.u32 4294901760, %v18774_v54  ;;  %v20713_v35 = vand.u32 4294901760, %v18782_v6  ;;  %v18801_v33 = vsub.f32 %v18460_v37, %v18539_v50  ;;  %v18867_v54 = vld [vmem:[#allocation9 + $0x208] sm:$0xff] }
 0x4f9   : > { %v5861_v15 = vsub.f32 %v18741_v23, %v21717_v12  ;;  %7725 = vmatprep.mubr.f32.mxu0 %v20716_v25  ;;  %13104 = vmatpush3.bf16.msra.mxu0 %v21718_v24  ;;  %21720 = vst [vmem:[#allocation85_spill] sm:$0xff] %v18796_v40  ;;  %v20714_v21 = vand.u32 4294901760, %v18796_v40  ;;  %v18813_v37 = vsub.f32 %v18457_v63, %v18565_v48  ;;  %v21734_v40 = vld [vmem:[#allocation66_spill] sm:$0xff]  ;;  %21746 = vst [vmem:[#allocation81_spill] sm:$0xff] %v18867_v54  ;;  %v21756_v24 = vld [vmem:[#allocation93_spill] sm:$0xff] }
 0x4fa   : > { %13106 = vmatprep.subr.bf16.mxu0 %v21719_v57  ;;  %21721 = vst [vmem:[#allocation163_spill] sm:$0xff] %v18801_v33  ;;  %v18820_v12 = vsub.f32 %v18506_v36, %v18580_v17  ;;  %v21731_v36 = vld [vmem:[#allocation19_spill] sm:$0xff]  ;;  %v18839_v10 = vsub.f32 %v18548_v61, %v18615_v3  ;;  %v18854_v61 = vsub.f32 %v18545_v11, %v18641_v42  ;;  %v18891_v58 = vld [vmem:[#allocation9 + $0x210] sm:$0xff] }
 0x4fb   : > { %5848 = vmatmul.mubr.f32.gmra.mrb[138].mxu1 %v5847_v44  ;;  %v5862_v34 = vand.u32 4294901760, %v5861_v15  ;;  %v20717_v44 = vand.u32 4294901760, %v18801_v33  ;;  %21722 = vst [vmem:[#allocation164_spill] sm:$0xff] %v18813_v37  ;;  %v21725_v15 = vld [vmem:[#allocation135_spill] sm:$0xff]  ;;  %v20731_v63 = vand.u32 4294901760, %v18813_v37  ;;  %v21733_v33 = vld [vmem:[#allocation84_spill] sm:$0xff]  ;;  %v18882_v57 = vsub.f32 %v18586_v28, %v18683_v27 }
 0x4fc   : > { %5857 = vmatprep.mubr.f32.mxu1 %v5856_v0  ;;  %7729 = vmatmul.mubr.f32.gmra.mrb[146].mxu0 %v20715_v26  ;;  %v21723_v0 = vld [vmem:[#allocation49_spill] sm:$0xff]  ;;  %v21729_v26 = vld [vmem:[#allocation22_spill] sm:$0xff]  ;;  %v21735_v6 = vpack.c.bf16 %v21733_v33, %v21734_v40  ;;  %v18865_v37 = vld [vmem:[#allocation9 + $0x200] sm:$0xff] }
 0x4fd   : > { %7736 = vmatprep.mubr.f32.mxu0 %v20713_v35  ;;  %13108 = vmatpush3.bf16.msra.mxu0 %v17971_v4  ;;  %21724 = vst [vmem:[#allocation49_spill] sm:$0xff] %v18820_v12  ;;  %v18830_v35 = vsub.f32 %v18503_v39, %v18609_v14  ;;  %v21736_v39 = vld [vmem:[#allocation136_spill] sm:$0xff]  ;;  %21739 = vst [vmem:[#allocation22_spill] sm:$0xff] %v18854_v61 }
 0x4fe   : > { %13110 = vmatprep.subr.bf16.mxu0 %v17996_v56  ;;  %21745 = vst [vmem:[#allocation66_spill] sm:$0xff] %v18865_v37  ;;  %v21752_v56 = vld [vmem:[#allocation75_spill] sm:$0xff]  ;;  %v21753_v4 = vld [vmem:[#allocation56_spill] sm:$0xff] }
 0x4ff   : > { %5863 = vmatmul.mubr.f32.gmra.mrb[140].mxu1 %v5862_v34  ;;  %v21726_v34 = vld [vmem:[#allocation50_spill] sm:$0xff]  ;;  %21727 = vst [vmem:[#allocation165_spill] sm:$0xff] %v18830_v35 }
 0x500   : > { %6093 = vmatprep.mubr.f32.mxu1 %v21723_v0  ;;  %7740 = vmatmul.mubr.f32.gmra.mrb[148].mxu0 %v20714_v21  ;;  %v21728_v21 = vld [vmem:[#allocation67_spill] sm:$0xff] }
 0x501   : > { %7747 = vmatprep.mubr.f32.mxu0 %v20717_v44  ;;  %13112 = vmatpush3.bf16.msra.mxu0 %v18008_v16  ;;  %v21730_v25 = vpack.c.bf16 %v21728_v21, %v21729_v26  ;;  %v20732_v44 = vand.u32 4294901760, %v18820_v12  ;;  %21732 = vst [vmem:[#allocation67_spill] sm:$0xff] %v18839_v10  ;;  %v18863_v12 = vsub.f32 %v18589_v8, %v18652_v31  ;;  %v21750_v16 = vand.u32 4294901760, %v18830_v35  ;;  %v18893_v8 = vld [vmem:[#allocation9 + $0x218] sm:$0xff]  ;;  %v21765_v35 = vld [vmem:[#allocation97_spill] sm:$0xff] }
 0x502   : > { %13114 = vmatprep.subr.bf16.mxu0 %v21725_v15 }
 0x503   : > { %6095 = vmatmul.mubr.f32.vlgmr.msra.gmra.mrb[142].mxu1 %v21726_v34  ;;  %21744 = vst [vmem:[#allocation84_spill] sm:$0xff] %v18863_v12  ;;  %v21821_v34 = vld [vmem:[#allocation46_spill] sm:$0xff] }
 0x504   : > { %12812 = vmatpush3.bf16.msra.mxu1 %v21730_v25  ;;  %6100 = vmatprep.mubr.f32.mxu1 %v21731_v36  ;;  %v21737_v25 = vld [vmem:[#allocation51_spill] sm:$0xff] }
 0x505   : > { %12814 = vmatprep.subr.bf16.mxu1 %v21735_v6  ;;  %7751 = vmatmul.mubr.f32.gmra.mrb[150].mxu0 %v20731_v63  ;;  %v21741_v6 = vld [vmem:[#allocation76_spill] sm:$0xff] }
 0x506   : > { %7758 = vmatprep.mubr.f32.mxu0 %v20732_v44  ;;  %13116 = vmatpush3.bf16.msra.mxu0 %v21736_v39  ;;  %v21742_v15 = vpack.c.bf16 %v21740_v13, %v21741_v6  ;;  %v21743_v63 = vld [vmem:[#allocation40_spill] sm:$0xff]  ;;  %v20744_v44 = vand.u32 4294901760, %v18839_v10  ;;  %21754 = vst [vmem:[#allocation76_spill] sm:$0xff] %v18882_v57 }
 0x507   : > { %6102 = vmatmul.mubr.f32.gmra.mrb[144].mxu1 %v21737_v25  ;;  %13118 = vmatprep.subr.bf16.mxu0 %v21738_v18  ;;  %v21747_v18 = vld [vmem:[#allocation28_spill] sm:$0xff] }
 0x508   : > { %12816 = vmatpush3.bf16.msra.mxu1 %v21742_v15  ;;  %6107 = vmatprep.mubr.f32.mxu1 %v21743_v63  ;;  %v21748_v39 = vld [vmem:[#allocation88_spill] sm:$0xff]  ;;  %v21751_v15 = vld [vmem:[#allocation138_spill] sm:$0xff]  ;;  %21759 = vst [vmem:[#allocation28_spill] sm:$0xff] %v18891_v58  ;;  %v21768_v63 = vand.u32 4294901760, %v18867_v54 }
 0x509   : > { %v21749_v11 = vpack.c.bf16 %v21747_v18, %v21748_v39  ;;  %7762 = vmatmul.mubr.f32.gmra.mrb[152].mxu0 %v21750_v16  ;;  %v21755_v16 = vld [vmem:[#allocation73_spill] sm:$0xff]  ;;  %21760 = vst [vmem:[#allocation88_spill] sm:$0xff] %v18893_v8 }
 0x50a   : > { %7769 = vmatprep.mubr.f32.mxu0 %v20744_v44  ;;  %13120 = vmatpush3.bf16.msra.mxu0 %v21751_v15  ;;  %v21757_v10 = vpack.c.bf16 %v21755_v16, %v21756_v24  ;;  %v21758_v44 = vld [vmem:[#allocation141_spill] sm:$0xff]  ;;  %v20749_v15 = vand.u32 4294901760, %v18863_v12  ;;  %v21770_v12 = vld [vmem:[#allocation32_spill] sm:$0xff] }
 0x50b   : > { %12818 = vmatprep.subr.bf16.mxu1 %v21749_v11  ;;  %6109 = vmatmul.mubr.f32.gmra.mrb[146].mxu1 %v21752_v56  ;;  %v21764_v11 = vand.u32 4294901760, %v18854_v61  ;;  %v21767_v56 = vand.u32 4294901760, %v18865_v37  ;;  %v21776_v37 = vld [vmem:[#allocation45_spill] sm:$0xff] }
 0x50c   : > { %13122 = vmatprep.subr.bf16.mxu0 %v21753_v4  ;;  %12820 = vmatpush3.bf16.msra.mxu1 %v21757_v10  ;;  %v21761_v4 = vld [vmem:[#allocation29_spill] sm:$0xff]  ;;  %v18920_v10 = vld [vmem:[#allocation9 + $0x228] sm:$0xff] }
 0x50d   : > { %6114 = vmatprep.mubr.f32.mxu1 %v21758_v44  ;;  %v21763_v28 = vpack.c.bf16 %v21761_v4, %v21762_v60  ;;  %7773 = vmatmul.mubr.f32.gmra.mrb[154].mxu0 %v21764_v11  ;;  %v21766_v44 = vld [vmem:[#allocation98_spill] sm:$0xff]  ;;  %v18910_v25 = vpack.c.bf16 %v21768_v63, %v21767_v56  ;;  %v20765_v11 = vand.u32 4294901760, %v18893_v8  ;;  %21774 = vst [vmem:[#allocation29_spill] sm:$0xff] %v18920_v10  ;;  %v21778_v56 = vand.u32 4294901760, %v18882_v57  ;;  %v21781_v57 = vld [vmem:[#allocation99_spill] sm:$0xff]  ;;  %v21791_v8 = vld [vmem:[#allocation112_spill] sm:$0xff] }
 0x50e   : > { %7780 = vmatprep.mubr.f32.mxu0 %v20749_v15  ;;  %13124 = vmatpush3.bf16.msra.mxu0 %v21765_v35  ;;  %v21771_v15 = vld [vmem:[#allocation30_spill] sm:$0xff]  ;;  %v18918_v35 = vld [vmem:[#allocation9 + $0x220] sm:$0xff] }
 0x50f   : > { %12822 = vmatprep.subr.bf16.mxu1 %v21763_v28  ;;  %6116 = vmatmul.mubr.f32.gmra.mrb[148].mxu1 %v18605_v59  ;;  %21769 = vst [vmem:[#allocation73_spill] sm:$0xff] %v18910_v25  ;;  %v20766_v28 = vand.u32 4294901760, %v18891_v58  ;;  %v21772_v61 = vpack.c.bf16 %v21770_v12, %v21771_v15  ;;  %21773 = vst [vmem:[#allocation93_spill] sm:$0xff] %v18918_v35  ;;  %v21779_v63 = vld [vmem:[#allocation146_spill] sm:$0xff]  ;;  %v20778_v54 = vand.u32 4294901760, %v18918_v35  ;;  %v21787_v58 = vld [vmem:[#allocation104_spill] sm:$0xff] }
 0x510   : > { %13126 = vmatprep.subr.bf16.mxu0 %v21766_v44  ;;  %6121 = vmatprep.mubr.f32.mxu1 %v18612_v32  ;;  %v21775_v44 = vld [vmem:[#allocation60_spill] sm:$0xff]  ;;  %v21796_v35 = vld [vmem:[#allocation118_spill] sm:$0xff] }
 0x511   : > { %12824 = vmatpush3.bf16.msra.mxu1 %v21772_v61  ;;  %v21777_v59 = vpack.c.bf16 %v21775_v44, %v21776_v37  ;;  %7784 = vmatmul.mubr.f32.gmra.mrb[156].mxu0 %v21778_v56  ;;  %v18935_v61 = vpack.c.bf16 %v20765_v11, %v20766_v28  ;;  %v21782_v56 = vld [vmem:[#allocation82_spill] sm:$0xff]  ;;  %v21790_v28 = vld [vmem:[#allocation113_spill] sm:$0xff] }
 0x512   : > { %13128 = vmatpush3.bf16.msra.mxu0 %v18136_v49  ;;  %8103 = vmatprep.mubr.f32.mxu0 %v18290_v9  ;;  %v21783_v32 = vpack.c.bf16 %v21781_v57, %v21782_v56  ;;  %v18943_v9 = vld [vmem:[#allocation9 + $0x230] sm:$0xff]  ;;  %v18945_v49 = vld [vmem:[#allocation9 + $0x238] sm:$0xff] }
 0x513   : > { %12826 = vmatprep.subr.bf16.mxu1 %v21777_v59  ;;  %6123 = vmatmul.mubr.f32.gmra.mrb[150].mxu1 %v21779_v63  ;;  %21780 = vst [vmem:[#allocation58_spill] sm:$0xff] %v18935_v61  ;;  %v20777_v59 = vand.u32 4294901760, %v18920_v10  ;;  %21784 = vst [vmem:[#allocation32_spill] sm:$0xff] %v18943_v9  ;;  %v21786_v63 = vld [vmem:[#allocation107_spill] sm:$0xff]  ;;  %v20790_v11 = vand.u32 4294901760, %v18943_v9  ;;  %v21800_v10 = vld [vmem:[#allocation122_spill] sm:$0xff] }
 0x514   : > { %13290 = vmatprep.subr.bf16.mxu0 %v18910_v25  ;;  %6128 = vmatprep.mubr.f32.mxu1 %v18644_v62  ;;  %21785 = vst [vmem:[#allocation30_spill] sm:$0xff] %v18945_v49  ;;  %v21788_v36 = vpack.c.bf16 %v21786_v63, %v21787_v58  ;;  %v21805_v9 = vld [vmem:[#allocation126_spill] sm:$0xff] }
 0x515   : > { %12828 = vmatpush3.bf16.msra.mxu1 %v21783_v32  ;;  %8105 = vmatmul.mubr.f32.vlgmr.msra.gmra.mrb[158].mxu0 %v18293_v45  ;;  %v18959_v32 = vpack.c.bf16 %v20777_v59, %v20778_v54  ;;  %v21792_v45 = vpack.c.bf16 %v21790_v28, %v21791_v8  ;;  %v21799_v54 = vld [vmem:[#allocation123_spill] sm:$0xff] }
 0x516   : > { %12830 = vmatprep.subr.bf16.mxu1 %v21788_v36  ;;  %8110 = vmatprep.mubr.f32.mxu0 %v18335_v29  ;;  %v20789_v36 = vand.u32 4294901760, %v18945_v49  ;;  %v18967_v29 = vld [vmem:[#allocation9 + $0x240] sm:$0xff]  ;;  %v21809_v49 = vld [vmem:[#allocation129_spill] sm:$0xff] }
 0x517   : > { %13292 = vmatpush3.bf16.msra.mxu0 %v18910_v25  ;;  %6130 = vmatmul.mubr.f32.gmra.mrb[152].mxu1 %v18662_v51  ;;  %21789 = vst [vmem:[#allocation60_spill] sm:$0xff] %v18959_v32  ;;  %21793 = vst [vmem:[#allocation45_spill] sm:$0xff] %v18967_v29  ;;  %v18969_v25 = vld [vmem:[#allocation9 + $0x248] sm:$0xff]  ;;  %v20801_v59 = vand.u32 4294901760, %v18967_v29 }
 0x518   : > { %13294 = vmatprep.subr.bf16.mxu0 %v18935_v61  ;;  %6135 = vmatprep.mubr.f32.mxu1 %v18691_v20  ;;  %21794 = vst [vmem:[#allocation99_spill] sm:$0xff] %v18969_v25  ;;  %v21795_v51 = vld [vmem:[#allocation120_spill] sm:$0xff] }
 0x519   : > { %12832 = vmatpush3.bf16.msra.mxu1 %v21792_v45  ;;  %v21797_v62 = vpack.c.bf16 %v21795_v51, %v21796_v35  ;;  %8112 = vmatmul.mubr.f32.gmra.mrb[160].mxu0 %v18338_v1  ;;  %v18983_v45 = vpack.c.bf16 %v20789_v36, %v20790_v11  ;;  %v21801_v1 = vpack.c.bf16 %v21799_v54, %v21800_v10  ;;  %v21808_v11 = vld [vmem:[#allocation130_spill] sm:$0xff]  ;;  %v21817_v29 = vld [vmem:[#allocation36_spill] sm:$0xff] }
 0x51a   : > { %8117 = vmatprep.mubr.f32.mxu0 %v18386_v46  ;;  %v18991_v46 = vld [vmem:[#allocation9 + $0x250] sm:$0xff] }
 0x51b   : > { %12834 = vmatprep.subr.bf16.mxu1 %v21797_v62  ;;  %13296 = vmatpush3.bf16.msra.mxu0 %v18935_v61  ;;  %21798 = vst [vmem:[#allocation82_spill] sm:$0xff] %v18983_v45  ;;  %v20800_v62 = vand.u32 4294901760, %v18969_v25  ;;  %21802 = vst [vmem:[#allocation107_spill] sm:$0xff] %v18991_v46  ;;  %v18993_v61 = vld [vmem:[#allocation9 + $0x258] sm:$0xff]  ;;  %v20809_v36 = vand.u32 4294901760, %v18991_v46 }
 0x51c   : > { %6137 = vmatmul.mubr.f32.gmra.mrb[154].mxu1 %v18694_v53  ;;  %13298 = vmatprep.subr.bf16.mxu0 %v18959_v32  ;;  %21803 = vst [vmem:[#allocation104_spill] sm:$0xff] %v18993_v61  ;;  %v21804_v53 = vld [vmem:[#allocation127_spill] sm:$0xff] }
 0x51d   : > { %12836 = vmatpush3.bf16.msra.mxu1 %v21801_v1  ;;  %6142 = vmatprep.mubr.f32.mxu1 %v18721_v55  ;;  %v21806_v20 = vpack.c.bf16 %v21804_v53, %v21805_v9  ;;  %v19007_v1 = vpack.c.bf16 %v20800_v62, %v20801_v59  ;;  %v21814_v55 = vld [vmem:[#allocation63_spill] sm:$0xff] }
 0x51e   : > { %8119 = vmatmul.mubr.f32.gmra.mrb[162].mxu0 %v18409_v2  ;;  %v21810_v2 = vpack.c.bf16 %v21808_v11, %v21809_v49  ;;  %v21815_v62 = vld [vmem:[#allocation87_spill] sm:$0xff] }
 0x51f   : > { %12838 = vmatprep.subr.bf16.mxu1 %v21806_v20  ;;  %8124 = vmatprep.mubr.f32.mxu0 %v18450_v43  ;;  %21807 = vst [vmem:[#allocation113_spill] sm:$0xff] %v19007_v1  ;;  %v20808_v20 = vand.u32 4294901760, %v18993_v61  ;;  %v21811_v43 = vld [vmem:[#allocation53_spill] sm:$0xff] }
 0x520   : > { %13300 = vmatpush3.bf16.msra.mxu0 %v18959_v32  ;;  %6144 = vmatmul.mubr.f32.gmra.mrb[156].mxu1 %v18724_v22  ;;  %v19015_v32 = vld [vmem:[#allocation9 + $0x260] sm:$0xff]  ;;  %v19017_v22 = vld [vmem:[#allocation9 + $0x268] sm:$0xff] }
 0x521   : > { %13302 = vmatprep.subr.bf16.mxu0 %v18983_v45  ;;  %12840 = vmatpush3.bf16.msra.mxu1 %v21810_v2  ;;  %21812 = vst [vmem:[#allocation112_spill] sm:$0xff] %v19015_v32  ;;  %21813 = vst [vmem:[#allocation120_spill] sm:$0xff] %v19017_v22  ;;  %v19029_v2 = vpack.c.bf16 %v20808_v20, %v20809_v36  ;;  %v20816_v59 = vand.u32 4294901760, %v19015_v32  ;;  %v20815_v25 = vand.u32 4294901760, %v19017_v22  ;;  %v21822_v20 = vld [vmem:[#allocation23_spill] sm:$0xff]  ;;  %v21830_v22 = vld [vmem:[#allocation142_spill] sm:$0xff] }
 0x522   : > { %6279 = vmatprep.mubr.f32.mxu1 %v21811_v43  ;;  %12842 = vmatprep.subr.bf16.mxu1 %v21814_v55  ;;  %v21827_v32 = vld [vmem:[#allocation139_spill] sm:$0xff] }
 0x523   : > { %8126 = vmatmul.mubr.f32.gmra.mrb[164].mxu0 %v18496_v19  ;;  %21816 = vst [vmem:[#allocation118_spill] sm:$0xff] %v19029_v2  ;;  %v21818_v19 = vld [vmem:[#allocation21_spill] sm:$0xff]  ;;  %v19049_v36 = vpack.c.bf16 %v20815_v25, %v20816_v59  ;;  %v21829_v59 = vld [vmem:[#allocation92_spill] sm:$0xff] }
 0x524   : > { %8131 = vmatprep.mubr.f32.mxu0 %v18539_v50  ;;  %13304 = vmatpush3.bf16.msra.mxu0 %v18983_v45  ;;  %v19035_v50 = vld [vmem:[#allocation9 + $0x270] sm:$0xff]  ;;  %v19037_v45 = vld [vmem:[#allocation9 + $0x278] sm:$0xff] }
 0x525   : > { %6282 = vmatmul.mubr.f32.vlgmr.msra.gmra.mrb[158].mxu1 %v21815_v62  ;;  %13306 = vmatprep.subr.bf16.mxu0 %v19007_v1  ;;  %21819 = vst [vmem:[#allocation123_spill] sm:$0xff] %v19035_v50  ;;  %21820 = vst [vmem:[#allocation122_spill] sm:$0xff] %v19037_v45  ;;  %v20823_v61 = vand.u32 4294901760, %v19035_v50  ;;  %v20822_v46 = vand.u32 4294901760, %v19037_v45  ;;  %v19082_v50 = vld [vmem:[#allocation2 + $0x48] sm:$0xff] }
 0x526   : > { %12844 = vmatpush3.bf16.msra.mxu1 %v21817_v29  ;;  %6288 = vmatprep.mubr.f32.mxu1 %v21818_v19  ;;  %21823 = vst [vmem:[#allocation127_spill] sm:$0xff] %v19049_v36  ;;  %21837 = vst [vmem:[#allocation53_spill] sm:$0xff] %v19082_v50 }
 0x527   : > { %12846 = vmatprep.subr.bf16.mxu1 %v21821_v34  ;;  %8133 = vmatmul.mubr.f32.gmra.mrb[166].mxu0 %v18565_v48  ;;  %v21824_v34 = vld [vmem:[#allocation78_spill] sm:$0xff]  ;;  %v19065_v25 = vpack.c.bf16 %v20822_v46, %v20823_v61  ;;  %v21834_v46 = vld [vmem:[#allocation31_spill] sm:$0xff]  ;;  %v21835_v61 = vld [vmem:[#allocation105_spill] sm:$0xff] }
 0x528   : > { %8138 = vmatprep.mubr.f32.mxu0 %v18580_v17  ;;  %13308 = vmatpush3.bf16.msra.mxu0 %v19007_v1  ;;  %v21825_v48 = vld [vmem:[#allocation42_spill] sm:$0xff]  ;;  %v21831_v1 = vld [vmem:[#allocation35_spill] sm:$0xff] }
 0x529   : > { %6291 = vmatmul.mubr.f32.gmra.mrb[160].mxu1 %v21822_v20  ;;  %13310 = vmatprep.subr.bf16.mxu0 %v19029_v2  ;;  %v21826_v17 = vld [vmem:[#allocation74_spill] sm:$0xff]  ;;  %21828 = vst [vmem:[#allocation126_spill] sm:$0xff] %v19065_v25 }
 0x52a   : > { %12848 = vmatpush3.bf16.msra.mxu1 %v21824_v34  ;;  %6297 = vmatprep.mubr.f32.mxu1 %v21825_v48 }
 0x52b   : > { %12850 = vmatprep.subr.bf16.mxu1 %v21826_v17  ;;  %8140 = vmatmul.mubr.f32.gmra.mrb[168].mxu0 %v18609_v14  ;;  %v21833_v14 = vld [vmem:[#allocation147_spill] sm:$0xff] }
 0x52c   : > { %8145 = vmatprep.mubr.f32.mxu0 %v18615_v3  ;;  %13312 = vmatpush3.bf16.msra.mxu0 %v19029_v2  ;;  %v19071_v3 = vld [vmem:[#allocation2 + $0x20] sm:$0xff]  ;;  %v21841_v2 = vld [vmem:[#allocation27_spill] sm:$0xff] }
 0x52d   : > { %6300 = vmatmul.mubr.f32.gmra.mrb[162].mxu1 %v21827_v32  ;;  %13314 = vmatprep.subr.bf16.mxu0 %v19049_v36  ;;  %21832 = vst [vmem:[#allocation130_spill] sm:$0xff] %v19071_v3  ;;  %v19080_v45 = vand.u32 4294901760, %v19071_v3  ;;  %v21842_v3 = vld [vmem:[#allocation106_spill] sm:$0xff] }
 0x52e   : > { %12852 = vmatpush3.bf16.msra.mxu1 %v21829_v59  ;;  %6306 = vmatprep.mubr.f32.mxu1 %v21830_v22 }
 0x52f   : > { %12854 = vmatprep.subr.bf16.mxu1 %v21831_v1  ;;  %8147 = vmatmul.mubr.f32.gmra.mrb[170].mxu0 %v18641_v42  ;;  %21836 = vst [vmem:[#allocation129_spill] sm:$0xff] %v19080_v45  ;;  %v21838_v42 = vld [vmem:[#allocation61_spill] sm:$0xff] }
 0x530   : > { %8152 = vmatprep.mubr.f32.mxu0 %v18652_v31  ;;  %13316 = vmatpush3.bf16.msra.mxu0 %v19049_v36  ;;  %v21839_v31 = vld [vmem:[#allocation148_spill] sm:$0xff]  ;;  %v19090_v36 = vand.u32 4294901760, %v19082_v50  ;;  %v21846_v50 = vld [vmem:[#allocation125_spill] sm:$0xff] }
 0x531   : > { %6309 = vmatmul.mubr.f32.gmra.mrb[164].mxu1 %v21833_v14  ;;  %13318 = vmatprep.subr.bf16.mxu0 %v19065_v25 }
 0x532   : > { %12856 = vmatpush3.bf16.msra.mxu1 %v21834_v46  ;;  %6315 = vmatprep.mubr.f32.mxu1 %v21835_v61  ;;  %21840 = vst [vmem:[#allocation63_spill] sm:$0xff] %v19090_v36 }
 0x533   : > { %12858 = vmatprep.subr.bf16.mxu1 %v21838_v42  ;;  %8154 = vmatmul.mubr.f32.gmra.mrb[172].mxu0 %v18683_v27  ;;  %v21843_v27 = vld [vmem:[#allocation111_spill] sm:$0xff]  ;;  %v21850_v42 = vand.u32 4294901760, %v21811_v43  ;;  %v21857_v43 = vand.u32 4294901760, %v21741_v6 }
 0x534   : > { %13320 = vmatpush3.bf16.msra.mxu0 %v19065_v25  ;;  %12061 = vmatprep.mubr.f32.mxu0 %v19080_v45  ;;  %v21844_v25 = vld [vmem:[#allocation119_spill] sm:$0xff]  ;;  %v21845_v45 = vld [vmem:[#allocation121_spill] sm:$0xff] }
 0x535   : > { %6318 = vmatmul.mubr.f32.gmra.mrb[166].mxu1 %v21839_v31 }
 0x536   : > { %12860 = vmatpush3.bf16.msra.mxu1 %v21841_v2  ;;  %6324 = vmatprep.mubr.f32.mxu1 %v18659_v47 }
 0x537   : > { %12862 = vmatprep.subr.bf16.mxu1 %v21842_v3  ;;  %12062 = vmatmul.mubr.f32.vlgmr.msra.gmra.mrb[174].mxu0 %v19090_v36  ;;  %v21847_v3 = vand.u32 4294901760, %v21714_v41  ;;  %v21848_v36 = vand.u32 4294901760, %v21713_v7  ;;  %v21854_v41 = vand.u32 4294901760, %v21733_v33  ;;  %v21856_v7 = vand.u32 4294901760, %v21818_v19 }
 0x538   : > { %v21863_v19 = vand.u32 4294901760, %v21756_v24  ;;  %v21864_v33 = vand.u32 4294901760, %v21755_v16  ;;  %v21870_v24 = vand.u32 4294901760, %v21770_v12  ;;  %v21871_v16 = vand.u32 4294901760, %v21776_v37 }
 0x539   : > { %6327 = vmatmul.mubr.f32.gmra.mrb[168].mxu1 %v18680_v52  ;;  %v12873_v2 = vpack.c.bf16 %v21848_v36, %v21847_v3  ;;  %v21855_v3 = vand.u32 4294901760, %v21815_v62  ;;  %v21877_v12 = vand.u32 4294901760, %v21787_v58  ;;  %v21878_v37 = vand.u32 4294901760, %v21786_v63 }
 0x53a   : > { %12864 = vmatpush3.bf16.msra.mxu1 %v21843_v27  ;;  %6333 = vmatprep.mubr.f32.mxu1 %v18708_v38  ;;  %v21849_v27 = vld [vmem:[#allocation128_spill] sm:$0xff]  ;;  %v12883_v6 = vpack.c.bf16 %v21864_v33, %v21863_v19  ;;  %v21884_v58 = vand.u32 4294901760, %v21795_v51  ;;  %v21885_v63 = vand.u32 4294901760, %v18680_v52  ;;  %v21891_v51 = vand.u32 4294901760, %v18713_v30  ;;  %v21914_v19 = vld [vmem:[#allocation155_spill] sm:$0xff] }
 0x53b   : > { %12866 = vmatprep.subr.bf16.mxu1 %v21844_v25  ;;  %v21851_v25 = vand.u32 4294901760, %v21729_v26  ;;  %v21892_v52 = vand.u32 4294901760, %v18737_v5  ;;  %v21915_v33 = vld [vmem:[#allocation119_spill] sm:$0xff] }
 0x53d   : > { %6336 = vmatmul.mubr.f32.gmra.mrb[170].mxu1 %v18713_v30  ;;  %v21898_v30 = vld [vmem:[#allocation46_spill] sm:$0xff] }
 0x53e   : > { %12868 = vmatpush3.bf16.msra.mxu1 %v21845_v45  ;;  %6342 = vmatprep.mubr.f32.mxu1 %v18737_v5  ;;  %v21852_v45 = vand.u32 4294901760, %v21728_v21  ;;  %v21859_v21 = vand.u32 4294901760, %v21748_v39  ;;  %v21866_v39 = vand.u32 4294901760, %v21761_v4  ;;  %v21873_v4 = vand.u32 4294901760, %v21833_v14  ;;  %v21900_v5 = vld [vmem:[#allocation40_spill] sm:$0xff] }
 0x53f   : > { %12870 = vmatprep.subr.bf16.mxu1 %v21846_v50  ;;  %v21853_v50 = vand.u32 4294901760, %v21734_v40  ;;  %v21860_v40 = vand.u32 4294901760, %v21747_v18  ;;  %v21867_v18 = vand.u32 4294901760, %v21827_v32  ;;  %v21874_v32 = vand.u32 4294901760, %v21835_v61 }
 0x540   : > { %v12875_v46 = vpack.c.bf16 %v21852_v45, %v21851_v25  ;;  %v21868_v45 = vand.u32 4294901760, %v21830_v22  ;;  %v21875_v22 = vand.u32 4294901760, %v21782_v56  ;;  %v21880_v14 = vand.u32 4294901760, %v18659_v47 }
 0x541   : > { %6345 = vmatmul.mubr.f32.gmra.mrb[172].mxu1 %v18741_v23  ;;  %v12877_v1 = vpack.c.bf16 %v21854_v41, %v21853_v50  ;;  %v12881_v25 = vpack.c.bf16 %v21860_v40, %v21859_v21  ;;  %v21861_v50 = vand.u32 4294901760, %v21822_v20  ;;  %v21881_v61 = vand.u32 4294901760, %v21791_v8  ;;  %v21906_v21 = vld [vmem:[#allocation144_spill] sm:$0xff]  ;;  %v21907_v40 = vld [vmem:[#allocation61_spill] sm:$0xff] }
 0x542   : > { %12872 = vmatpush3.bf16.msra.mxu1 %v21849_v27  ;;  %6449 = vmatprep.mubr.f32.mxu1 %v21850_v42  ;;  %v21858_v42 = vand.u32 4294901760, %v21740_v13  ;;  %v21865_v13 = vand.u32 4294901760, %v21762_v60  ;;  %v21872_v60 = vand.u32 4294901760, %v21775_v44  ;;  %v21879_v44 = vand.u32 4294901760, %v21839_v31 }
 0x543   : > { %12874 = vmatprep.subr.bf16.mxu1 %v12873_v2  ;;  %v12893_v2 = vpack.c.bf16 %v21878_v37, %v21877_v12  ;;  %v21882_v56 = vand.u32 4294901760, %v21790_v28  ;;  %v21886_v31 = vand.u32 4294901760, %v18708_v38  ;;  %v21887_v47 = vand.u32 4294901760, %v21800_v10 }
 0x544   : > { %v12879_v26 = vpack.c.bf16 %v21858_v42, %v21857_v43  ;;  %v12885_v36 = vpack.c.bf16 %v21866_v39, %v21865_v13  ;;  %v21888_v8 = vand.u32 4294901760, %v21799_v54  ;;  %v21889_v28 = vand.u32 4294901760, %v21805_v9  ;;  %v21896_v9 = vld [vmem:[#allocation50_spill] sm:$0xff]  ;;  %v21917_v13 = vld [vmem:[#allocation121_spill] sm:$0xff]  ;;  %v21918_v39 = vld [vmem:[#allocation159_spill] sm:$0xff] }
 0x545   : > { %6453 = vmatmul.mubr.f32.vlgmr.msra.gmra.mrb[174].mxu1 %v21855_v3  ;;  %v12895_v41 = vpack.c.bf16 %v21882_v56, %v21881_v61  ;;  %v21893_v38 = vand.u32 4294901760, %v21809_v49  ;;  %v21894_v10 = vand.u32 4294901760, %v21808_v11  ;;  %v21895_v54 = vand.u32 4294901760, %v18741_v23  ;;  %v21899_v49 = vld [vmem:[#allocation51_spill] sm:$0xff]  ;;  %v21939_v61 = vld [vmem:[#allocation94_spill] sm:$0xff] }
 0x546   : > { %12876 = vmatpush3.bf16.msra.mxu1 %v12875_v46  ;;  %6460 = vmatprep.mubr.f32.mxu1 %v21856_v7  ;;  %v21862_v46 = vand.u32 4294901760, %v21825_v48  ;;  %v21869_v48 = vand.u32 4294901760, %v21771_v15  ;;  %v21876_v15 = vand.u32 4294901760, %v21781_v57  ;;  %v21883_v57 = vand.u32 4294901760, %v21796_v35  ;;  %v21901_v23 = vld [vmem:[#allocation75_spill] sm:$0xff] }
 0x547   : > { %12878 = vmatprep.subr.bf16.mxu1 %v12877_v1  ;;  %v12889_v1 = vpack.c.bf16 %v21872_v60, %v21871_v16  ;;  %v12899_v7 = vpack.c.bf16 %v21888_v8, %v21887_v47  ;;  %v21890_v35 = vand.u32 4294901760, %v21804_v53  ;;  %v12903_v42 = vpack.c.bf16 %v21894_v10, %v21893_v38  ;;  %v21897_v53 = vld [vmem:[#allocation19_spill] sm:$0xff]  ;;  %v21928_v60 = vld [vmem:[#allocation134_spill] sm:$0xff]  ;;  %v21947_v38 = vld [vmem:[#allocation68_spill] sm:$0xff] }
 0x548   : > { %v12887_v62 = vpack.c.bf16 %v21870_v24, %v21869_v48  ;;  %v12891_v20 = vpack.c.bf16 %v21876_v15, %v21875_v22  ;;  %v12897_v3 = vpack.c.bf16 %v21884_v58, %v21883_v57  ;;  %v21903_v11 = vld [vmem:[#allocation35_spill] sm:$0xff]  ;;  %v21922_v48 = vld [vmem:[#allocation109_spill] sm:$0xff]  ;;  %v21923_v24 = vld [vmem:[#allocation110_spill] sm:$0xff] }
 0x549   : > { %6464 = vmatmul.mubr.f32.gmra.mrb[176].mxu1 %v21861_v50  ;;  %v12901_v43 = vpack.c.bf16 %v21890_v35, %v21889_v28  ;;  %v21911_v50 = vld [vmem:[#allocation106_spill] sm:$0xff]  ;;  %v21925_v16 = vld [vmem:[#allocation131_spill] sm:$0xff]  ;;  %v21933_v15 = vld [vmem:[#allocation56_spill] sm:$0xff] }
 0x54a   : > { %12880 = vmatpush3.bf16.msra.mxu1 %v12879_v26  ;;  %6471 = vmatprep.mubr.f32.mxu1 %v21862_v46  ;;  %v21905_v26 = vld [vmem:[#allocation31_spill] sm:$0xff]  ;;  %v21932_v22 = vld [vmem:[#allocation138_spill] sm:$0xff]  ;;  %v21945_v28 = vld [vmem:[#allocation24_spill] sm:$0xff] }
 0x54b   : > { %12882 = vmatprep.subr.bf16.mxu1 %v12881_v25  ;;  %v21909_v25 = vld [vmem:[#allocation27_spill] sm:$0xff]  ;;  %v21946_v35 = vld [vmem:[#allocation34_spill] sm:$0xff]  ;;  %v21948_v10 = vld [vmem:[#allocation69_spill] sm:$0xff] }
 0x54c   : > { %v21913_v46 = vld [vmem:[#allocation111_spill] sm:$0xff] }
 0x54d   : > { %6475 = vmatmul.mubr.f32.gmra.mrb[178].mxu1 %v21867_v18  ;;  %v21920_v18 = vld [vmem:[#allocation160_spill] sm:$0xff] }
 0x54e   : > { %12884 = vmatpush3.bf16.msra.mxu1 %v12883_v6  ;;  %6482 = vmatprep.mubr.f32.mxu1 %v21868_v45  ;;  %v21916_v6 = vld [vmem:[#allocation156_spill] sm:$0xff] }
 0x54f   : > { %12886 = vmatprep.subr.bf16.mxu1 %v12885_v36  ;;  %v21919_v36 = vld [vmem:[#allocation125_spill] sm:$0xff]  ;;  %v21921_v45 = vld [vmem:[#allocation124_spill] sm:$0xff] }
 0x551   : > { %6486 = vmatmul.mubr.f32.gmra.mrb[180].mxu1 %v21873_v4  ;;  %v21930_v4 = vld [vmem:[#allocation136_spill] sm:$0xff] }
 0x552   : > { %12888 = vmatpush3.bf16.msra.mxu1 %v12887_v62  ;;  %6493 = vmatprep.mubr.f32.mxu1 %v21874_v32  ;;  %v21924_v62 = vld [vmem:[#allocation47_spill] sm:$0xff]  ;;  %v21931_v32 = vld [vmem:[#allocation137_spill] sm:$0xff] }
 0x553   : > { %12890 = vmatprep.subr.bf16.mxu1 %v12889_v1  ;;  %v21929_v1 = vld [vmem:[#allocation135_spill] sm:$0xff] }
 0x555   : > { %6497 = vmatmul.mubr.f32.gmra.mrb[182].mxu1 %v21879_v44  ;;  %v21937_v44 = vld [vmem:[#allocation98_spill] sm:$0xff] }
 0x556   : > { %12892 = vmatpush3.bf16.msra.mxu1 %v12891_v20  ;;  %6504 = vmatprep.mubr.f32.mxu1 %v21880_v14  ;;  %v21934_v20 = vld [vmem:[#allocation153_spill] sm:$0xff] }
 0x557   : > { %12894 = vmatprep.subr.bf16.mxu1 %v12893_v2  ;;  %v21935_v12 = vand.u32 4294901760, %v21934_v20  ;;  %v21936_v2 = vld [vmem:[#allocation97_spill] sm:$0xff] }
 0x558   : > { %v21938_v14 = vld [vmem:[#allocation89_spill] sm:$0xff] }
 0x559   : > { %6508 = vmatmul.mubr.f32.gmra.mrb[184].mxu1 %v21885_v63  ;;  %v7004_v37 = vsub.f32 %v21934_v20, %v21935_v12  ;;  %v13001_v56 = vpack.c.bf16 %v21939_v61, %v21938_v14  ;;  %v21942_v63 = vld [vmem:[#allocation158_spill] sm:$0xff] }
 0x55a   : > { %12896 = vmatpush3.bf16.msra.mxu1 %v12895_v41  ;;  %6515 = vmatprep.mubr.f32.mxu1 %v21886_v31  ;;  %v21940_v41 = vld [vmem:[#allocation157_spill] sm:$0xff]  ;;  %v21943_v31 = vand.u32 4294901760, %v21942_v63 }
 0x55b   : > { %12898 = vmatprep.subr.bf16.mxu1 %v12897_v3  ;;  %v21941_v57 = vand.u32 4294901760, %v21940_v41  ;;  %v7005_v3 = vand.u32 4294901760, %v7004_v37 }
 0x55c   : > { %v7019_v47 = vsub.f32 %v21942_v63, %v21943_v31  ;;  %v21974_v31 = vld [vmem:[#allocation95_spill] sm:$0xff] }
 0x55d   : > { %6519 = vmatmul.mubr.f32.gmra.mrb[186].mxu1 %v21891_v51  ;;  %v7010_v58 = vsub.f32 %v21940_v41, %v21941_v57 }
 0x55e   : > { %12900 = vmatpush3.bf16.msra.mxu1 %v12899_v7  ;;  %6526 = vmatprep.mubr.f32.mxu1 %v21892_v52  ;;  %v21944_v7 = vld [vmem:[#allocation108_spill] sm:$0xff] }
 0x55f   : > { %12902 = vmatprep.subr.bf16.mxu1 %v12901_v43  ;;  %v13003_v43 = vpack.c.bf16 %v21946_v35, %v21945_v28  ;;  %v7011_v52 = vand.u32 4294901760, %v7010_v58 }
 0x561   : > { %6530 = vmatmul.mubr.f32.gmra.mrb[188].mxu1 %v21895_v54  ;;  %v21949_v54 = vld [vmem:[#allocation161_spill] sm:$0xff] }
 0x562   : > { %12904 = vmatpush3.bf16.msra.mxu1 %v12903_v42  ;;  %6696 = vmatprep.mubr.f32.mxu1 %v21723_v0  ;;  %v13005_v42 = vpack.c.bf16 %v21948_v10, %v21947_v38 }
 0x563   : > { %12906 = vmatprep.subr.bf16.mxu1 %v21814_v55  ;;  %v21902_v55 = vld [vmem:[#allocation141_spill] sm:$0xff] }
 0x565   : > { %6698 = vmatmul.mubr.f32.vlgmr.msra.gmra.mrb[190].mxu1 %v21896_v9 }
 0x566   : > { %12908 = vmatpush3.bf16.msra.mxu1 %v21817_v29  ;;  %6703 = vmatprep.mubr.f32.mxu1 %v21897_v53  ;;  %v21904_v29 = vld [vmem:[#allocation143_spill] sm:$0xff] }
 0x567   : > { %12910 = vmatprep.subr.bf16.mxu1 %v21898_v30 }
 0x569   : > { %6705 = vmatmul.mubr.f32.gmra.mrb[192].mxu1 %v21899_v49 }
 0x56a   : > { %12912 = vmatpush3.bf16.msra.mxu1 %v21824_v34  ;;  %6710 = vmatprep.mubr.f32.mxu1 %v21900_v5  ;;  %v21908_v34 = vld [vmem:[#allocation146_spill] sm:$0xff] }
 0x56b   : > { %12914 = vmatprep.subr.bf16.mxu1 %v21826_v17  ;;  %v21910_v17 = vld [vmem:[#allocation150_spill] sm:$0xff] }
 0x56d   : > { %6712 = vmatmul.mubr.f32.gmra.mrb[194].mxu1 %v21901_v23 }
 0x56e   : > { %12916 = vmatpush3.bf16.msra.mxu1 %v21829_v59  ;;  %6717 = vmatprep.mubr.f32.mxu1 %v21902_v55  ;;  %v21912_v59 = vld [vmem:[#allocation152_spill] sm:$0xff] }
 0x56f   : > { %12918 = vmatprep.subr.bf16.mxu1 %v21903_v11 }
 0x571   : > { %6719 = vmatmul.mubr.f32.gmra.mrb[196].mxu1 %v21904_v29 }
 0x572   : > { %12920 = vmatpush3.bf16.msra.mxu1 %v21905_v26  ;;  %6724 = vmatprep.mubr.f32.mxu1 %v21906_v21  ;;  %v21955_v26 = vld [vmem:[#allocation71_spill] sm:$0xff] }
 0x573   : > { %12922 = vmatprep.subr.bf16.mxu1 %v21907_v40 }
 0x575   : > { %6726 = vmatmul.mubr.f32.gmra.mrb[198].mxu1 %v21908_v34 }
 0x576   : > { %12924 = vmatpush3.bf16.msra.mxu1 %v21909_v25  ;;  %6731 = vmatprep.mubr.f32.mxu1 %v21910_v17  ;;  %v21956_v25 = vld [vmem:[#allocation80_spill] sm:$0xff] }
 0x577   : > { %12926 = vmatprep.subr.bf16.mxu1 %v21911_v50 }
 0x579   : > { %6733 = vmatmul.mubr.f32.gmra.mrb[200].mxu1 %v21912_v59 }
 0x57a   : > { %12928 = vmatpush3.bf16.msra.mxu1 %v21913_v46  ;;  %6738 = vmatprep.mubr.f32.mxu1 %v21914_v19 }
 0x57b   : > { %12930 = vmatprep.subr.bf16.mxu1 %v21915_v33 }
 0x57d   : > { %6740 = vmatmul.mubr.f32.gmra.mrb[202].mxu1 %v21916_v6 }
 0x57e   : > { %12932 = vmatpush3.bf16.msra.mxu1 %v21917_v13  ;;  %6745 = vmatprep.mubr.f32.mxu1 %v21918_v39  ;;  %v21961_v13 = vld [vmem:[#allocation64_spill] sm:$0xff] }
 0x57f   : > { %12934 = vmatprep.subr.bf16.mxu1 %v21919_v36 }
 0x581   : > { %6747 = vmatmul.mubr.f32.gmra.mrb[204].mxu1 %v21920_v18 }
 0x582   : > { %12936 = vmatpush3.bf16.msra.mxu1 %v21849_v27  ;;  %6849 = vmatprep.mubr.f32.mxu1 %v21723_v0  ;;  %v21926_v27 = vld [vmem:[#allocation132_spill] sm:$0xff]  ;;  %v21927_v0 = vld [vmem:[#allocation133_spill] sm:$0xff] }
 0x583   : > { %12938 = vmatprep.subr.bf16.mxu1 %v21921_v45  ;;  %v21964_v45 = vld [vmem:[#allocation43_spill] sm:$0xff] }
 0x585   : > { %6851 = vmatmul.mubr.f32.vlgmr.msra.gmra.mrb[206].mxu1 %v21896_v9  ;;  %v21950_v9 = vand.u32 4294901760, %v21949_v54 }
 0x586   : > { %12940 = vmatpush3.bf16.msra.mxu1 %v21922_v48  ;;  %6856 = vmatprep.mubr.f32.mxu1 %v21897_v53 }
 0x587   : > { %12942 = vmatprep.subr.bf16.mxu1 %v21923_v24  ;;  %v7025_v53 = vsub.f32 %v21949_v54, %v21950_v9  ;;  %v21978_v9 = vld [vmem:[#allocation49_spill] sm:$0xff] }
 0x589   : > { %6858 = vmatmul.mubr.f32.gmra.mrb[208].mxu1 %v21899_v49  ;;  %v7020_v49 = vand.u32 4294901760, %v7019_v47  ;;  %v21975_v47 = vld [vmem:[#allocation79_spill] sm:$0xff] }
 0x58a   : > { %12944 = vmatpush3.bf16.msra.mxu1 %v21924_v62  ;;  %6863 = vmatprep.mubr.f32.mxu1 %v21900_v5  ;;  %v21952_v5 = vld [vmem:[#allocation162_spill] sm:$0xff] }
 0x58b   : > { %12946 = vmatprep.subr.bf16.mxu1 %v21925_v16  ;;  %v21965_v16 = vld [vmem:[#allocation83_spill] sm:$0xff] }
 0x58d   : > { %6865 = vmatmul.mubr.f32.gmra.mrb[210].mxu1 %v21901_v23  ;;  %v21953_v23 = vand.u32 4294901760, %v21952_v5 }
 0x58e   : > { %12948 = vmatpush3.bf16.msra.mxu1 %v21926_v27  ;;  %6870 = vmatprep.mubr.f32.mxu1 %v21902_v55  ;;  %v21966_v27 = vld [vmem:[#allocation86_spill] sm:$0xff] }
 0x58f   : > { %12950 = vmatprep.subr.bf16.mxu1 %v21927_v0  ;;  %v7034_v55 = vsub.f32 %v21952_v5, %v21953_v23  ;;  %v13013_v0 = vpack.c.bf16 %v21966_v27, %v21965_v16 }
 0x591   : > { %6872 = vmatmul.mubr.f32.gmra.mrb[212].mxu1 %v21904_v29  ;;  %v21954_v29 = vld [vmem:[#allocation70_spill] sm:$0xff] }
 0x592   : > { %12952 = vmatpush3.bf16.msra.mxu1 %v21928_v60  ;;  %6877 = vmatprep.mubr.f32.mxu1 %v21906_v21  ;;  %v13007_v21 = vpack.c.bf16 %v21955_v26, %v21954_v29  ;;  %v21967_v60 = vld [vmem:[#allocation85_spill] sm:$0xff] }
 0x593   : > { %12954 = vmatprep.subr.bf16.mxu1 %v21929_v1  ;;  %v21968_v1 = vand.u32 4294901760, %v21967_v60 }
 0x595   : > { %6879 = vmatmul.mubr.f32.gmra.mrb[214].mxu1 %v21908_v34  ;;  %v7026_v34 = vand.u32 4294901760, %v7025_v53  ;;  %v21979_v53 = vand.u32 4294901760, %v21978_v9 }
 0x596   : > { %12956 = vmatpush3.bf16.msra.mxu1 %v21930_v4  ;;  %6884 = vmatprep.mubr.f32.mxu1 %v21910_v17  ;;  %v21957_v17 = vld [vmem:[#allocation96_spill] sm:$0xff]  ;;  %v7055_v4 = vsub.f32 %v21967_v60, %v21968_v1 }
 0x597   : > { %12958 = vmatprep.subr.bf16.mxu1 %v21931_v32  ;;  %v13009_v50 = vpack.c.bf16 %v21957_v17, %v21956_v25 }
 0x599   : > { %6886 = vmatmul.mubr.f32.gmra.mrb[216].mxu1 %v21912_v59  ;;  %v21958_v59 = vld [vmem:[#allocation54_spill] sm:$0xff] }
 0x59a   : > { %12960 = vmatpush3.bf16.msra.mxu1 %v21932_v22  ;;  %6891 = vmatprep.mubr.f32.mxu1 %v21914_v19  ;;  %v21959_v46 = vand.u32 4294901760, %v21958_v59 }
 0x59b   : > { %12962 = vmatprep.subr.bf16.mxu1 %v21933_v15  ;;  %v21969_v15 = vld [vmem:[#allocation163_spill] sm:$0xff] }
 0x59c   : > { %v7040_v19 = vsub.f32 %v21958_v59, %v21959_v46  ;;  %v21970_v12 = vand.u32 4294901760, %v21969_v15  ;;  %v21983_v46 = vld [vmem:[#allocation77_spill] sm:$0xff] }
 0x59d   : > { %6893 = vmatmul.mubr.f32.gmra.mrb[218].mxu1 %v21916_v6  ;;  %v7035_v6 = vand.u32 4294901760, %v7034_v55  ;;  %v21980_v55 = vld [vmem:[#allocation65_spill] sm:$0xff] }
 0x59e   : > { %12964 = vmatpush3.bf16.msra.mxu1 %v21936_v2  ;;  %6898 = vmatprep.mubr.f32.mxu1 %v21918_v39  ;;  %v10709_v8 = vpop.f32.mrb[126].mxu0  ;;  %v21962_v39 = vand.u32 4294901760, %v21961_v13  ;;  %v7041_v62 = vand.u32 4294901760, %v7040_v19  ;;  %v7064_v37 = vsub.f32 %v21969_v15, %v21970_v12 }
 0x59f   : > { %12966 = vmatprep.subr.bf16.mxu1 %v21937_v44  ;;  %v10710_v51 = vpop.f32.mrb[127].mxu0  ;;  %v21972_v44 = vld [vmem:[#allocation90_spill] sm:$0xff] }
 0x5a0   : > { %v19284_v30 = vadd.f32 %v10710_v51, %v10709_v8  ;;  %v7049_v36 = vsub.f32 %v21961_v13, %v21962_v39  ;;  %v13017_v8 = vpack.c.bf16 %v21975_v47, %v21974_v31 }
 0x5a1   : > { %6900 = vmatmul.mubr.f32.gmra.mrb[220].mxu1 %v21920_v18  ;;  %v21963_v18 = vld [vmem:[#allocation26_spill] sm:$0xff] }
 0x5a2   : > { %12968 = vmatpush3.bf16.msra.mxu1 %v21944_v7  ;;  %7006 = vmatprep.mubr.f32.mxu1 %v7005_v3  ;;  %21951 = vst [vmem:[#allocation87_spill] sm:$0xff] %v19284_v30  ;;  %v10712_v11 = vpop.f32.mrb[128].mxu0  ;;  %v13011_v48 = vpack.c.bf16 %v21964_v45, %v21963_v18  ;;  %v7050_v22 = vand.u32 4294901760, %v7049_v36  ;;  %v7056_v3 = vand.u32 4294901760, %v7055_v4  ;;  %v21976_v7 = vld [vmem:[#allocation164_spill] sm:$0xff] }
 0x5a3   : > { %13002 = vmatprep.subr.bf16.mxu1 %v13001_v56  ;;  %v10713_v40 = vpop.f32.mrb[129].mxu0  ;;  %v21973_v56 = vld [vmem:[#allocation91_spill] sm:$0xff] }
 0x5a4   : > { %v19296_v33 = vadd.f32 %v10713_v40, %v10712_v11  ;;  %v13015_v57 = vpack.c.bf16 %v21973_v56, %v21972_v44  ;;  %v21981_v11 = vld [vmem:[#allocation25_spill] sm:$0xff] }
 0x5a5   : > { %7012 = vmatmul.mubr.f32.vlgmr.msra.gmra.mrb[222].mxu1 %v7011_v52 }
 0x5a6   : > { %13004 = vmatpush3.bf16.msra.mxu1 %v13003_v43  ;;  %7021 = vmatprep.mubr.f32.mxu1 %v7020_v49  ;;  %21960 = vst [vmem:[#allocation36_spill] sm:$0xff] %v19296_v33  ;;  %v21977_v43 = vand.u32 4294901760, %v21976_v7  ;;  %v7079_v49 = vsub.f32 %v21978_v9, %v21979_v53 }
 0x5a7   : > { %13006 = vmatprep.subr.bf16.mxu1 %v13005_v42  ;;  %v10715_v24 = vpop.f32.mrb[130].mxu0  ;;  %v7065_v42 = vand.u32 4294901760, %v7064_v37 }
 0x5a8   : > { %v10716_v32 = vpop.f32.mrb[131].mxu0  ;;  %v7070_v51 = vsub.f32 %v21976_v7, %v21977_v43 }
 0x5a9   : > { %7027 = vmatmul.mubr.f32.gmra.mrb[224].mxu1 %v7026_v34  ;;  %v19311_v2 = vadd.f32 %v10716_v32, %v10715_v24  ;;  %v7080_v24 = vand.u32 4294901760, %v7079_v49  ;;  %v21989_v32 = vld [vmem:[#allocation59_spill] sm:$0xff] }
 0x5aa   : > { %13008 = vmatpush3.bf16.msra.mxu1 %v13007_v21  ;;  %7036 = vmatprep.mubr.f32.mxu1 %v7035_v6  ;;  %v13019_v21 = vpack.c.bf16 %v21981_v11, %v21980_v55  ;;  %v7071_v34 = vand.u32 4294901760, %v7070_v51  ;;  %v21984_v6 = vld [vmem:[#allocation165_spill] sm:$0xff]  ;;  %v21993_v51 = vld [vmem:[#allocation22_spill] sm:$0xff] }
 0x5ab   : > { %13010 = vmatprep.subr.bf16.mxu1 %v13009_v50  ;;  %21971 = vst [vmem:[#allocation21_spill] sm:$0xff] %v19311_v2  ;;  %v21982_v50 = vld [vmem:[#allocation33_spill] sm:$0xff]  ;;  %v21985_v39 = vand.u32 4294901760, %v21984_v6 }
 0x5ac   : > { %v10317_v58 = vpop.f32.mrb[126].mxu1  ;;  %v13021_v19 = vpack.c.bf16 %v21983_v46, %v21982_v50 }
 0x5ad   : > { %7042 = vmatmul.mubr.f32.gmra.mrb[226].mxu1 %v7041_v62  ;;  %v10318_v52 = vpop.f32.mrb[127].mxu1  ;;  %v7085_v36 = vsub.f32 %v21984_v6, %v21985_v39  ;;  %v21986_v62 = vld [vmem:[#allocation67_spill] sm:$0xff] }
 0x5ae   : > { %13012 = vmatpush3.bf16.msra.mxu1 %v13011_v48  ;;  %7051 = vmatprep.mubr.f32.mxu1 %v7050_v22  ;;  %v19323_v23 = vadd.f32 %v10318_v52, %v10317_v58  ;;  %v21990_v22 = vld [vmem:[#allocation57_spill] sm:$0xff]  ;;  %v21991_v58 = vld [vmem:[#allocation100_spill] sm:$0xff]  ;;  %v21994_v52 = vand.u32 4294901760, %v21993_v51 }
 0x5af   : > { %13014 = vmatprep.subr.bf16.mxu1 %v13013_v0  ;;  %v10718_v40 = vpop.f32.mrb[132].mxu0  ;;  %v21987_v0 = vand.u32 4294901760, %v21986_v62  ;;  %v13023_v12 = vpack.c.bf16 %v21990_v22, %v21989_v32 }
 0x5b0   : > { %v10719_v48 = vpop.f32.mrb[133].mxu0 }
 0x5b1   : > { %7057 = vmatmul.mubr.f32.gmra.mrb[228].mxu1 %v7056_v3  ;;  %v7094_v1 = vsub.f32 %v21986_v62, %v21987_v0  ;;  %v19335_v4 = vadd.f32 %v10719_v48, %v10718_v40  ;;  %v21992_v3 = vld [vmem:[#allocation101_spill] sm:$0xff]  ;;  %v21996_v40 = vld [vmem:[#allocation84_spill] sm:$0xff] }
 0x5b2   : > { %13016 = vmatpush3.bf16.msra.mxu1 %v13015_v57  ;;  %7066 = vmatprep.mubr.f32.mxu1 %v7065_v42  ;;  %v7086_v57 = vand.u32 4294901760, %v7085_v36  ;;  %v7100_v42 = vsub.f32 %v21993_v51, %v21994_v52  ;;  %v21999_v36 = vld [vmem:[#allocation103_spill] sm:$0xff]  ;;  %v22001_v52 = vld [vmem:[#allocation114_spill] sm:$0xff] }
 0x5b3   : > { %13018 = vmatprep.subr.bf16.mxu1 %v13017_v8  ;;  %21988 = vst [vmem:[#allocation23_spill] sm:$0xff] %v19335_v4  ;;  %v13025_v8 = vpack.c.bf16 %v21992_v3, %v21991_v58  ;;  %v7095_v53 = vand.u32 4294901760, %v7094_v1  ;;  %v22002_v1 = vld [vmem:[#allocation115_spill] sm:$0xff] }
 0x5b4   : > { %v10320_v37 = vpop.f32.mrb[128].mxu1  ;;  %v7101_v4 = vand.u32 4294901760, %v7100_v42  ;;  %v22008_v42 = vand.u32 4294901760, %v21939_v61  ;;  %v22012_v61 = vand.u32 4294901760, %v21947_v38 }
 0x5b5   : > { %7072 = vmatmul.mubr.f32.gmra.mrb[230].mxu1 %v7071_v34  ;;  %v10321_v43 = vpop.f32.mrb[129].mxu1 }
 0x5b6   : > { %13020 = vmatpush3.bf16.msra.mxu1 %v13019_v21  ;;  %7081 = vmatprep.mubr.f32.mxu1 %v7080_v24  ;;  %v19344_v49 = vadd.f32 %v10321_v43, %v10320_v37  ;;  %v21997_v21 = vand.u32 4294901760, %v21996_v40  ;;  %v10721_v39 = vpop.f32.mrb[134].mxu0  ;;  %v13029_v37 = vpack.c.bf16 %v22002_v1, %v22001_v52  ;;  %v22003_v43 = vld [vmem:[#allocation76_spill] sm:$0xff] }
 0x5b7   : > { %13022 = vmatprep.subr.bf16.mxu1 %v13021_v19  ;;  %v10722_v48 = vpop.f32.mrb[135].mxu0  ;;  %v21998_v19 = vld [vmem:[#allocation102_spill] sm:$0xff]  ;;  %v22004_v2 = vand.u32 4294901760, %v22003_v43 }
 0x5b8   : > { %21995 = vst [vmem:[#allocation78_spill] sm:$0xff] %v19344_v49  ;;  %v7109_v34 = vsub.f32 %v21996_v40, %v21997_v21  ;;  %v13027_v24 = vpack.c.bf16 %v21999_v36, %v21998_v19  ;;  %v19351_v0 = vadd.f32 %v10722_v48, %v10721_v39 }
 0x5b9   : > { %7087 = vmatmul.mubr.f32.gmra.mrb[232].mxu1 %v7086_v57  ;;  %v7115_v33 = vsub.f32 %v22003_v43, %v22004_v2 }
 0x5ba   : > { %13024 = vmatpush3.bf16.msra.mxu1 %v13023_v12  ;;  %7096 = vmatprep.mubr.f32.mxu1 %v7095_v53  ;;  %22000 = vst [vmem:[#allocation42_spill] sm:$0xff] %v19351_v0  ;;  %v7110_v21 = vand.u32 4294901760, %v7109_v34  ;;  %v22005_v12 = vld [vmem:[#allocation116_spill] sm:$0xff]  ;;  %v22006_v53 = vld [vmem:[#allocation117_spill] sm:$0xff] }
 0x5bb   : > { %13026 = vmatprep.subr.bf16.mxu1 %v13025_v8  ;;  %v10724_v57 = vpop.f32.mrb[136].mxu0  ;;  %v13031_v30 = vpack.c.bf16 %v22006_v53, %v22005_v12  ;;  %v7116_v39 = vand.u32 4294901760, %v7115_v33  ;;  %v22007_v8 = vand.u32 4294901760, %v21938_v14  ;;  %v22011_v33 = vand.u32 4294901760, %v21946_v35 }
 0x5bc   : > { %v10725_v40 = vpop.f32.mrb[137].mxu0  ;;  %v22016_v35 = vand.u32 4294901760, %v21955_v26  ;;  %v22021_v26 = vand.u32 4294901760, %v21964_v45  ;;  %v22026_v45 = vand.u32 4294901760, %v21973_v56  ;;  %v22031_v56 = vand.u32 4294901760, %v21981_v11 }
 0x5bd   : > { %7102 = vmatmul.mubr.f32.gmra.mrb[234].mxu1 %v7101_v4  ;;  %v13065_v48 = vpack.c.bf16 %v22008_v42, %v22007_v8  ;;  %v19364_v0 = vadd.f32 %v10725_v40, %v10724_v57  ;;  %v22013_v40 = vand.u32 4294901760, %v21948_v10  ;;  %v22017_v10 = vand.u32 4294901760, %v21956_v25 }
 0x5be   : > { %13028 = vmatpush3.bf16.msra.mxu1 %v13027_v24  ;;  %7111 = vmatprep.mubr.f32.mxu1 %v7110_v21  ;;  %v10323_v49 = vpop.f32.mrb[130].mxu1  ;;  %v22010_v24 = vand.u32 4294901760, %v21945_v28  ;;  %v22015_v28 = vand.u32 4294901760, %v21954_v29  ;;  %v22018_v42 = vand.u32 4294901760, %v21957_v17  ;;  %v22020_v29 = vand.u32 4294901760, %v21963_v18 }
 0x5bf   : > { %13030 = vmatprep.subr.bf16.mxu1 %v13029_v37  ;;  %22009 = vst [vmem:[#allocation74_spill] sm:$0xff] %v19364_v0  ;;  %v10324_v2 = vpop.f32.mrb[131].mxu1  ;;  %v10727_v4 = vpop.f32.mrb[138].mxu0  ;;  %v13069_v21 = vpack.c.bf16 %v22013_v40, %v22012_v61  ;;  %v22022_v17 = vand.u32 4294901760, %v21965_v16  ;;  %v22025_v18 = vand.u32 4294901760, %v21972_v44  ;;  %v22030_v44 = vand.u32 4294901760, %v21980_v55 }
 0x5c0   : > { %v19366_v34 = vadd.f32 %v10324_v2, %v10323_v49  ;;  %v13067_v37 = vpack.c.bf16 %v22011_v33, %v22010_v24  ;;  %v10728_v14 = vpop.f32.mrb[139].mxu0  ;;  %v13071_v38 = vpack.c.bf16 %v22016_v35, %v22015_v28  ;;  %v13075_v25 = vpack.c.bf16 %v22021_v26, %v22020_v29 }
 0x5c1   : > { %7117 = vmatmul.mubr.f32.gmra.mrb[236].mxu1 %v7116_v39  ;;  %v19377_v57 = vadd.f32 %v10728_v14, %v10727_v4  ;;  %v13079_v16 = vpack.c.bf16 %v22026_v45, %v22025_v18  ;;  %v22035_v55 = vand.u32 4294901760, %v21989_v32  ;;  %v22036_v11 = vand.u32 4294901760, %v21990_v22 }
 0x5c2   : > { %13032 = vmatpush3.bf16.msra.mxu1 %v13031_v30  ;;  %7533 = vmatprep.mubr.f32.mxu1 %v21934_v20  ;;  %v10326_v39 = vpop.f32.mrb[132].mxu1  ;;  %v22038_v29 = vand.u32 4294901760, %v21992_v3 }
 0x5c3   : > { %13066 = vmatprep.subr.bf16.mxu1 %v13065_v48  ;;  %22014 = vst [vmem:[#allocation139_spill] sm:$0xff] %v19377_v57  ;;  %v10327_v49 = vpop.f32.mrb[133].mxu1  ;;  %v10730_v30 = vpop.f32.mrb[140].mxu0  ;;  %v13073_v48 = vpack.c.bf16 %v22018_v42, %v22017_v10  ;;  %v22033_v10 = vand.u32 4294901760, %v21983_v46  ;;  %v19446_v46 = vld [vmem:[%s20069_s4 + $0x2] ss:$0 sm:$0xff] }
 0x5c4   : > { %v19380_v20 = vadd.f32 %v10327_v49, %v10326_v39  ;;  %v10731_v8 = vpop.f32.mrb[141].mxu0  ;;  %v22028_v49 = vand.u32 4294901760, %v21975_v47  ;;  %v22032_v47 = vand.u32 4294901760, %v21982_v50  ;;  %v13087_v50 = vpack.c.bf16 %v22036_v11, %v22035_v55  ;;  %v22055_v55 = vld [vmem:[#allocation63_spill] sm:$0xff]  ;;  %v22056_v11 = vld [vmem:[#allocation53_spill] sm:$0xff] }
 0x5c5   : > { %7536 = vmatmul.mubr.f32.vlgmr.msra.gmra.mrb[238].mxu1 %v21940_v41  ;;  %v19391_v2 = vadd.f32 %v10731_v8, %v10730_v30  ;;  %v5760_v32 = vadd.f32 %v19323_v23, %v19446_v46 }
 0x5c6   : > { %13068 = vmatpush3.bf16.msra.mxu1 %v13067_v37  ;;  %7542 = vmatprep.mubr.f32.mxu1 %v21942_v63  ;;  %v10329_v41 = vpop.f32.mrb[134].mxu1  ;;  %v22023_v37 = vand.u32 4294901760, %v21966_v27  ;;  %v22027_v27 = vand.u32 4294901760, %v21974_v31  ;;  %v13083_v31 = vpack.c.bf16 %v22031_v56, %v22030_v44  ;;  %v13085_v42 = vpack.c.bf16 %v22033_v10, %v22032_v47  ;;  %v22051_v56 = vld [vmem:[#allocation73_spill] sm:$0xff] }
 0x5c7   : > { %13070 = vmatprep.subr.bf16.mxu1 %v13069_v21  ;;  %22019 = vst [vmem:[#allocation92_spill] sm:$0xff] %v19391_v2  ;;  %v10330_v4 = vpop.f32.mrb[135].mxu1  ;;  %v10821_v24 = vpop.f32.mrb[142].mxu0  ;;  %v13710_v2 = vld [vmem:[#allocation9 + $0x248] sm:$0xff] }
 0x5c8   : > { %v19394_v63 = vadd.f32 %v10330_v4, %v10329_v41  ;;  %v10822_v33 = vpop.f32.mrb[143].mxu0  ;;  %v13077_v14 = vpack.c.bf16 %v22023_v37, %v22022_v17  ;;  %v13081_v30 = vpack.c.bf16 %v22028_v49, %v22027_v27  ;;  %v22040_v17 = vand.u32 4294901760, %v21998_v19 }
 0x5c9   : > { %7545 = vmatmul.mubr.f32.gmra.mrb[240].mxu1 %v21949_v54  ;;  %v19405_v61 = vadd.f32 %v10822_v33, %v10821_v24 }
 0x5ca   : > { %13072 = vmatpush3.bf16.msra.mxu1 %v13071_v38  ;;  %7551 = vmatprep.mubr.f32.mxu1 %v21952_v5  ;;  %v10332_v54 = vpop.f32.mrb[136].mxu1 }
 0x5cb   : > { %13074 = vmatprep.subr.bf16.mxu1 %v13073_v48  ;;  %22024 = vst [vmem:[#allocation142_spill] sm:$0xff] %v19405_v61  ;;  %v10333_v40 = vpop.f32.mrb[137].mxu1  ;;  %v10824_v21 = vpop.f32.mrb[144].mxu0 }
 0x5cc   : > { %v19408_v5 = vadd.f32 %v10333_v40, %v10332_v54  ;;  %v10825_v39 = vpop.f32.mrb[145].mxu0  ;;  %v22043_v54 = vand.u32 4294901760, %v22002_v1  ;;  %v22048_v1 = vand.u32 4294901760, %v22006_v53 }
 0x5cd   : > { %7554 = vmatmul.mubr.f32.gmra.mrb[242].mxu1 %v21958_v59  ;;  %v19419_v28 = vadd.f32 %v10825_v39, %v10824_v21 }
 0x5ce   : > { %13076 = vmatpush3.bf16.msra.mxu1 %v13075_v25  ;;  %7560 = vmatprep.mubr.f32.mxu1 %v21961_v13  ;;  %v10335_v59 = vpop.f32.mrb[138].mxu1 }
 0x5cf   : > { %13078 = vmatprep.subr.bf16.mxu1 %v13077_v14  ;;  %22029 = vst [vmem:[#allocation147_spill] sm:$0xff] %v19419_v28  ;;  %v10336_v35 = vpop.f32.mrb[139].mxu1  ;;  %v10827_v38 = vpop.f32.mrb[146].mxu0  ;;  %v22042_v14 = vand.u32 4294901760, %v22001_v52  ;;  %v22047_v52 = vand.u32 4294901760, %v22005_v12  ;;  %v22050_v12 = vld [vmem:[#allocation48_spill] sm:$0xff] }
 0x5d0   : > { %v19422_v13 = vadd.f32 %v10336_v35, %v10335_v59  ;;  %v10828_v8 = vpop.f32.mrb[147].mxu0  ;;  %v22106_v28 = vld [vmem:[#allocation151_spill] sm:$0xff] }
 0x5d1   : > { %7563 = vmatmul.mubr.f32.gmra.mrb[244].mxu1 %v21967_v60  ;;  %v19433_v48 = vadd.f32 %v10828_v8, %v10827_v38  ;;  %v13093_v40 = vpack.c.bf16 %v22043_v54, %v22042_v14  ;;  %v13095_v39 = vpack.c.bf16 %v22048_v1, %v22047_v52  ;;  %v5790_v38 = vadd.f32 %v19366_v34, %v19446_v46  ;;  %v22061_v14 = vld [vmem:[#allocation60_spill] sm:$0xff] }
 0x5d2   : > { %13080 = vmatpush3.bf16.msra.mxu1 %v13079_v16  ;;  %7569 = vmatprep.mubr.f32.mxu1 %v21969_v15  ;;  %v10338_v60 = vpop.f32.mrb[140].mxu1  ;;  %v22046_v16 = vld [vmem:[#allocation84_spill] sm:$0xff]  ;;  %v5835_v1 = vadd.f32 %v19408_v5, %v19446_v46 }
 0x5d3   : > { %13082 = vmatprep.subr.bf16.mxu1 %v13081_v30  ;;  %22034 = vst [vmem:[#allocation105_spill] sm:$0xff] %v19433_v48  ;;  %v10339_v41 = vpop.f32.mrb[141].mxu1  ;;  %v10830_v4 = vpop.f32.mrb[148].mxu0  ;;  %v22103_v48 = vld [vmem:[#allocation149_spill] sm:$0xff] }
 0x5d4   : > { %v19436_v15 = vadd.f32 %v10339_v41, %v10338_v60  ;;  %v10831_v24 = vpop.f32.mrb[149].mxu0  ;;  %v22053_v60 = vld [vmem:[#allocation72_spill] sm:$0xff]  ;;  %v22054_v41 = vld [vmem:[#allocation38_spill] sm:$0xff] }
 0x5d5   : > { %7572 = vmatmul.mubr.f32.gmra.mrb[246].mxu1 %v21976_v7  ;;  %v22037_v7 = vand.u32 4294901760, %v21991_v58  ;;  %v19452_v25 = vadd.f32 %v10831_v24, %v10830_v4  ;;  %v22041_v58 = vand.u32 4294901760, %v21999_v36  ;;  %v22057_v24 = vld [vmem:[#allocation58_spill] sm:$0xff] }
 0x5d6   : > { %13084 = vmatpush3.bf16.msra.mxu1 %v13083_v31  ;;  %7578 = vmatprep.mubr.f32.mxu1 %v21978_v9  ;;  %v10373_v9 = vpop.f32.mrb[142].mxu1 }
 0x5d7   : > { %13086 = vmatprep.subr.bf16.mxu1 %v13085_v42  ;;  %v13089_v26 = vpack.c.bf16 %v22038_v29, %v22037_v7  ;;  %22039 = vst [vmem:[#allocation148_spill] sm:$0xff] %v19452_v25  ;;  %v10374_v33 = vpop.f32.mrb[143].mxu1  ;;  %v13091_v37 = vpack.c.bf16 %v22041_v58, %v22040_v17  ;;  %v22060_v17 = vld [vmem:[#allocation39_spill] sm:$0xff] }
 0x5d8   : > { %v10375_v22 = vadd.f32 %v10374_v33, %v10373_v9  ;;  %v10833_v3 = vpop.f32.mrb[150].mxu0 }
 0x5d9   : > { %7581 = vmatmul.mubr.f32.gmra.mrb[248].mxu1 %v21984_v6  ;;  %v10834_v6 = vpop.f32.mrb[151].mxu0 }
 0x5da   : > { %13088 = vmatpush3.bf16.msra.mxu1 %v13087_v50  ;;  %7587 = vmatprep.mubr.f32.mxu1 %v21986_v62  ;;  %v19466_v21 = vadd.f32 %v10375_v22, %v5760_v32  ;;  %v10376_v23 = vpop.f32.mrb[144].mxu1  ;;  %v19468_v18 = vadd.f32 %v10834_v6, %v10833_v3  ;;  %v22045_v62 = vld [vmem:[#allocation78_spill] sm:$0xff]  ;;  %v19498_v50 = vsub.f32 %v22056_v11, %v22055_v55 }
 0x5db   : > { %13090 = vmatprep.subr.bf16.mxu1 %v13089_v26  ;;  %v10377_v45 = vpop.f32.mrb[145].mxu1  ;;  %v5775_v19 = vadd.f32 %v22045_v62, %v19446_v46  ;;  %v5820_v32 = vadd.f32 %v19394_v63, %v19446_v46  ;;  %v22063_v63 = vld [vmem:[#allocation20_spill] sm:$0xff] }
 0x5dc   : > { %22044 = vst [vmem:[#allocation128_spill] sm:$0xff] %v19468_v18  ;;  %v10378_v36 = vadd.f32 %v10377_v45, %v10376_v23  ;;  %v10836_v27 = vpop.f32.mrb[152].mxu0  ;;  %v20842_v3 = vand.u32 4294901760, %v19498_v50 }
 0x5dd   : > { %7590 = vmatmul.mubr.f32.gmra.mrb[250].mxu1 %v21993_v51  ;;  %v10837_v49 = vpop.f32.mrb[153].mxu0 }
 0x5de   : > { %13092 = vmatpush3.bf16.msra.mxu1 %v13091_v37  ;;  %7596 = vmatprep.mubr.f32.mxu1 %v22046_v16  ;;  %v19478_v30 = vadd.f32 %v10378_v36, %v5775_v19  ;;  %v10379_v59 = vpop.f32.mrb[146].mxu1  ;;  %v19480_v35 = vadd.f32 %v10837_v49, %v10836_v27  ;;  %v5540_v37 = vld [vmem:[#allocation2 + $0x70] sm:$0xff]  ;;  %v22066_v27 = vld [vmem:[#allocation37_spill] sm:$0xff] }
 0x5df   : > { %13094 = vmatprep.subr.bf16.mxu1 %v13093_v40  ;;  %v10380_v51 = vpop.f32.mrb[147].mxu1  ;;  %v5545_v40 = vld [vmem:[#allocation2 + $0x98] sm:$0xff]  ;;  %v22064_v19 = vld [vmem:[#allocation66_spill] sm:$0xff]  ;;  %v19522_v52 = vand.u32 4294901760, %v5540_v37 }
 0x5e0   : > { %22049 = vst [vmem:[#allocation50_spill] sm:$0xff] %v19480_v35  ;;  %v10381_v44 = vadd.f32 %v10380_v51, %v10379_v59  ;;  %v10839_v53 = vpop.f32.mrb[154].mxu0  ;;  %v22065_v36 = vand.u32 4294901760, %v22064_v19  ;;  %v22067_v59 = vld [vmem:[#allocation81_spill] sm:$0xff] }
 0x5e1   : > { %7599 = vmatmul.mubr.f32.gmra.mrb[252].mxu1 %v22003_v43  ;;  %v10840_v31 = vpop.f32.mrb[155].mxu0  ;;  %v5805_v43 = vadd.f32 %v19380_v20, %v19446_v46  ;;  %v22059_v20 = vld [vmem:[#allocation52_spill] sm:$0xff]  ;;  %v22068_v51 = vand.u32 4294901760, %v22067_v59 }
 0x5e2   : > { %13096 = vmatpush3.bf16.msra.mxu1 %v13095_v39  ;;  %7950 = vmatprep.mubr.f32.mxu1 %v22050_v12  ;;  %v19487_v8 = vadd.f32 %v10381_v44, %v5790_v38  ;;  %v10382_v47 = vpop.f32.mrb[148].mxu1  ;;  %v19489_v10 = vadd.f32 %v10840_v31, %v10839_v53  ;;  %v19520_v16 = vsub.f32 %v22064_v19, %v22065_v36  ;;  %v19533_v44 = vand.u32 4294901760, %v5545_v40  ;;  %v22069_v53 = vld [vmem:[#allocation82_spill] sm:$0xff]  ;;  %v13703_v19 = vld [vmem:[#allocation9 + $0x210] sm:$0xff]  ;;  %v22076_v36 = vld [vmem:[#allocation28_spill] sm:$0xff] }
 0x5e3   : > { %13130 = vmatprep.subr.bf16.mxu1 %v22051_v56  ;;  %v10383_v42 = vpop.f32.mrb[149].mxu1  ;;  %v19531_v38 = vsub.f32 %v22067_v59, %v22068_v51  ;;  %v19538_v12 = vsub.f32 %v19498_v50, %v20842_v3 }
 0x5e4   : > { %22052 = vst [vmem:[#allocation19_spill] sm:$0xff] %v19489_v10  ;;  %v10384_v34 = vadd.f32 %v10383_v42, %v10382_v47  ;;  %v10842_v4 = vpop.f32.mrb[156].mxu0  ;;  %v20843_v11 = vand.u32 4294901760, %v19520_v16 }
 0x5e5   : > { %7952 = vmatmul.mubr.f32.vlgmr.msra.gmra.mrb[254].mxu1 %v22053_v60  ;;  %v10843_v7 = vpop.f32.mrb[157].mxu0 }
 0x5e6   : > { %13132 = vmatpush3.bf16.msra.mxu1 %v22051_v56  ;;  %7957 = vmatprep.mubr.f32.mxu1 %v22054_v41  ;;  %v19501_v29 = vadd.f32 %v10384_v34, %v5805_v43  ;;  %v10385_v26 = vpop.f32.mrb[150].mxu1  ;;  %v19503_v9 = vadd.f32 %v10843_v7, %v10842_v4  ;;  %v22071_v43 = vld [vmem:[#allocation55_spill] sm:$0xff]  ;;  %v22072_v34 = vld [vmem:[#allocation129_spill] sm:$0xff]  ;;  %v22073_v41 = vld [vmem:[#allocation130_spill] sm:$0xff]  ;;  %v19552_v7 = vsub.f32 %v5540_v37, %v19522_v52 }
 0x5e7   : > { %13134 = vmatprep.subr.bf16.mxu1 %v22057_v24  ;;  %v10386_v33 = vpop.f32.mrb[151].mxu1  ;;  %v19548_v4 = vsub.f32 %v22073_v41, %v22072_v34  ;;  %v22081_v41 = vld [vmem:[#allocation44_spill] sm:$0xff] }
 0x5e8   : > { %22058 = vst [vmem:[#allocation46_spill] sm:$0xff] %v19503_v9  ;;  %v10387_v22 = vadd.f32 %v10386_v33, %v10385_v26  ;;  %v10933_v58 = vpop.f32.mrb[158].mxu0  ;;  %v5550_v26 = vld [vmem:[#allocation2 + $0xc0] sm:$0xff]  ;;  %v5555_v33 = vld [vmem:[#allocation2 + $0xe8] sm:$0xff] }
 0x5e9   : > { %7959 = vmatmul.mubr.f32.gmra.mrb[0].mxu1 %v22059_v20  ;;  %v10934_v54 = vpop.f32.mrb[159].mxu0  ;;  %v5850_v20 = vadd.f32 %v19422_v13, %v19446_v46  ;;  %v22077_v13 = vand.u32 4294901760, %v22076_v36  ;;  %v22086_v36 = vld [vmem:[#allocation29_spill] sm:$0xff]  ;;  %v22096_v9 = vand.u32 4294901760, %v19548_v4 }
 0x5ea   : > { %13136 = vmatpush3.bf16.msra.mxu1 %v22057_v24  ;;  %7964 = vmatprep.mubr.f32.mxu1 %v22060_v17  ;;  %v19512_v6 = vadd.f32 %v10387_v22, %v5820_v32  ;;  %v10388_v23 = vpop.f32.mrb[152].mxu1  ;;  %v19514_v45 = vadd.f32 %v10934_v54, %v10933_v58  ;;  %v22074_v22 = vld [vmem:[#allocation41_spill] sm:$0xff]  ;;  %v20844_v58 = vand.u32 4294901760, %v19531_v38  ;;  %v19560_v54 = vsub.f32 %v5545_v40, %v19533_v44 }
 0x5eb   : > { %13138 = vmatprep.subr.bf16.mxu1 %v22061_v14  ;;  %v10389_v62 = vpop.f32.mrb[153].mxu1 }
 0x5ec   : > { %22062 = vst [vmem:[#allocation51_spill] sm:$0xff] %v19514_v45  ;;  %v10390_v39 = vadd.f32 %v10389_v62, %v10388_v23  ;;  %v10936_v49 = vpop.f32.mrb[160].mxu0  ;;  %v5560_v23 = vld [vmem:[#allocation2 + $0x110] sm:$0xff]  ;;  %v22075_v62 = vld [vmem:[#allocation113_spill] sm:$0xff] }
 0x5ed   : > { %7966 = vmatmul.mubr.f32.gmra.mrb[2].mxu1 %v22063_v63  ;;  %v10937_v5 = vpop.f32.mrb[161].mxu0 }
 0x5ee   : > { %13140 = vmatpush3.bf16.msra.mxu1 %v22061_v14  ;;  %7971 = vmatprep.mubr.f32.mxu1 %v22066_v27  ;;  %v19541_v31 = vadd.f32 %v10390_v39, %v5835_v1  ;;  %v19543_v42 = vadd.f32 %v10937_v5, %v10936_v49  ;;  %v19566_v1 = vsub.f32 %v13703_v19, %v22077_v13  ;;  %v13704_v39 = vld [vmem:[#allocation9 + $0x218] sm:$0xff]  ;;  %v22078_v27 = vld [vmem:[#allocation88_spill] sm:$0xff] }
 0x5ef   : > { %13142 = vmatprep.subr.bf16.mxu1 %v22069_v53  ;;  %v10391_v47 = vpop.f32.mrb[154].mxu1  ;;  %v22079_v49 = vand.u32 4294901760, %v22078_v27  ;;  %v8324_v19 = vsub.f32 %v19520_v16, %v20843_v11  ;;  %v22082_v13 = vld [vmem:[#allocation140_spill] sm:$0xff]  ;;  %v8331_v27 = vsub.f32 %v19531_v38, %v20844_v58 }
 0x5f0   : > { %22070 = vst [vmem:[#allocation40_spill] sm:$0xff] %v19543_v42  ;;  %v10392_v60 = vpop.f32.mrb[155].mxu1 }
 0x5f1   : > { %7973 = vmatmul.mubr.f32.gmra.mrb[4].mxu1 %v22071_v43  ;;  %v10393_v32 = vadd.f32 %v10392_v60, %v10391_v47  ;;  %v10939_v17 = vpop.f32.mrb[162].mxu0  ;;  %v19570_v59 = vsub.f32 %v13704_v39, %v22079_v49  ;;  %v19576_v47 = vand.u32 4294901760, %v5550_v26  ;;  %v19578_v60 = vand.u32 4294901760, %v5555_v33 }
 0x5f2   : > { %13144 = vmatpush3.bf16.msra.mxu1 %v22069_v53  ;;  %7978 = vmatprep.mubr.f32.mxu1 %v22074_v22  ;;  %v10940_v63 = vpop.f32.mrb[163].mxu0  ;;  %v22087_v22 = vand.u32 4294901760, %v22086_v36  ;;  %v13707_v36 = vld [vmem:[#allocation9 + $0x230] sm:$0xff]  ;;  %v8325_v10 = vand.u32 4294901760, %v8324_v19  ;;  %v8332_v35 = vand.u32 4294901760, %v8331_v27  ;;  %v22101_v27 = vand.u32 4294901760, %v19552_v7 }
 0x5f3   : > { %13146 = vmatprep.subr.bf16.mxu1 %v22075_v62  ;;  %v19572_v51 = vadd.f32 %v10393_v32, %v5850_v20  ;;  %v10394_v40 = vpop.f32.mrb[156].mxu1  ;;  %v19574_v5 = vadd.f32 %v10940_v63, %v10939_v17  ;;  %v19586_v20 = vand.u32 4294901760, %v5560_v23  ;;  %v19588_v32 = vld [vmem:[#allocation2 + $0x138] sm:$0xff]  ;;  %v5865_v17 = vadd.f32 %v19436_v15, %v19446_v46  ;;  %v22084_v46 = vld [vmem:[#allocation93_spill] sm:$0xff] }
 0x5f4   : > { %v10395_v43 = vpop.f32.mrb[157].mxu1  ;;  %v13705_v15 = vld [vmem:[#allocation9 + $0x220] sm:$0xff]  ;;  %v19614_v45 = vsub.f32 %v5550_v26, %v19576_v47  ;;  %v19617_v37 = vand.u32 4294901760, %v19588_v32  ;;  %v22093_v26 = vld [vmem:[#allocation30_spill] sm:$0xff]  ;;  %v8263_v18 = vsub.f32 %v19552_v7, %v22101_v27  ;;  %v13161_v61 = vpack.c.bf16 %v8332_v35, %v8325_v10 }
 0x5f5   : > { %22080 = vst [vmem:[#allocation75_spill] sm:$0xff] %v19574_v5  ;;  %7980 = vmatmul.mubr.f32.gmra.mrb[6].mxu1 %v22081_v41  ;;  %v10396_v63 = vadd.f32 %v10395_v43, %v10394_v40  ;;  %v22083_v41 = vld [vmem:[#allocation118_spill] sm:$0xff]  ;;  %v22085_v40 = vand.u32 4294901760, %v22084_v46 }
 0x5f6   : > { %13148 = vmatpush3.bf16.msra.mxu1 %v22075_v62  ;;  %7985 = vmatprep.mubr.f32.mxu1 %v22082_v13  ;;  %v10942_v39 = vpop.f32.mrb[164].mxu0  ;;  %v13706_v13 = vld [vmem:[#allocation9 + $0x228] sm:$0xff]  ;;  %v22089_v46 = vld [vmem:[#allocation62_spill] sm:$0xff] }
 0x5f7   : > { %13150 = vmatprep.subr.bf16.mxu1 %v22083_v41  ;;  %v10943_v3 = vpop.f32.mrb[165].mxu0  ;;  %v19603_v43 = vsub.f32 %v13705_v15, %v22085_v40  ;;  %v19607_v5 = vsub.f32 %v13706_v13, %v22087_v22  ;;  %v19609_v58 = vadd.f32 %v10396_v63, %v5865_v17  ;;  %v19621_v15 = vsub.f32 %v5555_v33, %v19578_v60  ;;  %v22091_v17 = vld [vmem:[#allocation32_spill] sm:$0xff] }
 0x5f8   : > { %v10429_v49 = vpop.f32.mrb[158].mxu1  ;;  %v19611_v42 = vadd.f32 %v10943_v3, %v10942_v39  ;;  %v19624_v22 = vsub.f32 %v5560_v23, %v19586_v20  ;;  %v22092_v63 = vand.u32 4294901760, %v22091_v17  ;;  %v13708_v39 = vld [vmem:[#allocation9 + $0x238] sm:$0xff]  ;;  %v22094_v40 = vand.u32 4294901760, %v22093_v26  ;;  %v22097_v17 = vld [vmem:[#allocation127_spill] sm:$0xff] }
 0x5f9   : > { %v10430_v11 = vpop.f32.mrb[159].mxu1  ;;  %7987 = vmatmul.mubr.f32.gmra.mrb[8].mxu1 %v22089_v46  ;;  %22090 = vst [vmem:[#allocation35_spill] sm:$0xff] %v19621_v15  ;;  %v22095_v46 = vld [vmem:[#allocation145_spill] sm:$0xff]  ;;  %v8243_v23 = vsub.f32 %v19548_v4, %v22096_v9 }
 0x5fa   : > { %22088 = vst [vmem:[#allocation141_spill] sm:$0xff] %v19611_v42  ;;  %v19628_v3 = vsub.f32 %v13707_v36, %v22092_v63  ;;  %v19632_v13 = vsub.f32 %v13708_v39, %v22094_v40  ;;  %v10431_v42 = vadd.f32 %v10430_v11, %v10429_v49  ;;  %13152 = vmatpush3.bf16.msra.mxu1 %v22083_v41  ;;  %v10945_v33 = vpop.f32.mrb[166].mxu0  ;;  %v22098_v63 = vand.u32 4294901760, %v19566_v1  ;;  %v22107_v40 = vld [vmem:[#allocation99_spill] sm:$0xff]  ;;  %v13712_v41 = vld [vmem:[#allocation9 + $0x258] sm:$0xff] }
 0x5fb   : > { %7992 = vmatprep.mubr.f32.mxu1 %v22095_v46  ;;  %13154 = vmatprep.subr.bf16.mxu1 %v22097_v17  ;;  %v10946_v36 = vpop.f32.mrb[167].mxu0  ;;  %v22099_v11 = vand.u32 4294901760, %v19570_v59  ;;  %v22108_v57 = vand.u32 4294901760, %v22107_v40  ;;  %v8244_v40 = vand.u32 4294901760, %v8243_v23 }
 0x5fc   : > { %v8338_v39 = vsub.f32 %v19566_v1, %v22098_v63  ;;  %v19649_v46 = vadd.f32 %v10431_v42, %v19466_v21  ;;  %v10432_v9 = vpop.f32.mrb[160].mxu1  ;;  %v19651_v19 = vadd.f32 %v10946_v36, %v10945_v33  ;;  %v22102_v63 = vand.u32 4294901760, %v19560_v54  ;;  %v13709_v33 = vld [vmem:[#allocation9 + $0x240] sm:$0xff]  ;;  %v22104_v36 = vld [vmem:[#allocation45_spill] sm:$0xff]  ;;  %v22109_v42 = vld [vmem:[#allocation126_spill] sm:$0xff] }
 0x5fd   : > { %v8345_v49 = vsub.f32 %v19570_v59, %v22099_v11  ;;  %v10433_v11 = vpop.f32.mrb[161].mxu1  ;;  %7994 = vmatmul.mubr.f32.gmra.mrb[10].mxu1 %v22103_v48  ;;  %v22105_v26 = vand.u32 4294901760, %v22104_v36  ;;  %v19674_v21 = vsub.f32 %v13710_v2, %v22108_v57  ;;  %v22116_v2 = vld [vmem:[#allocation107_spill] sm:$0xff] }
 0x5fe   : > { %22100 = vst [vmem:[#allocation143_spill] sm:$0xff] %v19651_v19  ;;  %v19659_v25 = vsub.f32 %v19560_v54, %v22102_v63  ;;  %v10434_v27 = vadd.f32 %v10433_v11, %v10432_v9  ;;  %13156 = vmatpush3.bf16.msra.mxu1 %v22097_v17  ;;  %7999 = vmatprep.mubr.f32.mxu1 %v22106_v28  ;;  %v10948_v63 = vpop.f32.mrb[168].mxu0  ;;  %v8339_v36 = vand.u32 4294901760, %v8338_v39  ;;  %v22110_v9 = vand.u32 4294901760, %v19603_v43  ;;  %v22113_v39 = vld [vmem:[#allocation154_spill] sm:$0xff] }
 0x5ff   : > { %v19667_v19 = vsub.f32 %v13709_v33, %v22105_v26  ;;  %13158 = vmatprep.subr.bf16.mxu1 %v22109_v42  ;;  %v10949_v0 = vpop.f32.mrb[169].mxu0  ;;  %v8346_v26 = vand.u32 4294901760, %v8345_v49  ;;  %v22111_v28 = vand.u32 4294901760, %v19607_v5  ;;  %v22114_v49 = vand.u32 4294901760, %v19628_v3 }
 0x600   : > { %v8352_v11 = vsub.f32 %v19603_v43, %v22110_v9  ;;  %v19684_v10 = vadd.f32 %v10434_v27, %v19478_v30  ;;  %v10435_v33 = vpop.f32.mrb[162].mxu1  ;;  %v19686_v57 = vadd.f32 %v10949_v0, %v10948_v63  ;;  %v22115_v17 = vand.u32 4294901760, %v19632_v13 }
 0x601   : > { %v8359_v35 = vsub.f32 %v19607_v5, %v22111_v28  ;;  %v10436_v48 = vpop.f32.mrb[163].mxu1  ;;  %8001 = vmatmul.mubr.f32.gmra.mrb[12].mxu1 %v22113_v39  ;;  %v8366_v9 = vsub.f32 %v19628_v3, %v22114_v49  ;;  %v19698_v30 = vsub.f32 %v19588_v32, %v19617_v37  ;;  %v13711_v39 = vld [vmem:[#allocation9 + $0x250] sm:$0xff]  ;;  %v22117_v49 = vand.u32 4294901760, %v22116_v2 }
 0x602   : > { %22112 = vst [vmem:[#allocation31_spill] sm:$0xff] %v19686_v57  ;;  %v8373_v28 = vsub.f32 %v19632_v13, %v22115_v17  ;;  %v10437_v23 = vadd.f32 %v10436_v48, %v10435_v33  ;;  %13160 = vmatpush3.bf16.msra.mxu1 %v22109_v42  ;;  %11841 = vmatprep.mubr.f32.mxu1 %v8244_v40  ;;  %v10951_v27 = vpop.f32.mrb[170].mxu0  ;;  %v22118_v17 = vld [vmem:[#allocation104_spill] sm:$0xff]  ;;  %v8264_v32 = vand.u32 4294901760, %v8263_v18  ;;  %v8353_v33 = vand.u32 4294901760, %v8352_v11 }
 0x603   : > { %v19705_v57 = vsub.f32 %v13711_v39, %v22117_v49  ;;  %v22119_v62 = vand.u32 4294901760, %v22118_v17  ;;  %13162 = vmatprep.subr.bf16.mxu1 %v13161_v61  ;;  %v13165_v0 = vpack.c.bf16 %v8346_v26, %v8339_v36  ;;  %v10952_v48 = vpop.f32.mrb[171].mxu0  ;;  %v8360_v42 = vand.u32 4294901760, %v8359_v35 }
 0x604   : > { %v19712_v40 = vadd.f32 %v10437_v23, %v19487_v8  ;;  %v10438_v63 = vpop.f32.mrb[164].mxu1  ;;  %v19714_v14 = vadd.f32 %v10952_v48, %v10951_v27  ;;  %v22121_v2 = vand.u32 4294901760, %v19614_v45  ;;  %v22122_v49 = vand.u32 4294901760, %v19621_v15  ;;  %v22126_v8 = vld [vmem:[#allocation112_spill] sm:$0xff] }
 0x605   : > { %v19709_v53 = vsub.f32 %v13712_v41, %v22119_v62  ;;  %v10439_v41 = vpop.f32.mrb[165].mxu1  ;;  %v22123_v18 = vand.u32 4294901760, %v19538_v12  ;;  %v8367_v36 = vand.u32 4294901760, %v8366_v9  ;;  %v8374_v26 = vand.u32 4294901760, %v8373_v28 }
 0x606   : > { %22120 = vst [vmem:[#allocation144_spill] sm:$0xff] %v19714_v14  ;;  %v8283_v39 = vsub.f32 %v19614_v45, %v22121_v2  ;;  %v8293_v62 = vsub.f32 %v19621_v15, %v22122_v49  ;;  %v22124_v11 = vand.u32 4294901760, %v19667_v19  ;;  %v10440_v23 = vadd.f32 %v10439_v41, %v10438_v63  ;;  %v10954_v27 = vpop.f32.mrb[172].mxu0 }
 0x607   : > { %11842 = vmatmul.mubr.f32.vlgmr.msra.gmra.mrb[14].mxu1 %v22123_v18  ;;  %v22125_v17 = vand.u32 4294901760, %v19674_v21  ;;  %v8274_v9 = vand.u32 4294901760, %v19659_v25  ;;  %v13169_v28 = vpack.c.bf16 %v8360_v42, %v8353_v33  ;;  %v10955_v49 = vpop.f32.mrb[173].mxu0  ;;  %v13713_v18 = vld [vmem:[#allocation9 + $0x260] sm:$0xff]  ;;  %v22131_v25 = vand.u32 4294901760, %v19624_v22 }
 0x608   : > { %v8380_v35 = vsub.f32 %v19667_v19, %v22124_v11  ;;  %13164 = vmatpush3.bf16.msra.mxu1 %v13161_v61  ;;  %11844 = vmatprep.mubr.f32.mxu1 %v8264_v32  ;;  %v22127_v11 = vand.u32 4294901760, %v22126_v8  ;;  %v13714_v61 = vld [vmem:[#allocation9 + $0x268] sm:$0xff]  ;;  %v10441_v2 = vpop.f32.mrb[166].mxu1  ;;  %v8284_v12 = vand.u32 4294901760, %v8283_v39  ;;  %v19745_v15 = vadd.f32 %v10955_v49, %v10954_v27 }
 0x609   : > { %v8387_v48 = vsub.f32 %v19674_v21, %v22125_v17  ;;  %13166 = vmatprep.subr.bf16.mxu1 %v13165_v0  ;;  %v22128_v32 = vld [vmem:[#allocation120_spill] sm:$0xff]  ;;  %v19743_v17 = vadd.f32 %v10440_v23, %v19501_v29  ;;  %v8303_v42 = vsub.f32 %v19624_v22, %v22131_v25  ;;  %v10442_v33 = vpop.f32.mrb[167].mxu1  ;;  %v8294_v8 = vand.u32 4294901760, %v8293_v62  ;;  %v22139_v25 = vld [vmem:[#allocation122_spill] sm:$0xff] }
 0x60a   : > { %v19736_v63 = vsub.f32 %v13713_v18, %v22127_v11  ;;  %v22129_v41 = vand.u32 4294901760, %v22128_v32  ;;  %22130 = vst [vmem:[#allocation61_spill] sm:$0xff] %v19745_v15  ;;  %v13173_v18 = vpack.c.bf16 %v8374_v26, %v8367_v36  ;;  %v22132_v11 = vand.u32 4294901760, %v19698_v30  ;;  %v19753_v29 = vpop.f32.mrb[174].mxu0 }
 0x60b   : > { %11845 = vmatmul.mubr.f32.gmra.mrb[16].mxu1 %v8274_v9  ;;  %v8381_v32 = vand.u32 4294901760, %v8380_v35  ;;  %22133 = vst [vmem:[#allocation146_spill] sm:$0xff] %v19753_v29  ;;  %v8388_v39 = vand.u32 4294901760, %v8387_v48  ;;  %v22134_v23 = vand.u32 4294901760, %v19705_v57  ;;  %v22135_v49 = vand.u32 4294901760, %v19709_v53  ;;  %v19761_v36 = vpop.f32.mrb[175].mxu0 }
 0x60c   : > { %v19740_v14 = vsub.f32 %v13714_v61, %v22129_v41  ;;  %v8313_v61 = vsub.f32 %v19698_v30, %v22132_v11  ;;  %v10443_v41 = vadd.f32 %v10442_v33, %v10441_v2  ;;  %13168 = vmatpush3.bf16.msra.mxu1 %v13165_v0  ;;  %11847 = vmatprep.mubr.f32.mxu1 %v8284_v12  ;;  %v13715_v0 = vld [vmem:[#allocation9 + $0x270] sm:$0xff]  ;;  %v22137_v2 = vld [vmem:[#allocation123_spill] sm:$0xff]  ;;  %v13716_v48 = vld [vmem:[#allocation9 + $0x278] sm:$0xff]  ;;  %v22140_v33 = vand.u32 4294901760, %v22139_v25 }
 0x60d   : > { %v8394_v27 = vsub.f32 %v19705_v57, %v22134_v23  ;;  %v8401_v62 = vsub.f32 %v19709_v53, %v22135_v49  ;;  %13170 = vmatprep.subr.bf16.mxu1 %v13169_v28  ;;  %22136 = vst [vmem:[#allocation27_spill] sm:$0xff] %v19761_v36  ;;  %v22138_v12 = vand.u32 4294901760, %v22137_v2  ;;  %v10444_v49 = vpop.f32.mrb[168].mxu1  ;;  %v8304_v29 = vand.u32 4294901760, %v8303_v42 }
 0x60e   : > { %v19771_v11 = vsub.f32 %v13716_v48, %v22140_v33  ;;  %v19774_v23 = vadd.f32 %v10443_v41, %v19512_v6  ;;  %v10445_v36 = vpop.f32.mrb[169].mxu1  ;;  %v8314_v26 = vand.u32 4294901760, %v8313_v61  ;;  %v13177_v35 = vpack.c.bf16 %v8388_v39, %v8381_v32 }
 0x60f   : > { %v19767_v9 = vsub.f32 %v13715_v0, %v22138_v12  ;;  %11848 = vmatmul.mubr.f32.gmra.mrb[18].mxu1 %v8294_v8  ;;  %v10446_v15 = vadd.f32 %v10445_v36, %v10444_v49  ;;  %v8395_v2 = vand.u32 4294901760, %v8394_v27  ;;  %v8402_v0 = vand.u32 4294901760, %v8401_v62 }
 0x610   : > { %13172 = vmatpush3.bf16.msra.mxu1 %v13169_v28  ;;  %11850 = vmatprep.mubr.f32.mxu1 %v8304_v29  ;;  %v22141_v12 = vand.u32 4294901760, %v19736_v63  ;;  %v22142_v25 = vand.u32 4294901760, %v19740_v14  ;;  %v8428_v8 = vand.u32 4294901760, %v19771_v11  ;;  %v10447_v28 = vpop.f32.mrb[170].mxu1 }
 0x611   : > { %13174 = vmatprep.subr.bf16.mxu1 %v13173_v18  ;;  %v8421_v42 = vand.u32 4294901760, %v19767_v9  ;;  %v19785_v61 = vadd.f32 %v10446_v15, %v19541_v31  ;;  %v10448_v32 = vpop.f32.mrb[171].mxu1  ;;  %v13181_v29 = vpack.c.bf16 %v8402_v0, %v8395_v2 }
 0x612   : > { %v8408_v48 = vsub.f32 %v19736_v63, %v22141_v12  ;;  %v8415_v6 = vsub.f32 %v19740_v14, %v22142_v25  ;;  %v10449_v41 = vadd.f32 %v10448_v32, %v10447_v28  ;;  %v8429_v31 = vsub.f32 %v19771_v11, %v8428_v8 }
 0x613   : > { %11851 = vmatmul.mubr.f32.gmra.mrb[20].mxu1 %v8314_v26  ;;  %v8422_v62 = vsub.f32 %v19767_v9, %v8421_v42 }
 0x614   : > { %13176 = vmatpush3.bf16.msra.mxu1 %v13173_v18  ;;  %11885 = vmatprep.mubr.f32.mxu1 %v22072_v34  ;;  %v8409_v39 = vand.u32 4294901760, %v8408_v48  ;;  %v8416_v27 = vand.u32 4294901760, %v8415_v6  ;;  %v19795_v15 = vadd.f32 %v10449_v41, %v19572_v51  ;;  %v10450_v36 = vpop.f32.mrb[172].mxu1  ;;  %v8430_v2 = vand.u32 4294901760, %v8429_v31 }
 0x615   : > { %13178 = vmatprep.subr.bf16.mxu1 %v13177_v35  ;;  %v10451_v26 = vpop.f32.mrb[173].mxu1  ;;  %v8423_v49 = vand.u32 4294901760, %v8422_v62 }
 0x616   : > { %v10452_v18 = vadd.f32 %v10451_v26, %v10450_v36  ;;  %v13185_v33 = vpack.c.bf16 %v8416_v27, %v8409_v39 }
 0x617   : > { %v13189_v6 = vpack.c.bf16 %v8430_v2, %v8423_v49 }
 0x618   : > { %13180 = vmatpush3.bf16.msra.mxu1 %v13177_v35  ;;  %v19798_v0 = vadd.f32 %v10452_v18, %v19609_v58  ;;  %v10485_v12 = vpop.f32.mrb[174].mxu1  ;;  %v13193_v35 = vpack.c.bf16 %v19531_v38, %v19520_v16 }
 0x619   : > { %13182 = vmatprep.subr.bf16.mxu1 %v13181_v29  ;;  %v10486_v48 = vpop.f32.mrb[175].mxu1 }
 0x61a   : > { %v10487_v25 = vadd.f32 %v10486_v48, %v10485_v12 }
 0x61c   : > { %13184 = vmatpush3.bf16.msra.mxu1 %v13181_v29  ;;  %v19801_v51 = vadd.f32 %v10487_v25, %v19649_v46  ;;  %v10488_v28 = vpop.f32.mrb[176].mxu1  ;;  %v13197_v46 = vpack.c.bf16 %v19570_v59, %v19566_v1 }
 0x61d   : > { %13186 = vmatprep.subr.bf16.mxu1 %v13185_v33  ;;  %v10489_v32 = vpop.f32.mrb[177].mxu1 }
 0x61e   : > { %v10490_v41 = vadd.f32 %v10489_v32, %v10488_v28 }
 0x620   : > { %13188 = vmatpush3.bf16.msra.mxu1 %v13185_v33  ;;  %v19806_v58 = vadd.f32 %v10490_v41, %v19684_v10  ;;  %v10491_v39 = vpop.f32.mrb[178].mxu1  ;;  %v13201_v10 = vpack.c.bf16 %v19607_v5, %v19603_v43 }
 0x621   : > { %13190 = vmatprep.subr.bf16.mxu1 %v13189_v6  ;;  %v10492_v27 = vpop.f32.mrb[179].mxu1 }
 0x622   : > { %v10493_v62 = vadd.f32 %v10492_v27, %v10491_v39 }
 0x624   : > { %13192 = vmatpush3.bf16.msra.mxu1 %v13189_v6  ;;  %v6477_v29 = vadd.f32 %v10493_v62, %v19712_v40  ;;  %v10494_v31 = vpop.f32.mrb[180].mxu1  ;;  %v13205_v40 = vpack.c.bf16 %v19632_v13, %v19628_v3 }
 0x625   : > { %13194 = vmatprep.subr.bf16.mxu1 %v13193_v35  ;;  %v10495_v36 = vpop.f32.mrb[181].mxu1 }
 0x626   : > { %v10496_v26 = vadd.f32 %v10495_v36, %v10494_v31 }
 0x627   : > { %11886 = vmatmul.mubr.f32.vlgmr.msra.gmra.mrb[14].mxu1 %v22055_v55 }
 0x628   : > { %11888 = vmatprep.mubr.f32.mxu1 %v19522_v52  ;;  %13196 = vmatpush3.bf16.msra.mxu1 %v13193_v35  ;;  %v6488_v18 = vadd.f32 %v10496_v26, %v19743_v17  ;;  %v10497_v33 = vpop.f32.mrb[182].mxu1  ;;  %v13209_v17 = vpack.c.bf16 %v19674_v21, %v19667_v19 }
 0x629   : > { %13198 = vmatprep.subr.bf16.mxu1 %v13197_v46  ;;  %v10498_v49 = vpop.f32.mrb[183].mxu1 }
 0x62a   : > { %v10499_v2 = vadd.f32 %v10498_v49, %v10497_v33  ;;  %v13221_v33 = vpack.c.bf16 %v19771_v11, %v19767_v9 }
 0x62b   : > { %11889 = vmatmul.mubr.f32.gmra.mrb[16].mxu1 %v19533_v44 }
 0x62c   : > { %11891 = vmatprep.mubr.f32.mxu1 %v19576_v47  ;;  %13200 = vmatpush3.bf16.msra.mxu1 %v13197_v46  ;;  %v6499_v12 = vadd.f32 %v10499_v2, %v19774_v23  ;;  %v10500_v48 = vpop.f32.mrb[184].mxu1  ;;  %v13213_v23 = vpack.c.bf16 %v19709_v53, %v19705_v57 }
 0x62d   : > { %13202 = vmatprep.subr.bf16.mxu1 %v13201_v10  ;;  %v10501_v25 = vpop.f32.mrb[185].mxu1 }
 0x62e   : > { %v10502_v6 = vadd.f32 %v10501_v25, %v10500_v48 }
 0x62f   : > { %11892 = vmatmul.mubr.f32.gmra.mrb[18].mxu1 %v19578_v60 }
 0x630   : > { %11894 = vmatprep.mubr.f32.mxu1 %v19586_v20  ;;  %13204 = vmatpush3.bf16.msra.mxu1 %v13201_v10  ;;  %v6510_v28 = vadd.f32 %v10502_v6, %v19785_v61  ;;  %v10503_v32 = vpop.f32.mrb[186].mxu1  ;;  %v13217_v61 = vpack.c.bf16 %v19740_v14, %v19736_v63 }
 0x631   : > { %13206 = vmatprep.subr.bf16.mxu1 %v13205_v40  ;;  %v10504_v41 = vpop.f32.mrb[187].mxu1 }
 0x632   : > { %v10505_v35 = vadd.f32 %v10504_v41, %v10503_v32 }
 0x633   : > { %11895 = vmatmul.mubr.f32.gmra.mrb[20].mxu1 %v19617_v37 }
 0x634   : > { %13208 = vmatpush3.bf16.msra.mxu1 %v13205_v40  ;;  %11929 = vmatprep.mubr.f32.mxu1 %v19548_v4  ;;  %v6521_v39 = vadd.f32 %v10505_v35, %v19795_v15  ;;  %v10506_v27 = vpop.f32.mrb[188].mxu1 }
 0x635   : > { %13210 = vmatprep.subr.bf16.mxu1 %v13209_v17  ;;  %v10507_v62 = vpop.f32.mrb[189].mxu1 }
 0x636   : > { %v10508_v46 = vadd.f32 %v10507_v62, %v10506_v27 }
 0x638   : > { %13212 = vmatpush3.bf16.msra.mxu1 %v13209_v17  ;;  %v6532_v31 = vadd.f32 %v10508_v46, %v19798_v0  ;;  %v10541_v36 = vpop.f32.mrb[190].mxu1 }
 0x639   : > { %13214 = vmatprep.subr.bf16.mxu1 %v13213_v23  ;;  %v10542_v26 = vpop.f32.mrb[191].mxu1 }
 0x63a   : > { %v10543_v10 = vadd.f32 %v10542_v26, %v10541_v36 }
 0x63c   : > { %13216 = vmatpush3.bf16.msra.mxu1 %v13213_v23  ;;  %v6700_v15 = vadd.f32 %v10543_v10, %v19801_v51  ;;  %v10544_v49 = vpop.f32.mrb[192].mxu1 }
 0x63d   : > { %13218 = vmatprep.subr.bf16.mxu1 %v13217_v61  ;;  %v10545_v2 = vpop.f32.mrb[193].mxu1 }
 0x63e   : > { %v10546_v40 = vadd.f32 %v10545_v2, %v10544_v49 }
 0x640   : > { %13220 = vmatpush3.bf16.msra.mxu1 %v13217_v61  ;;  %v6707_v48 = vadd.f32 %v10546_v40, %v19806_v58  ;;  %v10547_v25 = vpop.f32.mrb[194].mxu1  ;;  %v22144_v61 = vld [vmem:[#allocation35_spill] sm:$0xff]  ;;  %v22147_v40 = vld [vmem:[#allocation113_spill] sm:$0xff] }
 0x641   : > { %13222 = vmatprep.subr.bf16.mxu1 %v13221_v33  ;;  %v10548_v6 = vpop.f32.mrb[195].mxu1 }
 0x642   : > { %v10549_v0 = vadd.f32 %v10548_v6, %v10547_v25 }
 0x644   : > { %13224 = vmatpush3.bf16.msra.mxu1 %v13221_v33  ;;  %v6714_v17 = vadd.f32 %v10549_v0, %v6477_v29  ;;  %v10550_v32 = vpop.f32.mrb[196].mxu1  ;;  %v22143_v29 = vld [vmem:[#allocation60_spill] sm:$0xff] }
 0x645   : > { %13226 = vmatprep.subr.bf16.mxu1 %v22051_v56  ;;  %v10551_v41 = vpop.f32.mrb[197].mxu1 }
 0x646   : > { %v10552_v35 = vadd.f32 %v10551_v41, %v10550_v32  ;;  %v22148_v41 = vld [vmem:[#allocation118_spill] sm:$0xff] }
 0x647   : > { %11930 = vmatmul.mubr.f32.vlgmr.msra.gmra.mrb[14].mxu1 %v19498_v50 }
 0x648   : > { %11932 = vmatprep.mubr.f32.mxu1 %v19552_v7  ;;  %13228 = vmatpush3.bf16.msra.mxu1 %v22051_v56  ;;  %v6721_v51 = vadd.f32 %v10552_v35, %v6488_v18  ;;  %v10553_v58 = vpop.f32.mrb[198].mxu1  ;;  %v22145_v18 = vld [vmem:[#allocation82_spill] sm:$0xff] }
 0x649   : > { %13230 = vmatprep.subr.bf16.mxu1 %v22057_v24  ;;  %v10554_v23 = vpop.f32.mrb[199].mxu1 }
 0x64a   : > { %v10555_v27 = vadd.f32 %v10554_v23, %v10553_v58 }
 0x64b   : > { %11933 = vmatmul.mubr.f32.gmra.mrb[16].mxu1 %v19560_v54 }
 0x64c   : > { %11935 = vmatprep.mubr.f32.mxu1 %v19614_v45  ;;  %13232 = vmatpush3.bf16.msra.mxu1 %v22057_v24  ;;  %v6728_v62 = vadd.f32 %v10555_v27, %v6499_v12  ;;  %v10556_v46 = vpop.f32.mrb[200].mxu1  ;;  %v22146_v12 = vand.u32 4294901760, %v19548_v4  ;;  %v22149_v27 = vld [vmem:[#allocation127_spill] sm:$0xff] }
 0x64d   : > { %13234 = vmatprep.subr.bf16.mxu1 %v22143_v29  ;;  %v10557_v36 = vpop.f32.mrb[201].mxu1 }
 0x64e   : > { %v10558_v26 = vadd.f32 %v10557_v36, %v10556_v46 }
 0x64f   : > { %11936 = vmatmul.mubr.f32.gmra.mrb[18].mxu1 %v22144_v61 }
 0x650   : > { %11938 = vmatprep.mubr.f32.mxu1 %v19624_v22  ;;  %13236 = vmatpush3.bf16.msra.mxu1 %v22143_v29  ;;  %v6735_v10 = vadd.f32 %v10558_v26, %v6510_v28  ;;  %v10559_v33 = vpop.f32.mrb[202].mxu1  ;;  %v22150_v26 = vld [vmem:[#allocation126_spill] sm:$0xff] }
 0x651   : > { %13238 = vmatprep.subr.bf16.mxu1 %v22145_v18  ;;  %v10560_v49 = vpop.f32.mrb[203].mxu1 }
 0x652   : > { %v10561_v2 = vadd.f32 %v10560_v49, %v10559_v33  ;;  %v22151_v33 = vand.u32 4294901760, %v19520_v16  ;;  %v22155_v16 = vand.u32 4294901760, %v19498_v50 }
 0x653   : > { %11939 = vmatmul.mubr.f32.gmra.mrb[20].mxu1 %v19698_v30 }
 0x654   : > { %13240 = vmatpush3.bf16.msra.mxu1 %v22145_v18  ;;  %11973 = vmatprep.mubr.f32.mxu1 %v22146_v12  ;;  %v6742_v25 = vadd.f32 %v10561_v2, %v6521_v39  ;;  %v10562_v6 = vpop.f32.mrb[204].mxu1 }
 0x655   : > { %13242 = vmatprep.subr.bf16.mxu1 %v22147_v40  ;;  %v10563_v0 = vpop.f32.mrb[205].mxu1 }
 0x656   : > { %v10564_v32 = vadd.f32 %v10563_v0, %v10562_v6 }
 0x658   : > { %13244 = vmatpush3.bf16.msra.mxu1 %v22147_v40  ;;  %v19858_v28 = vadd.f32 %v10564_v32, %v6532_v31  ;;  %v10597_v35 = vpop.f32.mrb[206].mxu1  ;;  %v22152_v31 = vand.u32 4294901760, %v19531_v38  ;;  %v22154_v32 = vand.u32 4294901760, %v19570_v59 }
 0x659   : > { %13246 = vmatprep.subr.bf16.mxu1 %v22148_v41  ;;  %v10598_v58 = vpop.f32.mrb[207].mxu1 }
 0x65a   : > { %v10599_v23 = vadd.f32 %v10598_v58, %v10597_v35  ;;  %v13257_v49 = vpack.c.bf16 %v22152_v31, %v22151_v33  ;;  %v22159_v33 = vand.u32 4294901760, %v19560_v54 }
 0x65c   : > { %13248 = vmatpush3.bf16.msra.mxu1 %v22148_v41  ;;  %v19862_v4 = vadd.f32 %v10599_v23, %v6700_v15  ;;  %v10600_v46 = vpop.f32.mrb[208].mxu1  ;;  %v22153_v15 = vand.u32 4294901760, %v19566_v1  ;;  %v22158_v1 = vand.u32 4294901760, %v19607_v5 }
 0x65d   : > { %13250 = vmatprep.subr.bf16.mxu1 %v22149_v27  ;;  %v10601_v39 = vpop.f32.mrb[209].mxu1 }
 0x65e   : > { %v10602_v36 = vadd.f32 %v10601_v39, %v10600_v46  ;;  %v13261_v35 = vpack.c.bf16 %v22154_v32, %v22153_v15  ;;  %v22156_v46 = vand.u32 4294901760, %v19552_v7  ;;  %v22157_v39 = vand.u32 4294901760, %v19603_v43 }
 0x65f   : > { %v22161_v7 = vand.u32 4294901760, %v19628_v3  ;;  %v22162_v43 = vand.u32 4294901760, %v19632_v13  ;;  %v22164_v15 = vand.u32 4294901760, %v19624_v22  ;;  %v22166_v3 = vand.u32 4294901760, %v19674_v21 }
 0x660   : > { %13252 = vmatpush3.bf16.msra.mxu1 %v22149_v27  ;;  %v19870_v2 = vadd.f32 %v10602_v36, %v6707_v48  ;;  %v10603_v12 = vpop.f32.mrb[210].mxu1  ;;  %v13265_v36 = vpack.c.bf16 %v22158_v1, %v22157_v39  ;;  %v22168_v22 = vand.u32 4294901760, %v19705_v57 }
 0x661   : > { %13254 = vmatprep.subr.bf16.mxu1 %v22150_v26  ;;  %v10604_v6 = vpop.f32.mrb[211].mxu1 }
 0x662   : > { %v10605_v0 = vadd.f32 %v10604_v6, %v10603_v12  ;;  %v22160_v12 = vand.u32 4294901760, %v19614_v45  ;;  %v22163_v6 = vand.u32 4294901760, %v22144_v61  ;;  %v22165_v45 = vand.u32 4294901760, %v19667_v19 }
 0x664   : > { %13256 = vmatpush3.bf16.msra.mxu1 %v22150_v26  ;;  %v19877_v58 = vadd.f32 %v10605_v0, %v6714_v17  ;;  %v10606_v23 = vpop.f32.mrb[212].mxu1  ;;  %v13273_v32 = vpack.c.bf16 %v22166_v3, %v22165_v45  ;;  %v22176_v3 = vld [vmem:[#allocation42_spill] sm:$0xff] }
 0x665   : > { %13258 = vmatprep.subr.bf16.mxu1 %v13257_v49  ;;  %v10607_v38 = vpop.f32.mrb[213].mxu1 }
 0x666   : > { %v10608_v48 = vadd.f32 %v10607_v38, %v10606_v23 }
 0x667   : > { %11974 = vmatmul.mubr.f32.vlgmr.msra.gmra.mrb[14].mxu1 %v22155_v16  ;;  %v22169_v16 = vand.u32 4294901760, %v19709_v53  ;;  %v13285_v53 = vpack.c.bf16 %v8428_v8, %v8421_v42 }
 0x668   : > { %11976 = vmatprep.mubr.f32.mxu1 %v22156_v46  ;;  %13260 = vmatpush3.bf16.msra.mxu1 %v13257_v49  ;;  %v19887_v59 = vadd.f32 %v10608_v48, %v6721_v51  ;;  %v10609_v17 = vpop.f32.mrb[214].mxu1  ;;  %v13269_v49 = vpack.c.bf16 %v22162_v43, %v22161_v7  ;;  %v22171_v46 = vand.u32 4294901760, %v19740_v14  ;;  %v22172_v14 = vld [vmem:[#allocation87_spill] sm:$0xff]  ;;  %v22173_v43 = vld [vmem:[#allocation36_spill] sm:$0xff] }
 0x669   : > { %13262 = vmatprep.subr.bf16.mxu1 %v13261_v35  ;;  %v10610_v50 = vpop.f32.mrb[215].mxu1  ;;  %v13277_v19 = vpack.c.bf16 %v22169_v16, %v22168_v22 }
 0x66a   : > { %v10611_v31 = vadd.f32 %v10610_v50, %v10609_v17 }
 0x66b   : > { %11977 = vmatmul.mubr.f32.gmra.mrb[16].mxu1 %v22159_v33 }
 0x66c   : > { %11979 = vmatprep.mubr.f32.mxu1 %v22160_v12  ;;  %13264 = vmatpush3.bf16.msra.mxu1 %v13261_v35  ;;  %v19897_v5 = vadd.f32 %v10611_v31, %v6728_v62  ;;  %v10612_v51 = vpop.f32.mrb[216].mxu1  ;;  %v22167_v35 = vand.u32 4294901760, %v19698_v30  ;;  %v22170_v30 = vand.u32 4294901760, %v19736_v63 }
 0x66d   : > { %13266 = vmatprep.subr.bf16.mxu1 %v13265_v36  ;;  %v10613_v54 = vpop.f32.mrb[217].mxu1 }
 0x66e   : > { %v10614_v0 = vadd.f32 %v10613_v54, %v10612_v51  ;;  %v13281_v39 = vpack.c.bf16 %v22171_v46, %v22170_v30  ;;  %v22179_v30 = vld [vmem:[#allocation92_spill] sm:$0xff] }
 0x66f   : > { %11980 = vmatmul.mubr.f32.gmra.mrb[18].mxu1 %v22163_v6 }
 0x670   : > { %11982 = vmatprep.mubr.f32.mxu1 %v22164_v15  ;;  %13268 = vmatpush3.bf16.msra.mxu1 %v13265_v36  ;;  %v19907_v13 = vadd.f32 %v10614_v0, %v6735_v10  ;;  %v10615_v62 = vpop.f32.mrb[218].mxu1 }
 0x671   : > { %13270 = vmatprep.subr.bf16.mxu1 %v13269_v49  ;;  %v10616_v61 = vpop.f32.mrb[219].mxu1 }
 0x672   : > { %v10617_v23 = vadd.f32 %v10616_v61, %v10615_v62  ;;  %v22177_v61 = vld [vmem:[#allocation74_spill] sm:$0xff] }
 0x673   : > { %11983 = vmatmul.mubr.f32.gmra.mrb[20].mxu1 %v22167_v35 }
 0x674   : > { %13272 = vmatpush3.bf16.msra.mxu1 %v13269_v49  ;;  %12017 = vmatprep.mubr.f32.mxu1 %v22072_v34  ;;  %v19916_v38 = vadd.f32 %v10617_v23, %v6742_v25  ;;  %v10618_v21 = vpop.f32.mrb[220].mxu1 }
 0x675   : > { %13274 = vmatprep.subr.bf16.mxu1 %v13273_v32  ;;  %v10619_v10 = vpop.f32.mrb[221].mxu1 }
 0x676   : > { %v10620_v48 = vadd.f32 %v10619_v10, %v10618_v21 }
 0x678   : > { %13276 = vmatpush3.bf16.msra.mxu1 %v13273_v32  ;;  %v19923_v34 = vadd.f32 %v10620_v48, %v19858_v28  ;;  %v10653_v1 = vpop.f32.mrb[222].mxu1 }
 0x679   : > { %13278 = vmatprep.subr.bf16.mxu1 %v13277_v19  ;;  %v10654_v57 = vpop.f32.mrb[223].mxu1 }
 0x67a   : > { %v10655_v36 = vadd.f32 %v10654_v57, %v10653_v1 }
 0x67c   : > { %13280 = vmatpush3.bf16.msra.mxu1 %v13277_v19  ;;  %v7014_v25 = vadd.f32 %v10655_v36, %v19862_v4  ;;  %v10656_v17 = vpop.f32.mrb[224].mxu1 }
 0x67d   : > { %13282 = vmatprep.subr.bf16.mxu1 %v13281_v39  ;;  %v10657_v63 = vpop.f32.mrb[225].mxu1 }
 0x67e   : > { %v10658_v33 = vadd.f32 %v10657_v63, %v10656_v17  ;;  %v7351_v50 = vadd.f32 %v22172_v14, %v7014_v25 }
 0x680   : > { %13284 = vmatpush3.bf16.msra.mxu1 %v13281_v39  ;;  %v7029_v28 = vadd.f32 %v10658_v33, %v19870_v2  ;;  %v10659_v31 = vpop.f32.mrb[226].mxu1  ;;  %v22174_v2 = vld [vmem:[#allocation21_spill] sm:$0xff] }
 0x681   : > { %13286 = vmatprep.subr.bf16.mxu1 %v13285_v53  ;;  %v10660_v12 = vpop.f32.mrb[227].mxu1 }
 0x682   : > { %v10661_v7 = vadd.f32 %v10660_v12, %v10659_v31  ;;  %v7358_v9 = vadd.f32 %v22173_v43, %v7029_v28 }
 0x684   : > { %13288 = vmatpush3.bf16.msra.mxu1 %v13285_v53  ;;  %v7044_v11 = vadd.f32 %v10661_v7, %v19877_v58  ;;  %v10662_v42 = vpop.f32.mrb[228].mxu1 }
 0x685   : > { %13321 = vmatprep.subr.bf16.mxu1 %v22051_v56  ;;  %v10663_v8 = vpop.f32.mrb[229].mxu1 }
 0x686   : > { %v10664_v4 = vadd.f32 %v10663_v8, %v10662_v42  ;;  %v7365_v49 = vadd.f32 %v22174_v2, %v7044_v11  ;;  %v22184_v2 = vld [vmem:[#allocation128_spill] sm:$0xff] }
 0x687   : > { %12018 = vmatmul.mubr.f32.vlgmr.msra.gmra.mrb[14].mxu1 %v22055_v55  ;;  %v22175_v55 = vld [vmem:[#allocation23_spill] sm:$0xff] }
 0x688   : > { %12020 = vmatprep.mubr.f32.mxu1 %v19522_v52  ;;  %13329 = vmatpush3.bf16.msra.mxu1 %v22051_v56  ;;  %v7059_v51 = vadd.f32 %v10664_v4, %v19887_v59  ;;  %v10665_v6 = vpop.f32.mrb[230].mxu1 }
 0x689   : > { %13322 = vmatprep.subr.bf16.mxu1 %v22057_v24  ;;  %v10666_v54 = vpop.f32.mrb[231].mxu1 }
 0x68a   : > { %v10667_v58 = vadd.f32 %v10666_v54, %v10665_v6  ;;  %v7372_v0 = vadd.f32 %v22175_v55, %v7059_v51 }
 0x68b   : > { %12021 = vmatmul.mubr.f32.gmra.mrb[16].mxu1 %v19533_v44 }
 0x68c   : > { %12023 = vmatprep.mubr.f32.mxu1 %v19576_v47  ;;  %13330 = vmatpush3.bf16.msra.mxu1 %v22057_v24  ;;  %v7074_v56 = vadd.f32 %v10667_v58, %v19897_v5  ;;  %v10668_v15 = vpop.f32.mrb[232].mxu1  ;;  %v22185_v58 = vld [vmem:[#allocation50_spill] sm:$0xff] }
 0x68d   : > { %13323 = vmatprep.subr.bf16.mxu1 %v22143_v29  ;;  %v10669_v45 = vpop.f32.mrb[233].mxu1 }
 0x68e   : > { %v10670_v59 = vadd.f32 %v10669_v45, %v10668_v15  ;;  %v7379_v32 = vadd.f32 %v22176_v3, %v7074_v56  ;;  %v22186_v15 = vld [vmem:[#allocation19_spill] sm:$0xff] }
 0x68f   : > { %12024 = vmatmul.mubr.f32.gmra.mrb[18].mxu1 %v19578_v60 }
 0x690   : > { %12026 = vmatprep.mubr.f32.mxu1 %v19586_v20  ;;  %13331 = vmatpush3.bf16.msra.mxu1 %v22143_v29  ;;  %v7089_v24 = vadd.f32 %v10670_v59, %v19907_v13  ;;  %v10671_v62 = vpop.f32.mrb[234].mxu1  ;;  %v22178_v13 = vld [vmem:[#allocation139_spill] sm:$0xff] }
 0x691   : > { %13324 = vmatprep.subr.bf16.mxu1 %v22145_v18  ;;  %v10672_v35 = vpop.f32.mrb[235].mxu1 }
 0x692   : > { %v10673_v5 = vadd.f32 %v10672_v35, %v10671_v62  ;;  %v7386_v23 = vadd.f32 %v22177_v61, %v7089_v24  ;;  %v22187_v24 = vld [vmem:[#allocation46_spill] sm:$0xff] }
 0x693   : > { %12027 = vmatmul.mubr.f32.gmra.mrb[20].mxu1 %v19617_v37 }
 0x694   : > { %13332 = vmatpush3.bf16.msra.mxu1 %v22145_v18  ;;  %12064 = vmatprep.mubr.f32.mxu1 %v19522_v52  ;;  %v7104_v29 = vadd.f32 %v10673_v5, %v19916_v38  ;;  %v10674_v22 = vpop.f32.mrb[236].mxu1 }
 0x695   : > { %13325 = vmatprep.subr.bf16.mxu1 %v22147_v40  ;;  %v10675_v16 = vpop.f32.mrb[237].mxu1 }
 0x696   : > { %v10676_v19 = vadd.f32 %v10675_v16, %v10674_v22  ;;  %v7393_v21 = vadd.f32 %v22178_v13, %v7104_v29  ;;  %v22188_v29 = vld [vmem:[#allocation51_spill] sm:$0xff] }
 0x698   : > { %13333 = vmatpush3.bf16.msra.mxu1 %v22147_v40  ;;  %v7119_v10 = vadd.f32 %v10676_v19, %v19923_v34  ;;  %v10765_v18 = vpop.f32.mrb[238].mxu1  ;;  %v22180_v40 = vld [vmem:[#allocation142_spill] sm:$0xff] }
 0x699   : > { %13326 = vmatprep.subr.bf16.mxu1 %v22148_v41  ;;  %v10766_v48 = vpop.f32.mrb[239].mxu1 }
 0x69a   : > { %v10767_v52 = vadd.f32 %v10766_v48, %v10765_v18  ;;  %v7400_v46 = vadd.f32 %v22179_v30, %v7119_v10  ;;  %v22189_v10 = vld [vmem:[#allocation40_spill] sm:$0xff] }
 0x69c   : > { %13334 = vmatpush3.bf16.msra.mxu1 %v22148_v41  ;;  %v7538_v38 = vadd.f32 %v10767_v52, %v7351_v50  ;;  %v10768_v39 = vpop.f32.mrb[240].mxu1  ;;  %v22181_v41 = vld [vmem:[#allocation147_spill] sm:$0xff] }
 0x69d   : > { %13327 = vmatprep.subr.bf16.mxu1 %v22149_v27  ;;  %v10769_v1 = vpop.f32.mrb[241].mxu1 }
 0x69e   : > { %v10770_v57 = vadd.f32 %v10769_v1, %v10768_v39  ;;  %v7709_v36 = vadd.f32 %v22180_v40, %v7538_v38  ;;  %v22190_v38 = vld [vmem:[#allocation75_spill] sm:$0xff] }
 0x6a0   : > { %13335 = vmatpush3.bf16.msra.mxu1 %v22149_v27  ;;  %v7547_v34 = vadd.f32 %v10770_v57, %v7358_v9  ;;  %v10771_v53 = vpop.f32.mrb[242].mxu1  ;;  %v22182_v27 = vld [vmem:[#allocation105_spill] sm:$0xff] }
 0x6a1   : > { %13328 = vmatprep.subr.bf16.mxu1 %v22150_v26  ;;  %v10772_v25 = vpop.f32.mrb[243].mxu1 }
 0x6a2   : > { %v10773_v17 = vadd.f32 %v10772_v25, %v10771_v53  ;;  %v7720_v63 = vadd.f32 %v22181_v41, %v7547_v34  ;;  %v22191_v34 = vld [vmem:[#allocation141_spill] sm:$0xff] }
 0x6a4   : > { %13336 = vmatpush3.bf16.msra.mxu1 %v22150_v26  ;;  %v7556_v33 = vadd.f32 %v10773_v17, %v7365_v49  ;;  %v10774_v14 = vpop.f32.mrb[244].mxu1  ;;  %v22183_v26 = vld [vmem:[#allocation148_spill] sm:$0xff] }
 0x6a5   : > { %v10775_v50 = vpop.f32.mrb[245].mxu1 }
 0x6a6   : > { %v10776_v28 = vadd.f32 %v10775_v50, %v10774_v14  ;;  %v7731_v31 = vadd.f32 %v22182_v27, %v7556_v33  ;;  %v22192_v33 = vld [vmem:[#allocation143_spill] sm:$0xff] }
 0x6a7   : > { %12065 = vmatmul.mubr.f32.vlgmr.msra.gmra.mrb[16].mxu1 %v19533_v44 }
 0x6a8   : > { %12067 = vmatprep.mubr.f32.mxu1 %v19576_v47  ;;  %v7565_v12 = vadd.f32 %v10776_v28, %v7372_v0  ;;  %v10777_v7 = vpop.f32.mrb[246].mxu1 }
 0x6a9   : > { %v10778_v43 = vpop.f32.mrb[247].mxu1 }
 0x6aa   : > { %v10779_v9 = vadd.f32 %v10778_v43, %v10777_v7  ;;  %v7742_v11 = vadd.f32 %v22183_v26, %v7565_v12  ;;  %v22193_v12 = vld [vmem:[#allocation31_spill] sm:$0xff] }
 0x6ab   : > { %12068 = vmatmul.mubr.f32.gmra.mrb[18].mxu1 %v19578_v60 }
 0x6ac   : > { %12070 = vmatprep.mubr.f32.mxu1 %v19586_v20  ;;  %v7574_v42 = vadd.f32 %v10779_v9, %v7379_v32  ;;  %v10780_v8 = vpop.f32.mrb[248].mxu1 }
 0x6ad   : > { %v10781_v44 = vpop.f32.mrb[249].mxu1 }
 0x6ae   : > { %v10782_v4 = vadd.f32 %v10781_v44, %v10780_v8  ;;  %v7753_v47 = vadd.f32 %v22184_v2, %v7574_v42  ;;  %v22194_v42 = vld [vmem:[#allocation144_spill] sm:$0xff] }
 0x6af   : > { %12071 = vmatmul.mubr.f32.gmra.mrb[20].mxu1 %v19617_v37 }
 0x6b0   : > { %v7583_v49 = vadd.f32 %v10782_v4, %v7386_v23  ;;  %v10783_v51 = vpop.f32.mrb[250].mxu1  ;;  %v22195_v4 = vld [vmem:[#allocation61_spill] sm:$0xff] }
 0x6b1   : > { %v10784_v6 = vpop.f32.mrb[251].mxu1 }
 0x6b2   : > { %v10785_v54 = vadd.f32 %v10784_v6, %v10783_v51  ;;  %v7764_v60 = vadd.f32 %v22185_v58, %v7583_v49 }
 0x6b4   : > { %v7592_v55 = vadd.f32 %v10785_v54, %v7393_v21  ;;  %v10786_v0 = vpop.f32.mrb[252].mxu1  ;;  %v22197_v54 = vld [vmem:[#allocation146_spill] sm:$0xff] }
 0x6b5   : > { %v10787_v56 = vpop.f32.mrb[253].mxu1 }
 0x6b6   : > { %v10788_v20 = vadd.f32 %v10787_v56, %v10786_v0  ;;  %v7775_v45 = vadd.f32 %v22186_v15, %v7592_v55 }
 0x6b8   : > { %v7601_v59 = vadd.f32 %v10788_v20, %v7400_v46  ;;  %v10877_v3 = vpop.f32.mrb[254].mxu1 }
 0x6b9   : > { %v10878_v32 = vpop.f32.mrb[255].mxu1 }
 0x6ba   : > { %v10879_v37 = vadd.f32 %v10878_v32, %v10877_v3  ;;  %v7786_v62 = vadd.f32 %v22187_v24, %v7601_v59 }
 0x6bc   : > { %v7954_v35 = vadd.f32 %v10879_v37, %v7709_v36  ;;  %v10880_v5 = vpop.f32.mrb[0].mxu1 }
 0x6bd   : > { %v10881_v61 = vpop.f32.mrb[1].mxu1 }
 0x6be   : > { %v10882_v23 = vadd.f32 %v10881_v61, %v10880_v5  ;;  %v8107_v22 = vadd.f32 %v22188_v29, %v7954_v35 }
 0x6c0   : > { %v7961_v16 = vadd.f32 %v10882_v23, %v7720_v63  ;;  %v10883_v19 = vpop.f32.mrb[2].mxu1 }
 0x6c1   : > { %v10884_v13 = vpop.f32.mrb[3].mxu1 }
 0x6c2   : > { %v10885_v21 = vadd.f32 %v10884_v13, %v10883_v19  ;;  %v8114_v18 = vadd.f32 %v22189_v10, %v7961_v16 }
 0x6c4   : > { %v7968_v48 = vadd.f32 %v10885_v21, %v7731_v31  ;;  %v10886_v52 = vpop.f32.mrb[4].mxu1 }
 0x6c5   : > { %v10887_v30 = vpop.f32.mrb[5].mxu1 }
 0x6c6   : > { %v10888_v46 = vadd.f32 %v10887_v30, %v10886_v52  ;;  %v8121_v39 = vadd.f32 %v22190_v38, %v7968_v48 }
 0x6c8   : > { %v7975_v1 = vadd.f32 %v10888_v46, %v7742_v11  ;;  %v10889_v57 = vpop.f32.mrb[6].mxu1 }
 0x6c9   : > { %v10890_v40 = vpop.f32.mrb[7].mxu1 }
 0x6ca   : > { %v10891_v36 = vadd.f32 %v10890_v40, %v10889_v57  ;;  %v8128_v53 = vadd.f32 %v22191_v34, %v7975_v1 }
 0x6cc   : > { %v7982_v25 = vadd.f32 %v10891_v36, %v7753_v47  ;;  %v10892_v17 = vpop.f32.mrb[8].mxu1 }
 0x6cd   : > { %v10893_v41 = vpop.f32.mrb[9].mxu1 }
 0x6ce   : > { %v10894_v63 = vadd.f32 %v10893_v41, %v10892_v17  ;;  %v8135_v14 = vadd.f32 %v22192_v33, %v7982_v25 }
 0x6d0   : > { %v7989_v50 = vadd.f32 %v10894_v63, %v7764_v60  ;;  %v10895_v28 = vpop.f32.mrb[10].mxu1  ;;  %v22198_v60 = vld [vmem:[#allocation27_spill] sm:$0xff] }
 0x6d1   : > { %v10896_v27 = vpop.f32.mrb[11].mxu1 }
 0x6d2   : > { %v10897_v31 = vadd.f32 %v10896_v27, %v10895_v28  ;;  %v8142_v7 = vadd.f32 %v22193_v12, %v7989_v50 }
 0x6d4   : > { %v7996_v43 = vadd.f32 %v10897_v31, %v7775_v45  ;;  %v10898_v9 = vpop.f32.mrb[12].mxu1 }
 0x6d5   : > { %v10899_v26 = vpop.f32.mrb[13].mxu1 }
 0x6d6   : > { %v10900_v11 = vadd.f32 %v10899_v26, %v10898_v9  ;;  %v8149_v8 = vadd.f32 %v22194_v42, %v7996_v43 }
 0x6d8   : > { %v8003_v44 = vadd.f32 %v10900_v11, %v7786_v62 }
 0x6da   : > { %v8156_v2 = vadd.f32 %v22195_v4, %v8003_v44 }
 0x75a   : > { %v12019_v47 = vpop.f32.mrb[14].mxu1 }
 0x75b   : > { %v13355_v49 = vadd.f32 %v12019_v47, %v8114_v18  ;;  %v8926_v51 = vpop.f32.mrb[15].mxu1 }
 0x75c   : > { %v13357_v6 = vadd.f32 %v8926_v51, %v8107_v22 }
 0x75d   : > { %v13356_v58 = vadd.f32 %v13355_v49, %v22197_v54 }
 0x75e   : > { %v13358_v55 = vadd.f32 %v13357_v6, %v22198_v60 }
 0x75f   : > { %v9102_v0 = vmax.f32 %v13356_v58, 0.0 }
 0x760   : > { %v9101_v56 = vmax.f32 %v13358_v55, 0.0 }
 0x761   : > { %9110 = vst [vmem:[%s19993_s12 + $0x8] sm:$0xff] %v9102_v0 }
 0x762   : > { %9109 = vst [vmem:[%s19993_s12] sm:$0xff] %v9101_v56 }
 0x77a   : > { %v12066_v20 = vpop.f32.mrb[16].mxu1 }
 0x77b   : > { %v13359_v15 = vadd.f32 %v12066_v20, %v8128_v53  ;;  %v9067_v45 = vpop.f32.mrb[17].mxu1 }
 0x77c   : > { %v13360_v59 = vadd.f32 %v9067_v45, %v8121_v39 }
 0x77d   : > { %v9104_v3 = vmax.f32 %v13359_v15, 0.0 }
 0x77e   : > { %v9103_v32 = vmax.f32 %v13360_v59, 0.0  ;;  %v12069_v37 = vpop.f32.mrb[18].mxu1 }
 0x77f   : > { %9112 = vst [vmem:[%s19993_s12 + $0x18] sm:$0xff] %v9104_v3  ;;  %v13361_v24 = vadd.f32 %v12069_v37, %v8142_v7  ;;  %v9079_v62 = vpop.f32.mrb[19].mxu1 }
 0x780   : > { %9111 = vst [vmem:[%s19993_s12 + $0x10] sm:$0xff] %v9103_v32  ;;  %v13362_v35 = vadd.f32 %v9079_v62, %v8135_v14 }
 0x781   : > { %v9106_v5 = vmax.f32 %v13361_v24, 0.0 }
 0x782   : > { %v9105_v61 = vmax.f32 %v13362_v35, 0.0  ;;  %v12072_v23 = vpop.f32.mrb[20].mxu1 }
 0x783   : > { %9114 = vst [vmem:[%s19993_s12 + $0x28] sm:$0xff] %v9106_v5  ;;  %v13363_v29 = vadd.f32 %v12072_v23, %v8156_v2  ;;  %v9091_v22 = vpop.f32.mrb[21].mxu1 }
 0x784   : > { %9113 = vst [vmem:[%s19993_s12 + $0x20] sm:$0xff] %v9105_v61  ;;  %v13364_v16 = vadd.f32 %v9091_v22, %v8149_v8 }
 0x785   : > { %v9108_v19 = vmax.f32 %v13363_v29, 0.0 }
 0x786   : > { %v9107_v13 = vmax.f32 %v13364_v16, 0.0 }
 0x787   : > { %9116 = vst [vmem:[%s19993_s12 + $0x38] sm:$0xff] %v9108_v19 }
 0x788   : > { %9115 = vst [vmem:[%s19993_s12 + $0x30] sm:$0xff] %v9107_v13 }
 0x789   : > { %13844 = shalt.err (!%p13841_p1)
}
 0x78a   : > { %s13845_s14 = scalar_lea.hbm %s20009_s7, 1024  ;;  %s13849_s12 = scalar_lea.hbm %s22199_s30, 4096 }
 0x78b   : > { %p13846_p2 = scmp.ne.s32.totalorder %s20009_s7, %s13845_s14  ;;  %p13850_p13 = scmp.lt.u32.totalorder %s20009_s7, %s22199_s30 }
 0x78c   : > { %p13851_p4 = scmp.lt.u32.totalorder %s13849_s12, %s13845_s14  ;;  %p13853_p6 = scmp.lt.u32.totalorder %s13845_s14, %s20009_s7 }
 0x78d   : > { %p13847_p8 = pnand %p13846_p2, %p14156_p3 }
 0x78e   : > { %p13852_p9 = por %p13851_p4, %p13850_p13 }
 0x78f   : > { %p13848_p12 = pneg %p13847_p8 }
 0x790   : > { %p13854_p0 = por %p13853_p6, %p13852_p9 }
 0x792   : > { %p13855_p10 = pnand %p13854_p0, %p13848_p12 }
 0x794   : > { %13858 = shalt.err (!%p13855_p10)
}
 0x795   : > { %s13949_s26 = smov 128   ;;  %s13950_s21 = smov 8  }
 0x796   : > { %13601 = dma.vmem_to_hbm [thread:$0]  (%p14156_p3), %s20003_s1, 1024, %s20009_s7, %s9118_s16, %s13949_s26, %s13949_s26, %s13950_s21  }
 0x797 PF: > { %s22200_s2 = sld [smem:[#allocation16_spill]]  ;;  %s22201_s28 = sld [smem:[#allocation18_spill]] }
 0x798   : > { %p13628_p5 = scmp.ge.s32.totalorder %s13937_s25, 2 }
 0x79d   : > { %s9148_s9 = sand.u32 1, %s22200_s2   ;;  %p22202_p7 = scmp.ne.s32.totalorder %s22201_s28, 0 }
 0x79e   : > { %s9149_s22 = scalar_lea.sflag [#allocation5], %s9148_s9 }
 0x79f   : > { %p13618_p11 = pnand %p13628_p5, %p22202_p7 }
 0x7a1   : > { %13904 = dma.done.wait (!%p13618_p11), %s9149_s22, 1024  }
 0x7a2   : > { %13906 = vsyncadd (!%p13618_p11), %s9149_s22, 4294966272  ;;  %s23_s25 = sadd.s32 1, %s13937_s25   ;;  %s22203_s18 = smov %s13913_s19 }
 0x7a3   : > { %p20_p1 = scmp.ge.s32.totalorder %s23_s25, 6   ;;  %s22204_s19 = smov %s13917_s20 }
 0x7a4   : > { %s22205_s20 = smov %s14173_s29  ;;  %s22206_s21 = smov %s13929_s23 }
 0x7a5   : > { %s22207_s22 = smov %s13933_s24  ;;  %s22208_s23 = smov %s22211_s10 }
 0x7a6   : > { %s22209_s24 = smov %s22215_s8  ;;  %22 = sbr.rel (!%p20_p1) target bundleno = 13 (0xd), region = 97 }
 0x7ad   :  { %9154 = vsyncpa [#allocation4], 1 }
 0x7ae   :  { %9156 = vsyncpa [#allocation4 + $0x1], 1 }
 0x7af   :  { %9157 = vsyncpa [#allocation7], 1 }
 0x7b0   :  { %9158 = vsyncpa [#allocation10], 1 }
 0x7b1   :  { %9159 = vsyncpa [#allocation5], 1 }
 0x7b2   :  { %9161 = vsyncpa [#allocation5 + $0x1], 1 }

</bundles_post_ra>
